<compile_context>
chip_gen: v7x
topology: tpu7x:2x2x1
jax: 0.10.0
libtpu: 0.0.40
codegen_flags: <defaults>
</compile_context>

<pallas_src>
import functools

import numpy as np
import jax
import jax.numpy as jnp
from jax import lax
from jax.experimental import pallas as pl
from jax.experimental.pallas import tpu as pltpu

# Architecture constants of the PyTorch module.
_CONV1_K, _CONV1_S = 8, 4
_CONV2_K, _CONV2_S = 4, 2
_CONV3_K, _CONV3_S = 3, 1


# ---------------------------------------------------------------------------
# Pack-time helpers (run once, outside the kernel)
# ---------------------------------------------------------------------------
def _conv_out(sz, k, s):
    return (sz - k) // s + 1


def _round_up(n, m):
    return -(-n // m) * m


def _gather_matrix(ih, iw, k, s, in_rows):
    """0/1 matrix G, shape (k*k*RPT, in_rows), such that G @ act (act rows are
    (y, x) row-major spatial positions of an (ih, iw) grid, lanes = channels)
    stacks, tap-major, the input rows needed by every output position of a
    k x k stride-s conv.  Rows per tap (RPT) are padded to a multiple of 8 so
    every in-kernel tap slice is sublane aligned; padded rows are zero."""
    oh, ow = _conv_out(ih, k, s), _conv_out(iw, k, s)
    p = oh * ow
    rpt = _round_up(p, 8)
    G = np.zeros((k * k * rpt, in_rows), np.float32)
    for i in range(k):
        for j in range(k):
            t = i * k + j
            for oy in range(oh):
                for ox in range(ow):
                    G[t * rpt + oy * ow + ox, (s * oy + i) * iw + (s * ox + j)] = 1.0
    return G, oh, ow, rpt


def pack_params(p, in_shape, num_actions, mm_dtype=jnp.bfloat16):
    """One-time repack of PyTorch-shaped parameters into kernel layout.
    Matmul operands are cast to mm_dtype (bf16); biases stay f32."""
    C, IH, IW = int(in_shape[0]), int(in_shape[1]), int(in_shape[2])
    c1, k1 = p["w1"].shape[0], p["w1"].shape[2]
    c2, k2 = p["w2"].shape[0], p["w2"].shape[2]
    c3, k3 = p["w3"].shape[0], p["w3"].shape[2]

    o1h, o1w = _conv_out(IH, k1, _CONV1_S), _conv_out(IW, k1, _CONV1_S)
    p1p = _round_up(o1h * o1w, 8)                      # sublane-aligned rows/img
    G2, o2h, o2w, _rpt2 = _gather_matrix(o1h, o1w, k2, _CONV2_S, p1p)
    G3, o3h, o3w, _rpt3 = _gather_matrix(o2h, o2w, k3, _CONV3_S, _rpt2)
    p3 = o3h * o3w
    n1 = p["wl1"].shape[0]
    n2 = p["wl2"].shape[0]

    f32 = jnp.float32
    packed = {
        # conv1 im2col-matmul weight with x/255 folded in; rows = (c, ki, kj)
        "w1": (p["w1"].reshape(c1, C * k1 * k1).T / 255.0).astype(mm_dtype),
        "b1": p["b1"].reshape(1, c1).astype(f32),
        # conv2 / conv3: tap-major gather matrices + flattened (KK*Cin, Cout) weights
        "g2": jnp.asarray(G2).astype(mm_dtype),
        "w2": p["w2"].transpose(2, 3, 1, 0).reshape(k2 * k2 * c1, c2).astype(mm_dtype),
        "b2": p["b2"].reshape(1, c2).astype(f32),
        "g3": jnp.asarray(G3).astype(mm_dtype),
        "w3": p["w3"].transpose(2, 3, 1, 0).reshape(k3 * k3 * c2, c3).astype(mm_dtype),
        "b3": p["b3"].reshape(1, c3).astype(f32),
        # fc1: rows permuted from torch (c, y, x) flatten order to ((y, x), c)
        "wl1": (p["wl1"].reshape(n1, c3, o3h, o3w)
                .transpose(2, 3, 1, 0).reshape(p3 * c3, n1).astype(mm_dtype)),
        "bl1": p["bl1"].reshape(1, n1).astype(f32),
        "wl2": p["wl2"].T.astype(mm_dtype),
        "bl2": p["bl2"].reshape(1, n2).astype(f32),
        # dueling head: single matmul for [A | V]
        "wha": jnp.concatenate([p["wa"].T, p["wv"].T], axis=1).astype(mm_dtype),
        "bha": jnp.concatenate([p["ba"], p["bv"]]).reshape(1, num_actions + 1).astype(f32),
    }
    return packed


def _conv1_patches(x):
    """im2col for conv1 on the raw NCHW input (the only pre-kernel glue).
    Rows are (oy, ox) row-major, columns are (c, ki, kj) to match w1."""
    B, C, H, W = x.shape
    k, s = _CONV1_K, _CONV1_S
    oh, ow = _conv_out(H, k, s), _conv_out(W, k, s)
    cols = []
    for i in range(k):
        for j in range(k):
            cols.append(x[:, :, i:i + s * (oh - 1) + 1:s, j:j + s * (ow - 1) + 1:s])
    pt = jnp.stack(cols, axis=0).reshape(k, k, B, C, oh, ow)
    pt = pt.transpose(2, 4, 5, 3, 0, 1)               # (B, oh, ow, C, k, k)
    return pt.reshape(B, oh * ow, C * k * k)


def _const_index_map(ndim):
    def im(n):
        return (0,) * ndim
    return im


# ---------------------------------------------------------------------------
# The fused Pallas kernel (TB images per grid step)
# ---------------------------------------------------------------------------
def _dqn_kernel(patches_ref, w1_ref, b1_ref, g2_ref, w2_ref, b2_ref,
                g3_ref, w3_ref, b3_ref, wl1_ref, bl1_ref, wl2_ref, bl2_ref,
                wha_ref, bha_ref, out_ref,
                *, TB, P1P, KK2, RPT2, KK3, RPT3, P3, nA):
    f32 = jnp.float32

    # Hoist weight loads out of the per-image loop.
    w1 = w1_ref[...]
    mmdt = w1.dtype
    b1 = b1_ref[...]
    g2w, w2, b2 = g2_ref[...], w2_ref[...], b2_ref[...]
    g3w, w3, b3 = g3_ref[...], w3_ref[...], b3_ref[...]

    # conv1 + relu for all TB images of this block in ONE matmul (x/255 folded in w1).
    x = patches_ref[...]                                              # (TB*P1P, K1)
    h1 = jnp.dot(x, w1, preferred_element_type=f32) + b1
    h1 = jnp.maximum(h1, 0.0).astype(mmdt)                            # (TB*P1P, C1)

    # conv2 / conv3 per image: one gather matmul + one big-K weight matmul each.
    flat_rows = []
    for i in range(TB):
        h1_i = h1[i * P1P:(i + 1) * P1P, :]                           # (P1P, C1) aligned

        g2 = jnp.dot(g2w, h1_i, preferred_element_type=f32)           # (KK2*RPT2, C1)
        gc2 = jnp.concatenate(
            [g2[t * RPT2:(t + 1) * RPT2, :] for t in range(KK2)], axis=1)
        h2 = jnp.dot(gc2.astype(mmdt), w2, preferred_element_type=f32) + b2
        h2 = jnp.maximum(h2, 0.0).astype(mmdt)                        # (RPT2, C2)

        g3 = jnp.dot(g3w, h2, preferred_element_type=f32)             # (KK3*RPT3, C2)
        gc3 = jnp.concatenate(
            [g3[t * RPT3:(t + 1) * RPT3, :] for t in range(KK3)], axis=1)
        h3 = jnp.dot(gc3.astype(mmdt), w3, preferred_element_type=f32) + b3
        h3 = jnp.maximum(h3, 0.0)                                     # (RPT3, C3)

        # Flatten the P3 valid spatial rows into one lane-major feature row;
        # padded rows RPT3-1..P3 (= relu(b3) garbage) are never touched.
        flat_rows.append(jnp.concatenate(
            [h3[sp:sp + 1, :] for sp in range(P3)], axis=1))          # (1, P3*C3)

    flat = jnp.concatenate(flat_rows, axis=0).astype(mmdt)            # (TB, P3*C3)

    # Batched fc path: M = TB for every matmul.
    f1 = jnp.dot(flat, wl1_ref[...], preferred_element_type=f32) + bl1_ref[...]
    f1 = jnp.maximum(f1, 0.0).astype(mmdt)                            # (TB, N1)
    f2 = jnp.dot(f1, wl2_ref[...], preferred_element_type=f32) + bl2_ref[...]  # (TB, N2)

    # Dueling head: single matmul for [A | V]; V = last column (no reduction).
    qv = jnp.dot(f2.astype(mmdt), wha_ref[...], preferred_element_type=f32) + bha_ref[...]
    a = qv[:, 0:nA]
    v = qv[:, nA:nA + 1]
    q = a + (v - jnp.sum(a, axis=1, keepdims=True) * (1.0 / nA))      # V + A - mean(A)
    out_ref[...] = q.astype(out_ref.dtype)


def dueling_dqn_forward(x, packed, block_batch=8):
    B = x.shape[0]
    K1, C1 = packed["w1"].shape
    P1P = packed["g2"].shape[1]
    KK2 = _CONV2_K * _CONV2_K
    RPT2 = packed["g2"].shape[0] // KK2
    C2 = packed["w2"].shape[1]
    KK3 = _CONV3_K * _CONV3_K
    RPT3 = packed["g3"].shape[0] // KK3
    C3 = packed["w3"].shape[1]
    P3 = packed["wl1"].shape[0] // C3
    N1 = packed["wl1"].shape[1]
    N2 = packed["wl2"].shape[1]
    nA = packed["wha"].shape[1] - 1

    TB = max(1, min(block_batch, B))
    n_blocks = -(-B // TB)
    Bpad = n_blocks * TB

    # Host-side im2col for conv1 (the only pre-kernel glue), padded to
    # sublane-aligned rows per image, laid out 2-D, and cast to bf16 so the
    # per-step HBM stream is halved.
    patches = _conv1_patches(x)                                       # (B, P1, K1) f32
    P1 = patches.shape[1]
    patches = jnp.pad(patches, ((0, Bpad - B), (0, P1P - P1), (0, 0)))
    patches = patches.reshape(Bpad * P1P, K1).astype(packed["w1"].dtype)

    weight_keys = ("w1", "b1", "g2", "w2", "b2", "g3", "w3", "b3",
                   "wl1", "bl1", "wl2", "bl2", "wha", "bha")
    weights = [packed[k] for k in weight_keys]

    in_specs = ([pl.BlockSpec((TB * P1P, K1), lambda n: (n, 0))]
                + [pl.BlockSpec(a.shape, _const_index_map(a.ndim)) for a in weights])
    out_specs = pl.BlockSpec((TB, nA), lambda n: (n, 0))

    flops = 2 * Bpad * (P1P * K1 * C1
                        + KK2 * RPT2 * P1P * C1 + RPT2 * KK2 * C1 * C2
                        + KK3 * RPT3 * RPT2 * C2 + RPT3 * KK3 * C2 * C3
                        + P3 * C3 * N1 + N1 * N2 + N2 * (nA + 1))
    bytes_accessed = (patches.size * patches.dtype.itemsize
                      + sum(a.size * a.dtype.itemsize for a in weights)
                      + Bpad * nA * 4)

    kern = functools.partial(_dqn_kernel, TB=TB, P1P=P1P, KK2=KK2, RPT2=RPT2,
                             KK3=KK3, RPT3=RPT3, P3=P3, nA=nA)

    out = pl.pallas_call(
        kern,
        out_shape=jax.ShapeDtypeStruct((Bpad, nA), jnp.float32),
        grid=(n_blocks,),
        in_specs=in_specs,
        out_specs=out_specs,
        compiler_params=pltpu.CompilerParams(
            dimension_semantics=("parallel",)),
        cost_estimate=pl.CostEstimate(flops=int(flops), transcendentals=0,
                                      bytes_accessed=int(bytes_accessed)),
    )(patches, *weights)
    return out[:B]


# ---------------------------------------------------------------------------
# Pure-JAX reference (same math, lax.conv, f32) for verification
# ---------------------------------------------------------------------------
def reference_forward(x, p):
    x = x / 255.0
    dn = ("NCHW", "OIHW", "NCHW")
    for wk, bk, s in (("w1", "b1", _CONV1_S), ("w2", "b2", _CONV2_S), ("w3", "b3", _CONV3_S)):
        x = lax.conv_general_dilated(x, p[wk], (s, s), "VALID", dimension_numbers=dn)
        x = jnp.maximum(x + p[bk][None, :, None, None], 0.0)
    B = x.shape[0]
    h = x.reshape(B, -1)
    h = jnp.maximum(h @ p["wl1"].T + p["bl1"], 0.0)
    h = h @ p["wl2"].T + p["bl2"]
    V = h @ p["wv"].T + p["bv"]
    A = h @ p["wa"].T + p["ba"]
    return V + (A - A.mean(axis=1, keepdims=True))


def init_params(key, channels, width, height, num_actions):
    # deterministic synthetic parameters (PyTorch shapes; not a checkpoint load)
    oh = _conv_out(_conv_out(_conv_out(width, 8, 4), 4, 2), 3, 1)
    ow = _conv_out(_conv_out(_conv_out(height, 8, 4), 4, 2), 3, 1)
    conv_output_size = 64 * oh * ow

    ks = jax.random.split(key, 14)
    n = lambda k, shp, s: (s * jax.random.normal(k, shp)).astype(jnp.float32)
    return {
        "w1": n(ks[0], (32, channels, 8, 8), 0.05), "b1": n(ks[1], (32,), 0.01),
        "w2": n(ks[2], (64, 32, 4, 4), 0.05),       "b2": n(ks[3], (64,), 0.01),
        "w3": n(ks[4], (64, 64, 3, 3), 0.05),       "b3": n(ks[5], (64,), 0.01),
        "wl1": n(ks[6], (1024, conv_output_size), 0.05), "bl1": n(ks[7], (1024,), 0.01),
        "wl2": n(ks[8], (512, 1024), 0.05),              "bl2": n(ks[9], (512,), 0.01),
        "wv": n(ks[10], (1, 512), 0.05),                 "bv": n(ks[11], (1,), 0.01),
        "wa": n(ks[12], (num_actions, 512), 0.05),       "ba": n(ks[13], (num_actions,), 0.01),
    }


if __name__ == "__main__":
    # in_shape = [channels, width, height] = [4, 44, 44] (conv stack needs >= 36),
    # num_actions = 4, batch = 16 -> 2 grid steps of 8 images each.
    B, C, W, H, NA = 16, 4, 44, 44, 4
    key = jax.random.PRNGKey(0)
    kx, kp = jax.random.split(key)

    x = jax.random.uniform(kx, (B, C, W, H), minval=0.0, maxval=255.0, dtype=jnp.float32)
    params = init_params(kp, C, W, H, NA)
    packed = pack_params(params, (C, W, H), NA)   # one-time weight repack (bf16)

    fwd = jax.jit(dueling_dqn_forward)
    out = fwd(x, packed)
    jax.block_until_ready(out)

    ref = reference_forward(x, params)
    assert out.shape == (B, NA), out.shape
    # bf16 matmul operands vs. f32 reference: bf16-level tolerance.
    assert jnp.allclose(out, ref, atol=3e-2, rtol=3e-2), (out, ref)

    print("KERNEL_OK")
</pallas_src>

<mosaic_0001>
module attributes {stable_mosaic.version = 11 : i64} {
  func.func @_dqn_kernel(%arg0: i32, %arg1: memref<832x256xbf16, #tpu.memory_space<vmem>>, %arg2: memref<256x32xbf16, #tpu.memory_space<vmem>>, %arg3: memref<1x32xf32, #tpu.memory_space<vmem>>, %arg4: memref<256x104xbf16, #tpu.memory_space<vmem>>, %arg5: memref<512x64xbf16, #tpu.memory_space<vmem>>, %arg6: memref<1x64xf32, #tpu.memory_space<vmem>>, %arg7: memref<72x16xbf16, #tpu.memory_space<vmem>>, %arg8: memref<576x64xbf16, #tpu.memory_space<vmem>>, %arg9: memref<1x64xf32, #tpu.memory_space<vmem>>, %arg10: memref<256x1024xbf16, #tpu.memory_space<vmem>>, %arg11: memref<1x1024xf32, #tpu.memory_space<vmem>>, %arg12: memref<1024x512xbf16, #tpu.memory_space<vmem>>, %arg13: memref<1x512xf32, #tpu.memory_space<vmem>>, %arg14: memref<512x5xbf16, #tpu.memory_space<vmem>>, %arg15: memref<1x5xf32, #tpu.memory_space<vmem>>, %arg16: memref<8x4xf32, #tpu.memory_space<vmem>>) attributes {dimension_semantics = [#tpu.dimension_semantics<parallel>], iteration_bounds = array<i64: 2>, scalar_prefetch = 0 : i64, scratch_operands = 0 : i64, tpu.core_type = #tpu.core_type<tc>, window_params = [{transform_indices = @transform_0, window_bounds = array<i64: 832, 256>}, {pipeline_mode = #tpu.pipeline_mode<synchronous>, transform_indices = @transform_1, window_bounds = array<i64: 256, 32>}, {pipeline_mode = #tpu.pipeline_mode<synchronous>, transform_indices = @transform_2, window_bounds = array<i64: 1, 32>}, {pipeline_mode = #tpu.pipeline_mode<synchronous>, transform_indices = @transform_3, window_bounds = array<i64: 256, 104>}, {pipeline_mode = #tpu.pipeline_mode<synchronous>, transform_indices = @transform_4, window_bounds = array<i64: 512, 64>}, {pipeline_mode = #tpu.pipeline_mode<synchronous>, transform_indices = @transform_5, window_bounds = array<i64: 1, 64>}, {pipeline_mode = #tpu.pipeline_mode<synchronous>, transform_indices = @transform_6, window_bounds = array<i64: 72, 16>}, {pipeline_mode = #tpu.pipeline_mode<synchronous>, transform_indices = @transform_7, window_bounds = array<i64: 576, 64>}, {pipeline_mode = #tpu.pipeline_mode<synchronous>, transform_indices = @transform_8, window_bounds = array<i64: 1, 64>}, {pipeline_mode = #tpu.pipeline_mode<synchronous>, transform_indices = @transform_9, window_bounds = array<i64: 256, 1024>}, {pipeline_mode = #tpu.pipeline_mode<synchronous>, transform_indices = @transform_10, window_bounds = array<i64: 1, 1024>}, {pipeline_mode = #tpu.pipeline_mode<synchronous>, transform_indices = @transform_11, window_bounds = array<i64: 1024, 512>}, {pipeline_mode = #tpu.pipeline_mode<synchronous>, transform_indices = @transform_12, window_bounds = array<i64: 1, 512>}, {pipeline_mode = #tpu.pipeline_mode<synchronous>, transform_indices = @transform_13, window_bounds = array<i64: 512, 5>}, {pipeline_mode = #tpu.pipeline_mode<synchronous>, transform_indices = @transform_14, window_bounds = array<i64: 1, 5>}, {transform_indices = @transform_15, window_bounds = array<i64: 8, 4>}]} {
    %c0 = arith.constant 0 : index
    %c0_0 = arith.constant 0 : index
    %0 = vector.load %arg2[%c0, %c0_0] : memref<256x32xbf16, #tpu.memory_space<vmem>>, vector<256x32xbf16>
    %c0_1 = arith.constant 0 : index
    %c0_2 = arith.constant 0 : index
    %1 = vector.load %arg3[%c0_1, %c0_2] : memref<1x32xf32, #tpu.memory_space<vmem>>, vector<1x32xf32>
    %c0_3 = arith.constant 0 : index
    %c0_4 = arith.constant 0 : index
    %2 = vector.load %arg4[%c0_3, %c0_4] : memref<256x104xbf16, #tpu.memory_space<vmem>>, vector<256x104xbf16>
    %c0_5 = arith.constant 0 : index
    %c0_6 = arith.constant 0 : index
    %3 = vector.load %arg5[%c0_5, %c0_6] : memref<512x64xbf16, #tpu.memory_space<vmem>>, vector<512x64xbf16>
    %c0_7 = arith.constant 0 : index
    %c0_8 = arith.constant 0 : index
    %4 = vector.load %arg6[%c0_7, %c0_8] : memref<1x64xf32, #tpu.memory_space<vmem>>, vector<1x64xf32>
    %c0_9 = arith.constant 0 : index
    %c0_10 = arith.constant 0 : index
    %5 = vector.load %arg7[%c0_9, %c0_10] : memref<72x16xbf16, #tpu.memory_space<vmem>>, vector<72x16xbf16>
    %c0_11 = arith.constant 0 : index
    %c0_12 = arith.constant 0 : index
    %6 = vector.load %arg8[%c0_11, %c0_12] : memref<576x64xbf16, #tpu.memory_space<vmem>>, vector<576x64xbf16>
    %c0_13 = arith.constant 0 : index
    %c0_14 = arith.constant 0 : index
    %7 = vector.load %arg9[%c0_13, %c0_14] : memref<1x64xf32, #tpu.memory_space<vmem>>, vector<1x64xf32>
    %c0_15 = arith.constant 0 : index
    %c0_16 = arith.constant 0 : index
    %8 = vector.load %arg1[%c0_15, %c0_16] : memref<832x256xbf16, #tpu.memory_space<vmem>>, vector<832x256xbf16>
    %cst = arith.constant dense<0.000000e+00> : vector<832x32xf32>
    %9 = tpu.matmul %8, %0, %cst {dimension_numbers = #tpu.dot_dimension_numbers<[1], [0], [0], [1], [0, 0, 1, 1], [], []>} : vector<832x256xbf16>, vector<256x32xbf16>, vector<832x32xf32> -> vector<832x32xf32>
    %10 = vector.broadcast %1 : vector<1x32xf32> to vector<832x32xf32>
    %11 = arith.addf %9, %10 : vector<832x32xf32>
    %cst_17 = arith.constant 0.000000e+00 : f32
    %12 = vector.broadcast %cst_17 : f32 to vector<832x32xf32>
    %13 = arith.maximumf %11, %12 : vector<832x32xf32>
    %14 = arith.truncf %13 : vector<832x32xf32> to vector<832x32xbf16>
    %15 = vector.extract_strided_slice %14 {offsets = [0, 0], sizes = [104, 32], strides = [1, 1]} : vector<832x32xbf16> to vector<104x32xbf16>
    %cst_18 = arith.constant dense<0.000000e+00> : vector<256x32xf32>
    %16 = tpu.matmul %2, %15, %cst_18 {dimension_numbers = #tpu.dot_dimension_numbers<[1], [0], [0], [1], [0, 0, 1, 1], [], []>} : vector<256x104xbf16>, vector<104x32xbf16>, vector<256x32xf32> -> vector<256x32xf32>
    %17 = vector.extract_strided_slice %16 {offsets = [0, 0], sizes = [16, 32], strides = [1, 1]} : vector<256x32xf32> to vector<16x32xf32>
    %18 = vector.extract_strided_slice %16 {offsets = [16, 0], sizes = [16, 32], strides = [1, 1]} : vector<256x32xf32> to vector<16x32xf32>
    %19 = vector.extract_strided_slice %16 {offsets = [32, 0], sizes = [16, 32], strides = [1, 1]} : vector<256x32xf32> to vector<16x32xf32>
    %20 = vector.extract_strided_slice %16 {offsets = [48, 0], sizes = [16, 32], strides = [1, 1]} : vector<256x32xf32> to vector<16x32xf32>
    %21 = vector.extract_strided_slice %16 {offsets = [64, 0], sizes = [16, 32], strides = [1, 1]} : vector<256x32xf32> to vector<16x32xf32>
    %22 = vector.extract_strided_slice %16 {offsets = [80, 0], sizes = [16, 32], strides = [1, 1]} : vector<256x32xf32> to vector<16x32xf32>
    %23 = vector.extract_strided_slice %16 {offsets = [96, 0], sizes = [16, 32], strides = [1, 1]} : vector<256x32xf32> to vector<16x32xf32>
    %24 = vector.extract_strided_slice %16 {offsets = [112, 0], sizes = [16, 32], strides = [1, 1]} : vector<256x32xf32> to vector<16x32xf32>
    %25 = vector.extract_strided_slice %16 {offsets = [128, 0], sizes = [16, 32], strides = [1, 1]} : vector<256x32xf32> to vector<16x32xf32>
    %26 = vector.extract_strided_slice %16 {offsets = [144, 0], sizes = [16, 32], strides = [1, 1]} : vector<256x32xf32> to vector<16x32xf32>
    %27 = vector.extract_strided_slice %16 {offsets = [160, 0], sizes = [16, 32], strides = [1, 1]} : vector<256x32xf32> to vector<16x32xf32>
    %28 = vector.extract_strided_slice %16 {offsets = [176, 0], sizes = [16, 32], strides = [1, 1]} : vector<256x32xf32> to vector<16x32xf32>
    %29 = vector.extract_strided_slice %16 {offsets = [192, 0], sizes = [16, 32], strides = [1, 1]} : vector<256x32xf32> to vector<16x32xf32>
    %30 = vector.extract_strided_slice %16 {offsets = [208, 0], sizes = [16, 32], strides = [1, 1]} : vector<256x32xf32> to vector<16x32xf32>
    %31 = vector.extract_strided_slice %16 {offsets = [224, 0], sizes = [16, 32], strides = [1, 1]} : vector<256x32xf32> to vector<16x32xf32>
    %32 = vector.extract_strided_slice %16 {offsets = [240, 0], sizes = [16, 32], strides = [1, 1]} : vector<256x32xf32> to vector<16x32xf32>
    %33 = tpu.concatenate %17, %18, %19, %20, %21, %22, %23, %24, %25, %26, %27, %28, %29, %30, %31, %32 in 1 : vector<16x32xf32>, vector<16x32xf32>, vector<16x32xf32>, vector<16x32xf32>, vector<16x32xf32>, vector<16x32xf32>, vector<16x32xf32>, vector<16x32xf32>, vector<16x32xf32>, vector<16x32xf32>, vector<16x32xf32>, vector<16x32xf32>, vector<16x32xf32>, vector<16x32xf32>, vector<16x32xf32>, vector<16x32xf32> -> vector<16x512xf32>
    %34 = arith.truncf %33 : vector<16x512xf32> to vector<16x512xbf16>
    %cst_19 = arith.constant dense<0.000000e+00> : vector<16x64xf32>
    %35 = tpu.matmul %34, %3, %cst_19 {dimension_numbers = #tpu.dot_dimension_numbers<[1], [0], [0], [1], [0, 0, 1, 1], [], []>} : vector<16x512xbf16>, vector<512x64xbf16>, vector<16x64xf32> -> vector<16x64xf32>
    %36 = vector.broadcast %4 : vector<1x64xf32> to vector<16x64xf32>
    %37 = arith.addf %35, %36 : vector<16x64xf32>
    %cst_20 = arith.constant 0.000000e+00 : f32
    %38 = vector.broadcast %cst_20 : f32 to vector<16x64xf32>
    %39 = arith.maximumf %37, %38 : vector<16x64xf32>
    %40 = arith.truncf %39 : vector<16x64xf32> to vector<16x64xbf16>
    %cst_21 = arith.constant dense<0.000000e+00> : vector<72x64xf32>
    %41 = tpu.matmul %5, %40, %cst_21 {dimension_numbers = #tpu.dot_dimension_numbers<[1], [0], [0], [1], [0, 0, 1, 1], [], []>} : vector<72x16xbf16>, vector<16x64xbf16>, vector<72x64xf32> -> vector<72x64xf32>
    %42 = vector.extract_strided_slice %41 {offsets = [0, 0], sizes = [8, 64], strides = [1, 1]} : vector<72x64xf32> to vector<8x64xf32>
    %43 = vector.extract_strided_slice %41 {offsets = [8, 0], sizes = [8, 64], strides = [1, 1]} : vector<72x64xf32> to vector<8x64xf32>
    %44 = vector.extract_strided_slice %41 {offsets = [16, 0], sizes = [8, 64], strides = [1, 1]} : vector<72x64xf32> to vector<8x64xf32>
    %45 = vector.extract_strided_slice %41 {offsets = [24, 0], sizes = [8, 64], strides = [1, 1]} : vector<72x64xf32> to vector<8x64xf32>
    %46 = vector.extract_strided_slice %41 {offsets = [32, 0], sizes = [8, 64], strides = [1, 1]} : vector<72x64xf32> to vector<8x64xf32>
    %47 = vector.extract_strided_slice %41 {offsets = [40, 0], sizes = [8, 64], strides = [1, 1]} : vector<72x64xf32> to vector<8x64xf32>
    %48 = vector.extract_strided_slice %41 {offsets = [48, 0], sizes = [8, 64], strides = [1, 1]} : vector<72x64xf32> to vector<8x64xf32>
    %49 = vector.extract_strided_slice %41 {offsets = [56, 0], sizes = [8, 64], strides = [1, 1]} : vector<72x64xf32> to vector<8x64xf32>
    %50 = vector.extract_strided_slice %41 {offsets = [64, 0], sizes = [8, 64], strides = [1, 1]} : vector<72x64xf32> to vector<8x64xf32>
    %51 = tpu.concatenate %42, %43, %44, %45, %46, %47, %48, %49, %50 in 1 : vector<8x64xf32>, vector<8x64xf32>, vector<8x64xf32>, vector<8x64xf32>, vector<8x64xf32>, vector<8x64xf32>, vector<8x64xf32>, vector<8x64xf32>, vector<8x64xf32> -> vector<8x576xf32>
    %52 = arith.truncf %51 : vector<8x576xf32> to vector<8x576xbf16>
    %cst_22 = arith.constant dense<0.000000e+00> : vector<8x64xf32>
    %53 = tpu.matmul %52, %6, %cst_22 {dimension_numbers = #tpu.dot_dimension_numbers<[1], [0], [0], [1], [0, 0, 1, 1], [], []>} : vector<8x576xbf16>, vector<576x64xbf16>, vector<8x64xf32> -> vector<8x64xf32>
    %54 = vector.broadcast %7 : vector<1x64xf32> to vector<8x64xf32>
    %55 = arith.addf %53, %54 : vector<8x64xf32>
    %cst_23 = arith.constant 0.000000e+00 : f32
    %56 = vector.broadcast %cst_23 : f32 to vector<8x64xf32>
    %57 = arith.maximumf %55, %56 : vector<8x64xf32>
    %58 = vector.extract_strided_slice %57 {offsets = [0, 0], sizes = [1, 64], strides = [1, 1]} : vector<8x64xf32> to vector<1x64xf32>
    %59 = vector.extract_strided_slice %57 {offsets = [1, 0], sizes = [1, 64], strides = [1, 1]} : vector<8x64xf32> to vector<1x64xf32>
    %60 = vector.extract_strided_slice %57 {offsets = [2, 0], sizes = [1, 64], strides = [1, 1]} : vector<8x64xf32> to vector<1x64xf32>
    %61 = vector.extract_strided_slice %57 {offsets = [3, 0], sizes = [1, 64], strides = [1, 1]} : vector<8x64xf32> to vector<1x64xf32>
    %62 = tpu.concatenate %58, %59, %60, %61 in 1 : vector<1x64xf32>, vector<1x64xf32>, vector<1x64xf32>, vector<1x64xf32> -> vector<1x256xf32>
    %63 = vector.extract_strided_slice %14 {offsets = [104, 0], sizes = [104, 32], strides = [1, 1]} : vector<832x32xbf16> to vector<104x32xbf16>
    %cst_24 = arith.constant dense<0.000000e+00> : vector<256x32xf32>
    %64 = tpu.matmul %2, %63, %cst_24 {dimension_numbers = #tpu.dot_dimension_numbers<[1], [0], [0], [1], [0, 0, 1, 1], [], []>} : vector<256x104xbf16>, vector<104x32xbf16>, vector<256x32xf32> -> vector<256x32xf32>
    %65 = vector.extract_strided_slice %64 {offsets = [0, 0], sizes = [16, 32], strides = [1, 1]} : vector<256x32xf32> to vector<16x32xf32>
    %66 = vector.extract_strided_slice %64 {offsets = [16, 0], sizes = [16, 32], strides = [1, 1]} : vector<256x32xf32> to vector<16x32xf32>
    %67 = vector.extract_strided_slice %64 {offsets = [32, 0], sizes = [16, 32], strides = [1, 1]} : vector<256x32xf32> to vector<16x32xf32>
    %68 = vector.extract_strided_slice %64 {offsets = [48, 0], sizes = [16, 32], strides = [1, 1]} : vector<256x32xf32> to vector<16x32xf32>
    %69 = vector.extract_strided_slice %64 {offsets = [64, 0], sizes = [16, 32], strides = [1, 1]} : vector<256x32xf32> to vector<16x32xf32>
    %70 = vector.extract_strided_slice %64 {offsets = [80, 0], sizes = [16, 32], strides = [1, 1]} : vector<256x32xf32> to vector<16x32xf32>
    %71 = vector.extract_strided_slice %64 {offsets = [96, 0], sizes = [16, 32], strides = [1, 1]} : vector<256x32xf32> to vector<16x32xf32>
    %72 = vector.extract_strided_slice %64 {offsets = [112, 0], sizes = [16, 32], strides = [1, 1]} : vector<256x32xf32> to vector<16x32xf32>
    %73 = vector.extract_strided_slice %64 {offsets = [128, 0], sizes = [16, 32], strides = [1, 1]} : vector<256x32xf32> to vector<16x32xf32>
    %74 = vector.extract_strided_slice %64 {offsets = [144, 0], sizes = [16, 32], strides = [1, 1]} : vector<256x32xf32> to vector<16x32xf32>
    %75 = vector.extract_strided_slice %64 {offsets = [160, 0], sizes = [16, 32], strides = [1, 1]} : vector<256x32xf32> to vector<16x32xf32>
    %76 = vector.extract_strided_slice %64 {offsets = [176, 0], sizes = [16, 32], strides = [1, 1]} : vector<256x32xf32> to vector<16x32xf32>
    %77 = vector.extract_strided_slice %64 {offsets = [192, 0], sizes = [16, 32], strides = [1, 1]} : vector<256x32xf32> to vector<16x32xf32>
    %78 = vector.extract_strided_slice %64 {offsets = [208, 0], sizes = [16, 32], strides = [1, 1]} : vector<256x32xf32> to vector<16x32xf32>
    %79 = vector.extract_strided_slice %64 {offsets = [224, 0], sizes = [16, 32], strides = [1, 1]} : vector<256x32xf32> to vector<16x32xf32>
    %80 = vector.extract_strided_slice %64 {offsets = [240, 0], sizes = [16, 32], strides = [1, 1]} : vector<256x32xf32> to vector<16x32xf32>
    %81 = tpu.concatenate %65, %66, %67, %68, %69, %70, %71, %72, %73, %74, %75, %76, %77, %78, %79, %80 in 1 : vector<16x32xf32>, vector<16x32xf32>, vector<16x32xf32>, vector<16x32xf32>, vector<16x32xf32>, vector<16x32xf32>, vector<16x32xf32>, vector<16x32xf32>, vector<16x32xf32>, vector<16x32xf32>, vector<16x32xf32>, vector<16x32xf32>, vector<16x32xf32>, vector<16x32xf32>, vector<16x32xf32>, vector<16x32xf32> -> vector<16x512xf32>
    %82 = arith.truncf %81 : vector<16x512xf32> to vector<16x512xbf16>
    %cst_25 = arith.constant dense<0.000000e+00> : vector<16x64xf32>
    %83 = tpu.matmul %82, %3, %cst_25 {dimension_numbers = #tpu.dot_dimension_numbers<[1], [0], [0], [1], [0, 0, 1, 1], [], []>} : vector<16x512xbf16>, vector<512x64xbf16>, vector<16x64xf32> -> vector<16x64xf32>
    %84 = vector.broadcast %4 : vector<1x64xf32> to vector<16x64xf32>
    %85 = arith.addf %83, %84 : vector<16x64xf32>
    %cst_26 = arith.constant 0.000000e+00 : f32
    %86 = vector.broadcast %cst_26 : f32 to vector<16x64xf32>
    %87 = arith.maximumf %85, %86 : vector<16x64xf32>
    %88 = arith.truncf %87 : vector<16x64xf32> to vector<16x64xbf16>
    %cst_27 = arith.constant dense<0.000000e+00> : vector<72x64xf32>
    %89 = tpu.matmul %5, %88, %cst_27 {dimension_numbers = #tpu.dot_dimension_numbers<[1], [0], [0], [1], [0, 0, 1, 1], [], []>} : vector<72x16xbf16>, vector<16x64xbf16>, vector<72x64xf32> -> vector<72x64xf32>
    %90 = vector.extract_strided_slice %89 {offsets = [0, 0], sizes = [8, 64], strides = [1, 1]} : vector<72x64xf32> to vector<8x64xf32>
    %91 = vector.extract_strided_slice %89 {offsets = [8, 0], sizes = [8, 64], strides = [1, 1]} : vector<72x64xf32> to vector<8x64xf32>
    %92 = vector.extract_strided_slice %89 {offsets = [16, 0], sizes = [8, 64], strides = [1, 1]} : vector<72x64xf32> to vector<8x64xf32>
    %93 = vector.extract_strided_slice %89 {offsets = [24, 0], sizes = [8, 64], strides = [1, 1]} : vector<72x64xf32> to vector<8x64xf32>
    %94 = vector.extract_strided_slice %89 {offsets = [32, 0], sizes = [8, 64], strides = [1, 1]} : vector<72x64xf32> to vector<8x64xf32>
    %95 = vector.extract_strided_slice %89 {offsets = [40, 0], sizes = [8, 64], strides = [1, 1]} : vector<72x64xf32> to vector<8x64xf32>
    %96 = vector.extract_strided_slice %89 {offsets = [48, 0], sizes = [8, 64], strides = [1, 1]} : vector<72x64xf32> to vector<8x64xf32>
    %97 = vector.extract_strided_slice %89 {offsets = [56, 0], sizes = [8, 64], strides = [1, 1]} : vector<72x64xf32> to vector<8x64xf32>
    %98 = vector.extract_strided_slice %89 {offsets = [64, 0], sizes = [8, 64], strides = [1, 1]} : vector<72x64xf32> to vector<8x64xf32>
    %99 = tpu.concatenate %90, %91, %92, %93, %94, %95, %96, %97, %98 in 1 : vector<8x64xf32>, vector<8x64xf32>, vector<8x64xf32>, vector<8x64xf32>, vector<8x64xf32>, vector<8x64xf32>, vector<8x64xf32>, vector<8x64xf32>, vector<8x64xf32> -> vector<8x576xf32>
    %100 = arith.truncf %99 : vector<8x576xf32> to vector<8x576xbf16>
    %cst_28 = arith.constant dense<0.000000e+00> : vector<8x64xf32>
    %101 = tpu.matmul %100, %6, %cst_28 {dimension_numbers = #tpu.dot_dimension_numbers<[1], [0], [0], [1], [0, 0, 1, 1], [], []>} : vector<8x576xbf16>, vector<576x64xbf16>, vector<8x64xf32> -> vector<8x64xf32>
    %102 = vector.broadcast %7 : vector<1x64xf32> to vector<8x64xf32>
    %103 = arith.addf %101, %102 : vector<8x64xf32>
    %cst_29 = arith.constant 0.000000e+00 : f32
    %104 = vector.broadcast %cst_29 : f32 to vector<8x64xf32>
    %105 = arith.maximumf %103, %104 : vector<8x64xf32>
    %106 = vector.extract_strided_slice %105 {offsets = [0, 0], sizes = [1, 64], strides = [1, 1]} : vector<8x64xf32> to vector<1x64xf32>
    %107 = vector.extract_strided_slice %105 {offsets = [1, 0], sizes = [1, 64], strides = [1, 1]} : vector<8x64xf32> to vector<1x64xf32>
    %108 = vector.extract_strided_slice %105 {offsets = [2, 0], sizes = [1, 64], strides = [1, 1]} : vector<8x64xf32> to vector<1x64xf32>
    %109 = vector.extract_strided_slice %105 {offsets = [3, 0], sizes = [1, 64], strides = [1, 1]} : vector<8x64xf32> to vector<1x64xf32>
    %110 = tpu.concatenate %106, %107, %108, %109 in 1 : vector<1x64xf32>, vector<1x64xf32>, vector<1x64xf32>, vector<1x64xf32> -> vector<1x256xf32>
    %111 = vector.extract_strided_slice %14 {offsets = [208, 0], sizes = [104, 32], strides = [1, 1]} : vector<832x32xbf16> to vector<104x32xbf16>
    %cst_30 = arith.constant dense<0.000000e+00> : vector<256x32xf32>
    %112 = tpu.matmul %2, %111, %cst_30 {dimension_numbers = #tpu.dot_dimension_numbers<[1], [0], [0], [1], [0, 0, 1, 1], [], []>} : vector<256x104xbf16>, vector<104x32xbf16>, vector<256x32xf32> -> vector<256x32xf32>
    %113 = vector.extract_strided_slice %112 {offsets = [0, 0], sizes = [16, 32], strides = [1, 1]} : vector<256x32xf32> to vector<16x32xf32>
    %114 = vector.extract_strided_slice %112 {offsets = [16, 0], sizes = [16, 32], strides = [1, 1]} : vector<256x32xf32> to vector<16x32xf32>
    %115 = vector.extract_strided_slice %112 {offsets = [32, 0], sizes = [16, 32], strides = [1, 1]} : vector<256x32xf32> to vector<16x32xf32>
    %116 = vector.extract_strided_slice %112 {offsets = [48, 0], sizes = [16, 32], strides = [1, 1]} : vector<256x32xf32> to vector<16x32xf32>
    %117 = vector.extract_strided_slice %112 {offsets = [64, 0], sizes = [16, 32], strides = [1, 1]} : vector<256x32xf32> to vector<16x32xf32>
    %118 = vector.extract_strided_slice %112 {offsets = [80, 0], sizes = [16, 32], strides = [1, 1]} : vector<256x32xf32> to vector<16x32xf32>
    %119 = vector.extract_strided_slice %112 {offsets = [96, 0], sizes = [16, 32], strides = [1, 1]} : vector<256x32xf32> to vector<16x32xf32>
    %120 = vector.extract_strided_slice %112 {offsets = [112, 0], sizes = [16, 32], strides = [1, 1]} : vector<256x32xf32> to vector<16x32xf32>
    %121 = vector.extract_strided_slice %112 {offsets = [128, 0], sizes = [16, 32], strides = [1, 1]} : vector<256x32xf32> to vector<16x32xf32>
    %122 = vector.extract_strided_slice %112 {offsets = [144, 0], sizes = [16, 32], strides = [1, 1]} : vector<256x32xf32> to vector<16x32xf32>
    %123 = vector.extract_strided_slice %112 {offsets = [160, 0], sizes = [16, 32], strides = [1, 1]} : vector<256x32xf32> to vector<16x32xf32>
    %124 = vector.extract_strided_slice %112 {offsets = [176, 0], sizes = [16, 32], strides = [1, 1]} : vector<256x32xf32> to vector<16x32xf32>
    %125 = vector.extract_strided_slice %112 {offsets = [192, 0], sizes = [16, 32], strides = [1, 1]} : vector<256x32xf32> to vector<16x32xf32>
    %126 = vector.extract_strided_slice %112 {offsets = [208, 0], sizes = [16, 32], strides = [1, 1]} : vector<256x32xf32> to vector<16x32xf32>
    %127 = vector.extract_strided_slice %112 {offsets = [224, 0], sizes = [16, 32], strides = [1, 1]} : vector<256x32xf32> to vector<16x32xf32>
    %128 = vector.extract_strided_slice %112 {offsets = [240, 0], sizes = [16, 32], strides = [1, 1]} : vector<256x32xf32> to vector<16x32xf32>
    %129 = tpu.concatenate %113, %114, %115, %116, %117, %118, %119, %120, %121, %122, %123, %124, %125, %126, %127, %128 in 1 : vector<16x32xf32>, vector<16x32xf32>, vector<16x32xf32>, vector<16x32xf32>, vector<16x32xf32>, vector<16x32xf32>, vector<16x32xf32>, vector<16x32xf32>, vector<16x32xf32>, vector<16x32xf32>, vector<16x32xf32>, vector<16x32xf32>, vector<16x32xf32>, vector<16x32xf32>, vector<16x32xf32>, vector<16x32xf32> -> vector<16x512xf32>
    %130 = arith.truncf %129 : vector<16x512xf32> to vector<16x512xbf16>
    %cst_31 = arith.constant dense<0.000000e+00> : vector<16x64xf32>
    %131 = tpu.matmul %130, %3, %cst_31 {dimension_numbers = #tpu.dot_dimension_numbers<[1], [0], [0], [1], [0, 0, 1, 1], [], []>} : vector<16x512xbf16>, vector<512x64xbf16>, vector<16x64xf32> -> vector<16x64xf32>
    %132 = vector.broadcast %4 : vector<1x64xf32> to vector<16x64xf32>
    %133 = arith.addf %131, %132 : vector<16x64xf32>
    %cst_32 = arith.constant 0.000000e+00 : f32
    %134 = vector.broadcast %cst_32 : f32 to vector<16x64xf32>
    %135 = arith.maximumf %133, %134 : vector<16x64xf32>
    %136 = arith.truncf %135 : vector<16x64xf32> to vector<16x64xbf16>
    %cst_33 = arith.constant dense<0.000000e+00> : vector<72x64xf32>
    %137 = tpu.matmul %5, %136, %cst_33 {dimension_numbers = #tpu.dot_dimension_numbers<[1], [0], [0], [1], [0, 0, 1, 1], [], []>} : vector<72x16xbf16>, vector<16x64xbf16>, vector<72x64xf32> -> vector<72x64xf32>
    %138 = vector.extract_strided_slice %137 {offsets = [0, 0], sizes = [8, 64], strides = [1, 1]} : vector<72x64xf32> to vector<8x64xf32>
    %139 = vector.extract_strided_slice %137 {offsets = [8, 0], sizes = [8, 64], strides = [1, 1]} : vector<72x64xf32> to vector<8x64xf32>
    %140 = vector.extract_strided_slice %137 {offsets = [16, 0], sizes = [8, 64], strides = [1, 1]} : vector<72x64xf32> to vector<8x64xf32>
    %141 = vector.extract_strided_slice %137 {offsets = [24, 0], sizes = [8, 64], strides = [1, 1]} : vector<72x64xf32> to vector<8x64xf32>
    %142 = vector.extract_strided_slice %137 {offsets = [32, 0], sizes = [8, 64], strides = [1, 1]} : vector<72x64xf32> to vector<8x64xf32>
    %143 = vector.extract_strided_slice %137 {offsets = [40, 0], sizes = [8, 64], strides = [1, 1]} : vector<72x64xf32> to vector<8x64xf32>
    %144 = vector.extract_strided_slice %137 {offsets = [48, 0], sizes = [8, 64], strides = [1, 1]} : vector<72x64xf32> to vector<8x64xf32>
    %145 = vector.extract_strided_slice %137 {offsets = [56, 0], sizes = [8, 64], strides = [1, 1]} : vector<72x64xf32> to vector<8x64xf32>
    %146 = vector.extract_strided_slice %137 {offsets = [64, 0], sizes = [8, 64], strides = [1, 1]} : vector<72x64xf32> to vector<8x64xf32>
    %147 = tpu.concatenate %138, %139, %140, %141, %142, %143, %144, %145, %146 in 1 : vector<8x64xf32>, vector<8x64xf32>, vector<8x64xf32>, vector<8x64xf32>, vector<8x64xf32>, vector<8x64xf32>, vector<8x64xf32>, vector<8x64xf32>, vector<8x64xf32> -> vector<8x576xf32>
    %148 = arith.truncf %147 : vector<8x576xf32> to vector<8x576xbf16>
    %cst_34 = arith.constant dense<0.000000e+00> : vector<8x64xf32>
    %149 = tpu.matmul %148, %6, %cst_34 {dimension_numbers = #tpu.dot_dimension_numbers<[1], [0], [0], [1], [0, 0, 1, 1], [], []>} : vector<8x576xbf16>, vector<576x64xbf16>, vector<8x64xf32> -> vector<8x64xf32>
    %150 = vector.broadcast %7 : vector<1x64xf32> to vector<8x64xf32>
    %151 = arith.addf %149, %150 : vector<8x64xf32>
    %cst_35 = arith.constant 0.000000e+00 : f32
    %152 = vector.broadcast %cst_35 : f32 to vector<8x64xf32>
    %153 = arith.maximumf %151, %152 : vector<8x64xf32>
    %154 = vector.extract_strided_slice %153 {offsets = [0, 0], sizes = [1, 64], strides = [1, 1]} : vector<8x64xf32> to vector<1x64xf32>
    %155 = vector.extract_strided_slice %153 {offsets = [1, 0], sizes = [1, 64], strides = [1, 1]} : vector<8x64xf32> to vector<1x64xf32>
    %156 = vector.extract_strided_slice %153 {offsets = [2, 0], sizes = [1, 64], strides = [1, 1]} : vector<8x64xf32> to vector<1x64xf32>
    %157 = vector.extract_strided_slice %153 {offsets = [3, 0], sizes = [1, 64], strides = [1, 1]} : vector<8x64xf32> to vector<1x64xf32>
    %158 = tpu.concatenate %154, %155, %156, %157 in 1 : vector<1x64xf32>, vector<1x64xf32>, vector<1x64xf32>, vector<1x64xf32> -> vector<1x256xf32>
    %159 = vector.extract_strided_slice %14 {offsets = [312, 0], sizes = [104, 32], strides = [1, 1]} : vector<832x32xbf16> to vector<104x32xbf16>
    %cst_36 = arith.constant dense<0.000000e+00> : vector<256x32xf32>
    %160 = tpu.matmul %2, %159, %cst_36 {dimension_numbers = #tpu.dot_dimension_numbers<[1], [0], [0], [1], [0, 0, 1, 1], [], []>} : vector<256x104xbf16>, vector<104x32xbf16>, vector<256x32xf32> -> vector<256x32xf32>
    %161 = vector.extract_strided_slice %160 {offsets = [0, 0], sizes = [16, 32], strides = [1, 1]} : vector<256x32xf32> to vector<16x32xf32>
    %162 = vector.extract_strided_slice %160 {offsets = [16, 0], sizes = [16, 32], strides = [1, 1]} : vector<256x32xf32> to vector<16x32xf32>
    %163 = vector.extract_strided_slice %160 {offsets = [32, 0], sizes = [16, 32], strides = [1, 1]} : vector<256x32xf32> to vector<16x32xf32>
    %164 = vector.extract_strided_slice %160 {offsets = [48, 0], sizes = [16, 32], strides = [1, 1]} : vector<256x32xf32> to vector<16x32xf32>
    %165 = vector.extract_strided_slice %160 {offsets = [64, 0], sizes = [16, 32], strides = [1, 1]} : vector<256x32xf32> to vector<16x32xf32>
    %166 = vector.extract_strided_slice %160 {offsets = [80, 0], sizes = [16, 32], strides = [1, 1]} : vector<256x32xf32> to vector<16x32xf32>
    %167 = vector.extract_strided_slice %160 {offsets = [96, 0], sizes = [16, 32], strides = [1, 1]} : vector<256x32xf32> to vector<16x32xf32>
    %168 = vector.extract_strided_slice %160 {offsets = [112, 0], sizes = [16, 32], strides = [1, 1]} : vector<256x32xf32> to vector<16x32xf32>
    %169 = vector.extract_strided_slice %160 {offsets = [128, 0], sizes = [16, 32], strides = [1, 1]} : vector<256x32xf32> to vector<16x32xf32>
    %170 = vector.extract_strided_slice %160 {offsets = [144, 0], sizes = [16, 32], strides = [1, 1]} : vector<256x32xf32> to vector<16x32xf32>
    %171 = vector.extract_strided_slice %160 {offsets = [160, 0], sizes = [16, 32], strides = [1, 1]} : vector<256x32xf32> to vector<16x32xf32>
    %172 = vector.extract_strided_slice %160 {offsets = [176, 0], sizes = [16, 32], strides = [1, 1]} : vector<256x32xf32> to vector<16x32xf32>
    %173 = vector.extract_strided_slice %160 {offsets = [192, 0], sizes = [16, 32], strides = [1, 1]} : vector<256x32xf32> to vector<16x32xf32>
    %174 = vector.extract_strided_slice %160 {offsets = [208, 0], sizes = [16, 32], strides = [1, 1]} : vector<256x32xf32> to vector<16x32xf32>
    %175 = vector.extract_strided_slice %160 {offsets = [224, 0], sizes = [16, 32], strides = [1, 1]} : vector<256x32xf32> to vector<16x32xf32>
    %176 = vector.extract_strided_slice %160 {offsets = [240, 0], sizes = [16, 32], strides = [1, 1]} : vector<256x32xf32> to vector<16x32xf32>
    %177 = tpu.concatenate %161, %162, %163, %164, %165, %166, %167, %168, %169, %170, %171, %172, %173, %174, %175, %176 in 1 : vector<16x32xf32>, vector<16x32xf32>, vector<16x32xf32>, vector<16x32xf32>, vector<16x32xf32>, vector<16x32xf32>, vector<16x32xf32>, vector<16x32xf32>, vector<16x32xf32>, vector<16x32xf32>, vector<16x32xf32>, vector<16x32xf32>, vector<16x32xf32>, vector<16x32xf32>, vector<16x32xf32>, vector<16x32xf32> -> vector<16x512xf32>
    %178 = arith.truncf %177 : vector<16x512xf32> to vector<16x512xbf16>
    %cst_37 = arith.constant dense<0.000000e+00> : vector<16x64xf32>
    %179 = tpu.matmul %178, %3, %cst_37 {dimension_numbers = #tpu.dot_dimension_numbers<[1], [0], [0], [1], [0, 0, 1, 1], [], []>} : vector<16x512xbf16>, vector<512x64xbf16>, vector<16x64xf32> -> vector<16x64xf32>
    %180 = vector.broadcast %4 : vector<1x64xf32> to vector<16x64xf32>
    %181 = arith.addf %179, %180 : vector<16x64xf32>
    %cst_38 = arith.constant 0.000000e+00 : f32
    %182 = vector.broadcast %cst_38 : f32 to vector<16x64xf32>
    %183 = arith.maximumf %181, %182 : vector<16x64xf32>
    %184 = arith.truncf %183 : vector<16x64xf32> to vector<16x64xbf16>
    %cst_39 = arith.constant dense<0.000000e+00> : vector<72x64xf32>
    %185 = tpu.matmul %5, %184, %cst_39 {dimension_numbers = #tpu.dot_dimension_numbers<[1], [0], [0], [1], [0, 0, 1, 1], [], []>} : vector<72x16xbf16>, vector<16x64xbf16>, vector<72x64xf32> -> vector<72x64xf32>
    %186 = vector.extract_strided_slice %185 {offsets = [0, 0], sizes = [8, 64], strides = [1, 1]} : vector<72x64xf32> to vector<8x64xf32>
    %187 = vector.extract_strided_slice %185 {offsets = [8, 0], sizes = [8, 64], strides = [1, 1]} : vector<72x64xf32> to vector<8x64xf32>
    %188 = vector.extract_strided_slice %185 {offsets = [16, 0], sizes = [8, 64], strides = [1, 1]} : vector<72x64xf32> to vector<8x64xf32>
    %189 = vector.extract_strided_slice %185 {offsets = [24, 0], sizes = [8, 64], strides = [1, 1]} : vector<72x64xf32> to vector<8x64xf32>
    %190 = vector.extract_strided_slice %185 {offsets = [32, 0], sizes = [8, 64], strides = [1, 1]} : vector<72x64xf32> to vector<8x64xf32>
    %191 = vector.extract_strided_slice %185 {offsets = [40, 0], sizes = [8, 64], strides = [1, 1]} : vector<72x64xf32> to vector<8x64xf32>
    %192 = vector.extract_strided_slice %185 {offsets = [48, 0], sizes = [8, 64], strides = [1, 1]} : vector<72x64xf32> to vector<8x64xf32>
    %193 = vector.extract_strided_slice %185 {offsets = [56, 0], sizes = [8, 64], strides = [1, 1]} : vector<72x64xf32> to vector<8x64xf32>
    %194 = vector.extract_strided_slice %185 {offsets = [64, 0], sizes = [8, 64], strides = [1, 1]} : vector<72x64xf32> to vector<8x64xf32>
    %195 = tpu.concatenate %186, %187, %188, %189, %190, %191, %192, %193, %194 in 1 : vector<8x64xf32>, vector<8x64xf32>, vector<8x64xf32>, vector<8x64xf32>, vector<8x64xf32>, vector<8x64xf32>, vector<8x64xf32>, vector<8x64xf32>, vector<8x64xf32> -> vector<8x576xf32>
    %196 = arith.truncf %195 : vector<8x576xf32> to vector<8x576xbf16>
    %cst_40 = arith.constant dense<0.000000e+00> : vector<8x64xf32>
    %197 = tpu.matmul %196, %6, %cst_40 {dimension_numbers = #tpu.dot_dimension_numbers<[1], [0], [0], [1], [0, 0, 1, 1], [], []>} : vector<8x576xbf16>, vector<576x64xbf16>, vector<8x64xf32> -> vector<8x64xf32>
    %198 = vector.broadcast %7 : vector<1x64xf32> to vector<8x64xf32>
    %199 = arith.addf %197, %198 : vector<8x64xf32>
    %cst_41 = arith.constant 0.000000e+00 : f32
    %200 = vector.broadcast %cst_41 : f32 to vector<8x64xf32>
    %201 = arith.maximumf %199, %200 : vector<8x64xf32>
    %202 = vector.extract_strided_slice %201 {offsets = [0, 0], sizes = [1, 64], strides = [1, 1]} : vector<8x64xf32> to vector<1x64xf32>
    %203 = vector.extract_strided_slice %201 {offsets = [1, 0], sizes = [1, 64], strides = [1, 1]} : vector<8x64xf32> to vector<1x64xf32>
    %204 = vector.extract_strided_slice %201 {offsets = [2, 0], sizes = [1, 64], strides = [1, 1]} : vector<8x64xf32> to vector<1x64xf32>
    %205 = vector.extract_strided_slice %201 {offsets = [3, 0], sizes = [1, 64], strides = [1, 1]} : vector<8x64xf32> to vector<1x64xf32>
    %206 = tpu.concatenate %202, %203, %204, %205 in 1 : vector<1x64xf32>, vector<1x64xf32>, vector<1x64xf32>, vector<1x64xf32> -> vector<1x256xf32>
    %207 = vector.extract_strided_slice %14 {offsets = [416, 0], sizes = [104, 32], strides = [1, 1]} : vector<832x32xbf16> to vector<104x32xbf16>
    %cst_42 = arith.constant dense<0.000000e+00> : vector<256x32xf32>
    %208 = tpu.matmul %2, %207, %cst_42 {dimension_numbers = #tpu.dot_dimension_numbers<[1], [0], [0], [1], [0, 0, 1, 1], [], []>} : vector<256x104xbf16>, vector<104x32xbf16>, vector<256x32xf32> -> vector<256x32xf32>
    %209 = vector.extract_strided_slice %208 {offsets = [0, 0], sizes = [16, 32], strides = [1, 1]} : vector<256x32xf32> to vector<16x32xf32>
    %210 = vector.extract_strided_slice %208 {offsets = [16, 0], sizes = [16, 32], strides = [1, 1]} : vector<256x32xf32> to vector<16x32xf32>
    %211 = vector.extract_strided_slice %208 {offsets = [32, 0], sizes = [16, 32], strides = [1, 1]} : vector<256x32xf32> to vector<16x32xf32>
    %212 = vector.extract_strided_slice %208 {offsets = [48, 0], sizes = [16, 32], strides = [1, 1]} : vector<256x32xf32> to vector<16x32xf32>
    %213 = vector.extract_strided_slice %208 {offsets = [64, 0], sizes = [16, 32], strides = [1, 1]} : vector<256x32xf32> to vector<16x32xf32>
    %214 = vector.extract_strided_slice %208 {offsets = [80, 0], sizes = [16, 32], strides = [1, 1]} : vector<256x32xf32> to vector<16x32xf32>
    %215 = vector.extract_strided_slice %208 {offsets = [96, 0], sizes = [16, 32], strides = [1, 1]} : vector<256x32xf32> to vector<16x32xf32>
    %216 = vector.extract_strided_slice %208 {offsets = [112, 0], sizes = [16, 32], strides = [1, 1]} : vector<256x32xf32> to vector<16x32xf32>
    %217 = vector.extract_strided_slice %208 {offsets = [128, 0], sizes = [16, 32], strides = [1, 1]} : vector<256x32xf32> to vector<16x32xf32>
    %218 = vector.extract_strided_slice %208 {offsets = [144, 0], sizes = [16, 32], strides = [1, 1]} : vector<256x32xf32> to vector<16x32xf32>
    %219 = vector.extract_strided_slice %208 {offsets = [160, 0], sizes = [16, 32], strides = [1, 1]} : vector<256x32xf32> to vector<16x32xf32>
    %220 = vector.extract_strided_slice %208 {offsets = [176, 0], sizes = [16, 32], strides = [1, 1]} : vector<256x32xf32> to vector<16x32xf32>
    %221 = vector.extract_strided_slice %208 {offsets = [192, 0], sizes = [16, 32], strides = [1, 1]} : vector<256x32xf32> to vector<16x32xf32>
    %222 = vector.extract_strided_slice %208 {offsets = [208, 0], sizes = [16, 32], strides = [1, 1]} : vector<256x32xf32> to vector<16x32xf32>
    %223 = vector.extract_strided_slice %208 {offsets = [224, 0], sizes = [16, 32], strides = [1, 1]} : vector<256x32xf32> to vector<16x32xf32>
    %224 = vector.extract_strided_slice %208 {offsets = [240, 0], sizes = [16, 32], strides = [1, 1]} : vector<256x32xf32> to vector<16x32xf32>
    %225 = tpu.concatenate %209, %210, %211, %212, %213, %214, %215, %216, %217, %218, %219, %220, %221, %222, %223, %224 in 1 : vector<16x32xf32>, vector<16x32xf32>, vector<16x32xf32>, vector<16x32xf32>, vector<16x32xf32>, vector<16x32xf32>, vector<16x32xf32>, vector<16x32xf32>, vector<16x32xf32>, vector<16x32xf32>, vector<16x32xf32>, vector<16x32xf32>, vector<16x32xf32>, vector<16x32xf32>, vector<16x32xf32>, vector<16x32xf32> -> vector<16x512xf32>
    %226 = arith.truncf %225 : vector<16x512xf32> to vector<16x512xbf16>
    %cst_43 = arith.constant dense<0.000000e+00> : vector<16x64xf32>
    %227 = tpu.matmul %226, %3, %cst_43 {dimension_numbers = #tpu.dot_dimension_numbers<[1], [0], [0], [1], [0, 0, 1, 1], [], []>} : vector<16x512xbf16>, vector<512x64xbf16>, vector<16x64xf32> -> vector<16x64xf32>
    %228 = vector.broadcast %4 : vector<1x64xf32> to vector<16x64xf32>
    %229 = arith.addf %227, %228 : vector<16x64xf32>
    %cst_44 = arith.constant 0.000000e+00 : f32
    %230 = vector.broadcast %cst_44 : f32 to vector<16x64xf32>
    %231 = arith.maximumf %229, %230 : vector<16x64xf32>
    %232 = arith.truncf %231 : vector<16x64xf32> to vector<16x64xbf16>
    %cst_45 = arith.constant dense<0.000000e+00> : vector<72x64xf32>
    %233 = tpu.matmul %5, %232, %cst_45 {dimension_numbers = #tpu.dot_dimension_numbers<[1], [0], [0], [1], [0, 0, 1, 1], [], []>} : vector<72x16xbf16>, vector<16x64xbf16>, vector<72x64xf32> -> vector<72x64xf32>
    %234 = vector.extract_strided_slice %233 {offsets = [0, 0], sizes = [8, 64], strides = [1, 1]} : vector<72x64xf32> to vector<8x64xf32>
    %235 = vector.extract_strided_slice %233 {offsets = [8, 0], sizes = [8, 64], strides = [1, 1]} : vector<72x64xf32> to vector<8x64xf32>
    %236 = vector.extract_strided_slice %233 {offsets = [16, 0], sizes = [8, 64], strides = [1, 1]} : vector<72x64xf32> to vector<8x64xf32>
    %237 = vector.extract_strided_slice %233 {offsets = [24, 0], sizes = [8, 64], strides = [1, 1]} : vector<72x64xf32> to vector<8x64xf32>
    %238 = vector.extract_strided_slice %233 {offsets = [32, 0], sizes = [8, 64], strides = [1, 1]} : vector<72x64xf32> to vector<8x64xf32>
    %239 = vector.extract_strided_slice %233 {offsets = [40, 0], sizes = [8, 64], strides = [1, 1]} : vector<72x64xf32> to vector<8x64xf32>
    %240 = vector.extract_strided_slice %233 {offsets = [48, 0], sizes = [8, 64], strides = [1, 1]} : vector<72x64xf32> to vector<8x64xf32>
    %241 = vector.extract_strided_slice %233 {offsets = [56, 0], sizes = [8, 64], strides = [1, 1]} : vector<72x64xf32> to vector<8x64xf32>
    %242 = vector.extract_strided_slice %233 {offsets = [64, 0], sizes = [8, 64], strides = [1, 1]} : vector<72x64xf32> to vector<8x64xf32>
    %243 = tpu.concatenate %234, %235, %236, %237, %238, %239, %240, %241, %242 in 1 : vector<8x64xf32>, vector<8x64xf32>, vector<8x64xf32>, vector<8x64xf32>, vector<8x64xf32>, vector<8x64xf32>, vector<8x64xf32>, vector<8x64xf32>, vector<8x64xf32> -> vector<8x576xf32>
    %244 = arith.truncf %243 : vector<8x576xf32> to vector<8x576xbf16>
    %cst_46 = arith.constant dense<0.000000e+00> : vector<8x64xf32>
    %245 = tpu.matmul %244, %6, %cst_46 {dimension_numbers = #tpu.dot_dimension_numbers<[1], [0], [0], [1], [0, 0, 1, 1], [], []>} : vector<8x576xbf16>, vector<576x64xbf16>, vector<8x64xf32> -> vector<8x64xf32>
    %246 = vector.broadcast %7 : vector<1x64xf32> to vector<8x64xf32>
    %247 = arith.addf %245, %246 : vector<8x64xf32>
    %cst_47 = arith.constant 0.000000e+00 : f32
    %248 = vector.broadcast %cst_47 : f32 to vector<8x64xf32>
    %249 = arith.maximumf %247, %248 : vector<8x64xf32>
    %250 = vector.extract_strided_slice %249 {offsets = [0, 0], sizes = [1, 64], strides = [1, 1]} : vector<8x64xf32> to vector<1x64xf32>
    %251 = vector.extract_strided_slice %249 {offsets = [1, 0], sizes = [1, 64], strides = [1, 1]} : vector<8x64xf32> to vector<1x64xf32>
    %252 = vector.extract_strided_slice %249 {offsets = [2, 0], sizes = [1, 64], strides = [1, 1]} : vector<8x64xf32> to vector<1x64xf32>
    %253 = vector.extract_strided_slice %249 {offsets = [3, 0], sizes = [1, 64], strides = [1, 1]} : vector<8x64xf32> to vector<1x64xf32>
    %254 = tpu.concatenate %250, %251, %252, %253 in 1 : vector<1x64xf32>, vector<1x64xf32>, vector<1x64xf32>, vector<1x64xf32> -> vector<1x256xf32>
    %255 = vector.extract_strided_slice %14 {offsets = [520, 0], sizes = [104, 32], strides = [1, 1]} : vector<832x32xbf16> to vector<104x32xbf16>
    %cst_48 = arith.constant dense<0.000000e+00> : vector<256x32xf32>
    %256 = tpu.matmul %2, %255, %cst_48 {dimension_numbers = #tpu.dot_dimension_numbers<[1], [0], [0], [1], [0, 0, 1, 1], [], []>} : vector<256x104xbf16>, vector<104x32xbf16>, vector<256x32xf32> -> vector<256x32xf32>
    %257 = vector.extract_strided_slice %256 {offsets = [0, 0], sizes = [16, 32], strides = [1, 1]} : vector<256x32xf32> to vector<16x32xf32>
    %258 = vector.extract_strided_slice %256 {offsets = [16, 0], sizes = [16, 32], strides = [1, 1]} : vector<256x32xf32> to vector<16x32xf32>
    %259 = vector.extract_strided_slice %256 {offsets = [32, 0], sizes = [16, 32], strides = [1, 1]} : vector<256x32xf32> to vector<16x32xf32>
    %260 = vector.extract_strided_slice %256 {offsets = [48, 0], sizes = [16, 32], strides = [1, 1]} : vector<256x32xf32> to vector<16x32xf32>
    %261 = vector.extract_strided_slice %256 {offsets = [64, 0], sizes = [16, 32], strides = [1, 1]} : vector<256x32xf32> to vector<16x32xf32>
    %262 = vector.extract_strided_slice %256 {offsets = [80, 0], sizes = [16, 32], strides = [1, 1]} : vector<256x32xf32> to vector<16x32xf32>
    %263 = vector.extract_strided_slice %256 {offsets = [96, 0], sizes = [16, 32], strides = [1, 1]} : vector<256x32xf32> to vector<16x32xf32>
    %264 = vector.extract_strided_slice %256 {offsets = [112, 0], sizes = [16, 32], strides = [1, 1]} : vector<256x32xf32> to vector<16x32xf32>
    %265 = vector.extract_strided_slice %256 {offsets = [128, 0], sizes = [16, 32], strides = [1, 1]} : vector<256x32xf32> to vector<16x32xf32>
    %266 = vector.extract_strided_slice %256 {offsets = [144, 0], sizes = [16, 32], strides = [1, 1]} : vector<256x32xf32> to vector<16x32xf32>
    %267 = vector.extract_strided_slice %256 {offsets = [160, 0], sizes = [16, 32], strides = [1, 1]} : vector<256x32xf32> to vector<16x32xf32>
    %268 = vector.extract_strided_slice %256 {offsets = [176, 0], sizes = [16, 32], strides = [1, 1]} : vector<256x32xf32> to vector<16x32xf32>
    %269 = vector.extract_strided_slice %256 {offsets = [192, 0], sizes = [16, 32], strides = [1, 1]} : vector<256x32xf32> to vector<16x32xf32>
    %270 = vector.extract_strided_slice %256 {offsets = [208, 0], sizes = [16, 32], strides = [1, 1]} : vector<256x32xf32> to vector<16x32xf32>
    %271 = vector.extract_strided_slice %256 {offsets = [224, 0], sizes = [16, 32], strides = [1, 1]} : vector<256x32xf32> to vector<16x32xf32>
    %272 = vector.extract_strided_slice %256 {offsets = [240, 0], sizes = [16, 32], strides = [1, 1]} : vector<256x32xf32> to vector<16x32xf32>
    %273 = tpu.concatenate %257, %258, %259, %260, %261, %262, %263, %264, %265, %266, %267, %268, %269, %270, %271, %272 in 1 : vector<16x32xf32>, vector<16x32xf32>, vector<16x32xf32>, vector<16x32xf32>, vector<16x32xf32>, vector<16x32xf32>, vector<16x32xf32>, vector<16x32xf32>, vector<16x32xf32>, vector<16x32xf32>, vector<16x32xf32>, vector<16x32xf32>, vector<16x32xf32>, vector<16x32xf32>, vector<16x32xf32>, vector<16x32xf32> -> vector<16x512xf32>
    %274 = arith.truncf %273 : vector<16x512xf32> to vector<16x512xbf16>
    %cst_49 = arith.constant dense<0.000000e+00> : vector<16x64xf32>
    %275 = tpu.matmul %274, %3, %cst_49 {dimension_numbers = #tpu.dot_dimension_numbers<[1], [0], [0], [1], [0, 0, 1, 1], [], []>} : vector<16x512xbf16>, vector<512x64xbf16>, vector<16x64xf32> -> vector<16x64xf32>
    %276 = vector.broadcast %4 : vector<1x64xf32> to vector<16x64xf32>
    %277 = arith.addf %275, %276 : vector<16x64xf32>
    %cst_50 = arith.constant 0.000000e+00 : f32
    %278 = vector.broadcast %cst_50 : f32 to vector<16x64xf32>
    %279 = arith.maximumf %277, %278 : vector<16x64xf32>
    %280 = arith.truncf %279 : vector<16x64xf32> to vector<16x64xbf16>
    %cst_51 = arith.constant dense<0.000000e+00> : vector<72x64xf32>
    %281 = tpu.matmul %5, %280, %cst_51 {dimension_numbers = #tpu.dot_dimension_numbers<[1], [0], [0], [1], [0, 0, 1, 1], [], []>} : vector<72x16xbf16>, vector<16x64xbf16>, vector<72x64xf32> -> vector<72x64xf32>
    %282 = vector.extract_strided_slice %281 {offsets = [0, 0], sizes = [8, 64], strides = [1, 1]} : vector<72x64xf32> to vector<8x64xf32>
    %283 = vector.extract_strided_slice %281 {offsets = [8, 0], sizes = [8, 64], strides = [1, 1]} : vector<72x64xf32> to vector<8x64xf32>
    %284 = vector.extract_strided_slice %281 {offsets = [16, 0], sizes = [8, 64], strides = [1, 1]} : vector<72x64xf32> to vector<8x64xf32>
    %285 = vector.extract_strided_slice %281 {offsets = [24, 0], sizes = [8, 64], strides = [1, 1]} : vector<72x64xf32> to vector<8x64xf32>
    %286 = vector.extract_strided_slice %281 {offsets = [32, 0], sizes = [8, 64], strides = [1, 1]} : vector<72x64xf32> to vector<8x64xf32>
    %287 = vector.extract_strided_slice %281 {offsets = [40, 0], sizes = [8, 64], strides = [1, 1]} : vector<72x64xf32> to vector<8x64xf32>
    %288 = vector.extract_strided_slice %281 {offsets = [48, 0], sizes = [8, 64], strides = [1, 1]} : vector<72x64xf32> to vector<8x64xf32>
    %289 = vector.extract_strided_slice %281 {offsets = [56, 0], sizes = [8, 64], strides = [1, 1]} : vector<72x64xf32> to vector<8x64xf32>
    %290 = vector.extract_strided_slice %281 {offsets = [64, 0], sizes = [8, 64], strides = [1, 1]} : vector<72x64xf32> to vector<8x64xf32>
    %291 = tpu.concatenate %282, %283, %284, %285, %286, %287, %288, %289, %290 in 1 : vector<8x64xf32>, vector<8x64xf32>, vector<8x64xf32>, vector<8x64xf32>, vector<8x64xf32>, vector<8x64xf32>, vector<8x64xf32>, vector<8x64xf32>, vector<8x64xf32> -> vector<8x576xf32>
    %292 = arith.truncf %291 : vector<8x576xf32> to vector<8x576xbf16>
    %cst_52 = arith.constant dense<0.000000e+00> : vector<8x64xf32>
    %293 = tpu.matmul %292, %6, %cst_52 {dimension_numbers = #tpu.dot_dimension_numbers<[1], [0], [0], [1], [0, 0, 1, 1], [], []>} : vector<8x576xbf16>, vector<576x64xbf16>, vector<8x64xf32> -> vector<8x64xf32>
    %294 = vector.broadcast %7 : vector<1x64xf32> to vector<8x64xf32>
    %295 = arith.addf %293, %294 : vector<8x64xf32>
    %cst_53 = arith.constant 0.000000e+00 : f32
    %296 = vector.broadcast %cst_53 : f32 to vector<8x64xf32>
    %297 = arith.maximumf %295, %296 : vector<8x64xf32>
    %298 = vector.extract_strided_slice %297 {offsets = [0, 0], sizes = [1, 64], strides = [1, 1]} : vector<8x64xf32> to vector<1x64xf32>
    %299 = vector.extract_strided_slice %297 {offsets = [1, 0], sizes = [1, 64], strides = [1, 1]} : vector<8x64xf32> to vector<1x64xf32>
    %300 = vector.extract_strided_slice %297 {offsets = [2, 0], sizes = [1, 64], strides = [1, 1]} : vector<8x64xf32> to vector<1x64xf32>
    %301 = vector.extract_strided_slice %297 {offsets = [3, 0], sizes = [1, 64], strides = [1, 1]} : vector<8x64xf32> to vector<1x64xf32>
    %302 = tpu.concatenate %298, %299, %300, %301 in 1 : vector<1x64xf32>, vector<1x64xf32>, vector<1x64xf32>, vector<1x64xf32> -> vector<1x256xf32>
    %303 = vector.extract_strided_slice %14 {offsets = [624, 0], sizes = [104, 32], strides = [1, 1]} : vector<832x32xbf16> to vector<104x32xbf16>
    %cst_54 = arith.constant dense<0.000000e+00> : vector<256x32xf32>
    %304 = tpu.matmul %2, %303, %cst_54 {dimension_numbers = #tpu.dot_dimension_numbers<[1], [0], [0], [1], [0, 0, 1, 1], [], []>} : vector<256x104xbf16>, vector<104x32xbf16>, vector<256x32xf32> -> vector<256x32xf32>
    %305 = vector.extract_strided_slice %304 {offsets = [0, 0], sizes = [16, 32], strides = [1, 1]} : vector<256x32xf32> to vector<16x32xf32>
    %306 = vector.extract_strided_slice %304 {offsets = [16, 0], sizes = [16, 32], strides = [1, 1]} : vector<256x32xf32> to vector<16x32xf32>
    %307 = vector.extract_strided_slice %304 {offsets = [32, 0], sizes = [16, 32], strides = [1, 1]} : vector<256x32xf32> to vector<16x32xf32>
    %308 = vector.extract_strided_slice %304 {offsets = [48, 0], sizes = [16, 32], strides = [1, 1]} : vector<256x32xf32> to vector<16x32xf32>
    %309 = vector.extract_strided_slice %304 {offsets = [64, 0], sizes = [16, 32], strides = [1, 1]} : vector<256x32xf32> to vector<16x32xf32>
    %310 = vector.extract_strided_slice %304 {offsets = [80, 0], sizes = [16, 32], strides = [1, 1]} : vector<256x32xf32> to vector<16x32xf32>
    %311 = vector.extract_strided_slice %304 {offsets = [96, 0], sizes = [16, 32], strides = [1, 1]} : vector<256x32xf32> to vector<16x32xf32>
    %312 = vector.extract_strided_slice %304 {offsets = [112, 0], sizes = [16, 32], strides = [1, 1]} : vector<256x32xf32> to vector<16x32xf32>
    %313 = vector.extract_strided_slice %304 {offsets = [128, 0], sizes = [16, 32], strides = [1, 1]} : vector<256x32xf32> to vector<16x32xf32>
    %314 = vector.extract_strided_slice %304 {offsets = [144, 0], sizes = [16, 32], strides = [1, 1]} : vector<256x32xf32> to vector<16x32xf32>
    %315 = vector.extract_strided_slice %304 {offsets = [160, 0], sizes = [16, 32], strides = [1, 1]} : vector<256x32xf32> to vector<16x32xf32>
    %316 = vector.extract_strided_slice %304 {offsets = [176, 0], sizes = [16, 32], strides = [1, 1]} : vector<256x32xf32> to vector<16x32xf32>
    %317 = vector.extract_strided_slice %304 {offsets = [192, 0], sizes = [16, 32], strides = [1, 1]} : vector<256x32xf32> to vector<16x32xf32>
    %318 = vector.extract_strided_slice %304 {offsets = [208, 0], sizes = [16, 32], strides = [1, 1]} : vector<256x32xf32> to vector<16x32xf32>
    %319 = vector.extract_strided_slice %304 {offsets = [224, 0], sizes = [16, 32], strides = [1, 1]} : vector<256x32xf32> to vector<16x32xf32>
    %320 = vector.extract_strided_slice %304 {offsets = [240, 0], sizes = [16, 32], strides = [1, 1]} : vector<256x32xf32> to vector<16x32xf32>
    %321 = tpu.concatenate %305, %306, %307, %308, %309, %310, %311, %312, %313, %314, %315, %316, %317, %318, %319, %320 in 1 : vector<16x32xf32>, vector<16x32xf32>, vector<16x32xf32>, vector<16x32xf32>, vector<16x32xf32>, vector<16x32xf32>, vector<16x32xf32>, vector<16x32xf32>, vector<16x32xf32>, vector<16x32xf32>, vector<16x32xf32>, vector<16x32xf32>, vector<16x32xf32>, vector<16x32xf32>, vector<16x32xf32>, vector<16x32xf32> -> vector<16x512xf32>
    %322 = arith.truncf %321 : vector<16x512xf32> to vector<16x512xbf16>
    %cst_55 = arith.constant dense<0.000000e+00> : vector<16x64xf32>
    %323 = tpu.matmul %322, %3, %cst_55 {dimension_numbers = #tpu.dot_dimension_numbers<[1], [0], [0], [1], [0, 0, 1, 1], [], []>} : vector<16x512xbf16>, vector<512x64xbf16>, vector<16x64xf32> -> vector<16x64xf32>
    %324 = vector.broadcast %4 : vector<1x64xf32> to vector<16x64xf32>
    %325 = arith.addf %323, %324 : vector<16x64xf32>
    %cst_56 = arith.constant 0.000000e+00 : f32
    %326 = vector.broadcast %cst_56 : f32 to vector<16x64xf32>
    %327 = arith.maximumf %325, %326 : vector<16x64xf32>
    %328 = arith.truncf %327 : vector<16x64xf32> to vector<16x64xbf16>
    %cst_57 = arith.constant dense<0.000000e+00> : vector<72x64xf32>
    %329 = tpu.matmul %5, %328, %cst_57 {dimension_numbers = #tpu.dot_dimension_numbers<[1], [0], [0], [1], [0, 0, 1, 1], [], []>} : vector<72x16xbf16>, vector<16x64xbf16>, vector<72x64xf32> -> vector<72x64xf32>
    %330 = vector.extract_strided_slice %329 {offsets = [0, 0], sizes = [8, 64], strides = [1, 1]} : vector<72x64xf32> to vector<8x64xf32>
    %331 = vector.extract_strided_slice %329 {offsets = [8, 0], sizes = [8, 64], strides = [1, 1]} : vector<72x64xf32> to vector<8x64xf32>
    %332 = vector.extract_strided_slice %329 {offsets = [16, 0], sizes = [8, 64], strides = [1, 1]} : vector<72x64xf32> to vector<8x64xf32>
    %333 = vector.extract_strided_slice %329 {offsets = [24, 0], sizes = [8, 64], strides = [1, 1]} : vector<72x64xf32> to vector<8x64xf32>
    %334 = vector.extract_strided_slice %329 {offsets = [32, 0], sizes = [8, 64], strides = [1, 1]} : vector<72x64xf32> to vector<8x64xf32>
    %335 = vector.extract_strided_slice %329 {offsets = [40, 0], sizes = [8, 64], strides = [1, 1]} : vector<72x64xf32> to vector<8x64xf32>
    %336 = vector.extract_strided_slice %329 {offsets = [48, 0], sizes = [8, 64], strides = [1, 1]} : vector<72x64xf32> to vector<8x64xf32>
    %337 = vector.extract_strided_slice %329 {offsets = [56, 0], sizes = [8, 64], strides = [1, 1]} : vector<72x64xf32> to vector<8x64xf32>
    %338 = vector.extract_strided_slice %329 {offsets = [64, 0], sizes = [8, 64], strides = [1, 1]} : vector<72x64xf32> to vector<8x64xf32>
    %339 = tpu.concatenate %330, %331, %332, %333, %334, %335, %336, %337, %338 in 1 : vector<8x64xf32>, vector<8x64xf32>, vector<8x64xf32>, vector<8x64xf32>, vector<8x64xf32>, vector<8x64xf32>, vector<8x64xf32>, vector<8x64xf32>, vector<8x64xf32> -> vector<8x576xf32>
    %340 = arith.truncf %339 : vector<8x576xf32> to vector<8x576xbf16>
    %cst_58 = arith.constant dense<0.000000e+00> : vector<8x64xf32>
    %341 = tpu.matmul %340, %6, %cst_58 {dimension_numbers = #tpu.dot_dimension_numbers<[1], [0], [0], [1], [0, 0, 1, 1], [], []>} : vector<8x576xbf16>, vector<576x64xbf16>, vector<8x64xf32> -> vector<8x64xf32>
    %342 = vector.broadcast %7 : vector<1x64xf32> to vector<8x64xf32>
    %343 = arith.addf %341, %342 : vector<8x64xf32>
    %cst_59 = arith.constant 0.000000e+00 : f32
    %344 = vector.broadcast %cst_59 : f32 to vector<8x64xf32>
    %345 = arith.maximumf %343, %344 : vector<8x64xf32>
    %346 = vector.extract_strided_slice %345 {offsets = [0, 0], sizes = [1, 64], strides = [1, 1]} : vector<8x64xf32> to vector<1x64xf32>
    %347 = vector.extract_strided_slice %345 {offsets = [1, 0], sizes = [1, 64], strides = [1, 1]} : vector<8x64xf32> to vector<1x64xf32>
    %348 = vector.extract_strided_slice %345 {offsets = [2, 0], sizes = [1, 64], strides = [1, 1]} : vector<8x64xf32> to vector<1x64xf32>
    %349 = vector.extract_strided_slice %345 {offsets = [3, 0], sizes = [1, 64], strides = [1, 1]} : vector<8x64xf32> to vector<1x64xf32>
    %350 = tpu.concatenate %346, %347, %348, %349 in 1 : vector<1x64xf32>, vector<1x64xf32>, vector<1x64xf32>, vector<1x64xf32> -> vector<1x256xf32>
    %351 = vector.extract_strided_slice %14 {offsets = [728, 0], sizes = [104, 32], strides = [1, 1]} : vector<832x32xbf16> to vector<104x32xbf16>
    %cst_60 = arith.constant dense<0.000000e+00> : vector<256x32xf32>
    %352 = tpu.matmul %2, %351, %cst_60 {dimension_numbers = #tpu.dot_dimension_numbers<[1], [0], [0], [1], [0, 0, 1, 1], [], []>} : vector<256x104xbf16>, vector<104x32xbf16>, vector<256x32xf32> -> vector<256x32xf32>
    %353 = vector.extract_strided_slice %352 {offsets = [0, 0], sizes = [16, 32], strides = [1, 1]} : vector<256x32xf32> to vector<16x32xf32>
    %354 = vector.extract_strided_slice %352 {offsets = [16, 0], sizes = [16, 32], strides = [1, 1]} : vector<256x32xf32> to vector<16x32xf32>
    %355 = vector.extract_strided_slice %352 {offsets = [32, 0], sizes = [16, 32], strides = [1, 1]} : vector<256x32xf32> to vector<16x32xf32>
    %356 = vector.extract_strided_slice %352 {offsets = [48, 0], sizes = [16, 32], strides = [1, 1]} : vector<256x32xf32> to vector<16x32xf32>
    %357 = vector.extract_strided_slice %352 {offsets = [64, 0], sizes = [16, 32], strides = [1, 1]} : vector<256x32xf32> to vector<16x32xf32>
    %358 = vector.extract_strided_slice %352 {offsets = [80, 0], sizes = [16, 32], strides = [1, 1]} : vector<256x32xf32> to vector<16x32xf32>
    %359 = vector.extract_strided_slice %352 {offsets = [96, 0], sizes = [16, 32], strides = [1, 1]} : vector<256x32xf32> to vector<16x32xf32>
    %360 = vector.extract_strided_slice %352 {offsets = [112, 0], sizes = [16, 32], strides = [1, 1]} : vector<256x32xf32> to vector<16x32xf32>
    %361 = vector.extract_strided_slice %352 {offsets = [128, 0], sizes = [16, 32], strides = [1, 1]} : vector<256x32xf32> to vector<16x32xf32>
    %362 = vector.extract_strided_slice %352 {offsets = [144, 0], sizes = [16, 32], strides = [1, 1]} : vector<256x32xf32> to vector<16x32xf32>
    %363 = vector.extract_strided_slice %352 {offsets = [160, 0], sizes = [16, 32], strides = [1, 1]} : vector<256x32xf32> to vector<16x32xf32>
    %364 = vector.extract_strided_slice %352 {offsets = [176, 0], sizes = [16, 32], strides = [1, 1]} : vector<256x32xf32> to vector<16x32xf32>
    %365 = vector.extract_strided_slice %352 {offsets = [192, 0], sizes = [16, 32], strides = [1, 1]} : vector<256x32xf32> to vector<16x32xf32>
    %366 = vector.extract_strided_slice %352 {offsets = [208, 0], sizes = [16, 32], strides = [1, 1]} : vector<256x32xf32> to vector<16x32xf32>
    %367 = vector.extract_strided_slice %352 {offsets = [224, 0], sizes = [16, 32], strides = [1, 1]} : vector<256x32xf32> to vector<16x32xf32>
    %368 = vector.extract_strided_slice %352 {offsets = [240, 0], sizes = [16, 32], strides = [1, 1]} : vector<256x32xf32> to vector<16x32xf32>
    %369 = tpu.concatenate %353, %354, %355, %356, %357, %358, %359, %360, %361, %362, %363, %364, %365, %366, %367, %368 in 1 : vector<16x32xf32>, vector<16x32xf32>, vector<16x32xf32>, vector<16x32xf32>, vector<16x32xf32>, vector<16x32xf32>, vector<16x32xf32>, vector<16x32xf32>, vector<16x32xf32>, vector<16x32xf32>, vector<16x32xf32>, vector<16x32xf32>, vector<16x32xf32>, vector<16x32xf32>, vector<16x32xf32>, vector<16x32xf32> -> vector<16x512xf32>
    %370 = arith.truncf %369 : vector<16x512xf32> to vector<16x512xbf16>
    %cst_61 = arith.constant dense<0.000000e+00> : vector<16x64xf32>
    %371 = tpu.matmul %370, %3, %cst_61 {dimension_numbers = #tpu.dot_dimension_numbers<[1], [0], [0], [1], [0, 0, 1, 1], [], []>} : vector<16x512xbf16>, vector<512x64xbf16>, vector<16x64xf32> -> vector<16x64xf32>
    %372 = vector.broadcast %4 : vector<1x64xf32> to vector<16x64xf32>
    %373 = arith.addf %371, %372 : vector<16x64xf32>
    %cst_62 = arith.constant 0.000000e+00 : f32
    %374 = vector.broadcast %cst_62 : f32 to vector<16x64xf32>
    %375 = arith.maximumf %373, %374 : vector<16x64xf32>
    %376 = arith.truncf %375 : vector<16x64xf32> to vector<16x64xbf16>
    %cst_63 = arith.constant dense<0.000000e+00> : vector<72x64xf32>
    %377 = tpu.matmul %5, %376, %cst_63 {dimension_numbers = #tpu.dot_dimension_numbers<[1], [0], [0], [1], [0, 0, 1, 1], [], []>} : vector<72x16xbf16>, vector<16x64xbf16>, vector<72x64xf32> -> vector<72x64xf32>
    %378 = vector.extract_strided_slice %377 {offsets = [0, 0], sizes = [8, 64], strides = [1, 1]} : vector<72x64xf32> to vector<8x64xf32>
    %379 = vector.extract_strided_slice %377 {offsets = [8, 0], sizes = [8, 64], strides = [1, 1]} : vector<72x64xf32> to vector<8x64xf32>
    %380 = vector.extract_strided_slice %377 {offsets = [16, 0], sizes = [8, 64], strides = [1, 1]} : vector<72x64xf32> to vector<8x64xf32>
    %381 = vector.extract_strided_slice %377 {offsets = [24, 0], sizes = [8, 64], strides = [1, 1]} : vector<72x64xf32> to vector<8x64xf32>
    %382 = vector.extract_strided_slice %377 {offsets = [32, 0], sizes = [8, 64], strides = [1, 1]} : vector<72x64xf32> to vector<8x64xf32>
    %383 = vector.extract_strided_slice %377 {offsets = [40, 0], sizes = [8, 64], strides = [1, 1]} : vector<72x64xf32> to vector<8x64xf32>
    %384 = vector.extract_strided_slice %377 {offsets = [48, 0], sizes = [8, 64], strides = [1, 1]} : vector<72x64xf32> to vector<8x64xf32>
    %385 = vector.extract_strided_slice %377 {offsets = [56, 0], sizes = [8, 64], strides = [1, 1]} : vector<72x64xf32> to vector<8x64xf32>
    %386 = vector.extract_strided_slice %377 {offsets = [64, 0], sizes = [8, 64], strides = [1, 1]} : vector<72x64xf32> to vector<8x64xf32>
    %387 = tpu.concatenate %378, %379, %380, %381, %382, %383, %384, %385, %386 in 1 : vector<8x64xf32>, vector<8x64xf32>, vector<8x64xf32>, vector<8x64xf32>, vector<8x64xf32>, vector<8x64xf32>, vector<8x64xf32>, vector<8x64xf32>, vector<8x64xf32> -> vector<8x576xf32>
    %388 = arith.truncf %387 : vector<8x576xf32> to vector<8x576xbf16>
    %cst_64 = arith.constant dense<0.000000e+00> : vector<8x64xf32>
    %389 = tpu.matmul %388, %6, %cst_64 {dimension_numbers = #tpu.dot_dimension_numbers<[1], [0], [0], [1], [0, 0, 1, 1], [], []>} : vector<8x576xbf16>, vector<576x64xbf16>, vector<8x64xf32> -> vector<8x64xf32>
    %390 = vector.broadcast %7 : vector<1x64xf32> to vector<8x64xf32>
    %391 = arith.addf %389, %390 : vector<8x64xf32>
    %cst_65 = arith.constant 0.000000e+00 : f32
    %392 = vector.broadcast %cst_65 : f32 to vector<8x64xf32>
    %393 = arith.maximumf %391, %392 : vector<8x64xf32>
    %394 = vector.extract_strided_slice %393 {offsets = [0, 0], sizes = [1, 64], strides = [1, 1]} : vector<8x64xf32> to vector<1x64xf32>
    %395 = vector.extract_strided_slice %393 {offsets = [1, 0], sizes = [1, 64], strides = [1, 1]} : vector<8x64xf32> to vector<1x64xf32>
    %396 = vector.extract_strided_slice %393 {offsets = [2, 0], sizes = [1, 64], strides = [1, 1]} : vector<8x64xf32> to vector<1x64xf32>
    %397 = vector.extract_strided_slice %393 {offsets = [3, 0], sizes = [1, 64], strides = [1, 1]} : vector<8x64xf32> to vector<1x64xf32>
    %398 = tpu.concatenate %394, %395, %396, %397 in 1 : vector<1x64xf32>, vector<1x64xf32>, vector<1x64xf32>, vector<1x64xf32> -> vector<1x256xf32>
    %399 = tpu.concatenate %62, %110, %158, %206, %254, %302, %350, %398 in 0 : vector<1x256xf32>, vector<1x256xf32>, vector<1x256xf32>, vector<1x256xf32>, vector<1x256xf32>, vector<1x256xf32>, vector<1x256xf32>, vector<1x256xf32> -> vector<8x256xf32>
    %400 = arith.truncf %399 : vector<8x256xf32> to vector<8x256xbf16>
    %c0_66 = arith.constant 0 : index
    %c0_67 = arith.constant 0 : index
    %401 = vector.load %arg10[%c0_66, %c0_67] : memref<256x1024xbf16, #tpu.memory_space<vmem>>, vector<256x1024xbf16>
    %cst_68 = arith.constant dense<0.000000e+00> : vector<8x1024xf32>
    %402 = tpu.matmul %400, %401, %cst_68 {dimension_numbers = #tpu.dot_dimension_numbers<[1], [0], [0], [1], [0, 0, 1, 1], [], []>} : vector<8x256xbf16>, vector<256x1024xbf16>, vector<8x1024xf32> -> vector<8x1024xf32>
    %c0_69 = arith.constant 0 : index
    %c0_70 = arith.constant 0 : index
    %403 = vector.load %arg11[%c0_69, %c0_70] : memref<1x1024xf32, #tpu.memory_space<vmem>>, vector<1x1024xf32>
    %404 = vector.broadcast %403 : vector<1x1024xf32> to vector<8x1024xf32>
    %405 = arith.addf %402, %404 : vector<8x1024xf32>
    %cst_71 = arith.constant 0.000000e+00 : f32
    %406 = vector.broadcast %cst_71 : f32 to vector<8x1024xf32>
    %407 = arith.maximumf %405, %406 : vector<8x1024xf32>
    %408 = arith.truncf %407 : vector<8x1024xf32> to vector<8x1024xbf16>
    %c0_72 = arith.constant 0 : index
    %c0_73 = arith.constant 0 : index
    %409 = vector.load %arg12[%c0_72, %c0_73] : memref<1024x512xbf16, #tpu.memory_space<vmem>>, vector<1024x512xbf16>
    %cst_74 = arith.constant dense<0.000000e+00> : vector<8x512xf32>
    %410 = tpu.matmul %408, %409, %cst_74 {dimension_numbers = #tpu.dot_dimension_numbers<[1], [0], [0], [1], [0, 0, 1, 1], [], []>} : vector<8x1024xbf16>, vector<1024x512xbf16>, vector<8x512xf32> -> vector<8x512xf32>
    %c0_75 = arith.constant 0 : index
    %c0_76 = arith.constant 0 : index
    %411 = vector.load %arg13[%c0_75, %c0_76] : memref<1x512xf32, #tpu.memory_space<vmem>>, vector<1x512xf32>
    %412 = vector.broadcast %411 : vector<1x512xf32> to vector<8x512xf32>
    %413 = arith.addf %410, %412 : vector<8x512xf32>
    %414 = arith.truncf %413 : vector<8x512xf32> to vector<8x512xbf16>
    %c0_77 = arith.constant 0 : index
    %c0_78 = arith.constant 0 : index
    %415 = vector.load %arg14[%c0_77, %c0_78] : memref<512x5xbf16, #tpu.memory_space<vmem>>, vector<512x5xbf16>
    %cst_79 = arith.constant dense<0.000000e+00> : vector<8x5xf32>
    %416 = tpu.matmul %414, %415, %cst_79 {dimension_numbers = #tpu.dot_dimension_numbers<[1], [0], [0], [1], [0, 0, 1, 1], [], []>} : vector<8x512xbf16>, vector<512x5xbf16>, vector<8x5xf32> -> vector<8x5xf32>
    %c0_80 = arith.constant 0 : index
    %c0_81 = arith.constant 0 : index
    %417 = vector.load %arg15[%c0_80, %c0_81] : memref<1x5xf32, #tpu.memory_space<vmem>>, vector<1x5xf32>
    %418 = vector.broadcast %417 : vector<1x5xf32> to vector<8x5xf32>
    %419 = arith.addf %416, %418 : vector<8x5xf32>
    %420 = vector.extract_strided_slice %419 {offsets = [0, 0], sizes = [8, 4], strides = [1, 1]} : vector<8x5xf32> to vector<8x4xf32>
    %421 = vector.extract_strided_slice %419 {offsets = [0, 4], sizes = [8, 1], strides = [1, 1]} : vector<8x5xf32> to vector<8x1xf32>
    %cst_82 = arith.constant dense<0.000000e+00> : vector<8xf32>
    %422 = vector.multi_reduction <add>, %420, %cst_82 [1] : vector<8x4xf32> to vector<8xf32>
    %423 = vector.shape_cast %422 : vector<8xf32> to vector<8x1xf32>
    %cst_83 = arith.constant 2.500000e-01 : f32
    %424 = vector.broadcast %cst_83 : f32 to vector<8x1xf32>
    %425 = arith.mulf %423, %424 : vector<8x1xf32>
    %426 = arith.subf %421, %425 : vector<8x1xf32>
    %427 = vector.broadcast %426 : vector<8x1xf32> to vector<8x4xf32>
    %428 = arith.addf %420, %427 : vector<8x4xf32>
    %c0_84 = arith.constant 0 : index
    %c0_85 = arith.constant 0 : index
    %429 = vector.load %arg16[%c0_84, %c0_85] : memref<8x4xf32, #tpu.memory_space<vmem>>, vector<8x4xf32>
    tpu.vector_store %arg16[%c0_84, %c0_85], %428 {strides = array<i32>} : memref<8x4xf32, #tpu.memory_space<vmem>>, vector<8x4xf32>,
    return
  }
  func.func @transform_0(%arg0: i32) -> (i32, i32) {
    %c0_i32 = arith.constant 0 : i32
    %c0_i32_0 = arith.constant 0 : i32
    return %arg0, %c0_i32 : i32, i32
  }
  func.func @transform_1(%arg0: i32) -> (i32, i32) {
    %c0_i32 = arith.constant 0 : i32
    %c0_i32_0 = arith.constant 0 : i32
    %c0_i32_1 = arith.constant 0 : i32
    return %c0_i32, %c0_i32_0 : i32, i32
  }
  func.func @transform_2(%arg0: i32) -> (i32, i32) {
    %c0_i32 = arith.constant 0 : i32
    %c0_i32_0 = arith.constant 0 : i32
    %c0_i32_1 = arith.constant 0 : i32
    return %c0_i32, %c0_i32_0 : i32, i32
  }
  func.func @transform_3(%arg0: i32) -> (i32, i32) {
    %c0_i32 = arith.constant 0 : i32
    %c0_i32_0 = arith.constant 0 : i32
    %c0_i32_1 = arith.constant 0 : i32
    return %c0_i32, %c0_i32_0 : i32, i32
  }
  func.func @transform_4(%arg0: i32) -> (i32, i32) {
    %c0_i32 = arith.constant 0 : i32
    %c0_i32_0 = arith.constant 0 : i32
    %c0_i32_1 = arith.constant 0 : i32
    return %c0_i32, %c0_i32_0 : i32, i32
  }
  func.func @transform_5(%arg0: i32) -> (i32, i32) {
    %c0_i32 = arith.constant 0 : i32
    %c0_i32_0 = arith.constant 0 : i32
    %c0_i32_1 = arith.constant 0 : i32
    return %c0_i32, %c0_i32_0 : i32, i32
  }
  func.func @transform_6(%arg0: i32) -> (i32, i32) {
    %c0_i32 = arith.constant 0 : i32
    %c0_i32_0 = arith.constant 0 : i32
    %c0_i32_1 = arith.constant 0 : i32
    return %c0_i32, %c0_i32_0 : i32, i32
  }
  func.func @transform_7(%arg0: i32) -> (i32, i32) {
    %c0_i32 = arith.constant 0 : i32
    %c0_i32_0 = arith.constant 0 : i32
    %c0_i32_1 = arith.constant 0 : i32
    return %c0_i32, %c0_i32_0 : i32, i32
  }
  func.func @transform_8(%arg0: i32) -> (i32, i32) {
    %c0_i32 = arith.constant 0 : i32
    %c0_i32_0 = arith.constant 0 : i32
    %c0_i32_1 = arith.constant 0 : i32
    return %c0_i32, %c0_i32_0 : i32, i32
  }
  func.func @transform_9(%arg0: i32) -> (i32, i32) {
    %c0_i32 = arith.constant 0 : i32
    %c0_i32_0 = arith.constant 0 : i32
    %c0_i32_1 = arith.constant 0 : i32
    return %c0_i32, %c0_i32_0 : i32, i32
  }
  func.func @transform_10(%arg0: i32) -> (i32, i32) {
    %c0_i32 = arith.constant 0 : i32
    %c0_i32_0 = arith.constant 0 : i32
    %c0_i32_1 = arith.constant 0 : i32
    return %c0_i32, %c0_i32_0 : i32, i32
  }
  func.func @transform_11(%arg0: i32) -> (i32, i32) {
    %c0_i32 = arith.constant 0 : i32
    %c0_i32_0 = arith.constant 0 : i32
    %c0_i32_1 = arith.constant 0 : i32
    return %c0_i32, %c0_i32_0 : i32, i32
  }
  func.func @transform_12(%arg0: i32) -> (i32, i32) {
    %c0_i32 = arith.constant 0 : i32
    %c0_i32_0 = arith.constant 0 : i32
    %c0_i32_1 = arith.constant 0 : i32
    return %c0_i32, %c0_i32_0 : i32, i32
  }
  func.func @transform_13(%arg0: i32) -> (i32, i32) {
    %c0_i32 = arith.constant 0 : i32
    %c0_i32_0 = arith.constant 0 : i32
    %c0_i32_1 = arith.constant 0 : i32
    return %c0_i32, %c0_i32_0 : i32, i32
  }
  func.func @transform_14(%arg0: i32) -> (i32, i32) {
    %c0_i32 = arith.constant 0 : i32
    %c0_i32_0 = arith.constant 0 : i32
    %c0_i32_1 = arith.constant 0 : i32
    return %c0_i32, %c0_i32_0 : i32, i32
  }
  func.func @transform_15(%arg0: i32) -> (i32, i32) {
    %c0_i32 = arith.constant 0 : i32
    %c0_i32_0 = arith.constant 0 : i32
    return %arg0, %c0_i32 : i32, i32
  }
}

</mosaic_0001>

<bundles_post_ra>
// kernel: dueling_dqn_forward.1
= control target key start
LH: loop header
LB: loop body
LE: loop exit
PB: predicated region body
PF: predicated region fallthrough
CT: control target
= control target key end

     0   :  { %s15157_s18 = smov 0   ;;  %s20480_s0 = inlined_call_operand.vmem [shape: bf16[1664,256], index: 0, kind: input, shape index: {}]   ;;  %s20481_s1 = inlined_call_operand.vmem [shape: bf16[256,32], index: 1, kind: input, shape index: {}]   ;;  %s20482_s2 = inlined_call_operand.vmem [shape: f32[1,32], index: 2, kind: input, shape index: {}]   ;;  %s20483_s3 = inlined_call_operand.vmem [shape: bf16[256,104], index: 3, kind: input, shape index: {}]   ;;  %s20484_s4 = inlined_call_operand.vmem [shape: bf16[512,64], index: 4, kind: input, shape index: {}]   ;;  %s20485_s5 = inlined_call_operand.vmem [shape: f32[1,64], index: 5, kind: input, shape index: {}]   ;;  %s20486_s6 = inlined_call_operand.vmem [shape: bf16[72,16], index: 6, kind: input, shape index: {}]   ;;  %s20487_s7 = inlined_call_operand.vmem [shape: bf16[576,64], index: 7, kind: input, shape index: {}]   ;;  %s20488_s8 = inlined_call_operand.vmem [shape: f32[1,64], index: 8, kind: input, shape index: {}]   ;;  %s20489_s9 = inlined_call_operand.vmem [shape: bf16[256,1024], index: 9, kind: input, shape index: {}]   ;;  %s20490_s10 = inlined_call_operand.vmem [shape: f32[1,1024], index: 10, kind: input, shape index: {}]   ;;  %s20491_s11 = inlined_call_operand.vmem [shape: bf16[1024,512], index: 11, kind: input, shape index: {}]   ;;  %s20492_s12 = inlined_call_operand.vmem [shape: f32[1,512], index: 12, kind: input, shape index: {}]   ;;  %s20493_s13 = inlined_call_operand.vmem [shape: bf16[512,5], index: 13, kind: input, shape index: {}]   ;;  %s20494_s14 = inlined_call_operand.vmem [shape: f32[1,5], index: 14, kind: input, shape index: {}]   ;;  %s20495_s15 = inlined_call_operand.vmem [shape: f32[16,4], index: 15, kind: output, shape index: {}]  }
   0x1 LB: > { %s15163_s19 = sadd.s32 4294967295, %s15068_s18   ;;  %p10952_p0 = scmp.ge.s32.totalorder %s15068_s18, 1  ;;  %s15068_s18 = sphi %s15157_s18, %s25_s18  }
   0x2   : > { %p439_p1 = scmp.lt.s32.totalorder %s15068_s18, 3 }
   0x4   : > { %p440_p2 = pnand %p10952_p0, %p439_p1 }
   0x6   : > { %443 = sbr.rel (%p440_p2) target bundleno = 9982 (0x26fe), region = 80 }
   0xd   : > { %v14077_v0 = vld [vmem:[%s20481_s1] sm:$0xff]   ;;  %v15070_v1 = vmov 0   ;;  %s487_s22 = smul.u32 104, %s15163_s19  ;;  %v14078_v2 = vld [vmem:[%s20481_s1 + $0x8] sm:$0xff]   ;;  %v14079_v3 = vld [vmem:[%s20481_s1 + $0x10] sm:$0xff]   ;;  %vm2122_vm0 = vcmask 850944  }
   0xe   : > { %1437 = vmatprep.subr.bf16.mxu0 %v15070_v1  ;;  %v14080_v4 = vld [vmem:[%s20481_s1 + $0x18] sm:$0xff]   ;;  %v14081_v5 = vld [vmem:[%s20481_s1 + $0x20] sm:$0xff]   ;;  %v14082_v7 = vld [vmem:[%s20481_s1 + $0x28] sm:$0xff]   ;;  %vm2171_vm1 = vcmask 1043456   ;;  %s15071_s26 = smov 32   ;;  %s15072_s16 = smov 64  }
   0xf   : > { %1438 = vmatpush1.bf16.msra.mxu0 %v14077_v0  ;;  %p488_p3 = scmp.lt.s32.totalorder %s487_s22, 207  ;;  %v14083_v8 = vld [vmem:[%s20481_s1 + $0x30] sm:$0xff]   ;;  %v14084_v9 = vld [vmem:[%s20481_s1 + $0x38] sm:$0xff]   ;;  %v14085_v10 = vld [vmem:[%s20481_s1 + $0x40] sm:$0xff]   ;;  %s15073_s17 = smov 96   ;;  %vm2432_vm2 = vcmask 261120  }
  0x10   : > { %1439 = vmatprep.subr.bf16.mxu0 %v15070_v1  ;;  %v14086_v11 = vld [vmem:[%s20481_s1 + $0x48] sm:$0xff]   ;;  %v14087_v12 = vld [vmem:[%s20481_s1 + $0x50] sm:$0xff]   ;;  %v14088_v13 = vld [vmem:[%s20481_s1 + $0x58] sm:$0xff]   ;;  %vm2435_vm3 = vcmask 523264   ;;  %vm2438_vm4 = vcmask 785408   ;;  %vm15075_vm5 = vmmov 0  }
  0x11   : > { %s21068_s22 = smov (!%p488_p3, %s487_s22), 207  ;;  %v14089_v14 = vld [vmem:[%s20481_s1 + $0x60] sm:$0xff]   ;;  %v14090_v15 = vld [vmem:[%s20481_s1 + $0x68] sm:$0xff]   ;;  %v14091_v16 = vld [vmem:[%s20481_s1 + $0x70] sm:$0xff]   ;;  %vm2769_vm6 = vcmask 130048   ;;  %vm7637_vm7 = vcmask 1040384  }
  0x12   : > { %s11763_s29 = sshll.u32 %s21068_s22, 3  ;;  %v14092_v17 = vld [vmem:[%s20481_s1 + $0x78] sm:$0xff]   ;;  %v14117_v33 = vld [vmem:[%s20483_s3] sm:$0xff]   ;;  %vm7640_vm8 = vcmask 1041408   ;;  %vm7643_vm9 = vcmask 1042432   ;;  %vm7648_vm10 = vcmask 1044480  }
  0x13   : > { %1440 = vmatpush1.bf16.msra.mxu0 %v14078_v2  ;;  %s15186_s21 = scalar_lea.vmem %s20480_s0, %s11763_s29  ;;  %12798 = vmatprep.mubr.msk.bf16.mxu1 %vm2122_vm0, %v14117_v33  ;;  %v15244_v34 = vld [vmem:[%s20482_s2] ss:$0 sm:$0xff]  ;;  %vm7651_vm11 = vcmask 1045504   ;;  %vm7654_vm12 = vcmask 1046528   ;;  %vm10882_vm13 = vcmask 31744   ;;  %p494_p4 = scmp.lt.s32.totalorder %s15163_s19, 1 }
  0x14   : > { %1441 = vmatprep.subr.bf16.mxu0 %v15070_v1  ;;  %v14095_v6 = vld [vmem:[%s15186_s21 + $0x4] ss:$8 sps:$4 sm:$0xff]   ;;  %v14093_v18 = vld [vmem:[%s15186_s21] ss:$8 sps:$4 sm:$0xff]   ;;  %v14096_v19 = vld [vmem:[%s15186_s21 + $0x14] ss:$8 sps:$4 sm:$0xff]  }
  0x15   : > { %1469 = vmatprep.mubr.bf16.mxu0 %v14095_v6  ;;  %v14098_v20 = vld [vmem:[%s15186_s21 + $0x10] ss:$8 sps:$4 sm:$0xff]   ;;  %v14099_v21 = vld [vmem:[%s15186_s21 + $0x24] ss:$8 sps:$4 sm:$0xff]   ;;  %v14101_v22 = vld [vmem:[%s15186_s21 + $0x20] ss:$8 sps:$4 sm:$0xff]  }
  0x16   : > { %v14102_v23 = vld [vmem:[%s15186_s21 + $0x34] ss:$8 sps:$4 sm:$0xff]   ;;  %v14104_v24 = vld [vmem:[%s15186_s21 + $0x30] ss:$8 sps:$4 sm:$0xff]   ;;  %v14105_v25 = vld [vmem:[%s15186_s21 + $0x44] ss:$8 sps:$4 sm:$0xff]  }
  0x17   : > { %1442 = vmatpush1.bf16.msra.mxu0 %v14079_v3  ;;  %v14107_v26 = vld [vmem:[%s15186_s21 + $0x40] ss:$8 sps:$4 sm:$0xff]   ;;  %v14108_v27 = vld [vmem:[%s15186_s21 + $0x54] ss:$8 sps:$4 sm:$0xff]   ;;  %v14110_v28 = vld [vmem:[%s15186_s21 + $0x50] ss:$8 sps:$4 sm:$0xff]  }
  0x18   : > { %1443 = vmatprep.subr.bf16.mxu0 %v15070_v1  ;;  %v14111_v29 = vld [vmem:[%s15186_s21 + $0x64] ss:$8 sps:$4 sm:$0xff]   ;;  %v14113_v30 = vld [vmem:[%s15186_s21 + $0x60] ss:$8 sps:$4 sm:$0xff]   ;;  %v14114_v31 = vld [vmem:[%s15186_s21 + $0x74] ss:$8 sps:$4 sm:$0xff]  }
  0x19   : > { %v14116_v32 = vld [vmem:[%s15186_s21 + $0x70] ss:$8 sps:$4 sm:$0xff]   ;;  %s21070_s19 = smov (!%p494_p4, %s15163_s19), 1 }
  0x1b   : > { %1444 = vmatpush1.bf16.msra.mxu0 %v14080_v4 }
  0x1c   : > { %1445 = vmatprep.subr.bf16.mxu0 %v15070_v1 }
  0x1f   : > { %1446 = vmatpush1.bf16.msra.mxu0 %v14081_v5 }
  0x20   : > { %1447 = vmatprep.subr.bf16.mxu0 %v15070_v1 }
  0x23   : > { %1448 = vmatpush1.bf16.msra.mxu0 %v14082_v7 }
  0x24   : > { %1449 = vmatprep.subr.bf16.mxu0 %v15070_v1 }
  0x27   : > { %1450 = vmatpush1.bf16.msra.mxu0 %v14083_v8 }
  0x28   : > { %1451 = vmatprep.subr.bf16.mxu0 %v15070_v1 }
  0x2b   : > { %1452 = vmatpush1.bf16.msra.mxu0 %v14084_v9 }
  0x2c   : > { %1453 = vmatprep.subr.bf16.mxu0 %v15070_v1 }
  0x2f   : > { %1454 = vmatpush1.bf16.msra.mxu0 %v14085_v10 }
  0x30   : > { %1455 = vmatprep.subr.bf16.mxu0 %v15070_v1 }
  0x33   : > { %1456 = vmatpush1.bf16.msra.mxu0 %v14086_v11 }
  0x34   : > { %1457 = vmatprep.subr.bf16.mxu0 %v15070_v1 }
  0x37   : > { %1458 = vmatpush1.bf16.msra.mxu0 %v14087_v12 }
  0x38   : > { %1459 = vmatprep.subr.bf16.mxu0 %v15070_v1 }
  0x3b   : > { %1460 = vmatpush1.bf16.msra.mxu0 %v14088_v13 }
  0x3c   : > { %1461 = vmatprep.subr.bf16.mxu0 %v15070_v1 }
  0x3f   : > { %1462 = vmatpush1.bf16.msra.mxu0 %v14089_v14 }
  0x40   : > { %1463 = vmatprep.subr.bf16.mxu0 %v15070_v1 }
  0x43   : > { %1464 = vmatpush1.bf16.msra.mxu0 %v14090_v15 }
  0x44   : > { %1465 = vmatprep.subr.bf16.mxu0 %v15070_v1 }
  0x47   : > { %1466 = vmatpush1.bf16.msra.mxu0 %v14091_v16 }
  0x48   : > { %1467 = vmatprep.subr.bf16.mxu0 %v15070_v1 }
  0x4b   : > { %1468 = vmatpush1.bf16.msra.mxu0 %v14092_v17 }
  0x4e   : > { %1470 = vmatmul.mubr.bf16.vlgmr.msra.gmra.mrb[0].mxu0 %v14093_v18 }
  0x4f   : > { %1477 = vmatprep.mubr.bf16.mxu0 %v14096_v19 }
  0x56   : > { %1478 = vmatmul.mubr.bf16.gmra.mrb[4].mxu0 %v14098_v20 }
  0x57   : > { %1485 = vmatprep.mubr.bf16.mxu0 %v14099_v21 }
  0x5e   : > { %1486 = vmatmul.mubr.bf16.gmra.mrb[8].mxu0 %v14101_v22 }
  0x5f   : > { %1493 = vmatprep.mubr.bf16.mxu0 %v14102_v23 }
  0x66   : > { %1494 = vmatmul.mubr.bf16.gmra.mrb[12].mxu0 %v14104_v24 }
  0x67   : > { %1501 = vmatprep.mubr.bf16.mxu0 %v14105_v25 }
  0x6e   : > { %1502 = vmatmul.mubr.bf16.gmra.mrb[16].mxu0 %v14107_v26 }
  0x6f   : > { %1509 = vmatprep.mubr.bf16.mxu0 %v14108_v27 }
  0x76   : > { %1510 = vmatmul.mubr.bf16.gmra.mrb[20].mxu0 %v14110_v28 }
  0x77   : > { %1517 = vmatprep.mubr.bf16.mxu0 %v14111_v29 }
  0x7e   : > { %1518 = vmatmul.mubr.bf16.gmra.mrb[24].mxu0 %v14113_v30 }
  0x7f   : > { %1525 = vmatprep.mubr.bf16.mxu0 %v14114_v31 }
  0x86   : > { %1526 = vmatmul.mubr.bf16.gmra.mrb[28].mxu0 %v14116_v32 }
 0x121   : > { %v1471_v35 = vpop.f32.mrb[0].mxu0 }
 0x122   : > { %v1472_v36 = vadd.f32 %v15244_v34, %v1471_v35  ;;  %v1473_v37 = vpop.f32.mrb[1].mxu0 }
 0x123   : > { %v1474_v38 = vpop.f32.mrb[2].mxu0 }
 0x124   : > { %v1475_v39 = vadd.f32 %v15244_v34, %v1474_v38  ;;  %v1476_v40 = vpop.f32.mrb[3].mxu0  ;;  %v1886_v41 = vmax.f32 %v1472_v36, 0.0 }
 0x126   : > { %v1887_v42 = vmax.f32 %v1475_v39, 0.0  ;;  %v15266_v39 = vld [vmem:[%s20483_s3 + $0x8] sm:$0xff]  }
 0x128   : > { %v1990_v43 = vpack.c.bf16 %v1887_v42, %v1886_v41  ;;  %v15271_v41 = vld [vmem:[%s20483_s3 + $0x10] sm:$0xff]  }
 0x129   : > { %v1479_v44 = vpop.f32.mrb[4].mxu0 }
 0x12a   : > { %v1480_v45 = vadd.f32 %v15244_v34, %v1479_v44  ;;  %v1481_v46 = vpop.f32.mrb[5].mxu0  ;;  %12784 = vmatprep.subr.bf16.mxu1 %v1990_v43 }
 0x12b   : > { %v1482_v47 = vpop.f32.mrb[6].mxu0  ;;  %12785 = vmatpush3.bf16.msra.mxu1 %v1990_v43 }
 0x12c   : > { %v1483_v48 = vadd.f32 %v15244_v34, %v1482_v47  ;;  %v1484_v49 = vpop.f32.mrb[7].mxu0  ;;  %v1888_v50 = vmax.f32 %v1480_v45, 0.0  ;;  %v15283_v47 = vld [vmem:[%s20483_s3 + $0x18] sm:$0xff]  }
 0x12e   : > { %v1889_v51 = vmax.f32 %v1483_v48, 0.0 }
 0x130   : > { %v1991_v52 = vpack.c.bf16 %v1889_v51, %v1888_v50  ;;  %v15289_v50 = vld [vmem:[%s20483_s3 + $0x20] sm:$0xff]  }
 0x131   : > { %v1487_v53 = vpop.f32.mrb[8].mxu0 }
 0x132   : > { %v1488_v54 = vadd.f32 %v15244_v34, %v1487_v53  ;;  %v1489_v55 = vpop.f32.mrb[9].mxu0  ;;  %12786 = vmatprep.subr.bf16.mxu1 %v1991_v52  ;;  %v15308_v53 = vld [vmem:[%s20483_s3 + $0x30] sm:$0xff]  }
 0x133   : > { %v1490_v56 = vpop.f32.mrb[10].mxu0  ;;  %12787 = vmatpush3.bf16.msra.mxu1 %v1991_v52  ;;  %v15303_v52 = vld [vmem:[%s20483_s3 + $0x28] sm:$0xff]   ;;  %v15322_v55 = vld [vmem:[%s20483_s3 + $0x40] sm:$0xff]  }
 0x134   : > { %v1491_v57 = vadd.f32 %v15244_v34, %v1490_v56  ;;  %v1492_v58 = vpop.f32.mrb[11].mxu0  ;;  %v1890_v59 = vmax.f32 %v1488_v54, 0.0  ;;  %v15317_v54 = vld [vmem:[%s20483_s3 + $0x38] sm:$0xff]   ;;  %v15331_v56 = vld [vmem:[%s20483_s3 + $0x48] sm:$0xff]  }
 0x135   : > { %v15345_v58 = vld [vmem:[%s20483_s3 + $0x58] sm:$0xff]  }
 0x136   : > { %v1891_v60 = vmax.f32 %v1491_v57, 0.0  ;;  %v15336_v57 = vld [vmem:[%s20483_s3 + $0x50] sm:$0xff]  }
 0x138   : > { %v1992_v61 = vpack.c.bf16 %v1891_v60, %v1890_v59  ;;  %v15350_v59 = vld [vmem:[%s20483_s3 + $0x60] sm:$0xff]   ;;  %v15359_v60 = vld [vmem:[%s20483_s3 + $0x68] sm:$0xff]  }
 0x139   : > { %v1495_v62 = vpop.f32.mrb[12].mxu0 }
 0x13a   : > { %v1496_v63 = vadd.f32 %v15244_v34, %v1495_v62  ;;  %v1497_v0 = vpop.f32.mrb[13].mxu0  ;;  %12788 = vmatprep.subr.bf16.mxu1 %v1992_v61  ;;  %v15373_v62 = vld [vmem:[%s20483_s3 + $0x78] sm:$0xff]  }
 0x13b   : > { %v1498_v1 = vpop.f32.mrb[14].mxu0  ;;  %12789 = vmatpush3.bf16.msra.mxu1 %v1992_v61  ;;  %v15364_v61 = vld [vmem:[%s20483_s3 + $0x70] sm:$0xff]   ;;  %v15385_v0 = vld [vmem:[%s20484_s4] sm:$0xff]  }
 0x13c   : > { %v1499_v2 = vadd.f32 %v15244_v34, %v1498_v1  ;;  %v1500_v3 = vpop.f32.mrb[15].mxu0  ;;  %v1892_v4 = vmax.f32 %v1496_v63, 0.0  ;;  %v15380_v63 = vld [vmem:[%s20484_s4 + $0x40] sm:$0xff]   ;;  %v15390_v1 = vld [vmem:[%s20484_s4 + $0x48] sm:$0xff]  }
 0x13d   : > { %12031 = vmatprep.subr.bf16.mxu0 %v15380_v63  ;;  %v15405_v3 = vld [vmem:[%s20484_s4 + $0x50] sm:$0xff]  }
 0x13e   : > { %v1893_v5 = vmax.f32 %v1499_v2, 0.0  ;;  %v15398_v2 = vld [vmem:[%s20484_s4 + $0x8] sm:$0xff]   ;;  %12032 = vmatpush3.bf16.msra.mxu0 %v15385_v0 }
 0x13f   : > { %12033 = vmatprep.subr.bf16.mxu0 %v15390_v1 }
 0x140   : > { %v1993_v6 = vpack.c.bf16 %v1893_v5, %v1892_v4  ;;  %v15412_v4 = vld [vmem:[%s20484_s4 + $0x10] sm:$0xff]   ;;  %v15422_v5 = vld [vmem:[%s20484_s4 + $0x58] sm:$0xff]  }
 0x141   : > { %v1503_v7 = vpop.f32.mrb[16].mxu0 }
 0x142   : > { %v1504_v8 = vadd.f32 %v15244_v34, %v1503_v7  ;;  %v1505_v9 = vpop.f32.mrb[17].mxu0  ;;  %12790 = vmatprep.subr.bf16.mxu1 %v1993_v6  ;;  %12034 = vmatpush3.bf16.msra.mxu0 %v15398_v2  ;;  %v15432_v7 = vld [vmem:[%s20484_s4 + $0x60] sm:$0xff]  }
 0x143   : > { %v1506_v10 = vpop.f32.mrb[18].mxu0  ;;  %12791 = vmatpush3.bf16.msra.mxu1 %v1993_v6  ;;  %12035 = vmatprep.subr.bf16.mxu0 %v15405_v3  ;;  %v15427_v6 = vld [vmem:[%s20484_s4 + $0x18] sm:$0xff]  }
 0x144   : > { %v1507_v11 = vadd.f32 %v15244_v34, %v1506_v10  ;;  %v1508_v12 = vpop.f32.mrb[19].mxu0  ;;  %v1894_v13 = vmax.f32 %v1504_v8, 0.0 }
 0x146   : > { %v1895_v14 = vmax.f32 %v1507_v11, 0.0  ;;  %12036 = vmatpush3.bf16.msra.mxu0 %v15412_v4 }
 0x147   : > { %12037 = vmatprep.subr.bf16.mxu0 %v15422_v5 }
 0x148   : > { %v1994_v15 = vpack.c.bf16 %v1895_v14, %v1894_v13  ;;  %v15447_v13 = vld [vmem:[%s20484_s4 + $0x20] sm:$0xff]  }
 0x149   : > { %v1511_v16 = vpop.f32.mrb[20].mxu0 }
 0x14a   : > { %v1512_v17 = vadd.f32 %v15244_v34, %v1511_v16  ;;  %v1513_v18 = vpop.f32.mrb[21].mxu0  ;;  %12792 = vmatprep.subr.bf16.mxu1 %v1994_v15  ;;  %12038 = vmatpush3.bf16.msra.mxu0 %v15427_v6 }
 0x14b   : > { %v1514_v19 = vpop.f32.mrb[22].mxu0  ;;  %12793 = vmatpush3.bf16.msra.mxu1 %v1994_v15  ;;  %12039 = vmatprep.subr.bf16.mxu0 %v15432_v7  ;;  %v15460_v18 = vld [vmem:[%s20484_s4 + $0x28] sm:$0xff]  }
 0x14c   : > { %v1515_v20 = vadd.f32 %v15244_v34, %v1514_v19  ;;  %v1516_v21 = vpop.f32.mrb[23].mxu0  ;;  %v1896_v22 = vmax.f32 %v1512_v17, 0.0  ;;  %v15455_v17 = vld [vmem:[%s20484_s4 + $0x68] sm:$0xff]  }
 0x14e   : > { %v1897_v23 = vmax.f32 %v1515_v20, 0.0  ;;  %12040 = vmatpush3.bf16.msra.mxu0 %v15447_v13 }
 0x14f   : > { %12041 = vmatprep.subr.bf16.mxu0 %v15455_v17 }
 0x150   : > { %v1995_v24 = vpack.c.bf16 %v1897_v23, %v1896_v22  ;;  %v15470_v23 = vld [vmem:[%s20484_s4 + $0x70] sm:$0xff]  }
 0x151   : > { %v1519_v25 = vpop.f32.mrb[24].mxu0 }
 0x152   : > { %v1520_v26 = vadd.f32 %v15244_v34, %v1519_v25  ;;  %v1521_v27 = vpop.f32.mrb[25].mxu0  ;;  %12794 = vmatprep.subr.bf16.mxu1 %v1995_v24  ;;  %12042 = vmatpush3.bf16.msra.mxu0 %v15460_v18  ;;  %v15477_v25 = vld [vmem:[%s20484_s4 + $0x30] sm:$0xff]  }
 0x153   : > { %v1522_v28 = vpop.f32.mrb[26].mxu0  ;;  %12795 = vmatpush3.bf16.msra.mxu1 %v1995_v24  ;;  %12043 = vmatprep.subr.bf16.mxu0 %v15470_v23 }
 0x154   : > { %v1523_v29 = vadd.f32 %v15244_v34, %v1522_v28  ;;  %v1524_v30 = vpop.f32.mrb[27].mxu0  ;;  %v1898_v31 = vmax.f32 %v1520_v26, 0.0 }
 0x155   : > { %v15494_v30 = vld [vmem:[%s20484_s4 + $0x38] sm:$0xff]  }
 0x156   : > { %v1899_v32 = vmax.f32 %v1523_v29, 0.0  ;;  %12044 = vmatpush3.bf16.msra.mxu0 %v15477_v25  ;;  %v15488_v29 = vld [vmem:[%s20484_s4 + $0x78] sm:$0xff]  }
 0x157   : > { %12045 = vmatprep.subr.bf16.mxu0 %v15488_v29 }
 0x158   : > { %v1996_v33 = vpack.c.bf16 %v1899_v32, %v1898_v31 }
 0x159   : > { %v1527_v35 = vpop.f32.mrb[28].mxu0 }
 0x15a   : > { %v1528_v36 = vadd.f32 %v15244_v34, %v1527_v35  ;;  %v1529_v37 = vpop.f32.mrb[29].mxu0  ;;  %13452 = vmatprep.subr.msk.bf16.mxu1 %vm2171_vm1, %v1996_v33  ;;  %v2173_v38 = vsel %vm2171_vm1, %v1996_v33, 0  ;;  %v3249_v48 = vrot.slane %v1996_v33, 4  ;;  %12046 = vmatpush3.bf16.msra.mxu0 %v15494_v30  ;;  %v15503_v33 = vld [vmem:[%s20484_s4 + $0xc0] sm:$0xff]  }
 0x15b   : > { %v1530_v40 = vpop.f32.mrb[30].mxu0  ;;  %12797 = vmatpush3.bf16.msra.mxu1 %v2173_v38  ;;  %12053 = vmatprep.subr.bf16.mxu0 %v15503_v33 }
 0x15c   : > { %v1900_v42 = vmax.f32 %v1528_v36, 0.0  ;;  %v1531_v43 = vadd.f32 %v15244_v34, %v1530_v40  ;;  %v1532_v44 = vpop.f32.mrb[31].mxu0  ;;  %11787 = vmatprep.subr.bf16.mxu1 %v15380_v63 }
 0x15e   : > { %v1901_v45 = vmax.f32 %v1531_v43, 0.0  ;;  %12799 = vmatmul.mubr.msk.bf16.vlgmr.msra.gmra.mrb[0].mxu1 %vm2122_vm0, %v15266_v39 }
 0x15f   : > { %12802 = vmatprep.mubr.msk.bf16.mxu1 %vm2122_vm0, %v15271_v41  ;;  %11788 = vmatpush3.bf16.msra.mxu1 %v15385_v0 }
 0x160   : > { %v15278_v46 = vpack.c.bf16 %v1901_v45, %v1900_v42  ;;  %11789 = vmatprep.subr.bf16.mxu1 %v15390_v1 }
 0x162   : > { %v20496_v49 = vrot.slane %v15278_v46, 4 }
 0x163   : > { %11790 = vmatpush3.bf16.msra.mxu1 %v15398_v2 }
 0x164   : > { %v15294_v51 = vsel %vm2171_vm1, %v3249_v48, %v20496_v49  ;;  %11791 = vmatprep.subr.bf16.mxu1 %v15405_v3 }
 0x166   : > { %12803 = vmatmul.mubr.msk.bf16.gmra.mrb[4].mxu1 %vm2122_vm0, %v15283_v47 }
 0x167   : > { %12806 = vmatprep.mubr.msk.bf16.mxu1 %vm2122_vm0, %v15289_v50  ;;  %11792 = vmatpush3.bf16.msra.mxu1 %v15412_v4 }
 0x168   : > { %11793 = vmatprep.subr.bf16.mxu1 %v15422_v5 }
 0x16b   : > { %11794 = vmatpush3.bf16.msra.mxu1 %v15427_v6 }
 0x16c   : > { %11795 = vmatprep.subr.bf16.mxu1 %v15432_v7 }
 0x16e   : > { %12807 = vmatmul.mubr.msk.bf16.gmra.mrb[8].mxu1 %vm2122_vm0, %v15303_v52 }
 0x16f   : > { %12810 = vmatprep.mubr.msk.bf16.mxu1 %vm2122_vm0, %v15308_v53  ;;  %11796 = vmatpush3.bf16.msra.mxu1 %v15447_v13 }
 0x170   : > { %11797 = vmatprep.subr.bf16.mxu1 %v15455_v17 }
 0x173   : > { %11798 = vmatpush3.bf16.msra.mxu1 %v15460_v18 }
 0x174   : > { %11799 = vmatprep.subr.bf16.mxu1 %v15470_v23 }
 0x176   : > { %12811 = vmatmul.mubr.msk.bf16.gmra.mrb[12].mxu1 %vm2122_vm0, %v15317_v54 }
 0x177   : > { %12814 = vmatprep.mubr.msk.bf16.mxu1 %vm2122_vm0, %v15322_v55  ;;  %11800 = vmatpush3.bf16.msra.mxu1 %v15477_v25 }
 0x178   : > { %11801 = vmatprep.subr.bf16.mxu1 %v15488_v29 }
 0x17b   : > { %11802 = vmatpush3.bf16.msra.mxu1 %v15494_v30 }
 0x17c   : > { %11809 = vmatprep.subr.bf16.mxu1 %v15503_v33 }
 0x17e   : > { %12815 = vmatmul.mubr.msk.bf16.gmra.mrb[16].mxu1 %vm2122_vm0, %v15331_v56 }
 0x17f   : > { %12818 = vmatprep.mubr.msk.bf16.mxu1 %vm2122_vm0, %v15336_v57 }
 0x186   : > { %12819 = vmatmul.mubr.msk.bf16.gmra.mrb[20].mxu1 %vm2122_vm0, %v15345_v58 }
 0x187   : > { %12822 = vmatprep.mubr.msk.bf16.mxu1 %vm2122_vm0, %v15350_v59 }
 0x18e   : > { %12823 = vmatmul.mubr.msk.bf16.gmra.mrb[24].mxu1 %vm2122_vm0, %v15359_v60 }
 0x18f   : > { %12826 = vmatprep.mubr.msk.bf16.mxu1 %vm2122_vm0, %v15364_v61 }
 0x196   : > { %12827 = vmatmul.mubr.msk.bf16.gmra.mrb[28].mxu1 %vm2122_vm0, %v15373_v62 }
 0x231   : > { %v12800_v8 = vpop.f32.mrb[0].mxu1 }
 0x232   : > { %v15440_v9 = vpop.f32.mrb[1].mxu1 }
 0x233   : > { %v12801_v10 = vpop.f32.mrb[2].mxu1 }
 0x234   : > { %v15442_v11 = vpop.f32.mrb[3].mxu1  ;;  %v13475_v12 = vpack.i.bf16 %v12801_v10, %v12800_v8 }
 0x236   : > { %13476 = vrot.lane.b32.xlu0 %v13475_v12, %s15071_s26 }
 0x239   : > { %v12804_v14 = vpop.f32.mrb[4].mxu1 }
 0x23a   : > { %v2225_v15 = vpop.f32.mrb[5].mxu1 }
 0x23b   : > { %v12805_v16 = vpop.f32.mrb[6].mxu1 }
 0x23c   : > { %v13500_v19 = vpack.i.bf16 %v12805_v16, %v12804_v14  ;;  %v2228_v20 = vpop.f32.mrb[7].mxu1 }
 0x23d   : > { %v13480_v21 = vpack.i.bf16 %v2228_v20, %v2225_v15 }
 0x23f   : > { %13481 = vrot.lane.b32.xlu1 %v13480_v21, %s15072_s16 }
 0x241   : > { %v12808_v22 = vpop.f32.mrb[8].mxu1 }
 0x242   : > { %v15472_v24 = vpop.f32.mrb[9].mxu1 }
 0x243   : > { %v12809_v26 = vpop.f32.mrb[10].mxu1 }
 0x244   : > { %v13485_v27 = vpack.i.bf16 %v12809_v26, %v12808_v22  ;;  %v15481_v28 = vpop.f32.mrb[11].mxu1 }
 0x246   : > { %13486 = vrot.lane.b32.xlu0 %v13485_v27, %s15071_s26 }
 0x249   : > { %v12812_v31 = vpop.f32.mrb[12].mxu1 }
 0x24a   : > { %v2257_v32 = vpop.f32.mrb[13].mxu1 }
 0x24b   : > { %v12813_v35 = vpop.f32.mrb[14].mxu1 }
 0x24c   : > { %v13490_v36 = vpack.i.bf16 %v12813_v35, %v12812_v31  ;;  %v2260_v37 = vpop.f32.mrb[15].mxu1 }
 0x24d   : > { %v13495_v38 = vpack.i.bf16 %v2260_v37, %v2257_v32 }
 0x24e   : > { %13491 = vrot.lane.b32.xlu0 %v13490_v36, %s15073_s17 }
 0x24f   : > { %13496 = vrot.lane.b32.xlu1 %v13495_v38, %s15072_s16 }
 0x251   : > { %v12816_v40 = vpop.f32.mrb[16].mxu1 }
 0x252   : > { %v15509_v42 = vpop.f32.mrb[17].mxu1 }
 0x253   : > { %13501 = vrot.lane.b32.xlu1 %v13500_v19, %s15073_s17  ;;  %v12817_v43 = vpop.f32.mrb[18].mxu1 }
 0x254   : > { %v13505_v44 = vpack.i.bf16 %v12817_v43, %v12816_v40  ;;  %v15512_v45 = vpop.f32.mrb[19].mxu1 }
 0x257   : > { %13506 = vrot.lane.b32.xlu1 %v13505_v44, %s15071_s26 }
 0x259   : > { %v12820_v48 = vpop.f32.mrb[20].mxu1 }
 0x25a   : > { %v2289_v8 = vpop.f32.mrb[21].mxu1 }
 0x25b   : > { %v12821_v10 = vpop.f32.mrb[22].mxu1 }
 0x25c   : > { %v13530_v12 = vpack.i.bf16 %v12821_v10, %v12820_v48  ;;  %v2292_v14 = vpop.f32.mrb[23].mxu1 }
 0x25d   : > { %v13510_v15 = vpack.i.bf16 %v2292_v14, %v2289_v8 }
 0x25f   : > { %13511 = vrot.lane.b32.xlu1 %v13510_v15, %s15072_s16 }
 0x261   : > { %v12824_v16 = vpop.f32.mrb[24].mxu1 }
 0x262   : > { %v15516_v20 = vpop.f32.mrb[25].mxu1 }
 0x263   : > { %13531 = vrot.lane.b32.xlu1 %v13530_v12, %s15073_s17  ;;  %v12825_v19 = vpop.f32.mrb[26].mxu1 }
 0x264   : > { %v13515_v21 = vpack.i.bf16 %v12825_v19, %v12824_v16  ;;  %v15519_v22 = vpop.f32.mrb[27].mxu1 }
 0x266   : > { %13516 = vrot.lane.b32.xlu0 %v13515_v21, %s15071_s26 }
 0x269   : > { %v12828_v26 = vpop.f32.mrb[28].mxu1 }
 0x26a   : > { %v2321_v27 = vpop.f32.mrb[29].mxu1 }
 0x26b   : > { %v12829_v31 = vpop.f32.mrb[30].mxu1 }
 0x26c   : > { %v13525_v32 = vpack.i.bf16 %v12829_v31, %v12828_v26  ;;  %v2324_v35 = vpop.f32.mrb[31].mxu1 }
 0x26d   : > { %v13520_v36 = vpack.i.bf16 %v2324_v35, %v2321_v27 }
 0x26f   : > { %13521 = vrot.lane.b32.xlu0 %v13520_v36, %s15072_s16 }
 0x273   : > { %13526 = vrot.lane.b32.xlu0 %v13525_v32, %s15073_s17 }
 0x2a8   : > { %v13477_v37 = vpop.permute.xlu0 %13476 }
 0x2a9   : > { %v13479_v8 = vunpack.i.h.bf16 %v13477_v37  ;;  %v13478_v10 = vunpack.i.l.bf16 %v13477_v37 }
 0x2ab   : > { %v2433_v36 = vsel %vm2432_vm2, %v15440_v9, %v13478_v10  ;;  %v15543_v9 = vld [vmem:[%s20484_s4 + $0x80] sm:$0xff]  }
 0x2b1   : > { %v13482_v40 = vpop.permute.xlu1 %13481 }
 0x2b2   : > { %v13484_v14 = vunpack.i.h.bf16 %v13482_v40  ;;  %v13483_v15 = vunpack.i.l.bf16 %v13482_v40 }
 0x2b8   : > { %v13487_v38 = vpop.permute.xlu0 %13486 }
 0x2b9   : > { %v13489_v43 = vunpack.i.h.bf16 %v13487_v38  ;;  %v13488_v44 = vunpack.i.l.bf16 %v13487_v38 }
 0x2bb   : > { %v2441_v21 = vsel %vm2432_vm2, %v15472_v24, %v13488_v44  ;;  %v2442_v26 = vsel %vm2432_vm2, %v15481_v28, %v13489_v43  ;;  %v2434_v24 = vsel %vm2432_vm2, %v15442_v11, %v13479_v8  ;;  %v15548_v11 = vld [vmem:[%s20484_s4 + $0xc8] sm:$0xff]  }
 0x2bc   : > { %v2437_v43 = vsel %vm2435_vm3, %v2434_v24, %v13484_v14  ;;  %v15554_v8 = vld [vmem:[%s20484_s4 + $0x88] sm:$0xff]  }
 0x2bd   : > { %20686 = vst [vmem:[#allocation2_spill] sm:$0xff] %v15554_v8 }
 0x2c0   : > { %v13492_v48 = vpop.permute.xlu0 %13491 }
 0x2c1   : > { %v13497_v12 = vpop.permute.xlu1 %13496  ;;  %v13494_v27 = vunpack.i.h.bf16 %v13492_v48  ;;  %v13493_v31 = vunpack.i.l.bf16 %v13492_v48  ;;  %v2436_v48 = vsel %vm2435_vm3, %v2433_v36, %v13483_v15  ;;  %v15560_v15 = vld [vmem:[%s20484_s4 + $0xd0] sm:$0xff]  }
 0x2c2   : > { %v13499_v16 = vunpack.i.h.bf16 %v13497_v12  ;;  %v13498_v19 = vunpack.i.l.bf16 %v13497_v12  ;;  %20687 = vst [vmem:[#allocation3_spill] sm:$0xff] %v15560_v15 }
 0x2c4   : > { %v2443_v32 = vsel %vm2435_vm3, %v2441_v21, %v13498_v19  ;;  %v2444_v35 = vsel %vm2435_vm3, %v2442_v26, %v13499_v16  ;;  %v15566_v21 = vld [vmem:[%s20484_s4 + $0x90] sm:$0xff]  }
 0x2c5   : > { %v13502_v37 = vpop.permute.xlu1 %13501  ;;  %v2445_v38 = vsel %vm2438_vm4, %v2443_v32, %v13493_v31  ;;  %v2446_v40 = vsel %vm2438_vm4, %v2444_v35, %v13494_v27  ;;  %20688 = vst [vmem:[#allocation4_spill] sm:$0xff] %v15566_v21  ;;  %v15572_v27 = vld [vmem:[%s20484_s4 + $0xd8] sm:$0xff]  }
 0x2c6   : > { %v13504_v44 = vunpack.i.h.bf16 %v13502_v37  ;;  %v13503_v12 = vunpack.i.l.bf16 %v13502_v37  ;;  %v2460_v28 = vpack.c.bf16 %v2446_v40, %v2445_v38  ;;  %20689 = vst [vmem:[#allocation5_spill] sm:$0xff] %v15572_v27  ;;  %v15578_v37 = vld [vmem:[%s20484_s4 + $0x98] sm:$0xff]   ;;  %v15584_v40 = vld [vmem:[%s20484_s4 + $0xe0] sm:$0xff]  }
 0x2c7   : > { %20690 = vst [vmem:[#allocation6_spill] sm:$0xff] %v15578_v37  ;;  %20691 = vst [vmem:[#allocation7_spill] sm:$0xff] %v15584_v40 }
 0x2c8   : > { %v2440_v16 = vsel %vm2438_vm4, %v2437_v43, %v13504_v44  ;;  %v2439_v19 = vsel %vm2438_vm4, %v2436_v48, %v13503_v12  ;;  %2693 = vmatprep.mubr.bf16.mxu1 %v2460_v28 }
 0x2c9   : > { %v2459_v10 = vpack.c.bf16 %v2440_v16, %v2439_v19  ;;  %v13507_v14 = vpop.permute.xlu1 %13506 }
 0x2ca   : > { %v13509_v31 = vunpack.i.h.bf16 %v13507_v14  ;;  %v13508_v32 = vunpack.i.l.bf16 %v13507_v14  ;;  %v15610_v14 = vld [vmem:[%s20484_s4 + $0xa8] sm:$0xff]  }
 0x2cb   : > { %2694 = vmatmul.mubr.bf16.vlgmr.msra.gmra.mrb[32].mxu1 %v2459_v10  ;;  %v15598_v10 = vld [vmem:[%s20484_s4 + $0xa0] sm:$0xff]   ;;  %20694 = vst [vmem:[#allocation10_spill] sm:$0xff] %v15610_v14 }
 0x2cc   : > { %11810 = vmatpush3.bf16.msra.mxu1 %v15543_v9  ;;  %v2447_v24 = vsel %vm2432_vm2, %v15509_v42, %v13508_v32  ;;  %v2448_v44 = vsel %vm2432_vm2, %v15512_v45, %v13509_v31  ;;  %20692 = vst [vmem:[#allocation8_spill] sm:$0xff] %v15598_v10  ;;  %v15604_v42 = vld [vmem:[%s20484_s4 + $0xe8] sm:$0xff]   ;;  %v15616_v31 = vld [vmem:[%s20484_s4 + $0xf0] sm:$0xff]  }
 0x2cd   : > { %11811 = vmatprep.subr.bf16.mxu1 %v15548_v11  ;;  %20693 = vst [vmem:[#allocation9_spill] sm:$0xff] %v15604_v42  ;;  %20695 = vst [vmem:[#allocation11_spill] sm:$0xff] %v15616_v31  ;;  %v15622_v32 = vld [vmem:[%s20484_s4 + $0xb0] sm:$0xff]  }
 0x2ce   : > { %20696 = vst [vmem:[#allocation12_spill] sm:$0xff] %v15622_v32 }
 0x2d0   : > { %11812 = vmatpush3.bf16.msra.mxu1 %v15554_v8 }
 0x2d1   : > { %v13512_v26 = vpop.permute.xlu1 %13511  ;;  %11813 = vmatprep.subr.bf16.mxu1 %v15560_v15 }
 0x2d2   : > { %v13514_v35 = vunpack.i.h.bf16 %v13512_v26  ;;  %v13513_v36 = vunpack.i.l.bf16 %v13512_v26 }
 0x2d4   : > { %11814 = vmatpush3.bf16.msra.mxu1 %v15566_v21  ;;  %v2450_v43 = vsel %vm2435_vm3, %v2448_v44, %v13514_v35  ;;  %v2449_v48 = vsel %vm2435_vm3, %v2447_v24, %v13513_v36  ;;  %v15628_v36 = vld [vmem:[%s20484_s4 + $0xf8] sm:$0xff]  }
 0x2d5   : > { %v13532_v38 = vpop.permute.xlu1 %13531  ;;  %11815 = vmatprep.subr.bf16.mxu1 %v15572_v27  ;;  %20697 = vst [vmem:[#allocation13_spill] sm:$0xff] %v15628_v36 }
 0x2d6   : > { %v13534_v12 = vunpack.i.h.bf16 %v13532_v38  ;;  %v13533_v28 = vunpack.i.l.bf16 %v13532_v38 }
 0x2d8   : > { %v2451_v16 = vsel %vm2438_vm4, %v2449_v48, %v13533_v28  ;;  %v2452_v19 = vsel %vm2438_vm4, %v2450_v43, %v13534_v12  ;;  %11816 = vmatpush3.bf16.msra.mxu1 %v15578_v37  ;;  %v13517_v26 = vpop.permute.xlu0 %13516  ;;  %v15634_v28 = vld [vmem:[%s20484_s4 + $0xb8] sm:$0xff]   ;;  %v20723_v37 = vrot.slane %v15278_v46, 4 }
 0x2d9   : > { %11817 = vmatprep.subr.bf16.mxu1 %v15584_v40  ;;  %v2461_v45 = vpack.c.bf16 %v2452_v19, %v2451_v16  ;;  %v13519_v38 = vunpack.i.h.bf16 %v13517_v26  ;;  %v13518_v24 = vunpack.i.l.bf16 %v13517_v26  ;;  %20698 = vst [vmem:[#allocation14_spill] sm:$0xff] %v15634_v28 }
 0x2db   : > { %v2453_v48 = vsel %vm2432_vm2, %v15516_v20, %v13518_v24  ;;  %v2454_v16 = vsel %vm2432_vm2, %v15519_v22, %v13519_v38  ;;  %v20498_v22 = vmov 0.0   ;;  %v14169_v38 = vld [vmem:[%s15186_s21 + $0x84] ss:$8 sps:$4 sm:$0xff]  }
 0x2dc   : > { %11818 = vmatpush3.bf16.msra.mxu1 %v15598_v10  ;;  %1533 = vmatprep.mubr.bf16.mxu0 %v14169_v38 }
 0x2dd   : > { %11819 = vmatprep.subr.bf16.mxu1 %v15604_v42 }
 0x2e0   : > { %11820 = vmatpush3.bf16.msra.mxu1 %v15610_v14 }
 0x2e1   : > { %v13522_v35 = vpop.permute.xlu0 %13521  ;;  %11821 = vmatprep.subr.bf16.mxu1 %v15616_v31 }
 0x2e2   : > { %v13524_v44 = vunpack.i.h.bf16 %v13522_v35  ;;  %v13523_v12 = vunpack.i.l.bf16 %v13522_v35 }
 0x2e4   : > { %11822 = vmatpush3.bf16.msra.mxu1 %v15622_v32  ;;  %v2455_v35 = vsel %vm2435_vm3, %v2453_v48, %v13523_v12  ;;  %v2456_v49 = vsel %vm2435_vm3, %v2454_v16, %v13524_v44  ;;  %v14171_v44 = vld [vmem:[%s15186_s21 + $0x80] ss:$8 sps:$4 sm:$0xff]   ;;  %v14172_v12 = vld [vmem:[%s15186_s21 + $0x94] ss:$8 sps:$4 sm:$0xff]   ;;  %v14180_v48 = vld [vmem:[%s15186_s21 + $0xb0] ss:$8 sps:$4 sm:$0xff]  }
 0x2e5   : > { %v13527_v43 = vpop.permute.xlu0 %13526  ;;  %11823 = vmatprep.subr.bf16.mxu1 %v15628_v36  ;;  %1534 = vmatmul.mubr.bf16.gmra.mrb[32].mxu0 %v14171_v44  ;;  %v14182_v16 = vld [vmem:[%s15186_s21 + $0xc4] ss:$8 sps:$4 sm:$0xff]  }
 0x2e6   : > { %v13529_v19 = vunpack.i.h.bf16 %v13527_v43  ;;  %v13528_v26 = vunpack.i.l.bf16 %v13527_v43  ;;  %1541 = vmatprep.mubr.bf16.mxu0 %v14172_v12  ;;  %v14178_v43 = vld [vmem:[%s15186_s21 + $0xb4] ss:$8 sps:$4 sm:$0xff]   ;;  %v15662_v12 = vld [vmem:[%s20485_s5] ss:$0 sm:$0xff] }
 0x2e7   : > { %20699 = vst [vmem:[#allocation15_spill] sm:$0xff] %v15662_v12 }
 0x2e8   : > { %11824 = vmatpush3.bf16.msra.mxu1 %v15634_v28  ;;  %v2457_v36 = vsel %vm2438_vm4, %v2455_v35, %v13528_v26  ;;  %v2458_v20 = vsel %vm2438_vm4, %v2456_v49, %v13529_v19  ;;  %v14174_v49 = vld [vmem:[%s15186_s21 + $0x90] ss:$8 sps:$4 sm:$0xff]   ;;  %v14184_v19 = vld [vmem:[%s15186_s21 + $0xc0] ss:$8 sps:$4 sm:$0xff]  }
 0x2e9   : > { %v2462_v24 = vpack.c.bf16 %v2458_v20, %v2457_v36  ;;  %12830 = vmatprep.subr.bf16.mxu1 %v20498_v22  ;;  %v14175_v36 = vld [vmem:[%s15186_s21 + $0xa4] ss:$8 sps:$4 sm:$0xff]  }
 0x2eb   : > { %2734 = vmatprep.mubr.bf16.mxu1 %v2462_v24 }
 0x2ec   : > { %2735 = vmatmul.mubr.bf16.vlgmr.msra.gmra.mrb[36].mxu1 %v2461_v45  ;;  %v14177_v45 = vld [vmem:[%s15186_s21 + $0xa0] ss:$8 sps:$4 sm:$0xff]  }
 0x2ed   : > { %12832 = vmatprep.mubr.msk.bf16.mxu1 %vm15075_vm5, %v20498_v22  ;;  %1542 = vmatmul.mubr.bf16.gmra.mrb[36].mxu0 %v14174_v49 }
 0x2ee   : > { %1549 = vmatprep.mubr.bf16.mxu0 %v14175_v36 }
 0x2f5   : > { %1550 = vmatmul.mubr.bf16.gmra.mrb[40].mxu0 %v14177_v45 }
 0x2f6   : > { %1557 = vmatprep.mubr.bf16.mxu0 %v14178_v43 }
 0x2fd   : > { %1558 = vmatmul.mubr.bf16.gmra.mrb[44].mxu0 %v14180_v48 }
 0x2fe   : > { %1565 = vmatprep.mubr.bf16.mxu0 %v14182_v16 }
 0x305   : > { %1566 = vmatmul.mubr.bf16.gmra.mrb[48].mxu0 %v14184_v19 }
 0x39e   : > { %v11803_v26 = vpop.f32.mrb[32].mxu1 }
 0x39f   : > { %v11804_v35 = vpop.f32.mrb[33].mxu1 }
 0x3a0   : > { %v11805_v20 = vadd.f32 %v11804_v35, %v11803_v26  ;;  %v11806_v24 = vpop.f32.mrb[34].mxu1 }
 0x3a1   : > { %v11807_v38 = vpop.f32.mrb[35].mxu1 }
 0x3a2   : > { %v11808_v44 = vadd.f32 %v11807_v38, %v11806_v24  ;;  %v2696_v45 = vadd.f32 %v11805_v20, %v15662_v12  ;;  %v15669_v38 = vld [vmem:[%s20486_s6] sm:$0xff]   ;;  %v20701_v20 = vmov 0.0  }
 0x3a3   : > { %20700 = vst [vmem:[#allocation16_spill] sm:$0xff] %v15669_v38 }
 0x3a4   : > { %v2699_v19 = vadd.f32 %v11808_v44, %v15662_v12  ;;  %v15705_v44 = vld [vmem:[%s20486_s6 + $0x20] ss:$0 sps:$4 sm:$0xff]  }
 0x3a5   : > { %20705 = vst [vmem:[#allocation20_spill] sm:$0xff] %v15705_v44 }
 0x3bf   : > { %v11825_v49 = vpop.f32.mrb[36].mxu1 }
 0x3c0   : > { %v11826_v36 = vpop.f32.mrb[37].mxu1 }
 0x3c1   : > { %v11827_v43 = vadd.f32 %v11826_v36, %v11825_v49  ;;  %v11828_v48 = vpop.f32.mrb[38].mxu1  ;;  %v15712_v49 = vld [vmem:[%s20487_s7 + $0x40] sm:$0xff]  }
 0x3c2   : > { %v11829_v16 = vpop.f32.mrb[39].mxu1  ;;  %20706 = vst [vmem:[#allocation21_spill] sm:$0xff] %v15712_v49  ;;  %v15717_v36 = vld [vmem:[%s20487_s7] sm:$0xff]  }
 0x3c3   : > { %v2737_v22 = vadd.f32 %v11827_v43, %v2696_v45  ;;  %v11830_v28 = vadd.f32 %v11829_v16, %v11828_v48  ;;  %20707 = vst [vmem:[#allocation22_spill] sm:$0xff] %v15717_v36  ;;  %v15722_v45 = vld [vmem:[%s20487_s7 + $0x48] sm:$0xff]   ;;  %v15735_v48 = vld [vmem:[%s20487_s7 + $0x50] sm:$0xff]  }
 0x3c4   : > { %20708 = vst [vmem:[#allocation23_spill] sm:$0xff] %v15722_v45  ;;  %v15729_v43 = vld [vmem:[%s20487_s7 + $0x8] sm:$0xff]   ;;  %20710 = vst [vmem:[#allocation25_spill] sm:$0xff] %v15735_v48  ;;  %v15741_v16 = vld [vmem:[%s20487_s7 + $0x10] sm:$0xff]  }
 0x3c5   : > { %v2740_v26 = vadd.f32 %v11830_v28, %v2699_v19  ;;  %v2743_v35 = vmax.f32 %v2737_v22, 0.0  ;;  %v15678_v28 = vld [vmem:[%s20486_s6 + $0x8] sm:$0xff]   ;;  %v15696_v22 = vld [vmem:[%s20486_s6 + $0x18] sm:$0xff]   ;;  %20709 = vst [vmem:[#allocation24_spill] sm:$0xff] %v15729_v43  ;;  %20711 = vst [vmem:[#allocation26_spill] sm:$0xff] %v15741_v16 }
 0x3c6   : > { %20702 = vst [vmem:[#allocation17_spill] sm:$0xff] %v15678_v28  ;;  %20704 = vst [vmem:[#allocation19_spill] sm:$0xff] %v15696_v22  ;;  %v15747_v19 = vld [vmem:[%s20487_s7 + $0x58] sm:$0xff]  }
 0x3c7   : > { %v2744_v32 = vmax.f32 %v2740_v26, 0.0  ;;  %20712 = vst [vmem:[#allocation27_spill] sm:$0xff] %v15747_v19  ;;  %v15753_v26 = vld [vmem:[%s20487_s7 + $0x18] sm:$0xff]  }
 0x3c8   : > { %20713 = vst [vmem:[#allocation28_spill] sm:$0xff] %v15753_v26 }
 0x3c9   : > { %v2745_v24 = vpack.c.bf16 %v2744_v32, %v2743_v35  ;;  %v15687_v32 = vld [vmem:[%s20486_s6 + $0x10] sm:$0xff]   ;;  %v15759_v35 = vld [vmem:[%s20487_s7 + $0x60] sm:$0xff]  }
 0x3ca   : > { %20703 = vst [vmem:[#allocation18_spill] sm:$0xff] %v15687_v32  ;;  %20714 = vst [vmem:[#allocation29_spill] sm:$0xff] %v15759_v35 }
 0x3cb   : > { %12831 = vmatpush3.bf16.msra.mxu1 %v2745_v24  ;;  %v15765_v24 = vld [vmem:[%s20487_s7 + $0x20] sm:$0xff]  }
 0x3cc   : > { %11837 = vmatprep.subr.bf16.mxu1 %v15712_v49  ;;  %20715 = vst [vmem:[#allocation30_spill] sm:$0xff] %v15765_v24 }
 0x3ce   : > { %12833 = vmatmul.mubr.msk.bf16.vlgmr.msra.gmra.mrb[40].mxu1 %vm2769_vm6, %v15669_v38 }
 0x3cf   : > { %12836 = vmatprep.mubr.msk.bf16.mxu1 %vm15075_vm5, %v20701_v20  ;;  %11838 = vmatpush3.bf16.msra.mxu1 %v15717_v36  ;;  %v1535_v36 = vpop.f32.mrb[32].mxu0 }
 0x3d0   : > { %11839 = vmatprep.subr.bf16.mxu1 %v15722_v45  ;;  %v1536_v38 = vadd.f32 %v15244_v34, %v1535_v36  ;;  %v1537_v49 = vpop.f32.mrb[33].mxu0 }
 0x3d1   : > { %v1538_v12 = vpop.f32.mrb[34].mxu0 }
 0x3d2   : > { %v1902_v31 = vmax.f32 %v1536_v38, 0.0  ;;  %v1540_v14 = vpop.f32.mrb[35].mxu0 }
 0x3d3   : > { %11840 = vmatpush3.bf16.msra.mxu1 %v15729_v43 }
 0x3d4   : > { %11841 = vmatprep.subr.bf16.mxu1 %v15735_v48 }
 0x3d6   : > { %12837 = vmatmul.mubr.msk.bf16.gmra.mrb[44].mxu1 %vm2769_vm6, %v15678_v28 }
 0x3d7   : > { %12840 = vmatprep.mubr.msk.bf16.mxu1 %vm15075_vm5, %v20701_v20  ;;  %11842 = vmatpush3.bf16.msra.mxu1 %v15741_v16 }
 0x3d8   : > { %11843 = vmatprep.subr.bf16.mxu1 %v15747_v19 }
 0x3db   : > { %11844 = vmatpush3.bf16.msra.mxu1 %v15753_v26 }
 0x3dc   : > { %11845 = vmatprep.subr.bf16.mxu1 %v15759_v35  ;;  %v15789_v35 = vld [vmem:[%s20487_s7 + $0x30] sm:$0xff]  }
 0x3dd   : > { %20719 = vst [vmem:[#allocation34_spill] sm:$0xff] %v15789_v35 }
 0x3de   : > { %12841 = vmatmul.mubr.msk.bf16.gmra.mrb[48].mxu1 %vm2769_vm6, %v15687_v32  ;;  %v15783_v32 = vld [vmem:[%s20487_s7 + $0x70] sm:$0xff]  }
 0x3df   : > { %12844 = vmatprep.mubr.msk.bf16.mxu1 %vm15075_vm5, %v20701_v20  ;;  %11846 = vmatpush3.bf16.msra.mxu1 %v15765_v24  ;;  %20718 = vst [vmem:[#allocation33_spill] sm:$0xff] %v15783_v32 }
 0x3e6   : > { %12845 = vmatmul.mubr.msk.bf16.gmra.mrb[52].mxu1 %vm2769_vm6, %v15696_v22  ;;  %v15777_v22 = vld [vmem:[%s20487_s7 + $0x28] sm:$0xff]  }
 0x3e7   : > { %12848 = vmatprep.mubr.msk.bf16.mxu1 %vm15075_vm5, %v20701_v20  ;;  %20717 = vst [vmem:[#allocation32_spill] sm:$0xff] %v15777_v22 }
 0x3ee   : > { %12849 = vmatmul.mubr.msk.bf16.gmra.mrb[56].mxu1 %vm2769_vm6, %v15705_v44  ;;  %v15771_v44 = vld [vmem:[%s20487_s7 + $0x68] sm:$0xff]  }
 0x3ef   : > { %20716 = vst [vmem:[#allocation31_spill] sm:$0xff] %v15771_v44  ;;  %11847 = vmatprep.subr.bf16.mxu1 %v15771_v44  ;;  %v15796_v44 = vld [vmem:[%s20487_s7 + $0x78] sm:$0xff]  }
 0x3f0   : > { %11848 = vmatpush3.bf16.msra.mxu1 %v15777_v22  ;;  %20720 = vst [vmem:[#allocation35_spill] sm:$0xff] %v15796_v44  ;;  %v15803_v22 = vld [vmem:[%s20487_s7 + $0x38] sm:$0xff]  }
 0x3f1   : > { %11849 = vmatprep.subr.bf16.mxu1 %v15783_v32  ;;  %20721 = vst [vmem:[#allocation36_spill] sm:$0xff] %v15803_v22 }
 0x3f4   : > { %11850 = vmatpush3.bf16.msra.mxu1 %v15789_v35  ;;  %v15810_v35 = vld [vmem:[%s20487_s7 + $0xc0] sm:$0xff]  }
 0x3f5   : > { %11851 = vmatprep.subr.bf16.mxu1 %v15796_v44  ;;  %20722 = vst [vmem:[#allocation37_spill] sm:$0xff] %v15810_v35 }
 0x3f8   : > { %11852 = vmatpush3.bf16.msra.mxu1 %v15803_v22 }
 0x3f9   : > { %11859 = vmatprep.subr.bf16.mxu1 %v15810_v35  ;;  %v1539_v35 = vadd.f32 %v15244_v34, %v1538_v12 }
 0x4a1   : > { %v15798_v24 = vpop.f32.mrb[40].mxu1 }
 0x4a2   : > { %v12834_v26 = vpop.f32.mrb[41].mxu1 }
 0x4a3   : > { %v2822_v19 = vpop.f32.mrb[42].mxu1 }
 0x4a4   : > { %v12835_v32 = vpop.f32.mrb[43].mxu1 }
 0x4a9   : > { %v15813_v16 = vpop.f32.mrb[44].mxu1 }
 0x4aa   : > { %v12838_v28 = vpop.f32.mrb[45].mxu1 }
 0x4ab   : > { %v2830_v48 = vpop.f32.mrb[46].mxu1 }
 0x4ac   : > { %v13535_v43 = vpack.i.bf16 %v2822_v19, %v2830_v48  ;;  %v12839_v45 = vpop.f32.mrb[47].mxu1  ;;  %v1903_v48 = vmax.f32 %v1539_v35, 0.0 }
 0x4ae   : > { %13536 = vrot.lane.b32.xlu0 %v13535_v43, %s15072_s16  ;;  %v1998_v43 = vpack.c.bf16 %v1903_v48, %v1902_v31 }
 0x4b0   : > { %v3252_v36 = vrot.slane %v1998_v43, 4 }
 0x4b1   : > { %v15816_v26 = vpop.f32.mrb[48].mxu1 }
 0x4b2   : > { %v12842_v44 = vpop.f32.mrb[49].mxu1  ;;  %v15828_v35 = vsel %vm2171_vm1, %v20723_v37, %v3252_v36 }
 0x4b3   : > { %v2838_v22 = vpop.f32.mrb[50].mxu1  ;;  %v1543_v44 = vpop.f32.mrb[36].mxu0 }
 0x4b4   : > { %v12843_v32 = vpop.f32.mrb[51].mxu1  ;;  %v1545_v40 = vpop.f32.mrb[37].mxu0 }
 0x4b5   : > { %v1544_v32 = vadd.f32 %v15244_v34, %v1543_v44  ;;  %v1546_v49 = vpop.f32.mrb[38].mxu0 }
 0x4b6   : > { %v1547_v12 = vadd.f32 %v15244_v34, %v1546_v49  ;;  %v1548_v14 = vpop.f32.mrb[39].mxu0 }
 0x4b7   : > { %v1904_v38 = vmax.f32 %v1544_v32, 0.0 }
 0x4b8   : > { %v1905_v31 = vmax.f32 %v1547_v12, 0.0 }
 0x4b9   : > { %v15820_v28 = vpop.f32.mrb[52].mxu1 }
 0x4ba   : > { %v12846_v45 = vpop.f32.mrb[53].mxu1 }
 0x4bb   : > { %v2846_v19 = vpop.f32.mrb[54].mxu1 }
 0x4bc   : > { %v13540_v42 = vpack.i.bf16 %v2838_v22, %v2846_v19  ;;  %v12847_v10 = vpop.f32.mrb[55].mxu1  ;;  %v1999_v22 = vpack.c.bf16 %v1905_v31, %v1904_v38 }
 0x4bd   : > { %v1551_v10 = vpop.f32.mrb[40].mxu0 }
 0x4be   : > { %13541 = vrot.lane.b32.xlu1 %v13540_v42, %s15072_s16  ;;  %v1552_v48 = vadd.f32 %v15244_v34, %v1551_v10  ;;  %v1553_v45 = vpop.f32.mrb[41].mxu0  ;;  %v3254_v19 = vrot.slane %v1999_v22, 4 }
 0x4bf   : > { %v1554_v40 = vpop.f32.mrb[42].mxu0 }
 0x4c0   : > { %v1906_v42 = vmax.f32 %v1552_v48, 0.0  ;;  %v1555_v43 = vadd.f32 %v15244_v34, %v1554_v40  ;;  %v1556_v44 = vpop.f32.mrb[43].mxu0  ;;  %v15833_v32 = vsel %vm2171_vm1, %v3252_v36, %v3254_v19 }
 0x4c1   : > { %v1559_v14 = vpop.f32.mrb[44].mxu0  ;;  %v15837_v22 = vpop.f32.mrb[56].mxu1 }
 0x4c2   : > { %v1907_v49 = vmax.f32 %v1555_v43, 0.0  ;;  %v1560_v37 = vadd.f32 %v15244_v34, %v1559_v14  ;;  %v1561_v12 = vpop.f32.mrb[45].mxu0  ;;  %v12850_v36 = vpop.f32.mrb[57].mxu1 }
 0x4c3   : > { %v1562_v38 = vpop.f32.mrb[46].mxu0  ;;  %v2854_v44 = vpop.f32.mrb[58].mxu1 }
 0x4c4   : > { %v2000_v46 = vpack.c.bf16 %v1907_v49, %v1906_v42  ;;  %v1908_v27 = vmax.f32 %v1560_v37, 0.0  ;;  %v1563_v10 = vadd.f32 %v15244_v34, %v1562_v38  ;;  %v1564_v45 = vpop.f32.mrb[47].mxu0  ;;  %v12851_v42 = vpop.f32.mrb[59].mxu1 }
 0x4c5   : > { %v1567_v49 = vpop.f32.mrb[48].mxu0  ;;  %v15865_v42 = vld [vmem:[%s20487_s7 + $0xc8] sm:$0xff]  }
 0x4c6   : > { %v3256_v31 = vrot.slane %v2000_v46, 4  ;;  %v1909_v40 = vmax.f32 %v1563_v10, 0.0  ;;  %v1568_v14 = vadd.f32 %v15244_v34, %v1567_v49  ;;  %v1569_v12 = vpop.f32.mrb[49].mxu0  ;;  %v15883_v49 = vld [vmem:[%s20487_s7 + $0x90] sm:$0xff]  }
 0x4c7   : > { %v1570_v21 = vpop.f32.mrb[50].mxu0 }
 0x4c8   : > { %v15840_v48 = vsel %vm2171_vm1, %v3254_v19, %v3256_v31  ;;  %v2001_v43 = vpack.c.bf16 %v1909_v40, %v1908_v27  ;;  %v1910_v37 = vmax.f32 %v1568_v14, 0.0  ;;  %v1571_v38 = vadd.f32 %v15244_v34, %v1570_v21  ;;  %v1572_v45 = vpop.f32.mrb[51].mxu0  ;;  %v15889_v14 = vld [vmem:[%s20487_s7 + $0xd8] sm:$0xff]  }
 0x4ca   : > { %v3258_v46 = vrot.slane %v2001_v43, 4  ;;  %v1911_v19 = vmax.f32 %v1571_v38, 0.0  ;;  %v15901_v38 = vld [vmem:[%s20487_s7 + $0xe0] sm:$0xff]  }
 0x4cc   : > { %v15845_v15 = vsel %vm2171_vm1, %v3256_v31, %v3258_v46  ;;  %v2002_v8 = vpack.c.bf16 %v1911_v19, %v1910_v37 }
 0x4ce   : > { %v15847_v10 = vrot.slane %v2002_v8, 4  ;;  %v15860_v8 = vld [vmem:[%s20487_s7 + $0x80] sm:$0xff]  }
 0x4d0   : > { %v15851_v27 = vsel %vm2171_vm1, %v3258_v46, %v15847_v10  ;;  %v15895_v46 = vld [vmem:[%s20487_s7 + $0x98] sm:$0xff]  }
 0x520   : > { %v13537_v40 = vpop.permute.xlu0 %13536 }
 0x521   : > { %v13539_v36 = vunpack.i.h.bf16 %v13537_v40  ;;  %v13538_v44 = vunpack.i.l.bf16 %v13537_v40  ;;  %v15909_v40 = vld [vmem:[%s20487_s7 + $0xa0] sm:$0xff]  }
 0x523   : > { %v2873_v43 = vsel %vm2435_vm3, %v15798_v24, %v13539_v36  ;;  %v2874_v34 = vsel %vm2435_vm3, %v15813_v16, %v13538_v44  ;;  %v15871_v16 = vld [vmem:[%s20487_s7 + $0x88] sm:$0xff]   ;;  %v15877_v24 = vld [vmem:[%s20487_s7 + $0xd0] sm:$0xff]  }
 0x524   : > { %v2877_v21 = vpack.c.bf16 %v2873_v43, %v2873_v43  ;;  %v2878_v31 = vpack.c.bf16 %v2874_v34, %v2874_v34  ;;  %v15915_v36 = vld [vmem:[%s20487_s7 + $0xe8] sm:$0xff]   ;;  %v15927_v44 = vld [vmem:[%s20487_s7 + $0xf0] sm:$0xff]   ;;  %v15939_v34 = vld [vmem:[%s20487_s7 + $0xf8] sm:$0xff]  }
 0x525   : > { %v15933_v43 = vld [vmem:[%s20487_s7 + $0xb0] sm:$0xff]  }
 0x526   : > { %3139 = vmatprep.mubr.bf16.mxu1 %v2878_v31  ;;  %v15945_v31 = vld [vmem:[%s20487_s7 + $0xb8] sm:$0xff]  }
 0x527   : > { %3140 = vmatmul.mubr.bf16.vlgmr.msra.gmra.mrb[60].mxu1 %v2877_v21 }
 0x528   : > { %11860 = vmatpush3.bf16.msra.mxu1 %v15860_v8 }
 0x529   : > { %11861 = vmatprep.subr.bf16.mxu1 %v15865_v42 }
 0x52c   : > { %11862 = vmatpush3.bf16.msra.mxu1 %v15871_v16 }
 0x52d   : > { %11863 = vmatprep.subr.bf16.mxu1 %v15877_v24 }
 0x530   : > { %11864 = vmatpush3.bf16.msra.mxu1 %v15883_v49  ;;  %v13542_v12 = vpop.permute.xlu1 %13541 }
 0x531   : > { %v13543_v37 = vunpack.i.l.bf16 %v13542_v12  ;;  %11865 = vmatprep.subr.bf16.mxu1 %v15889_v14  ;;  %v13544_v21 = vunpack.i.h.bf16 %v13542_v12 }
 0x533   : > { %v2876_v45 = vsel %vm2435_vm3, %v15820_v28, %v13543_v37  ;;  %v15921_v28 = vld [vmem:[%s20487_s7 + $0xa8] sm:$0xff]   ;;  %v2875_v37 = vsel %vm2435_vm3, %v15816_v26, %v13544_v21  ;;  %v15970_v26 = vld [vmem:[%s20487_s7 + $0x110] sm:$0xff]   ;;  %v15977_v21 = vld [vmem:[%s20487_s7 + $0x118] sm:$0xff]  }
 0x534   : > { %11866 = vmatpush3.bf16.msra.mxu1 %v15895_v46  ;;  %v2880_v19 = vpack.c.bf16 %v2876_v45, %v2876_v45  ;;  %v15954_v45 = vld [vmem:[%s20487_s7 + $0x100] sm:$0xff]   ;;  %v2879_v12 = vpack.c.bf16 %v2875_v37, %v2875_v37  ;;  %v2881_v37 = vpack.c.bf16 %v15837_v22, %v15837_v22 }
 0x535   : > { %11867 = vmatprep.subr.bf16.mxu1 %v15901_v38 }
 0x536   : > { %3179 = vmatprep.mubr.bf16.mxu1 %v2880_v19  ;;  %v15961_v19 = vld [vmem:[%s20487_s7 + $0x108] sm:$0xff]  }
 0x538   : > { %11868 = vmatpush3.bf16.msra.mxu1 %v15909_v40 }
 0x539   : > { %11869 = vmatprep.subr.bf16.mxu1 %v15915_v36 }
 0x53c   : > { %11870 = vmatpush3.bf16.msra.mxu1 %v15921_v28 }
 0x53d   : > { %11871 = vmatprep.subr.bf16.mxu1 %v15927_v44 }
 0x540   : > { %11872 = vmatpush3.bf16.msra.mxu1 %v15933_v43 }
 0x541   : > { %11873 = vmatprep.subr.bf16.mxu1 %v15939_v34 }
 0x544   : > { %11874 = vmatpush3.bf16.msra.mxu1 %v15945_v31 }
 0x545   : > { %12852 = vmatprep.subr.bf16.mxu1 %v20701_v20 }
 0x547   : > { %3180 = vmatmul.mubr.bf16.vlgmr.msra.gmra.mrb[64].mxu1 %v2879_v12  ;;  %v15989_v12 = vld [vmem:[%s20483_s3] sm:$0xff]  }
 0x548   : > { %12853 = vmatpush3.bf16.msra.mxu1 %v15954_v45  ;;  %12860 = vmatprep.mubr.msk.bf16.mxu1 %vm15075_vm5, %v20701_v20 }
 0x549   : > { %12854 = vmatprep.subr.bf16.mxu1 %v20701_v20 }
 0x54c   : > { %12855 = vmatpush3.bf16.msra.mxu1 %v15961_v19 }
 0x54d   : > { %12856 = vmatprep.subr.bf16.mxu1 %v20701_v20 }
 0x550   : > { %12857 = vmatpush3.bf16.msra.mxu1 %v15970_v26 }
 0x551   : > { %12858 = vmatprep.subr.bf16.mxu1 %v20701_v20 }
 0x554   : > { %12859 = vmatpush3.bf16.msra.mxu1 %v15977_v21 }
 0x555   : > { %12864 = vmatprep.subr.bf16.mxu1 %v15294_v51 }
 0x557   : > { %12861 = vmatmul.mubr.msk.bf16.vlgmr.msra.gmra.mrb[68].mxu1 %vm2435_vm3, %v2881_v37 }
 0x558   : > { %12865 = vmatpush3.bf16.msra.mxu1 %v15294_v51  ;;  %12878 = vmatprep.mubr.msk.bf16.mxu1 %vm2122_vm0, %v15989_v12  ;;  %v3269_v51 = vsel %vm2171_vm1, %v15847_v10, 0 }
 0x559   : > { %12866 = vmatprep.subr.bf16.mxu1 %v15828_v35 }
 0x55c   : > { %12867 = vmatpush3.bf16.msra.mxu1 %v15828_v35 }
 0x55d   : > { %12868 = vmatprep.subr.bf16.mxu1 %v15833_v32 }
 0x560   : > { %12869 = vmatpush3.bf16.msra.mxu1 %v15833_v32 }
 0x561   : > { %12870 = vmatprep.subr.bf16.mxu1 %v15840_v48 }
 0x564   : > { %12871 = vmatpush3.bf16.msra.mxu1 %v15840_v48 }
 0x565   : > { %12872 = vmatprep.subr.bf16.mxu1 %v15845_v15 }
 0x568   : > { %12873 = vmatpush3.bf16.msra.mxu1 %v15845_v15 }
 0x569   : > { %12874 = vmatprep.subr.bf16.mxu1 %v15851_v27 }
 0x56c   : > { %12875 = vmatpush3.bf16.msra.mxu1 %v15851_v27 }
 0x56d   : > { %13453 = vmatprep.subr.msk.bf16.mxu1 %vm2171_vm1, %v15847_v10 }
 0x570   : > { %12877 = vmatpush3.bf16.msra.mxu1 %v3269_v51 }
 0x571   : > { %11909 = vmatprep.subr.bf16.mxu1 %v15380_v63 }
 0x573   : > { %12879 = vmatmul.mubr.msk.bf16.vlgmr.msra.gmra.mrb[72].mxu1 %vm2122_vm0, %v15266_v39 }
 0x574   : > { %12882 = vmatprep.mubr.msk.bf16.mxu1 %vm2122_vm0, %v15271_v41  ;;  %11910 = vmatpush3.bf16.msra.mxu1 %v15385_v0 }
 0x575   : > { %11911 = vmatprep.subr.bf16.mxu1 %v15390_v1 }
 0x578   : > { %11912 = vmatpush3.bf16.msra.mxu1 %v15398_v2 }
 0x579   : > { %11913 = vmatprep.subr.bf16.mxu1 %v15405_v3 }
 0x57b   : > { %12883 = vmatmul.mubr.msk.bf16.gmra.mrb[76].mxu1 %vm2122_vm0, %v15283_v47 }
 0x57c   : > { %12886 = vmatprep.mubr.msk.bf16.mxu1 %vm2122_vm0, %v15289_v50  ;;  %11914 = vmatpush3.bf16.msra.mxu1 %v15412_v4 }
 0x57d   : > { %11915 = vmatprep.subr.bf16.mxu1 %v15422_v5 }
 0x580   : > { %11916 = vmatpush3.bf16.msra.mxu1 %v15427_v6 }
 0x581   : > { %11917 = vmatprep.subr.bf16.mxu1 %v15432_v7 }
 0x583   : > { %12887 = vmatmul.mubr.msk.bf16.gmra.mrb[80].mxu1 %vm2122_vm0, %v15303_v52 }
 0x584   : > { %12890 = vmatprep.mubr.msk.bf16.mxu1 %vm2122_vm0, %v15308_v53  ;;  %11918 = vmatpush3.bf16.msra.mxu1 %v15447_v13  ;;  %v11152_v53 = vld [vmem:[%s20488_s8] ss:$0 sm:$0xff] }
 0x585   : > { %11919 = vmatprep.subr.bf16.mxu1 %v15455_v17 }
 0x588   : > { %11920 = vmatpush3.bf16.msra.mxu1 %v15460_v18 }
 0x589   : > { %11921 = vmatprep.subr.bf16.mxu1 %v15470_v23 }
 0x58b   : > { %12891 = vmatmul.mubr.msk.bf16.gmra.mrb[84].mxu1 %vm2122_vm0, %v15317_v54 }
 0x58c   : > { %12894 = vmatprep.mubr.msk.bf16.mxu1 %vm2122_vm0, %v15322_v55  ;;  %11922 = vmatpush3.bf16.msra.mxu1 %v15477_v25 }
 0x58d   : > { %11923 = vmatprep.subr.bf16.mxu1 %v15488_v29 }
 0x590   : > { %11924 = vmatpush3.bf16.msra.mxu1 %v15494_v30 }
 0x591   : > { %11931 = vmatprep.subr.bf16.mxu1 %v15503_v33 }
 0x593   : > { %12895 = vmatmul.mubr.msk.bf16.gmra.mrb[88].mxu1 %vm2122_vm0, %v15331_v56 }
 0x594   : > { %12898 = vmatprep.mubr.msk.bf16.mxu1 %vm2122_vm0, %v15336_v57 }
 0x59b   : > { %12899 = vmatmul.mubr.msk.bf16.gmra.mrb[92].mxu1 %vm2122_vm0, %v15345_v58 }
 0x59c   : > { %12902 = vmatprep.mubr.msk.bf16.mxu1 %vm2122_vm0, %v15350_v59 }
 0x5a3   : > { %12903 = vmatmul.mubr.msk.bf16.gmra.mrb[96].mxu1 %vm2122_vm0, %v15359_v60 }
 0x5a4   : > { %12906 = vmatprep.mubr.msk.bf16.mxu1 %vm2122_vm0, %v15364_v61 }
 0x5ab   : > { %12907 = vmatmul.mubr.msk.bf16.gmra.mrb[100].mxu1 %vm2122_vm0, %v15373_v62 }
 0x5fa   : > { %v11853_v39 = vpop.f32.mrb[60].mxu1 }
 0x5fb   : > { %v11854_v41 = vpop.f32.mrb[61].mxu1 }
 0x5fc   : > { %v11855_v47 = vadd.f32 %v11854_v41, %v11853_v39  ;;  %v11856_v50 = vpop.f32.mrb[62].mxu1 }
 0x5fd   : > { %v11857_v52 = vpop.f32.mrb[63].mxu1 }
 0x5fe   : > { %v3142_v56 = vadd.f32 %v11855_v47, %v11152_v53 }
 0x61a   : > { %v11875_v54 = vpop.f32.mrb[64].mxu1 }
 0x61b   : > { %v11876_v55 = vpop.f32.mrb[65].mxu1 }
 0x61c   : > { %v11877_v57 = vadd.f32 %v11876_v55, %v11875_v54  ;;  %v11878_v58 = vpop.f32.mrb[66].mxu1 }
 0x61d   : > { %v11879_v59 = vpop.f32.mrb[67].mxu1 }
 0x61e   : > { %v3182_v60 = vadd.f32 %v11877_v57, %v3142_v56 }
 0x62a   : > { %v3221_v61 = vpop.f32.mrb[68].mxu1 }
 0x62b   : > { %v16057_v63 = vadd.f32 %v3221_v61, %v3182_v60  ;;  %v12862_v62 = vpop.f32.mrb[69].mxu1 }
 0x62c   : > { %v3224_v0 = vpop.f32.mrb[70].mxu1 }
 0x62d   : > { %20724 = vst [vmem:[#allocation38_spill] sm:$0xff] %v16057_v63  ;;  %v12863_v1 = vpop.f32.mrb[71].mxu1 }
 0x646   : > { %v12880_v2 = vpop.f32.mrb[72].mxu1 }
 0x647   : > { %v16059_v3 = vpop.f32.mrb[73].mxu1 }
 0x648   : > { %v12881_v4 = vpop.f32.mrb[74].mxu1 }
 0x649   : > { %v13545_v5 = vpack.i.bf16 %v12881_v4, %v12880_v2  ;;  %v3308_v6 = vpop.f32.mrb[75].mxu1 }
 0x64b   : > { %13546 = vrot.lane.b32.xlu1 %v13545_v5, %s15071_s26 }
 0x64e   : > { %v12884_v7 = vpop.f32.mrb[76].mxu1 }
 0x64f   : > { %v3321_v13 = vpop.f32.mrb[77].mxu1 }
 0x650   : > { %v12885_v17 = vpop.f32.mrb[78].mxu1 }
 0x651   : > { %v13570_v18 = vpack.i.bf16 %v12885_v17, %v12884_v7  ;;  %v3324_v23 = vpop.f32.mrb[79].mxu1 }
 0x652   : > { %v13550_v25 = vpack.i.bf16 %v3324_v23, %v3321_v13 }
 0x654   : > { %13551 = vrot.lane.b32.xlu1 %v13550_v25, %s15072_s16 }
 0x656   : > { %v12888_v29 = vpop.f32.mrb[80].mxu1 }
 0x657   : > { %v16063_v30 = vpop.f32.mrb[81].mxu1 }
 0x658   : > { %13571 = vrot.lane.b32.xlu1 %v13570_v18, %s15073_s17  ;;  %v12889_v33 = vpop.f32.mrb[82].mxu1 }
 0x659   : > { %v13555_v15 = vpack.i.bf16 %v12889_v33, %v12888_v29  ;;  %v16066_v35 = vpop.f32.mrb[83].mxu1 }
 0x65b   : > { %13556 = vrot.lane.b32.xlu0 %v13555_v15, %s15071_s26 }
 0x65e   : > { %v12892_v32 = vpop.f32.mrb[84].mxu1 }
 0x65f   : > { %v3353_v22 = vpop.f32.mrb[85].mxu1 }
 0x660   : > { %v12893_v48 = vpop.f32.mrb[86].mxu1 }
 0x661   : > { %v13565_v10 = vpack.i.bf16 %v12893_v48, %v12892_v32  ;;  %v3356_v27 = vpop.f32.mrb[87].mxu1 }
 0x662   : > { %v13560_v37 = vpack.i.bf16 %v3356_v27, %v3353_v22 }
 0x664   : > { %13561 = vrot.lane.b32.xlu0 %v13560_v37, %s15072_s16 }
 0x666   : > { %v12896_v51 = vpop.f32.mrb[88].mxu1 }
 0x667   : > { %v16070_v39 = vpop.f32.mrb[89].mxu1 }
 0x668   : > { %13566 = vrot.lane.b32.xlu0 %v13565_v10, %s15073_s17  ;;  %v12897_v41 = vpop.f32.mrb[90].mxu1 }
 0x669   : > { %v13575_v47 = vpack.i.bf16 %v12897_v41, %v12896_v51  ;;  %v16073_v50 = vpop.f32.mrb[91].mxu1 }
 0x66b   : > { %13576 = vrot.lane.b32.xlu1 %v13575_v47, %s15071_s26 }
 0x66e   : > { %v12900_v52 = vpop.f32.mrb[92].mxu1 }
 0x66f   : > { %v3385_v53 = vpop.f32.mrb[93].mxu1 }
 0x670   : > { %v12901_v54 = vpop.f32.mrb[94].mxu1 }
 0x671   : > { %v13600_v55 = vpack.i.bf16 %v12901_v54, %v12900_v52  ;;  %v3388_v56 = vpop.f32.mrb[95].mxu1 }
 0x672   : > { %v13580_v57 = vpack.i.bf16 %v3388_v56, %v3385_v53 }
 0x674   : > { %13581 = vrot.lane.b32.xlu1 %v13580_v57, %s15072_s16 }
 0x676   : > { %v12904_v58 = vpop.f32.mrb[96].mxu1 }
 0x677   : > { %v16077_v59 = vpop.f32.mrb[97].mxu1 }
 0x678   : > { %13601 = vrot.lane.b32.xlu1 %v13600_v55, %s15073_s17  ;;  %v12905_v60 = vpop.f32.mrb[98].mxu1 }
 0x679   : > { %v13585_v61 = vpack.i.bf16 %v12905_v60, %v12904_v58  ;;  %v16080_v62 = vpop.f32.mrb[99].mxu1 }
 0x67b   : > { %13586 = vrot.lane.b32.xlu0 %v13585_v61, %s15071_s26 }
 0x67e   : > { %v12908_v0 = vpop.f32.mrb[100].mxu1 }
 0x67f   : > { %v3417_v1 = vpop.f32.mrb[101].mxu1 }
 0x680   : > { %v12909_v2 = vpop.f32.mrb[102].mxu1 }
 0x681   : > { %v13595_v4 = vpack.i.bf16 %v12909_v2, %v12908_v0  ;;  %v3420_v5 = vpop.f32.mrb[103].mxu1 }
 0x682   : > { %v13590_v7 = vpack.i.bf16 %v3420_v5, %v3417_v1 }
 0x684   : > { %13591 = vrot.lane.b32.xlu0 %v13590_v7, %s15072_s16 }
 0x688   : > { %13596 = vrot.lane.b32.xlu0 %v13595_v4, %s15073_s17 }
 0x6bd   : > { %v13547_v13 = vpop.permute.xlu1 %13546 }
 0x6be   : > { %v13549_v18 = vunpack.i.h.bf16 %v13547_v13  ;;  %v13548_v23 = vunpack.i.l.bf16 %v13547_v13 }
 0x6c0   : > { %v3528_v15 = vsel %vm2432_vm2, %v16059_v3, %v13548_v23  ;;  %v3529_v32 = vsel %vm2432_vm2, %v3308_v6, %v13549_v18 }
 0x6c6   : > { %v13552_v17 = vpop.permute.xlu1 %13551 }
 0x6c7   : > { %v13554_v25 = vunpack.i.h.bf16 %v13552_v17  ;;  %v13553_v29 = vunpack.i.l.bf16 %v13552_v17  ;;  %v20726_v17 = vld [vmem:[#allocation3_spill] sm:$0xff] }
 0x6c9   : > { %v3531_v10 = vsel %vm2435_vm3, %v3529_v32, %v13554_v25  ;;  %v3530_v27 = vsel %vm2435_vm3, %v3528_v15, %v13553_v29  ;;  %v20727_v25 = vld [vmem:[#allocation4_spill] sm:$0xff]  ;;  %v20728_v32 = vld [vmem:[#allocation5_spill] sm:$0xff] }
 0x6ca   : > { %v13572_v33 = vpop.permute.xlu1 %13571 }
 0x6cb   : > { %v13574_v22 = vunpack.i.h.bf16 %v13572_v33  ;;  %v13573_v48 = vunpack.i.l.bf16 %v13572_v33 }
 0x6cd   : > { %v3532_v37 = vsel %vm2438_vm4, %v3530_v27, %v13573_v48  ;;  %v3533_v51 = vsel %vm2438_vm4, %v3531_v10, %v13574_v22  ;;  %v13557_v47 = vpop.permute.xlu0 %13556 }
 0x6ce   : > { %v3552_v41 = vpack.c.bf16 %v3533_v51, %v3532_v37  ;;  %v13559_v53 = vunpack.i.h.bf16 %v13557_v47  ;;  %v13558_v54 = vunpack.i.l.bf16 %v13557_v47  ;;  %v20729_v51 = vld [vmem:[#allocation6_spill] sm:$0xff]  ;;  %v20731_v47 = vld [vmem:[#allocation8_spill] sm:$0xff] }
 0x6d0   : > { %v3534_v6 = vsel %vm2432_vm2, %v16063_v30, %v13558_v54  ;;  %v3535_v57 = vsel %vm2432_vm2, %v16066_v35, %v13559_v53  ;;  %v20725_v30 = vld [vmem:[#allocation2_spill] sm:$0xff] }
 0x6d6   : > { %v13562_v52 = vpop.permute.xlu0 %13561 }
 0x6d7   : > { %v13564_v55 = vunpack.i.h.bf16 %v13562_v52  ;;  %v13563_v56 = vunpack.i.l.bf16 %v13562_v52  ;;  %v20733_v52 = vld [vmem:[#allocation10_spill] sm:$0xff] }
 0x6d9   : > { %v3536_v61 = vsel %vm2435_vm3, %v3534_v6, %v13563_v56  ;;  %v3537_v0 = vsel %vm2435_vm3, %v3535_v57, %v13564_v55  ;;  %v20734_v56 = vld [vmem:[#allocation11_spill] sm:$0xff]  ;;  %v20735_v57 = vld [vmem:[#allocation12_spill] sm:$0xff] }
 0x6da   : > { %v13567_v3 = vpop.permute.xlu0 %13566 }
 0x6db   : > { %v13569_v58 = vunpack.i.h.bf16 %v13567_v3  ;;  %v13568_v60 = vunpack.i.l.bf16 %v13567_v3 }
 0x6dd   : > { %v3538_v1 = vsel %vm2438_vm4, %v3536_v61, %v13568_v60  ;;  %v3539_v2 = vsel %vm2438_vm4, %v3537_v0, %v13569_v58  ;;  %v13577_v5 = vpop.permute.xlu1 %13576 }
 0x6de   : > { %v3553_v4 = vpack.c.bf16 %v3539_v2, %v3538_v1  ;;  %v13579_v7 = vunpack.i.h.bf16 %v13577_v5  ;;  %v13578_v13 = vunpack.i.l.bf16 %v13577_v5  ;;  %v20736_v2 = vld [vmem:[#allocation13_spill] sm:$0xff] }
 0x6e0   : > { %3588 = vmatprep.mubr.bf16.mxu1 %v3553_v4  ;;  %v3540_v33 = vsel %vm2432_vm2, %v16070_v39, %v13578_v13  ;;  %v14223_v13 = vld [vmem:[%s15186_s21 + $0xd0] ss:$8 sps:$4 sm:$0xff]  }
 0x6e1   : > { %3589 = vmatmul.mubr.bf16.vlgmr.msra.gmra.mrb[104].mxu1 %v3552_v41  ;;  %v20730_v41 = vld [vmem:[#allocation7_spill] sm:$0xff] }
 0x6e2   : > { %11932 = vmatpush3.bf16.msra.mxu1 %v15543_v9  ;;  %v3541_v9 = vsel %vm2432_vm2, %v16073_v50, %v13579_v7  ;;  %v20732_v50 = vld [vmem:[#allocation9_spill] sm:$0xff] }
 0x6e3   : > { %11933 = vmatprep.subr.bf16.mxu1 %v15548_v11 }
 0x6e6   : > { %11934 = vmatpush3.bf16.msra.mxu1 %v20725_v30  ;;  %v13582_v35 = vpop.permute.xlu1 %13581 }
 0x6e7   : > { %11935 = vmatprep.subr.bf16.mxu1 %v20726_v17  ;;  %v13584_v18 = vunpack.i.h.bf16 %v13582_v35  ;;  %v13583_v23 = vunpack.i.l.bf16 %v13582_v35  ;;  %v14224_v17 = vld [vmem:[%s15186_s21 + $0xe4] ss:$8 sps:$4 sm:$0xff]  }
 0x6e9   : > { %v3543_v22 = vsel %vm2435_vm3, %v3541_v9, %v13584_v18  ;;  %v3542_v48 = vsel %vm2435_vm3, %v3540_v33, %v13583_v23  ;;  %v14226_v18 = vld [vmem:[%s15186_s21 + $0xe0] ss:$8 sps:$4 sm:$0xff]   ;;  %v14227_v23 = vld [vmem:[%s15186_s21 + $0xf4] ss:$8 sps:$4 sm:$0xff]  }
 0x6ea   : > { %11936 = vmatpush3.bf16.msra.mxu1 %v20727_v25  ;;  %v13602_v29 = vpop.permute.xlu1 %13601  ;;  %v14229_v25 = vld [vmem:[%s15186_s21 + $0xf0] ss:$8 sps:$4 sm:$0xff]   ;;  %v14232_v33 = vld [vmem:[%s15186_s21 + $0x100] ss:$8 sps:$4 sm:$0xff]   ;;  %v14233_v9 = vld [vmem:[%s15186_s21 + $0x114] ss:$8 sps:$4 sm:$0xff]  }
 0x6eb   : > { %v13604_v15 = vunpack.i.h.bf16 %v13602_v29  ;;  %v13603_v11 = vunpack.i.l.bf16 %v13602_v29  ;;  %11937 = vmatprep.subr.bf16.mxu1 %v20728_v32  ;;  %v14230_v29 = vld [vmem:[%s15186_s21 + $0x104] ss:$8 sps:$4 sm:$0xff]   ;;  %v14238_v32 = vld [vmem:[%s15186_s21 + $0x120] ss:$8 sps:$4 sm:$0xff]  }
 0x6ed   : > { %v3544_v10 = vsel %vm2438_vm4, %v3542_v48, %v13603_v11  ;;  %v3545_v27 = vsel %vm2438_vm4, %v3543_v22, %v13604_v15  ;;  %v13587_v39 = vpop.permute.xlu0 %13586  ;;  %v14235_v15 = vld [vmem:[%s15186_s21 + $0x110] ss:$8 sps:$4 sm:$0xff]   ;;  %v14236_v11 = vld [vmem:[%s15186_s21 + $0x124] ss:$8 sps:$4 sm:$0xff]   ;;  %v14239_v22 = vld [vmem:[%s15186_s21 + $0x134] ss:$8 sps:$4 sm:$0xff]  }
 0x6ee   : > { %v3554_v37 = vpack.c.bf16 %v3545_v27, %v3544_v10  ;;  %11938 = vmatpush3.bf16.msra.mxu1 %v20729_v51  ;;  %v13589_v54 = vunpack.i.h.bf16 %v13587_v39  ;;  %v13588_v55 = vunpack.i.l.bf16 %v13587_v39  ;;  %v14241_v48 = vld [vmem:[%s15186_s21 + $0x130] ss:$8 sps:$4 sm:$0xff]   ;;  %v14242_v10 = vld [vmem:[%s15186_s21 + $0x144] ss:$8 sps:$4 sm:$0xff]   ;;  %v14244_v27 = vld [vmem:[%s15186_s21 + $0x140] ss:$8 sps:$4 sm:$0xff]  }
 0x6ef   : > { %11939 = vmatprep.subr.bf16.mxu1 %v20730_v41 }
 0x6f0   : > { %v3546_v60 = vsel %vm2432_vm2, %v16077_v59, %v13588_v55  ;;  %v3547_v61 = vsel %vm2432_vm2, %v16080_v62, %v13589_v54  ;;  %v20737_v59 = vld [vmem:[#allocation14_spill] sm:$0xff]  ;;  %v14221_v62 = vld [vmem:[%s15186_s21 + $0xd4] ss:$8 sps:$4 sm:$0xff]   ;;  %v20738_v54 = vld [vmem:[#allocation15_spill] sm:$0xff] }
 0x6f1   : > { %1573 = vmatprep.mubr.bf16.mxu0 %v14221_v62  ;;  %v20745_v62 = vld [vmem:[#allocation17_spill] sm:$0xff] }
 0x6f2   : > { %11940 = vmatpush3.bf16.msra.mxu1 %v20731_v47  ;;  %1574 = vmatmul.mubr.bf16.gmra.mrb[52].mxu0 %v14223_v13  ;;  %v20746_v13 = vld [vmem:[#allocation26_spill] sm:$0xff] }
 0x6f3   : > { %11941 = vmatprep.subr.bf16.mxu1 %v20732_v50  ;;  %1581 = vmatprep.mubr.bf16.mxu0 %v14224_v17  ;;  %v20747_v17 = vld [vmem:[#allocation27_spill] sm:$0xff] }
 0x6f6   : > { %11942 = vmatpush3.bf16.msra.mxu1 %v20733_v52  ;;  %v13592_v53 = vpop.permute.xlu0 %13591 }
 0x6f7   : > { %11943 = vmatprep.subr.bf16.mxu1 %v20734_v56  ;;  %v13594_v3 = vunpack.i.h.bf16 %v13592_v53  ;;  %v13593_v6 = vunpack.i.l.bf16 %v13592_v53 }
 0x6f9   : > { %v3548_v4 = vsel %vm2435_vm3, %v3546_v60, %v13593_v6  ;;  %v3549_v5 = vsel %vm2435_vm3, %v3547_v61, %v13594_v3 }
 0x6fa   : > { %11944 = vmatpush3.bf16.msra.mxu1 %v20735_v57  ;;  %v13597_v58 = vpop.permute.xlu0 %13596  ;;  %1582 = vmatmul.mubr.bf16.gmra.mrb[56].mxu0 %v14226_v18  ;;  %v20748_v18 = vld [vmem:[#allocation28_spill] sm:$0xff] }
 0x6fb   : > { %v13599_v0 = vunpack.i.h.bf16 %v13597_v58  ;;  %v13598_v1 = vunpack.i.l.bf16 %v13597_v58  ;;  %11945 = vmatprep.subr.bf16.mxu1 %v20736_v2  ;;  %1589 = vmatprep.mubr.bf16.mxu0 %v14227_v23  ;;  %v20749_v23 = vld [vmem:[#allocation29_spill] sm:$0xff] }
 0x6fd   : > { %v3550_v30 = vsel %vm2438_vm4, %v3548_v4, %v13598_v1  ;;  %v3551_v35 = vsel %vm2438_vm4, %v3549_v5, %v13599_v0  ;;  %v20739_v4 = vld [vmem:[#allocation21_spill] sm:$0xff]  ;;  %v20740_v5 = vld [vmem:[#allocation16_spill] sm:$0xff] }
 0x6fe   : > { %11946 = vmatpush3.bf16.msra.mxu1 %v20737_v59  ;;  %v3555_v7 = vpack.c.bf16 %v3551_v35, %v3550_v30  ;;  %v20741_v30 = vld [vmem:[#allocation22_spill] sm:$0xff]  ;;  %v20742_v35 = vld [vmem:[#allocation23_spill] sm:$0xff]  ;;  %v20743_v59 = vld [vmem:[#allocation24_spill] sm:$0xff] }
 0x6ff   : > { %12910 = vmatprep.subr.bf16.mxu1 %v20701_v20 }
 0x700   : > { %3629 = vmatprep.mubr.bf16.mxu1 %v3555_v7  ;;  %v20744_v7 = vld [vmem:[#allocation25_spill] sm:$0xff] }
 0x701   : > { %3630 = vmatmul.mubr.bf16.vlgmr.msra.gmra.mrb[108].mxu1 %v3554_v37 }
 0x702   : > { %12912 = vmatprep.mubr.msk.bf16.mxu1 %vm15075_vm5, %v20701_v20  ;;  %1590 = vmatmul.mubr.bf16.gmra.mrb[60].mxu0 %v14229_v25  ;;  %v20750_v25 = vld [vmem:[#allocation18_spill] sm:$0xff] }
 0x703   : > { %1597 = vmatprep.mubr.bf16.mxu0 %v14230_v29  ;;  %v20751_v29 = vld [vmem:[#allocation30_spill] sm:$0xff] }
 0x70a   : > { %1598 = vmatmul.mubr.bf16.gmra.mrb[64].mxu0 %v14232_v33  ;;  %v20752_v33 = vld [vmem:[#allocation31_spill] sm:$0xff] }
 0x70b   : > { %1605 = vmatprep.mubr.bf16.mxu0 %v14233_v9  ;;  %v20753_v9 = vld [vmem:[#allocation32_spill] sm:$0xff] }
 0x712   : > { %1606 = vmatmul.mubr.bf16.gmra.mrb[68].mxu0 %v14235_v15  ;;  %v20754_v15 = vld [vmem:[#allocation33_spill] sm:$0xff] }
 0x713   : > { %1613 = vmatprep.mubr.bf16.mxu0 %v14236_v11  ;;  %v20755_v11 = vld [vmem:[#allocation19_spill] sm:$0xff] }
 0x71a   : > { %1614 = vmatmul.mubr.bf16.gmra.mrb[72].mxu0 %v14238_v32  ;;  %v20756_v32 = vld [vmem:[#allocation34_spill] sm:$0xff] }
 0x71b   : > { %1621 = vmatprep.mubr.bf16.mxu0 %v14239_v22  ;;  %v20757_v22 = vld [vmem:[#allocation35_spill] sm:$0xff] }
 0x722   : > { %1622 = vmatmul.mubr.bf16.gmra.mrb[76].mxu0 %v14241_v48  ;;  %v20758_v48 = vld [vmem:[#allocation36_spill] sm:$0xff] }
 0x723   : > { %1629 = vmatprep.mubr.bf16.mxu0 %v14242_v10  ;;  %v20759_v10 = vld [vmem:[#allocation37_spill] sm:$0xff] }
 0x72a   : > { %1630 = vmatmul.mubr.bf16.gmra.mrb[80].mxu0 %v14244_v27  ;;  %v20760_v27 = vld [vmem:[#allocation20_spill] sm:$0xff] }
 0x7b4   : > { %v11925_v37 = vpop.f32.mrb[104].mxu1 }
 0x7b5   : > { %v11926_v51 = vpop.f32.mrb[105].mxu1 }
 0x7b6   : > { %v11927_v41 = vadd.f32 %v11926_v51, %v11925_v37  ;;  %v11928_v39 = vpop.f32.mrb[106].mxu1 }
 0x7b7   : > { %v11929_v47 = vpop.f32.mrb[107].mxu1 }
 0x7b8   : > { %v11930_v50 = vadd.f32 %v11929_v47, %v11928_v39  ;;  %v3591_v55 = vadd.f32 %v11927_v41, %v20738_v54 }
 0x7ba   : > { %v3594_v57 = vadd.f32 %v11930_v50, %v20738_v54 }
 0x7d4   : > { %v11947_v52 = vpop.f32.mrb[108].mxu1 }
 0x7d5   : > { %v11948_v53 = vpop.f32.mrb[109].mxu1 }
 0x7d6   : > { %v11949_v56 = vadd.f32 %v11948_v53, %v11947_v52  ;;  %v11950_v3 = vpop.f32.mrb[110].mxu1 }
 0x7d7   : > { %v11951_v6 = vpop.f32.mrb[111].mxu1 }
 0x7d8   : > { %v3632_v58 = vadd.f32 %v11949_v56, %v3591_v55  ;;  %v11952_v60 = vadd.f32 %v11951_v6, %v11950_v3  ;;  %v1575_v6 = vpop.f32.mrb[52].mxu0 }
 0x7da   : > { %v3635_v61 = vadd.f32 %v11952_v60, %v3594_v57  ;;  %v3638_v0 = vmax.f32 %v3632_v58, 0.0  ;;  %v16197_v58 = vld [vmem:[%s20482_s2] ss:$0 sm:$0xff] }
 0x7db   : > { %v1576_v60 = vadd.f32 %v16197_v58, %v1575_v6 }
 0x7dc   : > { %v3639_v1 = vmax.f32 %v3635_v61, 0.0  ;;  %v1577_v61 = vpop.f32.mrb[53].mxu0 }
 0x7de   : > { %v3640_v2 = vpack.c.bf16 %v3639_v1, %v3638_v0  ;;  %v1578_v0 = vpop.f32.mrb[54].mxu0 }
 0x7df   : > { %v1579_v1 = vadd.f32 %v16197_v58, %v1578_v0 }
 0x7e0   : > { %12911 = vmatpush3.bf16.msra.mxu1 %v3640_v2  ;;  %v1580_v2 = vpop.f32.mrb[55].mxu0 }
 0x7e1   : > { %11959 = vmatprep.subr.bf16.mxu1 %v20739_v4  ;;  %v1912_v4 = vmax.f32 %v1576_v60, 0.0 }
 0x7e3   : > { %12913 = vmatmul.mubr.msk.bf16.vlgmr.msra.gmra.mrb[112].mxu1 %vm2769_vm6, %v20740_v5  ;;  %v1913_v5 = vmax.f32 %v1579_v1, 0.0 }
 0x7e4   : > { %12916 = vmatprep.mubr.msk.bf16.mxu1 %vm15075_vm5, %v20701_v20  ;;  %11960 = vmatpush3.bf16.msra.mxu1 %v20741_v30  ;;  %v1583_v30 = vpop.f32.mrb[56].mxu0 }
 0x7e5   : > { %11961 = vmatprep.subr.bf16.mxu1 %v20742_v35 }
 0x7e8   : > { %11962 = vmatpush3.bf16.msra.mxu1 %v20743_v59  ;;  %v1585_v59 = vpop.f32.mrb[57].mxu0 }
 0x7e9   : > { %11963 = vmatprep.subr.bf16.mxu1 %v20744_v7 }
 0x7eb   : > { %12917 = vmatmul.mubr.msk.bf16.gmra.mrb[116].mxu1 %vm2769_vm6, %v20745_v62 }
 0x7ec   : > { %12920 = vmatprep.mubr.msk.bf16.mxu1 %vm15075_vm5, %v20701_v20  ;;  %11964 = vmatpush3.bf16.msra.mxu1 %v20746_v13  ;;  %v1584_v13 = vadd.f32 %v16197_v58, %v1583_v30 }
 0x7ed   : > { %11965 = vmatprep.subr.bf16.mxu1 %v20747_v17  ;;  %v16204_v17 = vpack.c.bf16 %v1913_v5, %v1912_v4 }
 0x7f0   : > { %11966 = vmatpush3.bf16.msra.mxu1 %v20748_v18 }
 0x7f1   : > { %11967 = vmatprep.subr.bf16.mxu1 %v20749_v23 }
 0x7f3   : > { %12921 = vmatmul.mubr.msk.bf16.gmra.mrb[120].mxu1 %vm2769_vm6, %v20750_v25  ;;  %v1586_v25 = vpop.f32.mrb[58].mxu0 }
 0x7f4   : > { %12924 = vmatprep.mubr.msk.bf16.mxu1 %vm15075_vm5, %v20701_v20  ;;  %11968 = vmatpush3.bf16.msra.mxu1 %v20751_v29  ;;  %v1587_v29 = vadd.f32 %v16197_v58, %v1586_v25 }
 0x7f5   : > { %11969 = vmatprep.subr.bf16.mxu1 %v20752_v33  ;;  %v1588_v33 = vpop.f32.mrb[59].mxu0 }
 0x7f8   : > { %11970 = vmatpush3.bf16.msra.mxu1 %v20753_v9  ;;  %v1914_v9 = vmax.f32 %v1584_v13, 0.0 }
 0x7f9   : > { %11971 = vmatprep.subr.bf16.mxu1 %v20754_v15  ;;  %v1915_v15 = vmax.f32 %v1587_v29, 0.0 }
 0x7fb   : > { %12925 = vmatmul.mubr.msk.bf16.gmra.mrb[124].mxu1 %vm2769_vm6, %v20755_v11  ;;  %v1591_v11 = vpop.f32.mrb[60].mxu0 }
 0x7fc   : > { %12928 = vmatprep.mubr.msk.bf16.mxu1 %vm15075_vm5, %v20701_v20  ;;  %11972 = vmatpush3.bf16.msra.mxu1 %v20756_v32  ;;  %v1593_v32 = vpop.f32.mrb[61].mxu0 }
 0x7fd   : > { %11973 = vmatprep.subr.bf16.mxu1 %v20757_v22  ;;  %v1592_v22 = vadd.f32 %v16197_v58, %v1591_v11 }
 0x800   : > { %11974 = vmatpush3.bf16.msra.mxu1 %v20758_v48  ;;  %v16209_v48 = vpack.c.bf16 %v1915_v15, %v1914_v9 }
 0x801   : > { %11981 = vmatprep.subr.bf16.mxu1 %v20759_v10  ;;  %v1594_v10 = vpop.f32.mrb[62].mxu0 }
 0x803   : > { %12929 = vmatmul.mubr.msk.bf16.gmra.mrb[128].mxu1 %vm2769_vm6, %v20760_v27  ;;  %v1595_v27 = vadd.f32 %v16197_v58, %v1594_v10 }
 0x8b6   : > { %v16187_v37 = vpop.f32.mrb[112].mxu1 }
 0x8b7   : > { %v12914_v51 = vpop.f32.mrb[113].mxu1 }
 0x8b8   : > { %v3678_v41 = vpop.f32.mrb[114].mxu1  ;;  %v1596_v51 = vpop.f32.mrb[63].mxu0 }
 0x8b9   : > { %v12915_v39 = vpop.f32.mrb[115].mxu1 }
 0x8ba   : > { %v1917_v39 = vmax.f32 %v1595_v27, 0.0 }
 0x8be   : > { %v16189_v47 = vpop.f32.mrb[116].mxu1 }
 0x8bf   : > { %v12918_v50 = vpop.f32.mrb[117].mxu1 }
 0x8c0   : > { %v3686_v52 = vpop.f32.mrb[118].mxu1  ;;  %v1599_v50 = vpop.f32.mrb[64].mxu0 }
 0x8c1   : > { %v13605_v53 = vpack.i.bf16 %v3678_v41, %v3686_v52  ;;  %v12919_v54 = vpop.f32.mrb[119].mxu1  ;;  %v1916_v41 = vmax.f32 %v1592_v22, 0.0  ;;  %v1601_v52 = vpop.f32.mrb[65].mxu0 }
 0x8c3   : > { %13606 = vrot.lane.b32.xlu0 %v13605_v53, %s15072_s16  ;;  %v1600_v53 = vadd.f32 %v16197_v58, %v1599_v50  ;;  %v16213_v54 = vpack.c.bf16 %v1917_v39, %v1916_v41 }
 0x8c6   : > { %v16192_v55 = vpop.f32.mrb[120].mxu1 }
 0x8c7   : > { %v12922_v56 = vpop.f32.mrb[121].mxu1 }
 0x8c8   : > { %v3694_v3 = vpop.f32.mrb[122].mxu1  ;;  %v1602_v56 = vpop.f32.mrb[66].mxu0 }
 0x8c9   : > { %v12923_v57 = vpop.f32.mrb[123].mxu1  ;;  %v1604_v6 = vpop.f32.mrb[67].mxu0 }
 0x8ca   : > { %v1918_v57 = vmax.f32 %v1600_v53, 0.0  ;;  %v1607_v0 = vpop.f32.mrb[68].mxu0 }
 0x8cb   : > { %v1609_v2 = vpop.f32.mrb[69].mxu0  ;;  %v1608_v5 = vadd.f32 %v16197_v58, %v1607_v0 }
 0x8ce   : > { %v16201_v35 = vpop.f32.mrb[124].mxu1 }
 0x8cf   : > { %v12926_v7 = vpop.f32.mrb[125].mxu1 }
 0x8d0   : > { %v3702_v62 = vpop.f32.mrb[126].mxu1  ;;  %v1610_v7 = vpop.f32.mrb[70].mxu0 }
 0x8d1   : > { %v13610_v18 = vpack.i.bf16 %v3694_v3, %v3702_v62  ;;  %v12927_v23 = vpop.f32.mrb[127].mxu1  ;;  %v1603_v3 = vadd.f32 %v16197_v58, %v1602_v56  ;;  %v1611_v62 = vadd.f32 %v16197_v58, %v1610_v7  ;;  %v1612_v13 = vpop.f32.mrb[71].mxu0 }
 0x8d2   : > { %v1615_v25 = vpop.f32.mrb[72].mxu0 }
 0x8d3   : > { %13611 = vrot.lane.b32.xlu1 %v13610_v18, %s15072_s16  ;;  %v1919_v60 = vmax.f32 %v1603_v3, 0.0  ;;  %v1920_v18 = vmax.f32 %v1608_v5, 0.0  ;;  %v1921_v23 = vmax.f32 %v1611_v62, 0.0  ;;  %v1617_v29 = vpop.f32.mrb[73].mxu0  ;;  %v1616_v33 = vadd.f32 %v16197_v58, %v1615_v25 }
 0x8d4   : > { %v1618_v15 = vpop.f32.mrb[74].mxu0 }
 0x8d5   : > { %v16219_v59 = vpack.c.bf16 %v1919_v60, %v1918_v57  ;;  %v16223_v9 = vpack.c.bf16 %v1921_v23, %v1920_v18  ;;  %v1619_v11 = vadd.f32 %v16197_v58, %v1618_v15  ;;  %v1620_v32 = vpop.f32.mrb[75].mxu0  ;;  %v1922_v10 = vmax.f32 %v1616_v33, 0.0  ;;  %v14245_v15 = vld [vmem:[%s15186_s21 + $0x154] ss:$8 sps:$4 sm:$0xff]  }
 0x8d6   : > { %v16216_v61 = vpop.f32.mrb[128].mxu1  ;;  %v1623_v22 = vpop.f32.mrb[76].mxu0  ;;  %v14248_v32 = vld [vmem:[%s15186_s21 + $0x164] ss:$8 sps:$4 sm:$0xff]   ;;  %1637 = vmatprep.mubr.bf16.mxu0 %v14245_v15  ;;  %v14786_v15 = vld [vmem:[%s20483_s3 + $0x78] sm:$0xff]  }
 0x8d7   : > { %v12930_v1 = vpop.f32.mrb[129].mxu1  ;;  %v1923_v27 = vmax.f32 %v1619_v11, 0.0  ;;  %v1624_v51 = vadd.f32 %v16197_v58, %v1623_v22  ;;  %v1625_v41 = vpop.f32.mrb[77].mxu0  ;;  %v14247_v11 = vld [vmem:[%s15186_s21 + $0x150] ss:$8 sps:$4 sm:$0xff]  }
 0x8d8   : > { %v3710_v4 = vpop.f32.mrb[130].mxu1  ;;  %v1626_v39 = vpop.f32.mrb[78].mxu0  ;;  %1638 = vmatmul.mubr.bf16.gmra.mrb[84].mxu0 %v14247_v11  ;;  %v14251_v22 = vld [vmem:[%s15186_s21 + $0x174] ss:$8 sps:$4 sm:$0xff]  }
 0x8d9   : > { %v12931_v30 = vpop.f32.mrb[131].mxu1  ;;  %v1924_v50 = vmax.f32 %v1624_v51, 0.0  ;;  %v1627_v52 = vadd.f32 %v16197_v58, %v1626_v39  ;;  %v1628_v53 = vpop.f32.mrb[79].mxu0  ;;  %v16228_v3 = vpack.c.bf16 %v1923_v27, %v1922_v10  ;;  %1645 = vmatprep.mubr.bf16.mxu0 %v14248_v32  ;;  %v14770_v10 = vld [vmem:[%s20483_s3 + $0x30] sm:$0xff]   ;;  %v14262_v27 = vld [vmem:[%s15186_s21 + $0x1a0] ss:$8 sps:$4 sm:$0xff]  }
 0x8da   : > { %v1631_v56 = vpop.f32.mrb[80].mxu0  ;;  %v14771_v51 = vld [vmem:[%s20487_s7 + $0x20] sm:$0xff]   ;;  %v14263_v41 = vld [vmem:[%s15186_s21 + $0x1b4] ss:$8 sps:$4 sm:$0xff]   ;;  %v14772_v39 = vld [vmem:[%s20487_s7 + $0x68] sm:$0xff]  }
 0x8db   : > { %v1925_v6 = vmax.f32 %v1627_v52, 0.0  ;;  %v1632_v57 = vadd.f32 %v16197_v58, %v1631_v56  ;;  %v1633_v60 = vpop.f32.mrb[81].mxu0  ;;  %v14774_v52 = vld [vmem:[%s20487_s7 + $0x70] sm:$0xff]   ;;  %v14775_v53 = vld [vmem:[%s20483_s3 + $0x38] sm:$0xff]   ;;  %v14776_v56 = vld [vmem:[%s20483_s3 + $0x40] sm:$0xff]  }
 0x8dc   : > { %v1634_v0 = vpop.f32.mrb[82].mxu0  ;;  %v14778_v60 = vld [vmem:[%s20487_s7 + $0x78] sm:$0xff]  }
 0x8dd   : > { %v16231_v1 = vpack.c.bf16 %v1925_v6, %v1924_v50  ;;  %v1926_v2 = vmax.f32 %v1632_v57, 0.0  ;;  %v1635_v4 = vadd.f32 %v16197_v58, %v1634_v0  ;;  %v1636_v5 = vpop.f32.mrb[83].mxu0  ;;  %v14773_v50 = vld [vmem:[%s20487_s7 + $0x28] sm:$0xff]   ;;  %v14777_v6 = vld [vmem:[%s20487_s7 + $0x30] sm:$0xff]   ;;  %v14779_v0 = vld [vmem:[%s20487_s7 + $0x38] sm:$0xff]  }
 0x8de   : > { %v14266_v57 = vld [vmem:[%s15186_s21 + $0x1c4] ss:$8 sps:$4 sm:$0xff]   ;;  %v14268_v5 = vld [vmem:[%s15186_s21 + $0x1c0] ss:$8 sps:$4 sm:$0xff]   ;;  %v14275_v11 = vld [vmem:[%s15186_s21 + $0x1f4] ss:$8 sps:$4 sm:$0xff]  }
 0x8df   : > { %v1927_v30 = vmax.f32 %v1635_v4, 0.0  ;;  %v14781_v4 = vld [vmem:[%s20483_s3 + $0x50] sm:$0xff]  }
 0x8e0   : > { %v14277_v32 = vld [vmem:[%s15186_s21 + $0x1f0] ss:$8 sps:$4 sm:$0xff]  }
 0x8e1   : > { %v16234_v7 = vpack.c.bf16 %v1927_v30, %v1926_v2  ;;  %v14780_v2 = vld [vmem:[%s20483_s3 + $0x48] sm:$0xff]   ;;  %v14782_v30 = vld [vmem:[%s20483_s3 + $0x58] sm:$0xff]  }
 0x935   : > { %v13607_v62 = vpop.permute.xlu0 %13606 }
 0x936   : > { %v13609_v13 = vunpack.i.h.bf16 %v13607_v62  ;;  %v13608_v18 = vunpack.i.l.bf16 %v13607_v62  ;;  %v14783_v62 = vld [vmem:[%s20483_s3 + $0x60] sm:$0xff]  }
 0x938   : > { %v3729_v23 = vsel %vm2435_vm3, %v16187_v37, %v13609_v13  ;;  %v3730_v25 = vsel %vm2435_vm3, %v16189_v47, %v13608_v18  ;;  %v14269_v13 = vld [vmem:[%s15186_s21 + $0x1d4] ss:$8 sps:$4 sm:$0xff]   ;;  %v14271_v18 = vld [vmem:[%s15186_s21 + $0x1d0] ss:$8 sps:$4 sm:$0xff]  }
 0x939   : > { %v3733_v29 = vpack.c.bf16 %v3729_v23, %v3729_v23  ;;  %v3734_v33 = vpack.c.bf16 %v3730_v25, %v3730_v25  ;;  %v14272_v23 = vld [vmem:[%s15186_s21 + $0x1e4] ss:$8 sps:$4 sm:$0xff]  }
 0x93a   : > { %v14784_v25 = vld [vmem:[%s20483_s3 + $0x68] sm:$0xff]  }
 0x93b   : > { %3773 = vmatprep.mubr.bf16.mxu1 %v3734_v33  ;;  %v14274_v33 = vld [vmem:[%s15186_s21 + $0x1e0] ss:$8 sps:$4 sm:$0xff]  }
 0x93c   : > { %3774 = vmatmul.mubr.bf16.vlgmr.msra.gmra.mrb[132].mxu1 %v3733_v29  ;;  %v14785_v29 = vld [vmem:[%s20483_s3 + $0x70] sm:$0xff]  }
 0x93d   : > { %11982 = vmatpush3.bf16.msra.mxu1 %v15860_v8  ;;  %v14250_v8 = vld [vmem:[%s15186_s21 + $0x160] ss:$8 sps:$4 sm:$0xff]  }
 0x93e   : > { %11983 = vmatprep.subr.bf16.mxu1 %v15865_v42  ;;  %1646 = vmatmul.mubr.bf16.gmra.mrb[88].mxu0 %v14250_v8  ;;  %v14281_v8 = vld [vmem:[%s15186_s21 + $0x214] ss:$8 sps:$4 sm:$0xff]  }
 0x93f   : > { %1653 = vmatprep.mubr.bf16.mxu0 %v14251_v22  ;;  %v14284_v22 = vld [vmem:[%s15186_s21 + $0x224] ss:$8 sps:$4 sm:$0xff]  }
 0x941   : > { %11984 = vmatpush3.bf16.msra.mxu1 %v15871_v16 }
 0x942   : > { %11985 = vmatprep.subr.bf16.mxu1 %v15877_v24  ;;  %v14253_v24 = vld [vmem:[%s15186_s21 + $0x170] ss:$8 sps:$4 sm:$0xff]  }
 0x945   : > { %11986 = vmatpush3.bf16.msra.mxu1 %v15883_v49  ;;  %v13612_v37 = vpop.permute.xlu1 %13611  ;;  %v14254_v49 = vld [vmem:[%s15186_s21 + $0x184] ss:$8 sps:$4 sm:$0xff]  }
 0x946   : > { %v13613_v47 = vunpack.i.l.bf16 %v13612_v37  ;;  %11987 = vmatprep.subr.bf16.mxu1 %v15889_v14  ;;  %v13614_v14 = vunpack.i.h.bf16 %v13612_v37  ;;  %1654 = vmatmul.mubr.bf16.gmra.mrb[92].mxu0 %v14253_v24  ;;  %v14278_v37 = vld [vmem:[%s15186_s21 + $0x204] ss:$8 sps:$4 sm:$0xff]   ;;  %v14287_v24 = vld [vmem:[%s15186_s21 + $0x234] ss:$8 sps:$4 sm:$0xff]  }
 0x947   : > { %1661 = vmatprep.mubr.bf16.mxu0 %v14254_v49  ;;  %v14289_v49 = vld [vmem:[%s15186_s21 + $0x230] ss:$8 sps:$4 sm:$0xff]  }
 0x948   : > { %v3732_v42 = vsel %vm2435_vm3, %v16201_v35, %v13613_v47  ;;  %v14257_v35 = vld [vmem:[%s15186_s21 + $0x194] ss:$8 sps:$4 sm:$0xff]   ;;  %v14280_v47 = vld [vmem:[%s15186_s21 + $0x200] ss:$8 sps:$4 sm:$0xff]  }
 0x949   : > { %11988 = vmatpush3.bf16.msra.mxu1 %v15895_v46  ;;  %v3736_v16 = vpack.c.bf16 %v3732_v42, %v3732_v42  ;;  %v3731_v46 = vsel %vm2435_vm3, %v16192_v55, %v13614_v14  ;;  %v14765_v55 = vld [vmem:[%s20487_s7 + $0x10] sm:$0xff]   ;;  %v14290_v14 = vld [vmem:[%s15186_s21 + $0x244] ss:$8 sps:$4 sm:$0xff]  }
 0x94a   : > { %11989 = vmatprep.subr.bf16.mxu1 %v15901_v38  ;;  %v14256_v38 = vld [vmem:[%s15186_s21 + $0x180] ss:$8 sps:$4 sm:$0xff]   ;;  %v14283_v42 = vld [vmem:[%s15186_s21 + $0x210] ss:$8 sps:$4 sm:$0xff]  }
 0x94b   : > { %3813 = vmatprep.mubr.bf16.mxu1 %v3736_v16  ;;  %v14286_v16 = vld [vmem:[%s15186_s21 + $0x220] ss:$8 sps:$4 sm:$0xff]  }
 0x94d   : > { %11990 = vmatpush3.bf16.msra.mxu1 %v15909_v40  ;;  %v3735_v40 = vpack.c.bf16 %v3731_v46, %v3731_v46  ;;  %v14292_v46 = vld [vmem:[%s15186_s21 + $0x240] ss:$8 sps:$4 sm:$0xff]  }
 0x94e   : > { %11991 = vmatprep.subr.bf16.mxu1 %v15915_v36  ;;  %1662 = vmatmul.mubr.bf16.gmra.mrb[96].mxu0 %v14256_v38  ;;  %v3737_v36 = vpack.c.bf16 %v16216_v61, %v16216_v61  ;;  %v14767_v61 = vld [vmem:[%s20487_s7 + $0x18] sm:$0xff]  }
 0x94f   : > { %1669 = vmatprep.mubr.bf16.mxu0 %v14257_v35  ;;  %v14293_v38 = vld [vmem:[%s15186_s21 + $0x254] ss:$8 sps:$4 sm:$0xff]   ;;  %v14307_v35 = vld [vmem:[%s15186_s21 + $0x290] ss:$8 sps:$4 sm:$0xff]  }
 0x951   : > { %11992 = vmatpush3.bf16.msra.mxu1 %v15921_v28  ;;  %v3876_v28 = vsel %vm2171_vm1, %v16231_v1, 0 }
 0x952   : > { %11993 = vmatprep.subr.bf16.mxu1 %v15927_v44  ;;  %v14756_v44 = vld [vmem:[%s20487_s7 + $0x40] sm:$0xff]  }
 0x955   : > { %11994 = vmatpush3.bf16.msra.mxu1 %v15933_v43  ;;  %v14757_v43 = vld [vmem:[%s20483_s3 + $0x8] sm:$0xff]  }
 0x956   : > { %11995 = vmatprep.subr.bf16.mxu1 %v15939_v34  ;;  %v14758_v34 = vld [vmem:[%s20483_s3 + $0x10] sm:$0xff]  }
 0x959   : > { %11996 = vmatpush3.bf16.msra.mxu1 %v15945_v31  ;;  %v14759_v31 = vld [vmem:[%s20487_s7] sm:$0xff]  }
 0x95a   : > { %12932 = vmatprep.subr.bf16.mxu1 %v20701_v20 }
 0x95c   : > { %3814 = vmatmul.mubr.bf16.vlgmr.msra.gmra.mrb[136].mxu1 %v3735_v40  ;;  %v14295_v40 = vld [vmem:[%s15186_s21 + $0x250] ss:$8 sps:$4 sm:$0xff]  }
 0x95d   : > { %12933 = vmatpush3.bf16.msra.mxu1 %v15954_v45  ;;  %12940 = vmatprep.mubr.msk.bf16.mxu1 %vm15075_vm5, %v20701_v20  ;;  %v14760_v45 = vld [vmem:[%s20487_s7 + $0x48] sm:$0xff]  }
 0x95e   : > { %12934 = vmatprep.subr.bf16.mxu1 %v20701_v20 }
 0x961   : > { %12935 = vmatpush3.bf16.msra.mxu1 %v15961_v19  ;;  %v14761_v19 = vld [vmem:[%s20487_s7 + $0x8] sm:$0xff]  }
 0x962   : > { %12936 = vmatprep.subr.bf16.mxu1 %v20701_v20 }
 0x965   : > { %12937 = vmatpush3.bf16.msra.mxu1 %v15970_v26  ;;  %v14762_v26 = vld [vmem:[%s20487_s7 + $0x50] sm:$0xff]  }
 0x966   : > { %12938 = vmatprep.subr.bf16.mxu1 %v20701_v20 }
 0x969   : > { %12939 = vmatpush3.bf16.msra.mxu1 %v15977_v21  ;;  %v14763_v21 = vld [vmem:[%s20483_s3 + $0x18] sm:$0xff]  }
 0x96a   : > { %12944 = vmatprep.subr.bf16.mxu1 %v16204_v17 }
 0x96c   : > { %12941 = vmatmul.mubr.msk.bf16.vlgmr.msra.gmra.mrb[140].mxu1 %vm2435_vm3, %v3737_v36  ;;  %v14296_v36 = vld [vmem:[%s15186_s21 + $0x264] ss:$8 sps:$4 sm:$0xff]  }
 0x96d   : > { %12945 = vmatpush3.bf16.msra.mxu1 %v16204_v17  ;;  %12958 = vmatprep.mubr.msk.bf16.mxu1 %vm2122_vm0, %v15989_v12  ;;  %v14764_v12 = vld [vmem:[%s20483_s3 + $0x20] sm:$0xff]   ;;  %v14766_v17 = vld [vmem:[%s20487_s7 + $0x58] sm:$0xff]  }
 0x96e   : > { %12946 = vmatprep.subr.bf16.mxu1 %v16209_v48 }
 0x971   : > { %12947 = vmatpush3.bf16.msra.mxu1 %v16209_v48  ;;  %v14259_v48 = vld [vmem:[%s15186_s21 + $0x190] ss:$8 sps:$4 sm:$0xff]  }
 0x972   : > { %12948 = vmatprep.subr.bf16.mxu1 %v16213_v54  ;;  %1670 = vmatmul.mubr.bf16.gmra.mrb[100].mxu0 %v14259_v48  ;;  %v14310_v48 = vld [vmem:[%s15186_s21 + $0x2a0] ss:$8 sps:$4 sm:$0xff]  }
 0x975   : > { %12949 = vmatpush3.bf16.msra.mxu1 %v16213_v54  ;;  %v14260_v54 = vld [vmem:[%s15186_s21 + $0x1a4] ss:$8 sps:$4 sm:$0xff]  }
 0x976   : > { %12950 = vmatprep.subr.bf16.mxu1 %v16219_v59  ;;  %1677 = vmatprep.mubr.bf16.mxu0 %v14260_v54  ;;  %v14311_v54 = vld [vmem:[%s15186_s21 + $0x2b4] ss:$8 sps:$4 sm:$0xff]  }
 0x979   : > { %12951 = vmatpush3.bf16.msra.mxu1 %v16219_v59  ;;  %v14768_v59 = vld [vmem:[%s20487_s7 + $0x60] sm:$0xff]  }
 0x97a   : > { %12952 = vmatprep.subr.bf16.mxu1 %v16223_v9  ;;  %1678 = vmatmul.mubr.bf16.gmra.mrb[104].mxu0 %v14262_v27  ;;  %v14314_v27 = vld [vmem:[%s15186_s21 + $0x2c4] ss:$8 sps:$4 sm:$0xff]  }
 0x97b   : > { %1685 = vmatprep.mubr.bf16.mxu0 %v14263_v41 }
 0x97d   : > { %12953 = vmatpush3.bf16.msra.mxu1 %v16223_v9  ;;  %v14769_v9 = vld [vmem:[%s20483_s3 + $0x28] sm:$0xff]  }
 0x97e   : > { %12954 = vmatprep.subr.bf16.mxu1 %v16228_v3 }
 0x981   : > { %12955 = vmatpush3.bf16.msra.mxu1 %v16228_v3  ;;  %v14265_v3 = vld [vmem:[%s15186_s21 + $0x1b0] ss:$8 sps:$4 sm:$0xff]  }
 0x982   : > { %13454 = vmatprep.subr.msk.bf16.mxu1 %vm2171_vm1, %v16231_v1  ;;  %1686 = vmatmul.mubr.bf16.gmra.mrb[108].mxu0 %v14265_v3 }
 0x983   : > { %1693 = vmatprep.mubr.bf16.mxu0 %v14266_v57 }
 0x985   : > { %12957 = vmatpush3.bf16.msra.mxu1 %v3876_v28  ;;  %v14298_v28 = vld [vmem:[%s15186_s21 + $0x260] ss:$8 sps:$4 sm:$0xff]  }
 0x986   : > { %12081 = vmatprep.subr.bf16.mxu1 %v14756_v44  ;;  %v14299_v44 = vld [vmem:[%s15186_s21 + $0x274] ss:$8 sps:$4 sm:$0xff]  }
 0x988   : > { %12959 = vmatmul.mubr.msk.bf16.vlgmr.msra.gmra.mrb[144].mxu1 %vm2122_vm0, %v14757_v43  ;;  %v14301_v43 = vld [vmem:[%s15186_s21 + $0x270] ss:$8 sps:$4 sm:$0xff]  }
 0x989   : > { %12962 = vmatprep.mubr.msk.bf16.mxu1 %vm2122_vm0, %v14758_v34  ;;  %12082 = vmatpush3.bf16.msra.mxu1 %v14759_v31  ;;  %v14302_v34 = vld [vmem:[%s15186_s21 + $0x284] ss:$8 sps:$4 sm:$0xff]   ;;  %v14304_v31 = vld [vmem:[%s15186_s21 + $0x280] ss:$8 sps:$4 sm:$0xff]  }
 0x98a   : > { %12083 = vmatprep.subr.bf16.mxu1 %v14760_v45  ;;  %1694 = vmatmul.mubr.bf16.gmra.mrb[112].mxu0 %v14268_v5 }
 0x98b   : > { %1701 = vmatprep.mubr.bf16.mxu0 %v14269_v13 }
 0x98d   : > { %12084 = vmatpush3.bf16.msra.mxu1 %v14761_v19 }
 0x98e   : > { %12085 = vmatprep.subr.bf16.mxu1 %v14762_v26 }
 0x990   : > { %12963 = vmatmul.mubr.msk.bf16.gmra.mrb[148].mxu1 %vm2122_vm0, %v14763_v21 }
 0x991   : > { %12966 = vmatprep.mubr.msk.bf16.mxu1 %vm2122_vm0, %v14764_v12  ;;  %12086 = vmatpush3.bf16.msra.mxu1 %v14765_v55  ;;  %v14305_v55 = vld [vmem:[%s15186_s21 + $0x294] ss:$8 sps:$4 sm:$0xff]  }
 0x992   : > { %12087 = vmatprep.subr.bf16.mxu1 %v14766_v17  ;;  %1702 = vmatmul.mubr.bf16.gmra.mrb[116].mxu0 %v14271_v18  ;;  %v14308_v17 = vld [vmem:[%s15186_s21 + $0x2a4] ss:$8 sps:$4 sm:$0xff]  }
 0x993   : > { %1709 = vmatprep.mubr.bf16.mxu0 %v14272_v23  ;;  %v14787_v23 = vld [vmem:[%s20488_s8] ss:$0 sm:$0xff] }
 0x995   : > { %12088 = vmatpush3.bf16.msra.mxu1 %v14767_v61 }
 0x996   : > { %12089 = vmatprep.subr.bf16.mxu1 %v14768_v59  ;;  %v14313_v59 = vld [vmem:[%s15186_s21 + $0x2b0] ss:$8 sps:$4 sm:$0xff]  }
 0x998   : > { %12967 = vmatmul.mubr.msk.bf16.gmra.mrb[152].mxu1 %vm2122_vm0, %v14769_v9 }
 0x999   : > { %12970 = vmatprep.mubr.msk.bf16.mxu1 %vm2122_vm0, %v14770_v10  ;;  %12090 = vmatpush3.bf16.msra.mxu1 %v14771_v51 }
 0x99a   : > { %12091 = vmatprep.subr.bf16.mxu1 %v14772_v39  ;;  %1710 = vmatmul.mubr.bf16.gmra.mrb[120].mxu0 %v14274_v33 }
 0x99b   : > { %1717 = vmatprep.mubr.bf16.mxu0 %v14275_v11 }
 0x99d   : > { %12092 = vmatpush3.bf16.msra.mxu1 %v14773_v50 }
 0x99e   : > { %12093 = vmatprep.subr.bf16.mxu1 %v14774_v52 }
 0x9a0   : > { %12971 = vmatmul.mubr.msk.bf16.gmra.mrb[156].mxu1 %vm2122_vm0, %v14775_v53 }
 0x9a1   : > { %12974 = vmatprep.mubr.msk.bf16.mxu1 %vm2122_vm0, %v14776_v56  ;;  %12094 = vmatpush3.bf16.msra.mxu1 %v14777_v6 }
 0x9a2   : > { %12095 = vmatprep.subr.bf16.mxu1 %v14778_v60  ;;  %1718 = vmatmul.mubr.bf16.gmra.mrb[124].mxu0 %v14277_v32  ;;  %v14320_v32 = vld [vmem:[%s15186_s21 + $0x2e4] ss:$8 sps:$4 sm:$0xff]  }
 0x9a3   : > { %1725 = vmatprep.mubr.bf16.mxu0 %v14278_v37 }
 0x9a5   : > { %12096 = vmatpush3.bf16.msra.mxu1 %v14779_v0 }
 0x9a6   : > { %13012 = vmatprep.subr.bf16.mxu1 %v20701_v20 }
 0x9a8   : > { %12975 = vmatmul.mubr.msk.bf16.gmra.mrb[160].mxu1 %vm2122_vm0, %v14780_v2 }
 0x9a9   : > { %12978 = vmatprep.mubr.msk.bf16.mxu1 %vm2122_vm0, %v14781_v4  ;;  %v14316_v4 = vld [vmem:[%s15186_s21 + $0x2c0] ss:$8 sps:$4 sm:$0xff]  }
 0x9aa   : > { %1726 = vmatmul.mubr.bf16.gmra.mrb[128].mxu0 %v14280_v47  ;;  %v14322_v47 = vld [vmem:[%s15186_s21 + $0x2e0] ss:$8 sps:$4 sm:$0xff]  }
 0x9ab   : > { %1733 = vmatprep.mubr.bf16.mxu0 %v14281_v8  ;;  %v1639_v61 = vpop.f32.mrb[84].mxu0  ;;  %v14323_v8 = vld [vmem:[%s15186_s21 + $0x2f4] ss:$8 sps:$4 sm:$0xff]  }
 0x9ac   : > { %v1640_v9 = vadd.f32 %v16197_v58, %v1639_v61  ;;  %v1641_v10 = vpop.f32.mrb[85].mxu0 }
 0x9ad   : > { %v1642_v51 = vpop.f32.mrb[86].mxu0 }
 0x9ae   : > { %v1928_v41 = vmax.f32 %v1640_v9, 0.0  ;;  %v1643_v39 = vadd.f32 %v16197_v58, %v1642_v51  ;;  %v1644_v50 = vpop.f32.mrb[87].mxu0 }
 0x9b0   : > { %12979 = vmatmul.mubr.msk.bf16.gmra.mrb[164].mxu1 %vm2122_vm0, %v14782_v30  ;;  %v1929_v53 = vmax.f32 %v1643_v39, 0.0  ;;  %v14317_v30 = vld [vmem:[%s15186_s21 + $0x2d4] ss:$8 sps:$4 sm:$0xff]  }
 0x9b1   : > { %12982 = vmatprep.mubr.msk.bf16.mxu1 %vm2122_vm0, %v14783_v62 }
 0x9b2   : > { %1734 = vmatmul.mubr.bf16.gmra.mrb[132].mxu0 %v14283_v42  ;;  %v2011_v57 = vpack.c.bf16 %v1929_v53, %v1928_v41 }
 0x9b3   : > { %1741 = vmatprep.mubr.bf16.mxu0 %v14284_v22 }
 0x9b8   : > { %12983 = vmatmul.mubr.msk.bf16.gmra.mrb[168].mxu1 %vm2122_vm0, %v14784_v25 }
 0x9b9   : > { %12986 = vmatprep.mubr.msk.bf16.mxu1 %vm2122_vm0, %v14785_v29 }
 0x9ba   : > { %1742 = vmatmul.mubr.bf16.gmra.mrb[136].mxu0 %v14286_v16 }
 0x9bb   : > { %1749 = vmatprep.mubr.bf16.mxu0 %v14287_v24 }
 0x9c0   : > { %12987 = vmatmul.mubr.msk.bf16.gmra.mrb[172].mxu1 %vm2122_vm0, %v14786_v15  ;;  %v14319_v15 = vld [vmem:[%s15186_s21 + $0x2d0] ss:$8 sps:$4 sm:$0xff]  }
 0x9c2   : > { %1750 = vmatmul.mubr.bf16.gmra.mrb[140].mxu0 %v14289_v49  ;;  %v14325_v49 = vld [vmem:[%s15186_s21 + $0x2f0] ss:$8 sps:$4 sm:$0xff]  }
 0x9c3   : > { %1757 = vmatprep.mubr.bf16.mxu0 %v14290_v14 }
 0x9ca   : > { %1758 = vmatmul.mubr.bf16.gmra.mrb[144].mxu0 %v14292_v46  ;;  %v14326_v46 = vld [vmem:[%s15186_s21 + $0x304] ss:$8 sps:$4 sm:$0xff]  }
 0x9cb   : > { %1765 = vmatprep.mubr.bf16.mxu0 %v14293_v38  ;;  %v14328_v38 = vld [vmem:[%s15186_s21 + $0x300] ss:$8 sps:$4 sm:$0xff]  }
 0x9d2   : > { %1766 = vmatmul.mubr.bf16.gmra.mrb[148].mxu0 %v14295_v40  ;;  %v14329_v40 = vld [vmem:[%s15186_s21 + $0x314] ss:$8 sps:$4 sm:$0xff]  }
 0x9d3   : > { %1773 = vmatprep.mubr.bf16.mxu0 %v14296_v36  ;;  %v20537_v36 = vrot.slane %v16234_v7, 4 }
 0x9da   : > { %1774 = vmatmul.mubr.bf16.gmra.mrb[152].mxu0 %v14298_v28  ;;  %v4492_v28 = vrot.slane %v2011_v57, 4  ;;  %v14337_v57 = vld [vmem:[%s15186_s21 + $0x330] ss:$8 sps:$4 sm:$0xff]  }
 0x9db   : > { %1781 = vmatprep.mubr.bf16.mxu0 %v14299_v44  ;;  %v14331_v44 = vld [vmem:[%s15186_s21 + $0x310] ss:$8 sps:$4 sm:$0xff]  }
 0x9e2   : > { %1782 = vmatmul.mubr.bf16.gmra.mrb[156].mxu0 %v14301_v43  ;;  %v16472_v43 = vsel %vm2171_vm1, %v20537_v36, %v4492_v28 }
 0x9e3   : > { %1789 = vmatprep.mubr.bf16.mxu0 %v14302_v34 }
 0x9ea   : > { %1790 = vmatmul.mubr.bf16.gmra.mrb[160].mxu0 %v14304_v31 }
 0x9eb   : > { %1797 = vmatprep.mubr.bf16.mxu0 %v14305_v55 }
 0x9f2   : > { %1798 = vmatmul.mubr.bf16.gmra.mrb[164].mxu0 %v14307_v35  ;;  %v14332_v35 = vld [vmem:[%s15186_s21 + $0x324] ss:$8 sps:$4 sm:$0xff]  }
 0x9f3   : > { %1805 = vmatprep.mubr.bf16.mxu0 %v14308_v17 }
 0x9fa   : > { %1806 = vmatmul.mubr.bf16.gmra.mrb[168].mxu0 %v14310_v48 }
 0x9fb   : > { %1813 = vmatprep.mubr.bf16.mxu0 %v14311_v54  ;;  %v14334_v54 = vld [vmem:[%s15186_s21 + $0x320] ss:$8 sps:$4 sm:$0xff]  }
 0xa02   : > { %1814 = vmatmul.mubr.bf16.gmra.mrb[172].mxu0 %v14313_v59 }
 0xa03   : > { %1821 = vmatprep.mubr.bf16.mxu0 %v14314_v27 }
 0xa0a   : > { %1822 = vmatmul.mubr.bf16.gmra.mrb[176].mxu0 %v14316_v4 }
 0xa0b   : > { %1829 = vmatprep.mubr.bf16.mxu0 %v14317_v30 }
 0xa0f   : > { %v11975_v45 = vpop.f32.mrb[132].mxu1 }
 0xa10   : > { %v11976_v19 = vpop.f32.mrb[133].mxu1 }
 0xa11   : > { %v11977_v26 = vadd.f32 %v11976_v19, %v11975_v45  ;;  %v11978_v21 = vpop.f32.mrb[134].mxu1  ;;  %v1647_v52 = vpop.f32.mrb[88].mxu0 }
 0xa12   : > { %v11979_v12 = vpop.f32.mrb[135].mxu1  ;;  %v1648_v56 = vadd.f32 %v16197_v58, %v1647_v52  ;;  %v1649_v3 = vpop.f32.mrb[89].mxu0  ;;  %1830 = vmatmul.mubr.bf16.gmra.mrb[180].mxu0 %v14319_v15  ;;  %v14335_v52 = vld [vmem:[%s15186_s21 + $0x334] ss:$8 sps:$4 sm:$0xff]  }
 0xa13   : > { %v1650_v6 = vpop.f32.mrb[90].mxu0  ;;  %v3776_v25 = vadd.f32 %v14787_v23, %v11977_v26  ;;  %1837 = vmatprep.mubr.bf16.mxu0 %v14320_v32 }
 0xa14   : > { %v1930_v60 = vmax.f32 %v1648_v56, 0.0  ;;  %v1651_v0 = vadd.f32 %v16197_v58, %v1650_v6  ;;  %v1652_v2 = vpop.f32.mrb[91].mxu0 }
 0xa16   : > { %v1931_v5 = vmax.f32 %v1651_v0, 0.0 }
 0xa18   : > { %v16452_v62 = vpack.c.bf16 %v1931_v5, %v1930_v60 }
 0xa19   : > { %v1655_v34 = vpop.f32.mrb[92].mxu0 }
 0xa1a   : > { %1838 = vmatmul.mubr.bf16.gmra.mrb[184].mxu0 %v14322_v47  ;;  %v1656_v31 = vadd.f32 %v16197_v58, %v1655_v34  ;;  %v1657_v45 = vpop.f32.mrb[93].mxu0  ;;  %v4494_v17 = vrot.slane %v16452_v62, 4 }
 0xa1b   : > { %1845 = vmatprep.mubr.bf16.mxu0 %v14323_v8  ;;  %v1658_v19 = vpop.f32.mrb[94].mxu0 }
 0xa1c   : > { %v1932_v26 = vmax.f32 %v1656_v31, 0.0  ;;  %v1659_v21 = vadd.f32 %v16197_v58, %v1658_v19  ;;  %v1660_v12 = vpop.f32.mrb[95].mxu0  ;;  %v16482_v9 = vsel %vm2171_vm1, %v4492_v28, %v4494_v17 }
 0xa1e   : > { %v1933_v55 = vmax.f32 %v1659_v21, 0.0 }
 0xa20   : > { %v2013_v59 = vpack.c.bf16 %v1933_v55, %v1932_v26 }
 0xa21   : > { %v1663_v41 = vpop.f32.mrb[96].mxu0 }
 0xa22   : > { %1846 = vmatmul.mubr.bf16.gmra.mrb[188].mxu0 %v14325_v49  ;;  %v1665_v39 = vpop.f32.mrb[97].mxu0  ;;  %v4496_v53 = vrot.slane %v2013_v59, 4  ;;  %v1664_v3 = vadd.f32 %v16197_v58, %v1663_v41 }
 0xa23   : > { %1853 = vmatprep.mubr.bf16.mxu0 %v14326_v46  ;;  %v1666_v50 = vpop.f32.mrb[98].mxu0 }
 0xa24   : > { %v1667_v6 = vadd.f32 %v16197_v58, %v1666_v50  ;;  %v1668_v60 = vpop.f32.mrb[99].mxu0  ;;  %v16492_v2 = vsel %vm2171_vm1, %v4494_v17, %v4496_v53  ;;  %v1934_v5 = vmax.f32 %v1664_v3, 0.0 }
 0xa26   : > { %v1935_v30 = vmax.f32 %v1667_v6, 0.0 }
 0xa28   : > { %v2014_v23 = vpack.c.bf16 %v1935_v30, %v1934_v5 }
 0xa2a   : > { %1854 = vmatmul.mubr.bf16.gmra.mrb[192].mxu0 %v14328_v38 }
 0xa2b   : > { %1861 = vmatprep.mubr.bf16.mxu0 %v14329_v40 }
 0xa2f   : > { %v11997_v13 = vpop.f32.mrb[136].mxu1 }
 0xa30   : > { %v11998_v18 = vpop.f32.mrb[137].mxu1 }
 0xa31   : > { %v12000_v29 = vpop.f32.mrb[138].mxu1  ;;  %v11999_v33 = vadd.f32 %v11998_v18, %v11997_v13 }
 0xa32   : > { %v12001_v11 = vpop.f32.mrb[139].mxu1  ;;  %1862 = vmatmul.mubr.bf16.gmra.mrb[196].mxu0 %v14331_v44 }
 0xa33   : > { %v3816_v37 = vadd.f32 %v11999_v33, %v3776_v25  ;;  %1869 = vmatprep.mubr.bf16.mxu0 %v14332_v35  ;;  %v4498_v11 = vrot.slane %v2014_v23, 4 }
 0xa3a   : > { %1870 = vmatmul.mubr.bf16.gmra.mrb[200].mxu0 %v14334_v54 }
 0xa3b   : > { %1877 = vmatprep.mubr.bf16.mxu0 %v14335_v52 }
 0xa3f   : > { %v3855_v42 = vpop.f32.mrb[140].mxu1 }
 0xa40   : > { %v16461_v22 = vadd.f32 %v3855_v42, %v3816_v37  ;;  %v12942_v16 = vpop.f32.mrb[141].mxu1 }
 0xa41   : > { %v3858_v24 = vpop.f32.mrb[142].mxu1  ;;  %v16500_v16 = vsel %vm2171_vm1, %v4496_v53, %v4498_v11 }
 0xa42   : > { %20761 = vst [vmem:[#allocation2_spill] sm:$0xff] %v16461_v22  ;;  %v12943_v14 = vpop.f32.mrb[143].mxu1  ;;  %1878 = vmatmul.mubr.bf16.gmra.mrb[204].mxu0 %v14337_v57 }
 0xa45   : > { %v1671_v25 = vpop.f32.mrb[100].mxu0 }
 0xa46   : > { %v1672_v29 = vadd.f32 %v16197_v58, %v1671_v25  ;;  %v1673_v33 = vpop.f32.mrb[101].mxu0 }
 0xa47   : > { %v1674_v15 = vpop.f32.mrb[102].mxu0 }
 0xa48   : > { %v1936_v37 = vmax.f32 %v1672_v29, 0.0  ;;  %v1675_v47 = vadd.f32 %v16197_v58, %v1674_v15  ;;  %v1676_v8 = vpop.f32.mrb[103].mxu0 }
 0xa4a   : > { %v1937_v49 = vmax.f32 %v1675_v47, 0.0 }
 0xa4c   : > { %v2015_v38 = vpack.c.bf16 %v1937_v49, %v1936_v37 }
 0xa4d   : > { %v1679_v26 = vpop.f32.mrb[104].mxu0 }
 0xa4e   : > { %v16506_v40 = vrot.slane %v2015_v38, 4  ;;  %v1681_v12 = vpop.f32.mrb[105].mxu0  ;;  %v1680_v35 = vadd.f32 %v16197_v58, %v1679_v26 }
 0xa4f   : > { %v1682_v55 = vpop.f32.mrb[106].mxu0 }
 0xa50   : > { %v16510_v34 = vsel %vm2171_vm1, %v4498_v11, %v16506_v40  ;;  %v1683_v17 = vadd.f32 %v16197_v58, %v1682_v55 }
 0xa52   : > { %v1939_v41 = vmax.f32 %v1683_v17, 0.0 }
 0xa5b   : > { %v12960_v48 = vpop.f32.mrb[144].mxu1 }
 0xa5c   : > { %v16479_v61 = vpop.f32.mrb[145].mxu1 }
 0xa5d   : > { %v12961_v10 = vpop.f32.mrb[146].mxu1 }
 0xa5e   : > { %v13615_v27 = vpack.i.bf16 %v12961_v10, %v12960_v48  ;;  %v16484_v51 = vpop.f32.mrb[147].mxu1  ;;  %v1684_v48 = vpop.f32.mrb[107].mxu0 }
 0xa5f   : > { %v1687_v52 = vpop.f32.mrb[108].mxu0 }
 0xa60   : > { %13616 = vrot.lane.b32.xlu1 %v13615_v27, %s15071_s26  ;;  %v1938_v27 = vmax.f32 %v1680_v35, 0.0  ;;  %v1689_v53 = vpop.f32.mrb[109].mxu0 }
 0xa61   : > { %v1690_v3 = vpop.f32.mrb[110].mxu0 }
 0xa62   : > { %v16522_v6 = vpack.c.bf16 %v1939_v41, %v1938_v27  ;;  %v1692_v57 = vpop.f32.mrb[111].mxu0 }
 0xa63   : > { %v12964_v56 = vpop.f32.mrb[148].mxu1 }
 0xa64   : > { %v3928_v0 = vpop.f32.mrb[149].mxu1  ;;  %20762 = vst [vmem:[#allocation3_spill] sm:$0xff] %v16522_v6 }
 0xa65   : > { %v12965_v4 = vpop.f32.mrb[150].mxu1 }
 0xa66   : > { %v13640_v62 = vpack.i.bf16 %v12965_v4, %v12964_v56  ;;  %v3931_v13 = vpop.f32.mrb[151].mxu1  ;;  %v1688_v56 = vadd.f32 %v16197_v58, %v1687_v52 }
 0xa67   : > { %v13620_v18 = vpack.i.bf16 %v3931_v13, %v3928_v0  ;;  %v1691_v0 = vadd.f32 %v16197_v58, %v1690_v3  ;;  %v1695_v13 = vpop.f32.mrb[112].mxu0 }
 0xa68   : > { %v1940_v30 = vmax.f32 %v1688_v56, 0.0  ;;  %v1697_v25 = vpop.f32.mrb[113].mxu0  ;;  %v1696_v11 = vadd.f32 %v16197_v58, %v1695_v13 }
 0xa69   : > { %13621 = vrot.lane.b32.xlu1 %v13620_v18, %s15072_s16  ;;  %v1698_v33 = vpop.f32.mrb[114].mxu0 }
 0xa6a   : > { %v1700_v15 = vpop.f32.mrb[115].mxu0  ;;  %v1942_v49 = vmax.f32 %v1696_v11, 0.0 }
 0xa6b   : > { %v12968_v32 = vpop.f32.mrb[152].mxu1 }
 0xa6c   : > { %v16497_v42 = vpop.f32.mrb[153].mxu1 }
 0xa6d   : > { %13641 = vrot.lane.b32.xlu1 %v13640_v62, %s15073_s17  ;;  %v12969_v24 = vpop.f32.mrb[154].mxu1  ;;  %v1941_v62 = vmax.f32 %v1691_v0, 0.0 }
 0xa6e   : > { %v13625_v14 = vpack.i.bf16 %v12969_v24, %v12968_v32  ;;  %v16503_v46 = vpop.f32.mrb[155].mxu1  ;;  %v1699_v32 = vadd.f32 %v16197_v58, %v1698_v33 }
 0xa6f   : > { %v16528_v37 = vpack.c.bf16 %v1941_v62, %v1940_v30 }
 0xa70   : > { %13626 = vrot.lane.b32.xlu0 %v13625_v14, %s15071_s26  ;;  %v1943_v14 = vmax.f32 %v1699_v32, 0.0 }
 0xa71   : > { %20763 = vst [vmem:[#allocation4_spill] sm:$0xff] %v16528_v37 }
 0xa72   : > { %v16538_v12 = vpack.c.bf16 %v1943_v14, %v1942_v49 }
 0xa73   : > { %v12972_v28 = vpop.f32.mrb[156].mxu1 }
 0xa74   : > { %v3960_v44 = vpop.f32.mrb[157].mxu1  ;;  %20764 = vst [vmem:[#allocation5_spill] sm:$0xff] %v16538_v12 }
 0xa75   : > { %v12973_v31 = vpop.f32.mrb[158].mxu1 }
 0xa76   : > { %v13635_v45 = vpack.i.bf16 %v12973_v31, %v12972_v28  ;;  %v3963_v19 = vpop.f32.mrb[159].mxu1 }
 0xa77   : > { %v13630_v21 = vpack.i.bf16 %v3963_v19, %v3960_v44  ;;  %v1703_v44 = vpop.f32.mrb[116].mxu0 }
 0xa78   : > { %v1705_v31 = vpop.f32.mrb[117].mxu0  ;;  %v1704_v19 = vadd.f32 %v16197_v58, %v1703_v44 }
 0xa79   : > { %13631 = vrot.lane.b32.xlu0 %v13630_v21, %s15072_s16 }
 0xa7a   : > { %v1944_v48 = vmax.f32 %v1704_v19, 0.0 }
 0xa7b   : > { %v12976_v54 = vpop.f32.mrb[160].mxu1 }
 0xa7c   : > { %v16515_v59 = vpop.f32.mrb[161].mxu1 }
 0xa7d   : > { %13636 = vrot.lane.b32.xlu0 %v13635_v45, %s15073_s17  ;;  %v12977_v10 = vpop.f32.mrb[162].mxu1  ;;  %v1706_v45 = vpop.f32.mrb[118].mxu0 }
 0xa7e   : > { %v13645_v39 = vpack.i.bf16 %v12977_v10, %v12976_v54  ;;  %v16518_v50 = vpop.f32.mrb[163].mxu1  ;;  %v1707_v26 = vadd.f32 %v16197_v58, %v1706_v45  ;;  %v1708_v21 = vpop.f32.mrb[119].mxu0 }
 0xa7f   : > { %v1711_v41 = vpop.f32.mrb[120].mxu0 }
 0xa80   : > { %13646 = vrot.lane.b32.xlu1 %v13645_v39, %s15071_s26  ;;  %v1945_v54 = vmax.f32 %v1707_v26, 0.0  ;;  %v1713_v52 = vpop.f32.mrb[121].mxu0  ;;  %v1712_v56 = vadd.f32 %v16197_v58, %v1711_v41 }
 0xa81   : > { %v1714_v53 = vpop.f32.mrb[122].mxu0 }
 0xa82   : > { %v1715_v3 = vadd.f32 %v16197_v58, %v1714_v53  ;;  %v1716_v57 = vpop.f32.mrb[123].mxu0  ;;  %v1946_v30 = vmax.f32 %v1712_v56, 0.0 }
 0xa83   : > { %v12980_v60 = vpop.f32.mrb[164].mxu1  ;;  %v1719_v0 = vpop.f32.mrb[124].mxu0 }
 0xa84   : > { %v3992_v4 = vpop.f32.mrb[165].mxu1  ;;  %v1947_v62 = vmax.f32 %v1715_v3, 0.0 }
 0xa85   : > { %v12981_v5 = vpop.f32.mrb[166].mxu1 }
 0xa86   : > { %v13670_v18 = vpack.i.bf16 %v12981_v5, %v12980_v60  ;;  %v3995_v23 = vpop.f32.mrb[167].mxu1  ;;  %v16543_v60 = vpack.c.bf16 %v1945_v54, %v1944_v48  ;;  %v16549_v15 = vpack.c.bf16 %v1947_v62, %v1946_v30 }
 0xa87   : > { %v13650_v29 = vpack.i.bf16 %v3995_v23, %v3992_v4  ;;  %v1721_v4 = vpop.f32.mrb[125].mxu0  ;;  %v1720_v23 = vadd.f32 %v16197_v58, %v1719_v0 }
 0xa88   : > { %20765 = vst [vmem:[#allocation6_spill] sm:$0xff] %v16543_v60  ;;  %v1722_v5 = vpop.f32.mrb[126].mxu0  ;;  %20766 = vst [vmem:[#allocation7_spill] sm:$0xff] %v16549_v15 }
 0xa89   : > { %13651 = vrot.lane.b32.xlu1 %v13650_v29, %s15072_s16  ;;  %v1724_v13 = vpop.f32.mrb[127].mxu0  ;;  %v1723_v25 = vadd.f32 %v16197_v58, %v1722_v5  ;;  %v1948_v49 = vmax.f32 %v1720_v23, 0.0 }
 0xa8a   : > { %v16566_v13 = vld [vmem:[%s20482_s2] ss:$0 sm:$0xff] }
 0xa8b   : > { %v12984_v47 = vpop.f32.mrb[168].mxu1  ;;  %v1949_v14 = vmax.f32 %v1723_v25, 0.0 }
 0xa8c   : > { %v16530_v8 = vpop.f32.mrb[169].mxu1 }
 0xa8d   : > { %13671 = vrot.lane.b32.xlu1 %v13670_v18, %s15073_s17  ;;  %v12985_v24 = vpop.f32.mrb[170].mxu1  ;;  %v1727_v18 = vpop.f32.mrb[128].mxu0  ;;  %v16555_v26 = vpack.c.bf16 %v1949_v14, %v1948_v49 }
 0xa8e   : > { %v13655_v38 = vpack.i.bf16 %v12985_v24, %v12984_v47  ;;  %v16533_v28 = vpop.f32.mrb[171].mxu1  ;;  %v1728_v29 = vadd.f32 %v16197_v58, %v1727_v18  ;;  %v1729_v33 = vpop.f32.mrb[129].mxu0 }
 0xa8f   : > { %v1730_v11 = vpop.f32.mrb[130].mxu0  ;;  %20768 = vst [vmem:[#allocation9_spill] sm:$0xff] %v16555_v26 }
 0xa90   : > { %13656 = vrot.lane.b32.xlu0 %v13655_v38, %s15071_s26  ;;  %v1950_v32 = vmax.f32 %v1728_v29, 0.0  ;;  %v1731_v47 = vadd.f32 %v16197_v58, %v1730_v11  ;;  %v1732_v24 = vpop.f32.mrb[131].mxu0 }
 0xa91   : > { %v1735_v31 = vpop.f32.mrb[132].mxu0 }
 0xa92   : > { %v1951_v38 = vmax.f32 %v1731_v47, 0.0  ;;  %v1736_v45 = vadd.f32 %v16197_v58, %v1735_v31  ;;  %v1737_v19 = vpop.f32.mrb[133].mxu0 }
 0xa93   : > { %v12988_v55 = vpop.f32.mrb[172].mxu1  ;;  %v1738_v21 = vpop.f32.mrb[134].mxu0 }
 0xa94   : > { %v4024_v35 = vpop.f32.mrb[173].mxu1  ;;  %v16552_v44 = vpack.c.bf16 %v1951_v38, %v1950_v32 }
 0xa95   : > { %v12989_v17 = vpop.f32.mrb[174].mxu1 }
 0xa96   : > { %v13665_v10 = vpack.i.bf16 %v12989_v17, %v12988_v55  ;;  %v4027_v27 = vpop.f32.mrb[175].mxu1  ;;  %20767 = vst [vmem:[#allocation8_spill] sm:$0xff] %v16552_v44  ;;  %v1952_v55 = vmax.f32 %v1736_v45, 0.0  ;;  %v1740_v17 = vpop.f32.mrb[135].mxu0 }
 0xa97   : > { %v13660_v39 = vpack.i.bf16 %v4027_v27, %v4024_v35  ;;  %v1739_v35 = vadd.f32 %v16197_v58, %v1738_v21 }
 0xa99   : > { %13661 = vrot.lane.b32.xlu0 %v13660_v39, %s15072_s16  ;;  %v1953_v48 = vmax.f32 %v1739_v35, 0.0 }
 0xa9b   : > { %v16558_v54 = vpack.c.bf16 %v1953_v48, %v1952_v55 }
 0xa9d   : > { %13666 = vrot.lane.b32.xlu0 %v13665_v10, %s15073_s17  ;;  %20769 = vst [vmem:[#allocation10_spill] sm:$0xff] %v16558_v54  ;;  %v1743_v10 = vpop.f32.mrb[136].mxu0  ;;  %v20536_v25 = vrot.slane %v16558_v54, 4 }
 0xa9e   : > { %v1744_v27 = vadd.f32 %v16197_v58, %v1743_v10  ;;  %v1745_v41 = vpop.f32.mrb[137].mxu0 }
 0xa9f   : > { %v1746_v39 = vpop.f32.mrb[138].mxu0 }
 0xaa0   : > { %v1954_v52 = vmax.f32 %v1744_v27, 0.0  ;;  %v1747_v53 = vadd.f32 %v16197_v58, %v1746_v39  ;;  %v1748_v56 = vpop.f32.mrb[139].mxu0 }
 0xaa1   : > { %v1751_v0 = vpop.f32.mrb[140].mxu0 }
 0xaa2   : > { %v1955_v3 = vmax.f32 %v1747_v53, 0.0  ;;  %v1752_v4 = vadd.f32 %v16197_v58, %v1751_v0  ;;  %v1753_v5 = vpop.f32.mrb[141].mxu0 }
 0xaa3   : > { %v1754_v30 = vpop.f32.mrb[142].mxu0 }
 0xaa4   : > { %v2024_v57 = vpack.c.bf16 %v1955_v3, %v1954_v52  ;;  %v1956_v62 = vmax.f32 %v1752_v4, 0.0  ;;  %v1755_v18 = vadd.f32 %v16566_v13, %v1754_v30  ;;  %v1756_v23 = vpop.f32.mrb[143].mxu0 }
 0xaa5   : > { %v1759_v32 = vpop.f32.mrb[144].mxu0 }
 0xaa6   : > { %v5732_v29 = vrot.slane %v2024_v57, 4  ;;  %v1957_v33 = vmax.f32 %v1755_v18, 0.0  ;;  %v1760_v47 = vadd.f32 %v16566_v13, %v1759_v32  ;;  %v1761_v24 = vpop.f32.mrb[145].mxu0 }
 0xaa7   : > { %v1762_v49 = vpop.f32.mrb[146].mxu0 }
 0xaa8   : > { %v16573_v11 = vsel %vm2171_vm1, %v20536_v25, %v5732_v29  ;;  %v2025_v58 = vpack.c.bf16 %v1957_v33, %v1956_v62  ;;  %v1958_v14 = vmax.f32 %v1760_v47, 0.0  ;;  %v1763_v38 = vadd.f32 %v16566_v13, %v1762_v49  ;;  %v1764_v31 = vpop.f32.mrb[147].mxu0 }
 0xaa9   : > { %20770 = vst [vmem:[#allocation11_spill] sm:$0xff] %v16573_v11  ;;  %v1767_v35 = vpop.f32.mrb[148].mxu0 }
 0xaaa   : > { %v5734_v45 = vrot.slane %v2025_v58, 4  ;;  %v1959_v19 = vmax.f32 %v1763_v38, 0.0  ;;  %v1768_v17 = vadd.f32 %v16566_v13, %v1767_v35  ;;  %v1769_v48 = vpop.f32.mrb[149].mxu0 }
 0xaab   : > { %v1770_v10 = vpop.f32.mrb[150].mxu0 }
 0xaac   : > { %v16578_v21 = vsel %vm2171_vm1, %v5732_v29, %v5734_v45  ;;  %v2026_v55 = vpack.c.bf16 %v1959_v19, %v1958_v14  ;;  %v1960_v27 = vmax.f32 %v1768_v17, 0.0  ;;  %v1771_v41 = vadd.f32 %v16566_v13, %v1770_v10  ;;  %v1772_v39 = vpop.f32.mrb[151].mxu0 }
 0xaad   : > { %20771 = vst [vmem:[#allocation12_spill] sm:$0xff] %v16578_v21  ;;  %v1775_v57 = vpop.f32.mrb[152].mxu0 }
 0xaae   : > { %v5736_v52 = vrot.slane %v2026_v55, 4  ;;  %v1961_v53 = vmax.f32 %v1771_v41, 0.0  ;;  %v1777_v0 = vpop.f32.mrb[153].mxu0  ;;  %v1776_v18 = vadd.f32 %v16566_v13, %v1775_v57 }
 0xaaf   : > { %v1778_v4 = vpop.f32.mrb[154].mxu0 }
 0xab0   : > { %v16583_v56 = vsel %vm2171_vm1, %v5734_v45, %v5736_v52  ;;  %v2027_v3 = vpack.c.bf16 %v1961_v53, %v1960_v27  ;;  %v1780_v5 = vpop.f32.mrb[155].mxu0  ;;  %v1779_v23 = vadd.f32 %v16566_v13, %v1778_v4  ;;  %v1962_v58 = vmax.f32 %v1776_v18, 0.0 }
 0xab1   : > { %20772 = vst [vmem:[#allocation13_spill] sm:$0xff] %v16583_v56 }
 0xab2   : > { %v5738_v30 = vrot.slane %v2027_v3, 4  ;;  %v1963_v32 = vmax.f32 %v1779_v23, 0.0 }
 0xab4   : > { %v16586_v62 = vsel %vm2171_vm1, %v5736_v52, %v5738_v30  ;;  %v2028_v49 = vpack.c.bf16 %v1963_v32, %v1962_v58 }
 0xab5   : > { %20773 = vst [vmem:[#allocation14_spill] sm:$0xff] %v16586_v62  ;;  %v1783_v33 = vpop.f32.mrb[156].mxu0 }
 0xab6   : > { %v1785_v47 = vpop.f32.mrb[157].mxu0  ;;  %v16590_v19 = vrot.slane %v2028_v49, 4 }
 0xab7   : > { %v1786_v24 = vpop.f32.mrb[158].mxu0 }
 0xab8   : > { %v1788_v38 = vpop.f32.mrb[159].mxu0  ;;  %20774 = vst [vmem:[#allocation15_spill] sm:$0xff] %v16590_v19  ;;  %v16594_v17 = vsel %vm2171_vm1, %v5738_v30, %v16590_v19 }
 0xab9   : > { %20775 = vst [vmem:[#allocation21_spill] sm:$0xff] %v16594_v17 }
 0xabd   : > { %v1791_v52 = vpop.f32.mrb[160].mxu0 }
 0xabe   : > { %v1792_v57 = vadd.f32 %v16566_v13, %v1791_v52  ;;  %v1793_v0 = vpop.f32.mrb[161].mxu0 }
 0xabf   : > { %v1794_v30 = vpop.f32.mrb[162].mxu0 }
 0xac0   : > { %v1796_v23 = vpop.f32.mrb[163].mxu0  ;;  %v1795_v58 = vadd.f32 %v16566_v13, %v1794_v30 }
 0xac2   : > { %v1967_v32 = vmax.f32 %v1795_v58, 0.0 }
 0xad2   : > { %v13617_v29 = vpop.permute.xlu1 %13616 }
 0xad3   : > { %v13619_v31 = vunpack.i.h.bf16 %v13617_v29  ;;  %v13618_v45 = vunpack.i.l.bf16 %v13617_v29  ;;  %v1966_v29 = vmax.f32 %v1792_v57, 0.0 }
 0xad5   : > { %v4135_v10 = vsel %vm2432_vm2, %v16479_v61, %v13618_v45  ;;  %v4136_v27 = vsel %vm2432_vm2, %v16484_v51, %v13619_v31  ;;  %v1784_v61 = vadd.f32 %v16566_v13, %v1783_v33  ;;  %v1787_v51 = vadd.f32 %v16566_v13, %v1786_v24  ;;  %v1799_v31 = vpop.f32.mrb[164].mxu0 }
 0xad6   : > { %v16608_v38 = vpack.c.bf16 %v1967_v32, %v1966_v29  ;;  %v1800_v45 = vadd.f32 %v16566_v13, %v1799_v31 }
 0xad7   : > { %v1964_v49 = vmax.f32 %v1784_v61, 0.0 }
 0xad8   : > { %20776 = vst [vmem:[#allocation16_spill] sm:$0xff] %v16608_v38 }
 0xadb   : > { %v13622_v14 = vpop.permute.xlu1 %13621 }
 0xadc   : > { %v13624_v55 = vunpack.i.h.bf16 %v13622_v14  ;;  %v13623_v35 = vunpack.i.l.bf16 %v13622_v14  ;;  %v1965_v14 = vmax.f32 %v1787_v51, 0.0 }
 0xade   : > { %v4138_v53 = vsel %vm2435_vm3, %v4136_v27, %v13624_v55  ;;  %v4137_v3 = vsel %vm2435_vm3, %v4135_v10, %v13623_v35  ;;  %v1801_v55 = vpop.f32.mrb[165].mxu0  ;;  %v1968_v10 = vmax.f32 %v1800_v45, 0.0  ;;  %v16612_v27 = vpack.c.bf16 %v1965_v14, %v1964_v49 }
 0xadf   : > { %v13642_v48 = vpop.permute.xlu1 %13641  ;;  %v1802_v35 = vpop.f32.mrb[166].mxu0 }
 0xae0   : > { %v13644_v41 = vunpack.i.h.bf16 %v13642_v48  ;;  %v13643_v39 = vunpack.i.l.bf16 %v13642_v48  ;;  %v1803_v33 = vadd.f32 %v16566_v13, %v1802_v35  ;;  %v1804_v24 = vpop.f32.mrb[167].mxu0  ;;  %20777 = vst [vmem:[#allocation22_spill] sm:$0xff] %v16612_v27 }
 0xae1   : > { %v1807_v51 = vpop.f32.mrb[168].mxu0 }
 0xae2   : > { %v4139_v4 = vsel %vm2438_vm4, %v4137_v3, %v13643_v39  ;;  %v4140_v5 = vsel %vm2438_vm4, %v4138_v53, %v13644_v41  ;;  %v13627_v47 = vpop.permute.xlu0 %13626  ;;  %v1969_v3 = vmax.f32 %v1803_v33, 0.0  ;;  %v1808_v58 = vadd.f32 %v16566_v13, %v1807_v51  ;;  %v1809_v32 = vpop.f32.mrb[169].mxu0 }
 0xae3   : > { %v4159_v18 = vpack.c.bf16 %v4140_v5, %v4139_v4  ;;  %v13629_v41 = vunpack.i.h.bf16 %v13627_v47  ;;  %v13628_v39 = vunpack.i.l.bf16 %v13627_v47  ;;  %v1810_v14 = vpop.f32.mrb[170].mxu0 }
 0xae4   : > { %v16614_v0 = vpack.c.bf16 %v1969_v3, %v1968_v10  ;;  %v1970_v45 = vmax.f32 %v1808_v58, 0.0  ;;  %v16635_v10 = vld [vmem:[%s20484_s4 + $0xc8] sm:$0xff]   ;;  %v16657_v58 = vld [vmem:[%s20484_s4 + $0x90] sm:$0xff]  }
 0xae5   : > { %v4141_v4 = vsel %vm2432_vm2, %v16497_v42, %v13628_v39  ;;  %v4142_v5 = vsel %vm2432_vm2, %v16503_v46, %v13629_v41  ;;  %v1812_v42 = vpop.f32.mrb[171].mxu0  ;;  %v1811_v46 = vadd.f32 %v16566_v13, %v1810_v14 }
 0xae6   : > { %20778 = vst [vmem:[#allocation23_spill] sm:$0xff] %v16614_v0  ;;  %v1815_v24 = vpop.f32.mrb[172].mxu0 }
 0xae7   : > { %v1971_v55 = vmax.f32 %v1811_v46, 0.0  ;;  %v1817_v41 = vpop.f32.mrb[173].mxu0 }
 0xae8   : > { %v1818_v39 = vpop.f32.mrb[174].mxu0 }
 0xae9   : > { %v16638_v33 = vpack.c.bf16 %v1971_v55, %v1970_v45  ;;  %v16669_v45 = vld [vmem:[%s20484_s4 + $0xd8] sm:$0xff]  }
 0xaeb   : > { %v13632_v48 = vpop.permute.xlu0 %13631  ;;  %20779 = vst [vmem:[#allocation24_spill] sm:$0xff] %v16638_v33  ;;  %v16932_v33 = vld [vmem:[%s20486_s6 + $0x20] ss:$0 sps:$4 sm:$0xff]  }
 0xaec   : > { %v13634_v52 = vunpack.i.h.bf16 %v13632_v48  ;;  %v13633_v53 = vunpack.i.l.bf16 %v13632_v48  ;;  %v16629_v48 = vld [vmem:[%s20484_s4 + $0x80] sm:$0xff]   ;;  %20792 = vst [vmem:[#allocation34_spill] sm:$0xff] %v16932_v33 }
 0xaee   : > { %v4144_v23 = vsel %vm2435_vm3, %v4142_v5, %v13634_v52  ;;  %v4143_v29 = vsel %vm2435_vm3, %v4141_v4, %v13633_v53  ;;  %v16644_v52 = vld [vmem:[%s20484_s4 + $0x88] sm:$0xff]   ;;  %v1820_v4 = vpop.f32.mrb[175].mxu0 }
 0xaef   : > { %v13637_v57 = vpop.permute.xlu0 %13636  ;;  %v1823_v46 = vpop.f32.mrb[176].mxu0 }
 0xaf0   : > { %v13639_v30 = vunpack.i.h.bf16 %v13637_v57  ;;  %v13638_v61 = vunpack.i.l.bf16 %v13637_v57  ;;  %v1819_v57 = vadd.f32 %v16566_v13, %v1818_v39 }
 0xaf2   : > { %v4145_v47 = vsel %vm2438_vm4, %v4143_v29, %v13638_v61  ;;  %v4146_v49 = vsel %vm2438_vm4, %v4144_v23, %v13639_v30  ;;  %v13647_v35 = vpop.permute.xlu1 %13646  ;;  %v16651_v61 = vld [vmem:[%s20484_s4 + $0xd0] sm:$0xff]   ;;  %v1973_v29 = vmax.f32 %v1819_v57, 0.0  ;;  %v16686_v57 = vld [vmem:[%s20484_s4 + $0xe0] sm:$0xff]  }
 0xaf3   : > { %v4160_v31 = vpack.c.bf16 %v4146_v49, %v4145_v47  ;;  %v13649_v5 = vunpack.i.h.bf16 %v13647_v35  ;;  %v13648_v30 = vunpack.i.l.bf16 %v13647_v35 }
 0xaf5   : > { %4195 = vmatprep.mubr.bf16.mxu0 %v4160_v31  ;;  %v4147_v49 = vsel %vm2432_vm2, %v16515_v59, %v13648_v30  ;;  %v4148_v14 = vsel %vm2432_vm2, %v16518_v50, %v13649_v5  ;;  %v1825_v59 = vpop.f32.mrb[177].mxu0 }
 0xaf6   : > { %4196 = vmatmul.mubr.bf16.vlgmr.msra.gmra.mrb[208].mxu0 %v4159_v18  ;;  %v1816_v18 = vadd.f32 %v16566_v13, %v1815_v24  ;;  %v1824_v24 = vadd.f32 %v16566_v13, %v1823_v46  ;;  %v1826_v41 = vpop.f32.mrb[178].mxu0  ;;  %v16708_v46 = vld [vmem:[%s20484_s4 + $0xa8] sm:$0xff]  }
 0xaf7   : > { %12054 = vmatpush3.bf16.msra.mxu0 %v16629_v48  ;;  %v1827_v5 = vadd.f32 %v16566_v13, %v1826_v41  ;;  %v16715_v41 = vld [vmem:[%s20484_s4 + $0xf0] sm:$0xff]  }
 0xaf8   : > { %12055 = vmatprep.subr.bf16.mxu0 %v16635_v10  ;;  %v1972_v3 = vmax.f32 %v1816_v18, 0.0  ;;  %v1974_v4 = vmax.f32 %v1824_v24, 0.0 }
 0xaf9   : > { %v1975_v30 = vmax.f32 %v1827_v5, 0.0 }
 0xafa   : > { %v16660_v47 = vpack.c.bf16 %v1973_v29, %v1972_v3  ;;  %v1828_v3 = vpop.f32.mrb[179].mxu0  ;;  %v16699_v29 = vld [vmem:[%s20484_s4 + $0xe8] sm:$0xff]  }
 0xafb   : > { %12056 = vmatpush3.bf16.msra.mxu0 %v16644_v52  ;;  %v13652_v53 = vpop.permute.xlu1 %13651 }
 0xafc   : > { %12057 = vmatprep.subr.bf16.mxu0 %v16651_v61  ;;  %v13654_v51 = vunpack.i.h.bf16 %v13652_v53  ;;  %v13653_v23 = vunpack.i.l.bf16 %v13652_v53  ;;  %20780 = vst [vmem:[#allocation25_spill] sm:$0xff] %v16660_v47  ;;  %v16680_v53 = vld [vmem:[%s20484_s4 + $0x98] sm:$0xff]   ;;  %v16926_v47 = vld [vmem:[%s20484_s4 + $0x40] sm:$0xff]  }
 0xafd   : > { %20791 = vst [vmem:[#allocation19_spill] sm:$0xff] %v16926_v47 }
 0xafe   : > { %v4150_v55 = vsel %vm2435_vm3, %v4148_v14, %v13654_v51  ;;  %v4149_v35 = vsel %vm2435_vm3, %v4147_v49, %v13653_v23  ;;  %v16693_v23 = vld [vmem:[%s20484_s4 + $0xa0] sm:$0xff]   ;;  %v1831_v49 = vpop.f32.mrb[180].mxu0 }
 0xaff   : > { %12058 = vmatpush3.bf16.msra.mxu0 %v16657_v58  ;;  %v13672_v32 = vpop.permute.xlu1 %13671  ;;  %v1832_v14 = vadd.f32 %v16566_v13, %v1831_v49 }
 0xb00   : > { %v13674_v31 = vunpack.i.h.bf16 %v13672_v32  ;;  %v13673_v42 = vunpack.i.l.bf16 %v13672_v32  ;;  %12059 = vmatprep.subr.bf16.mxu0 %v16669_v45  ;;  %v16702_v32 = vpack.c.bf16 %v1975_v30, %v1974_v4  ;;  %v16721_v30 = vld [vmem:[%s20484_s4 + $0xb0] sm:$0xff]  }
 0xb02   : > { %v4151_v18 = vsel %vm2438_vm4, %v4149_v35, %v13673_v42  ;;  %v4152_v50 = vsel %vm2438_vm4, %v4150_v55, %v13674_v31  ;;  %v13657_v51 = vpop.permute.xlu0 %13656  ;;  %20781 = vst [vmem:[#allocation17_spill] sm:$0xff] %v16702_v32  ;;  %v1833_v31 = vpop.f32.mrb[181].mxu0  ;;  %v1976_v35 = vmax.f32 %v1832_v14, 0.0 }
 0xb03   : > { %v4161_v39 = vpack.c.bf16 %v4152_v50, %v4151_v18  ;;  %12060 = vmatpush3.bf16.msra.mxu0 %v16680_v53  ;;  %v1834_v42 = vpop.f32.mrb[182].mxu0  ;;  %v13659_v18 = vunpack.i.h.bf16 %v13657_v51  ;;  %v13658_v50 = vunpack.i.l.bf16 %v13657_v51 }
 0xb04   : > { %12061 = vmatprep.subr.bf16.mxu0 %v16686_v57  ;;  %v1835_v24 = vadd.f32 %v16566_v13, %v1834_v42  ;;  %v1836_v59 = vpop.f32.mrb[183].mxu0 }
 0xb05   : > { %v4153_v51 = vsel %vm2432_vm2, %v16530_v8, %v13658_v50  ;;  %v4154_v31 = vsel %vm2432_vm2, %v16533_v28, %v13659_v18 }
 0xb06   : > { %v1977_v5 = vmax.f32 %v1835_v24, 0.0  ;;  %v1839_v24 = vpop.f32.mrb[184].mxu0 }
 0xb07   : > { %12062 = vmatpush3.bf16.msra.mxu0 %v16693_v23  ;;  %v1841_v8 = vpop.f32.mrb[185].mxu0 }
 0xb08   : > { %12063 = vmatprep.subr.bf16.mxu0 %v16699_v29  ;;  %v16724_v14 = vpack.c.bf16 %v1977_v5, %v1976_v35  ;;  %v1840_v5 = vadd.f32 %v16566_v13, %v1839_v24  ;;  %v1842_v18 = vpop.f32.mrb[186].mxu0 }
 0xb0a   : > { %20782 = vst [vmem:[#allocation26_spill] sm:$0xff] %v16724_v14  ;;  %v1978_v63 = vmax.f32 %v1840_v5, 0.0 }
 0xb0b   : > { %12064 = vmatpush3.bf16.msra.mxu0 %v16708_v46  ;;  %v13662_v55 = vpop.permute.xlu0 %13661 }
 0xb0c   : > { %12065 = vmatprep.subr.bf16.mxu0 %v16715_v41  ;;  %v13664_v3 = vunpack.i.h.bf16 %v13662_v55  ;;  %v13663_v4 = vunpack.i.l.bf16 %v13662_v55  ;;  %v16733_v55 = vld [vmem:[%s20484_s4 + $0xf8] sm:$0xff]  }
 0xb0e   : > { %v4156_v25 = vsel %vm2435_vm3, %v4154_v31, %v13664_v3  ;;  %v4155_v35 = vsel %vm2435_vm3, %v4153_v51, %v13663_v4  ;;  %v1843_v3 = vadd.f32 %v16566_v13, %v1842_v18  ;;  %v1844_v4 = vpop.f32.mrb[187].mxu0 }
 0xb0f   : > { %12066 = vmatpush3.bf16.msra.mxu0 %v16721_v30  ;;  %v13667_v49 = vpop.permute.xlu0 %13666 }
 0xb10   : > { %v13669_v42 = vunpack.i.h.bf16 %v13667_v49  ;;  %v13668_v59 = vunpack.i.l.bf16 %v13667_v49  ;;  %12067 = vmatprep.subr.bf16.mxu0 %v16733_v55  ;;  %v16744_v49 = vld [vmem:[%s20484_s4 + $0xb8] sm:$0xff]   ;;  %v1979_v51 = vmax.f32 %v1843_v3, 0.0 }
 0xb12   : > { %v4157_v50 = vsel %vm2438_vm4, %v4155_v35, %v13668_v59  ;;  %v4158_v28 = vsel %vm2438_vm4, %v4156_v25, %v13669_v42  ;;  %v16749_v31 = vpack.c.bf16 %v1979_v51, %v1978_v63  ;;  %v1847_v25 = vpop.f32.mrb[188].mxu0 }
 0xb13   : > { %12068 = vmatpush3.bf16.msra.mxu0 %v16744_v49  ;;  %v4162_v36 = vpack.c.bf16 %v4158_v28, %v4157_v50  ;;  %v1848_v42 = vadd.f32 %v16566_v13, %v1847_v25  ;;  %v1849_v59 = vpop.f32.mrb[189].mxu0 }
 0xb14   : > { %12990 = vmatprep.subr.bf16.mxu0 %v20701_v20  ;;  %20783 = vst [vmem:[#allocation27_spill] sm:$0xff] %v16749_v31  ;;  %v1850_v24 = vpop.f32.mrb[190].mxu0  ;;  %v20539_v25 = vrot.slane %v16749_v31, 4 }
 0xb15   : > { %4236 = vmatprep.mubr.bf16.mxu0 %v4162_v36  ;;  %v1980_v35 = vmax.f32 %v1848_v42, 0.0  ;;  %v1851_v5 = vadd.f32 %v16566_v13, %v1850_v24  ;;  %v1852_v8 = vpop.f32.mrb[191].mxu0 }
 0xb16   : > { %4237 = vmatmul.mubr.bf16.vlgmr.msra.gmra.mrb[212].mxu0 %v4161_v39  ;;  %v1855_v18 = vpop.f32.mrb[192].mxu0 }
 0xb17   : > { %12992 = vmatprep.mubr.msk.bf16.mxu0 %vm15075_vm5, %v20701_v20  ;;  %v1981_v50 = vmax.f32 %v1851_v5, 0.0  ;;  %v1856_v36 = vadd.f32 %v16566_v13, %v1855_v18  ;;  %v1857_v39 = vpop.f32.mrb[193].mxu0 }
 0xb18   : > { %v1858_v63 = vpop.f32.mrb[194].mxu0 }
 0xb19   : > { %v2037_v28 = vpack.c.bf16 %v1981_v50, %v1980_v35  ;;  %v1982_v3 = vmax.f32 %v1856_v36, 0.0  ;;  %v1859_v4 = vadd.f32 %v16566_v13, %v1858_v63  ;;  %v1860_v51 = vpop.f32.mrb[195].mxu0 }
 0xb1a   : > { %v1863_v42 = vpop.f32.mrb[196].mxu0 }
 0xb1b   : > { %v6972_v22 = vrot.slane %v2037_v28, 4  ;;  %v1983_v14 = vmax.f32 %v1859_v4, 0.0  ;;  %v1864_v35 = vadd.f32 %v16566_v13, %v1863_v42  ;;  %v1865_v5 = vpop.f32.mrb[197].mxu0 }
 0xb1c   : > { %v1866_v8 = vpop.f32.mrb[198].mxu0 }
 0xb1d   : > { %v2038_v59 = vpack.c.bf16 %v1983_v14, %v1982_v3  ;;  %v16761_v24 = vsel %vm2171_vm1, %v20539_v25, %v6972_v22  ;;  %v1984_v50 = vmax.f32 %v1864_v35, 0.0  ;;  %v1867_v18 = vadd.f32 %v16566_v13, %v1866_v8  ;;  %v1868_v36 = vpop.f32.mrb[199].mxu0 }
 0xb1e   : > { %20784 = vst [vmem:[#allocation28_spill] sm:$0xff] %v16761_v24  ;;  %v1871_v4 = vpop.f32.mrb[200].mxu0 }
 0xb1f   : > { %v6974_v39 = vrot.slane %v2038_v59, 4  ;;  %v1985_v28 = vmax.f32 %v1867_v18, 0.0  ;;  %v1872_v3 = vadd.f32 %v16566_v13, %v1871_v4  ;;  %v1873_v51 = vpop.f32.mrb[201].mxu0 }
 0xb20   : > { %v1874_v25 = vpop.f32.mrb[202].mxu0 }
 0xb21   : > { %v2039_v63 = vpack.c.bf16 %v1985_v28, %v1984_v50  ;;  %v16766_v14 = vsel %vm2171_vm1, %v6972_v22, %v6974_v39  ;;  %v1986_v24 = vmax.f32 %v1872_v3, 0.0  ;;  %v1875_v42 = vadd.f32 %v16566_v13, %v1874_v25  ;;  %v1876_v5 = vpop.f32.mrb[203].mxu0 }
 0xb22   : > { %20785 = vst [vmem:[#allocation29_spill] sm:$0xff] %v16766_v14  ;;  %v1879_v8 = vpop.f32.mrb[204].mxu0 }
 0xb23   : > { %v6976_v31 = vrot.slane %v2039_v63, 4  ;;  %v1987_v35 = vmax.f32 %v1875_v42, 0.0  ;;  %v1880_v50 = vadd.f32 %v16566_v13, %v1879_v8  ;;  %v1881_v18 = vpop.f32.mrb[205].mxu0 }
 0xb24   : > { %v1882_v22 = vpop.f32.mrb[206].mxu0 }
 0xb25   : > { %v2040_v32 = vpack.c.bf16 %v1987_v35, %v1986_v24  ;;  %v16771_v59 = vsel %vm2171_vm1, %v6974_v39, %v6976_v31  ;;  %v1988_v36 = vmax.f32 %v1880_v50, 0.0  ;;  %v1883_v28 = vadd.f32 %v16566_v13, %v1882_v22  ;;  %v1884_v4 = vpop.f32.mrb[207].mxu0 }
 0xb26   : > { %20786 = vst [vmem:[#allocation18_spill] sm:$0xff] %v16771_v59  ;;  %v16920_v59 = vld [vmem:[%s20487_s7 + $0xb8] sm:$0xff]  }
 0xb27   : > { %v6978_v51 = vrot.slane %v2040_v32, 4  ;;  %v1989_v3 = vmax.f32 %v1883_v28, 0.0  ;;  %v16787_v32 = vld [vmem:[%s20485_s5] ss:$0 sm:$0xff]  ;;  %20790 = vst [vmem:[#allocation33_spill] sm:$0xff] %v16920_v59 }
 0xb29   : > { %v2041_v14 = vpack.c.bf16 %v1989_v3, %v1988_v36  ;;  %v16776_v25 = vsel %vm2171_vm1, %v6976_v31, %v6978_v51 }
 0xb2a   : > { %20787 = vst [vmem:[#allocation30_spill] sm:$0xff] %v16776_v25  ;;  %v16914_v25 = vld [vmem:[%s20487_s7 + $0xf8] sm:$0xff]  }
 0xb2b   : > { %v16778_v63 = vrot.slane %v2041_v14, 4 }
 0xb2d   : > { %20788 = vst [vmem:[#allocation31_spill] sm:$0xff] %v16778_v63  ;;  %v16782_v24 = vsel %vm2171_vm1, %v6978_v51, %v16778_v63  ;;  %v16899_v63 = vld [vmem:[%s20486_s6 + $0x18] sm:$0xff]  }
 0xb2e   : > { %20789 = vst [vmem:[#allocation32_spill] sm:$0xff] %v16782_v24  ;;  %v16908_v24 = vld [vmem:[%s20487_s7 + $0xb0] sm:$0xff]  }
 0xbc9   : > { %v12047_v39 = vpop.f32.mrb[208].mxu0 }
 0xbca   : > { %v12048_v42 = vpop.f32.mrb[209].mxu0 }
 0xbcb   : > { %v12049_v5 = vadd.f32 %v12048_v42, %v12047_v39  ;;  %v12050_v35 = vpop.f32.mrb[210].mxu0 }
 0xbcc   : > { %v12051_v8 = vpop.f32.mrb[211].mxu0 }
 0xbcd   : > { %v12052_v50 = vadd.f32 %v12051_v8, %v12050_v35  ;;  %v4198_v31 = vadd.f32 %v16787_v32, %v12049_v5  ;;  %v16794_v8 = vld [vmem:[%s20487_s7 + $0xc0] sm:$0xff]  }
 0xbce   : > { %v16800_v5 = vld [vmem:[%s20486_s6] sm:$0xff]  }
 0xbcf   : > { %v4201_v28 = vadd.f32 %v16787_v32, %v12052_v50  ;;  %v16809_v50 = vld [vmem:[%s20487_s7 + $0x80] sm:$0xff]  }
 0xbe9   : > { %v12069_v13 = vpop.f32.mrb[212].mxu0 }
 0xbea   : > { %v12070_v18 = vpop.f32.mrb[213].mxu0 }
 0xbeb   : > { %v12071_v14 = vadd.f32 %v12070_v18, %v12069_v13  ;;  %v12072_v22 = vpop.f32.mrb[214].mxu0  ;;  %v16815_v13 = vld [vmem:[%s20487_s7 + $0xc8] sm:$0xff]  }
 0xbec   : > { %v12073_v36 = vpop.f32.mrb[215].mxu0  ;;  %v16821_v18 = vld [vmem:[%s20487_s7 + $0x88] sm:$0xff]  }
 0xbed   : > { %v4239_v4 = vadd.f32 %v12071_v14, %v4198_v31  ;;  %v12074_v51 = vadd.f32 %v12073_v36, %v12072_v22  ;;  %v16827_v31 = vld [vmem:[%s20487_s7 + $0xd0] sm:$0xff]   ;;  %v16833_v14 = vld [vmem:[%s20486_s6 + $0x8] sm:$0xff]   ;;  %v16848_v36 = vld [vmem:[%s20487_s7 + $0xd8] sm:$0xff]  }
 0xbee   : > { %v16842_v22 = vld [vmem:[%s20487_s7 + $0x90] sm:$0xff]  }
 0xbef   : > { %v4242_v3 = vadd.f32 %v12074_v51, %v4201_v28  ;;  %v4245_v39 = vmax.f32 %v4239_v4, 0.0  ;;  %v16854_v28 = vld [vmem:[%s20487_s7 + $0x98] sm:$0xff]   ;;  %v16860_v4 = vld [vmem:[%s20487_s7 + $0xe0] sm:$0xff]   ;;  %v16866_v51 = vld [vmem:[%s20486_s6 + $0x10] sm:$0xff]  }
 0xbf1   : > { %v4246_v42 = vmax.f32 %v4242_v3, 0.0  ;;  %v16875_v3 = vld [vmem:[%s20487_s7 + $0xa0] sm:$0xff]  }
 0xbf3   : > { %v4247_v35 = vpack.c.bf16 %v4246_v42, %v4245_v39  ;;  %v16881_v39 = vld [vmem:[%s20487_s7 + $0xe8] sm:$0xff]  }
 0xbf4   : > { %v16887_v42 = vld [vmem:[%s20487_s7 + $0xa8] sm:$0xff]  }
 0xbf5   : > { %12991 = vmatpush3.bf16.msra.mxu0 %v4247_v35  ;;  %v16893_v35 = vld [vmem:[%s20487_s7 + $0xf0] sm:$0xff]  }
 0xbf6   : > { %12103 = vmatprep.subr.bf16.mxu0 %v16794_v8 }
 0xbf8   : > { %12993 = vmatmul.mubr.msk.bf16.vlgmr.msra.gmra.mrb[216].mxu0 %vm2769_vm6, %v16800_v5 }
 0xbf9   : > { %12996 = vmatprep.mubr.msk.bf16.mxu0 %vm15075_vm5, %v20701_v20  ;;  %12104 = vmatpush3.bf16.msra.mxu0 %v16809_v50 }
 0xbfa   : > { %12105 = vmatprep.subr.bf16.mxu0 %v16815_v13 }
 0xbfd   : > { %12106 = vmatpush3.bf16.msra.mxu0 %v16821_v18 }
 0xbfe   : > { %12107 = vmatprep.subr.bf16.mxu0 %v16827_v31 }
 0xc00   : > { %12997 = vmatmul.mubr.msk.bf16.gmra.mrb[220].mxu0 %vm2769_vm6, %v16833_v14 }
 0xc01   : > { %13000 = vmatprep.mubr.msk.bf16.mxu0 %vm15075_vm5, %v20701_v20  ;;  %12108 = vmatpush3.bf16.msra.mxu0 %v16842_v22 }
 0xc02   : > { %12109 = vmatprep.subr.bf16.mxu0 %v16848_v36 }
 0xc05   : > { %12110 = vmatpush3.bf16.msra.mxu0 %v16854_v28 }
 0xc06   : > { %12111 = vmatprep.subr.bf16.mxu0 %v16860_v4 }
 0xc08   : > { %13001 = vmatmul.mubr.msk.bf16.gmra.mrb[224].mxu0 %vm2769_vm6, %v16866_v51 }
 0xc09   : > { %13004 = vmatprep.mubr.msk.bf16.mxu0 %vm15075_vm5, %v20701_v20  ;;  %12112 = vmatpush3.bf16.msra.mxu0 %v16875_v3 }
 0xc0a   : > { %12113 = vmatprep.subr.bf16.mxu0 %v16881_v39 }
 0xc0d   : > { %12114 = vmatpush3.bf16.msra.mxu0 %v16887_v42 }
 0xc0e   : > { %12115 = vmatprep.subr.bf16.mxu0 %v16893_v35 }
 0xc10   : > { %13005 = vmatmul.mubr.msk.bf16.gmra.mrb[228].mxu0 %vm2769_vm6, %v16899_v63 }
 0xc11   : > { %13008 = vmatprep.mubr.msk.bf16.mxu0 %vm15075_vm5, %v20701_v20  ;;  %12116 = vmatpush3.bf16.msra.mxu0 %v16908_v24 }
 0xc12   : > { %12117 = vmatprep.subr.bf16.mxu0 %v16914_v25 }
 0xc15   : > { %12118 = vmatpush3.bf16.msra.mxu0 %v16920_v59 }
 0xc16   : > { %12153 = vmatprep.subr.bf16.mxu0 %v16926_v47 }
 0xc18   : > { %13009 = vmatmul.mubr.msk.bf16.gmra.mrb[232].mxu0 %vm2769_vm6, %v16932_v33 }
 0xccb   : > { %v4282_v0 = vpop.f32.mrb[216].mxu0 }
 0xccc   : > { %v12994_v38 = vpop.f32.mrb[217].mxu0 }
 0xccd   : > { %v4285_v27 = vpop.f32.mrb[218].mxu0 }
 0xcce   : > { %v12995_v19 = vpop.f32.mrb[219].mxu0 }
 0xcd3   : > { %v4290_v17 = vpop.f32.mrb[220].mxu0 }
 0xcd4   : > { %v12998_v62 = vpop.f32.mrb[221].mxu0 }
 0xcd5   : > { %v4293_v56 = vpop.f32.mrb[222].mxu0 }
 0xcd6   : > { %v13675_v21 = vpack.i.bf16 %v4285_v27, %v4293_v56  ;;  %v12999_v11 = vpop.f32.mrb[223].mxu0 }
 0xcd8   : > { %13676 = vrot.lane.b32.xlu0 %v13675_v21, %s15072_s16 }
 0xcdb   : > { %v4298_v54 = vpop.f32.mrb[224].mxu0 }
 0xcdc   : > { %v13002_v44 = vpop.f32.mrb[225].mxu0 }
 0xcdd   : > { %v4301_v26 = vpop.f32.mrb[226].mxu0 }
 0xcde   : > { %v13003_v15 = vpop.f32.mrb[227].mxu0 }
 0xce3   : > { %v4306_v60 = vpop.f32.mrb[228].mxu0 }
 0xce4   : > { %v13006_v12 = vpop.f32.mrb[229].mxu0 }
 0xce5   : > { %v4309_v37 = vpop.f32.mrb[230].mxu0  ;;  %v16959_v12 = vld [vmem:[%s20487_s7 + $0x110] sm:$0xff]  }
 0xce6   : > { %v13680_v6 = vpack.i.bf16 %v4301_v26, %v4309_v37  ;;  %v13007_v33 = vpop.f32.mrb[231].mxu0  ;;  %v16943_v37 = vld [vmem:[%s20487_s7 + $0x100] sm:$0xff]   ;;  %20795 = vst [vmem:[#allocation37_spill] sm:$0xff] %v16959_v12 }
 0xce7   : > { %20793 = vst [vmem:[#allocation35_spill] sm:$0xff] %v16943_v37 }
 0xce8   : > { %13681 = vrot.lane.b32.xlu1 %v13680_v6, %s15072_s16  ;;  %v16952_v6 = vld [vmem:[%s20487_s7 + $0x108] sm:$0xff]  }
 0xce9   : > { %20794 = vst [vmem:[#allocation36_spill] sm:$0xff] %v16952_v6 }
 0xceb   : > { %v4314_v38 = vpop.f32.mrb[232].mxu0 }
 0xcec   : > { %v13010_v19 = vpop.f32.mrb[233].mxu0 }
 0xced   : > { %v4317_v47 = vpop.f32.mrb[234].mxu0 }
 0xcee   : > { %v13011_v62 = vpop.f32.mrb[235].mxu0 }
 0xd4a   : > { %v13677_v59 = vpop.permute.xlu0 %13676 }
 0xd4b   : > { %v13679_v56 = vunpack.i.h.bf16 %v13677_v59  ;;  %v13678_v11 = vunpack.i.l.bf16 %v13677_v59  ;;  %v4344_v59 = vpack.c.bf16 %v4314_v38, %v4314_v38  ;;  %v17001_v38 = vld [vmem:[%s20484_s4 + $0x8] sm:$0xff]  }
 0xd4c   : > { %20801 = vst [vmem:[#allocation42_spill] sm:$0xff] %v17001_v38 }
 0xd4d   : > { %v4336_v21 = vsel %vm2435_vm3, %v4282_v0, %v13679_v56  ;;  %v4337_v44 = vsel %vm2435_vm3, %v4290_v17, %v13678_v11  ;;  %v4489_v17 = vrot.slane %v16231_v1, 4  ;;  %v16969_v56 = vld [vmem:[%s20487_s7 + $0x118] sm:$0xff]   ;;  %v20797_v11 = vrot.slane %v16234_v7, 4  ;;  %v16987_v7 = vld [vmem:[%s20484_s4] sm:$0xff]  }
 0xd4e   : > { %v4340_v27 = vpack.c.bf16 %v4336_v21, %v4336_v21  ;;  %v4341_v15 = vpack.c.bf16 %v4337_v44, %v4337_v44  ;;  %20796 = vst [vmem:[#allocation20_spill] sm:$0xff] %v16969_v56  ;;  %20799 = vst [vmem:[#allocation40_spill] sm:$0xff] %v16987_v7  ;;  %v17007_v44 = vld [vmem:[%s20484_s4 + $0x50] sm:$0xff]  }
 0xd4f   : > { %v4491_v1 = vsel %vm2171_vm1, %v4489_v17, %v20797_v11  ;;  %20802 = vst [vmem:[#allocation43_spill] sm:$0xff] %v17007_v44  ;;  %v17064_v17 = vld [vmem:[%s20484_s4 + $0x70] sm:$0xff]   ;;  %v17116_v11 = vld [vmem:[%s20487_s7 + $0x48] sm:$0xff]  }
 0xd50   : > { %4380 = vmatprep.mubr.bf16.mxu1 %v4341_v15  ;;  %v17035_v15 = vld [vmem:[%s20484_s4 + $0x60] sm:$0xff]   ;;  %20810 = vst [vmem:[#allocation51_spill] sm:$0xff] %v17064_v17  ;;  %20818 = vst [vmem:[#allocation59_spill] sm:$0xff] %v17116_v11 }
 0xd51   : > { %4381 = vmatmul.mubr.bf16.vlgmr.msra.gmra.mrb[176].mxu1 %v4340_v27  ;;  %v17021_v27 = vld [vmem:[%s20484_s4 + $0x58] sm:$0xff]   ;;  %20806 = vst [vmem:[#allocation47_spill] sm:$0xff] %v17035_v15 }
 0xd52   : > { %13013 = vmatpush3.bf16.msra.mxu1 %v16943_v37  ;;  %13020 = vmatprep.mubr.msk.bf16.mxu1 %vm15075_vm5, %v20701_v20  ;;  %20804 = vst [vmem:[#allocation45_spill] sm:$0xff] %v17021_v27 }
 0xd53   : > { %13014 = vmatprep.subr.bf16.mxu1 %v20701_v20 }
 0xd56   : > { %13015 = vmatpush3.bf16.msra.mxu1 %v16952_v6 }
 0xd57   : > { %13016 = vmatprep.subr.bf16.mxu1 %v20701_v20 }
 0xd5a   : > { %13017 = vmatpush3.bf16.msra.mxu1 %v16959_v12  ;;  %v13682_v26 = vpop.permute.xlu1 %13681 }
 0xd5b   : > { %v13684_v0 = vunpack.i.h.bf16 %v13682_v26  ;;  %v13683_v33 = vunpack.i.l.bf16 %v13682_v26  ;;  %13018 = vmatprep.subr.bf16.mxu1 %v20701_v20  ;;  %v17049_v26 = vld [vmem:[%s20484_s4 + $0x68] sm:$0xff]  }
 0xd5c   : > { %20808 = vst [vmem:[#allocation49_spill] sm:$0xff] %v17049_v26 }
 0xd5d   : > { %v4338_v47 = vsel %vm2435_vm3, %v4298_v54, %v13684_v0  ;;  %v4339_v19 = vsel %vm2435_vm3, %v4306_v60, %v13683_v33  ;;  %v16979_v60 = vld [vmem:[%s20483_s3] sm:$0xff]   ;;  %v16993_v54 = vld [vmem:[%s20484_s4 + $0x48] sm:$0xff]   ;;  %v17072_v0 = vld [vmem:[%s20484_s4 + $0x30] sm:$0xff]  }
 0xd5e   : > { %v4342_v62 = vpack.c.bf16 %v4338_v47, %v4338_v47  ;;  %13019 = vmatpush3.bf16.msra.mxu1 %v16969_v56  ;;  %v4343_v21 = vpack.c.bf16 %v4339_v19, %v4339_v19  ;;  %20798 = vst [vmem:[#allocation39_spill] sm:$0xff] %v16979_v60  ;;  %20800 = vst [vmem:[#allocation41_spill] sm:$0xff] %v16993_v54  ;;  %v17078_v33 = vld [vmem:[%s20487_s7 + $0x40] sm:$0xff]   ;;  %v17084_v47 = vld [vmem:[%s20484_s4 + $0x78] sm:$0xff]  }
 0xd5f   : > { %13024 = vmatprep.subr.bf16.mxu1 %v4491_v1  ;;  %20811 = vst [vmem:[#allocation52_spill] sm:$0xff] %v17072_v0  ;;  %20812 = vst [vmem:[#allocation53_spill] sm:$0xff] %v17078_v33  ;;  %v17104_v19 = vld [vmem:[%s20487_s7] sm:$0xff]  }
 0xd60   : > { %4420 = vmatprep.mubr.bf16.mxu0 %v4343_v21  ;;  %20813 = vst [vmem:[#allocation54_spill] sm:$0xff] %v17084_v47  ;;  %20816 = vst [vmem:[#allocation57_spill] sm:$0xff] %v17104_v19  ;;  %v17128_v21 = vld [vmem:[%s20487_s7 + $0x8] sm:$0xff]  }
 0xd61   : > { %13021 = vmatmul.mubr.msk.bf16.vlgmr.msra.gmra.mrb[180].mxu1 %vm2435_vm3, %v4344_v59  ;;  %4421 = vmatmul.mubr.bf16.vlgmr.msra.gmra.mrb[236].mxu0 %v4342_v62  ;;  %v17097_v59 = vld [vmem:[%s20483_s3 + $0x10] sm:$0xff]   ;;  %v17110_v62 = vld [vmem:[%s20484_s4 + $0x38] sm:$0xff]   ;;  %20820 = vst [vmem:[#allocation61_spill] sm:$0xff] %v17128_v21 }
 0xd62   : > { %13025 = vmatpush3.bf16.msra.mxu1 %v4491_v1  ;;  %13038 = vmatprep.mubr.msk.bf16.mxu1 %vm2122_vm0, %v16979_v60  ;;  %20815 = vst [vmem:[#allocation56_spill] sm:$0xff] %v17097_v59  ;;  %20817 = vst [vmem:[#allocation58_spill] sm:$0xff] %v17110_v62  ;;  %v17122_v1 = vld [vmem:[%s20484_s4 + $0xc0] sm:$0xff]  }
 0xd63   : > { %13026 = vmatprep.subr.bf16.mxu1 %v16472_v43  ;;  %12154 = vmatpush3.bf16.msra.mxu0 %v16987_v7  ;;  %20819 = vst [vmem:[#allocation60_spill] sm:$0xff] %v17122_v1 }
 0xd64   : > { %12155 = vmatprep.subr.bf16.mxu0 %v16993_v54 }
 0xd66   : > { %13027 = vmatpush3.bf16.msra.mxu1 %v16472_v43  ;;  %v17015_v43 = vld [vmem:[%s20484_s4 + $0x10] sm:$0xff]  }
 0xd67   : > { %13028 = vmatprep.subr.bf16.mxu1 %v16482_v9  ;;  %12156 = vmatpush3.bf16.msra.mxu0 %v17001_v38  ;;  %20803 = vst [vmem:[#allocation44_spill] sm:$0xff] %v17015_v43 }
 0xd68   : > { %12157 = vmatprep.subr.bf16.mxu0 %v17007_v44 }
 0xd6a   : > { %13029 = vmatpush3.bf16.msra.mxu1 %v16482_v9  ;;  %v17029_v9 = vld [vmem:[%s20484_s4 + $0x18] sm:$0xff]  }
 0xd6b   : > { %13030 = vmatprep.subr.bf16.mxu1 %v16492_v2  ;;  %12158 = vmatpush3.bf16.msra.mxu0 %v17015_v43  ;;  %20805 = vst [vmem:[#allocation46_spill] sm:$0xff] %v17029_v9 }
 0xd6c   : > { %12159 = vmatprep.subr.bf16.mxu0 %v17021_v27 }
 0xd6e   : > { %13031 = vmatpush3.bf16.msra.mxu1 %v16492_v2  ;;  %v17043_v2 = vld [vmem:[%s20484_s4 + $0x20] sm:$0xff]  }
 0xd6f   : > { %13032 = vmatprep.subr.bf16.mxu1 %v16500_v16  ;;  %12160 = vmatpush3.bf16.msra.mxu0 %v17029_v9  ;;  %20807 = vst [vmem:[#allocation48_spill] sm:$0xff] %v17043_v2 }
 0xd70   : > { %12161 = vmatprep.subr.bf16.mxu0 %v17035_v15 }
 0xd72   : > { %13033 = vmatpush3.bf16.msra.mxu1 %v16500_v16  ;;  %v17058_v16 = vld [vmem:[%s20484_s4 + $0x28] sm:$0xff]  }
 0xd73   : > { %13034 = vmatprep.subr.bf16.mxu1 %v16510_v34  ;;  %12162 = vmatpush3.bf16.msra.mxu0 %v17043_v2  ;;  %20809 = vst [vmem:[#allocation50_spill] sm:$0xff] %v17058_v16 }
 0xd74   : > { %12163 = vmatprep.subr.bf16.mxu0 %v17049_v26 }
 0xd76   : > { %13035 = vmatpush3.bf16.msra.mxu1 %v16510_v34  ;;  %v4509_v34 = vsel %vm2171_vm1, %v16506_v40, 0 }
 0xd77   : > { %13455 = vmatprep.subr.msk.bf16.mxu1 %vm2171_vm1, %v16506_v40  ;;  %12164 = vmatpush3.bf16.msra.mxu0 %v17058_v16  ;;  %v17090_v40 = vld [vmem:[%s20483_s3 + $0x8] sm:$0xff]  }
 0xd78   : > { %12165 = vmatprep.subr.bf16.mxu0 %v17064_v17  ;;  %20814 = vst [vmem:[#allocation55_spill] sm:$0xff] %v17090_v40 }
 0xd7a   : > { %13037 = vmatpush3.bf16.msra.mxu1 %v4509_v34  ;;  %v17134_v34 = vld [vmem:[%s20487_s7 + $0x50] sm:$0xff]  }
 0xd7b   : > { %12166 = vmatpush3.bf16.msra.mxu0 %v17072_v0  ;;  %12203 = vmatprep.subr.bf16.mxu1 %v17078_v33  ;;  %20821 = vst [vmem:[#allocation62_spill] sm:$0xff] %v17134_v34 }
 0xd7c   : > { %12167 = vmatprep.subr.bf16.mxu0 %v17084_v47 }
 0xd7d   : > { %13039 = vmatmul.mubr.msk.bf16.vlgmr.msra.gmra.mrb[184].mxu1 %vm2122_vm0, %v17090_v40 }
 0xd7e   : > { %13042 = vmatprep.mubr.msk.bf16.mxu1 %vm2122_vm0, %v17097_v59  ;;  %12204 = vmatpush3.bf16.msra.mxu1 %v17104_v19 }
 0xd7f   : > { %12168 = vmatpush3.bf16.msra.mxu0 %v17110_v62  ;;  %12205 = vmatprep.subr.bf16.mxu1 %v17116_v11  ;;  %v17140_v11 = vld [vmem:[%s20483_s3 + $0x18] sm:$0xff]  }
 0xd80   : > { %12175 = vmatprep.subr.bf16.mxu0 %v17122_v1  ;;  %20822 = vst [vmem:[#allocation63_spill] sm:$0xff] %v17140_v11  ;;  %v17147_v1 = vld [vmem:[%s20483_s3 + $0x20] sm:$0xff]  }
 0xd81   : > { %20823 = vst [vmem:[#allocation64_spill] sm:$0xff] %v17147_v1 }
 0xd82   : > { %12206 = vmatpush3.bf16.msra.mxu1 %v17128_v21  ;;  %v17160_v21 = vld [vmem:[%s20487_s7 + $0x58] sm:$0xff]  }
 0xd83   : > { %12207 = vmatprep.subr.bf16.mxu1 %v17134_v34  ;;  %v17154_v34 = vld [vmem:[%s20487_s7 + $0x10] sm:$0xff]   ;;  %20825 = vst [vmem:[#allocation66_spill] sm:$0xff] %v17160_v21 }
 0xd84   : > { %20824 = vst [vmem:[#allocation65_spill] sm:$0xff] %v17154_v34 }
 0xd85   : > { %13043 = vmatmul.mubr.msk.bf16.gmra.mrb[188].mxu1 %vm2122_vm0, %v17140_v11  ;;  %v17166_v11 = vld [vmem:[%s20487_s7 + $0x18] sm:$0xff]  }
 0xd86   : > { %13046 = vmatprep.mubr.msk.bf16.mxu1 %vm2122_vm0, %v17147_v1  ;;  %12208 = vmatpush3.bf16.msra.mxu1 %v17154_v34  ;;  %20826 = vst [vmem:[#allocation67_spill] sm:$0xff] %v17166_v11  ;;  %v17172_v1 = vld [vmem:[%s20487_s7 + $0x60] sm:$0xff]   ;;  %v17178_v34 = vld [vmem:[%s20483_s3 + $0x28] sm:$0xff]  }
 0xd87   : > { %12209 = vmatprep.subr.bf16.mxu1 %v17160_v21  ;;  %20827 = vst [vmem:[#allocation68_spill] sm:$0xff] %v17172_v1  ;;  %20828 = vst [vmem:[#allocation69_spill] sm:$0xff] %v17178_v34  ;;  %v17185_v21 = vld [vmem:[%s20483_s3 + $0x30] sm:$0xff]  }
 0xd88   : > { %20829 = vst [vmem:[#allocation70_spill] sm:$0xff] %v17185_v21 }
 0xd8a   : > { %12210 = vmatpush3.bf16.msra.mxu1 %v17166_v11  ;;  %v17198_v11 = vld [vmem:[%s20487_s7 + $0x68] sm:$0xff]  }
 0xd8b   : > { %12211 = vmatprep.subr.bf16.mxu1 %v17172_v1  ;;  %v17192_v1 = vld [vmem:[%s20487_s7 + $0x20] sm:$0xff]   ;;  %20831 = vst [vmem:[#allocation72_spill] sm:$0xff] %v17198_v11 }
 0xd8c   : > { %20830 = vst [vmem:[#allocation71_spill] sm:$0xff] %v17192_v1 }
 0xd8d   : > { %13047 = vmatmul.mubr.msk.bf16.gmra.mrb[192].mxu1 %vm2122_vm0, %v17178_v34  ;;  %v17204_v34 = vld [vmem:[%s20487_s7 + $0x28] sm:$0xff]  }
 0xd8e   : > { %13050 = vmatprep.mubr.msk.bf16.mxu1 %vm2122_vm0, %v17185_v21  ;;  %12212 = vmatpush3.bf16.msra.mxu1 %v17192_v1  ;;  %20832 = vst [vmem:[#allocation73_spill] sm:$0xff] %v17204_v34  ;;  %v17210_v21 = vld [vmem:[%s20487_s7 + $0x70] sm:$0xff]   ;;  %v17216_v1 = vld [vmem:[%s20483_s3 + $0x38] sm:$0xff]  }
 0xd8f   : > { %12213 = vmatprep.subr.bf16.mxu1 %v17198_v11  ;;  %20833 = vst [vmem:[#allocation74_spill] sm:$0xff] %v17210_v21  ;;  %20834 = vst [vmem:[#allocation75_spill] sm:$0xff] %v17216_v1  ;;  %v17223_v11 = vld [vmem:[%s20483_s3 + $0x40] sm:$0xff]  }
 0xd90   : > { %20835 = vst [vmem:[#allocation76_spill] sm:$0xff] %v17223_v11 }
 0xd92   : > { %12214 = vmatpush3.bf16.msra.mxu1 %v17204_v34  ;;  %v17236_v34 = vld [vmem:[%s20487_s7 + $0x78] sm:$0xff]  }
 0xd93   : > { %12215 = vmatprep.subr.bf16.mxu1 %v17210_v21  ;;  %v17230_v21 = vld [vmem:[%s20487_s7 + $0x30] sm:$0xff]   ;;  %20837 = vst [vmem:[#allocation78_spill] sm:$0xff] %v17236_v34 }
 0xd94   : > { %20836 = vst [vmem:[#allocation77_spill] sm:$0xff] %v17230_v21 }
 0xd95   : > { %13051 = vmatmul.mubr.msk.bf16.gmra.mrb[196].mxu1 %vm2122_vm0, %v17216_v1  ;;  %v17242_v1 = vld [vmem:[%s20487_s7 + $0x38] sm:$0xff]  }
 0xd96   : > { %13054 = vmatprep.mubr.msk.bf16.mxu1 %vm2122_vm0, %v17223_v11  ;;  %12216 = vmatpush3.bf16.msra.mxu1 %v17230_v21  ;;  %20838 = vst [vmem:[#allocation79_spill] sm:$0xff] %v17242_v1  ;;  %v17249_v21 = vld [vmem:[%s20483_s3 + $0x48] sm:$0xff]  }
 0xd97   : > { %12217 = vmatprep.subr.bf16.mxu1 %v17236_v34  ;;  %20839 = vst [vmem:[#allocation80_spill] sm:$0xff] %v17249_v21  ;;  %v17256_v34 = vld [vmem:[%s20483_s3 + $0x50] sm:$0xff]  }
 0xd98   : > { %20840 = vst [vmem:[#allocation81_spill] sm:$0xff] %v17256_v34 }
 0xd9a   : > { %12218 = vmatpush3.bf16.msra.mxu1 %v17242_v1  ;;  %v17263_v1 = vld [vmem:[%s20483_s3 + $0x58] sm:$0xff]  }
 0xd9b   : > { %13092 = vmatprep.subr.bf16.mxu1 %v20701_v20  ;;  %20841 = vst [vmem:[#allocation82_spill] sm:$0xff] %v17263_v1 }
 0xd9d   : > { %13055 = vmatmul.mubr.msk.bf16.gmra.mrb[200].mxu1 %vm2122_vm0, %v17249_v21  ;;  %v17270_v21 = vld [vmem:[%s20483_s3 + $0x60] sm:$0xff]  }
 0xd9e   : > { %13058 = vmatprep.mubr.msk.bf16.mxu1 %vm2122_vm0, %v17256_v34  ;;  %20842 = vst [vmem:[#allocation83_spill] sm:$0xff] %v17270_v21  ;;  %v17277_v34 = vld [vmem:[%s20483_s3 + $0x68] sm:$0xff]  }
 0xd9f   : > { %20843 = vst [vmem:[#allocation84_spill] sm:$0xff] %v17277_v34 }
 0xda5   : > { %13059 = vmatmul.mubr.msk.bf16.gmra.mrb[204].mxu1 %vm2122_vm0, %v17263_v1  ;;  %v17284_v1 = vld [vmem:[%s20483_s3 + $0x70] sm:$0xff]  }
 0xda6   : > { %13062 = vmatprep.mubr.msk.bf16.mxu1 %vm2122_vm0, %v17270_v21  ;;  %20844 = vst [vmem:[#allocation85_spill] sm:$0xff] %v17284_v1  ;;  %v17291_v21 = vld [vmem:[%s20483_s3 + $0x78] sm:$0xff]  }
 0xda7   : > { %20845 = vst [vmem:[#allocation86_spill] sm:$0xff] %v17291_v21 }
 0xdad   : > { %13063 = vmatmul.mubr.msk.bf16.gmra.mrb[208].mxu1 %vm2122_vm0, %v17277_v34 }
 0xdae   : > { %13066 = vmatprep.mubr.msk.bf16.mxu1 %vm2122_vm0, %v17284_v1  ;;  %v17298_v1 = vld [vmem:[%s20488_s8] ss:$0 sm:$0xff] }
 0xdaf   : > { %20846 = vst [vmem:[#allocation87_spill] sm:$0xff] %v17298_v1 }
 0xdb5   : > { %13067 = vmatmul.mubr.msk.bf16.gmra.mrb[212].mxu1 %vm2122_vm0, %v17291_v21 }
 0xe24   : > { %v12097_v11 = vpop.f32.mrb[176].mxu1 }
 0xe25   : > { %v12098_v62 = vpop.f32.mrb[177].mxu1 }
 0xe26   : > { %v12099_v19 = vadd.f32 %v12098_v62, %v12097_v11  ;;  %v12100_v34 = vpop.f32.mrb[178].mxu1 }
 0xe27   : > { %v12101_v59 = vpop.f32.mrb[179].mxu1 }
 0xe28   : > { %v4383_v17 = vadd.f32 %v17298_v1, %v12099_v19 }
 0xe34   : > { %v4462_v40 = vpop.f32.mrb[180].mxu1  ;;  %v12119_v47 = vpop.f32.mrb[236].mxu0 }
 0xe35   : > { %v13022_v33 = vpop.f32.mrb[181].mxu1  ;;  %v12120_v0 = vpop.f32.mrb[237].mxu0 }
 0xe36   : > { %v12121_v16 = vadd.f32 %v12120_v0, %v12119_v47  ;;  %v4465_v26 = vpop.f32.mrb[182].mxu1  ;;  %v12122_v2 = vpop.f32.mrb[238].mxu0 }
 0xe37   : > { %v13023_v21 = vpop.f32.mrb[183].mxu1  ;;  %v12123_v15 = vpop.f32.mrb[239].mxu0 }
 0xe38   : > { %v4423_v9 = vadd.f32 %v12121_v16, %v4383_v17 }
 0xe3a   : > { %v17301_v62 = vadd.f32 %v4462_v40, %v4423_v9 }
 0xe3c   : > { %20847 = vst [vmem:[#allocation88_spill] sm:$0xff] %v17301_v62 }
 0xe50   : > { %v13040_v59 = vpop.f32.mrb[184].mxu1 }
 0xe51   : > { %v17303_v11 = vpop.f32.mrb[185].mxu1 }
 0xe52   : > { %v13041_v33 = vpop.f32.mrb[186].mxu1 }
 0xe53   : > { %v13685_v34 = vpack.i.bf16 %v13041_v33, %v13040_v59  ;;  %v4548_v27 = vpop.f32.mrb[187].mxu1 }
 0xe55   : > { %13686 = vrot.lane.b32.xlu1 %v13685_v34, %s15071_s26 }
 0xe58   : > { %v13044_v43 = vpop.f32.mrb[188].mxu1 }
 0xe59   : > { %v4561_v44 = vpop.f32.mrb[189].mxu1 }
 0xe5a   : > { %v13045_v38 = vpop.f32.mrb[190].mxu1 }
 0xe5b   : > { %v13710_v19 = vpack.i.bf16 %v13045_v38, %v13044_v43  ;;  %v4564_v0 = vpop.f32.mrb[191].mxu1 }
 0xe5c   : > { %v13690_v26 = vpack.i.bf16 %v4564_v0, %v4561_v44 }
 0xe5e   : > { %13691 = vrot.lane.b32.xlu1 %v13690_v26, %s15072_s16 }
 0xe60   : > { %v13048_v15 = vpop.f32.mrb[192].mxu1 }
 0xe61   : > { %v17307_v2 = vpop.f32.mrb[193].mxu1 }
 0xe62   : > { %13711 = vrot.lane.b32.xlu1 %v13710_v19, %s15073_s17  ;;  %v13049_v9 = vpop.f32.mrb[194].mxu1 }
 0xe63   : > { %v13695_v16 = vpack.i.bf16 %v13049_v9, %v13048_v15  ;;  %v17310_v17 = vpop.f32.mrb[195].mxu1 }
 0xe65   : > { %13696 = vrot.lane.b32.xlu0 %v13695_v16, %s15071_s26 }
 0xe68   : > { %v13052_v47 = vpop.f32.mrb[196].mxu1 }
 0xe69   : > { %v4593_v40 = vpop.f32.mrb[197].mxu1 }
 0xe6a   : > { %v13053_v21 = vpop.f32.mrb[198].mxu1 }
 0xe6b   : > { %v13705_v59 = vpack.i.bf16 %v13053_v21, %v13052_v47  ;;  %v4596_v38 = vpop.f32.mrb[199].mxu1 }
 0xe6c   : > { %v13700_v43 = vpack.i.bf16 %v4596_v38, %v4593_v40 }
 0xe6e   : > { %13701 = vrot.lane.b32.xlu0 %v13700_v43, %s15072_s16 }
 0xe70   : > { %v13056_v44 = vpop.f32.mrb[200].mxu1 }
 0xe71   : > { %v17314_v33 = vpop.f32.mrb[201].mxu1 }
 0xe72   : > { %13706 = vrot.lane.b32.xlu0 %v13705_v59, %s15073_s17  ;;  %v13057_v34 = vpop.f32.mrb[202].mxu1 }
 0xe73   : > { %v13715_v19 = vpack.i.bf16 %v13057_v34, %v13056_v44  ;;  %v17317_v0 = vpop.f32.mrb[203].mxu1 }
 0xe75   : > { %13716 = vrot.lane.b32.xlu1 %v13715_v19, %s15071_s26 }
 0xe78   : > { %v13060_v26 = vpop.f32.mrb[204].mxu1 }
 0xe79   : > { %v4625_v15 = vpop.f32.mrb[205].mxu1 }
 0xe7a   : > { %v13061_v9 = vpop.f32.mrb[206].mxu1 }
 0xe7b   : > { %v13740_v16 = vpack.i.bf16 %v13061_v9, %v13060_v26  ;;  %v4628_v47 = vpop.f32.mrb[207].mxu1 }
 0xe7c   : > { %v13720_v21 = vpack.i.bf16 %v4628_v47, %v4625_v15 }
 0xe7e   : > { %13721 = vrot.lane.b32.xlu1 %v13720_v21, %s15072_s16 }
 0xe80   : > { %v13064_v40 = vpop.f32.mrb[208].mxu1 }
 0xe81   : > { %v17321_v38 = vpop.f32.mrb[209].mxu1 }
 0xe82   : > { %13741 = vrot.lane.b32.xlu1 %v13740_v16, %s15073_s17  ;;  %v13065_v59 = vpop.f32.mrb[210].mxu1 }
 0xe83   : > { %v13725_v43 = vpack.i.bf16 %v13065_v59, %v13064_v40  ;;  %v17324_v44 = vpop.f32.mrb[211].mxu1 }
 0xe85   : > { %13726 = vrot.lane.b32.xlu0 %v13725_v43, %s15071_s26 }
 0xe88   : > { %v13068_v34 = vpop.f32.mrb[212].mxu1 }
 0xe89   : > { %v4657_v19 = vpop.f32.mrb[213].mxu1 }
 0xe8a   : > { %v13069_v62 = vpop.f32.mrb[214].mxu1 }
 0xe8b   : > { %v13735_v1 = vpack.i.bf16 %v13069_v62, %v13068_v34  ;;  %v4660_v26 = vpop.f32.mrb[215].mxu1 }
 0xe8c   : > { %v13730_v9 = vpack.i.bf16 %v4660_v26, %v4657_v19 }
 0xe8e   : > { %13731 = vrot.lane.b32.xlu0 %v13730_v9, %s15072_s16 }
 0xe92   : > { %13736 = vrot.lane.b32.xlu0 %v13735_v1, %s15073_s17 }
 0xec7   : > { %v13687_v15 = vpop.permute.xlu1 %13686 }
 0xec8   : > { %v13689_v21 = vunpack.i.h.bf16 %v13687_v15  ;;  %v13688_v16 = vunpack.i.l.bf16 %v13687_v15 }
 0xeca   : > { %v4768_v43 = vsel %vm2432_vm2, %v17303_v11, %v13688_v16  ;;  %v4769_v7 = vsel %vm2432_vm2, %v4548_v27, %v13689_v21 }
 0xed0   : > { %v13692_v47 = vpop.permute.xlu1 %13691 }
 0xed1   : > { %v13694_v54 = vunpack.i.h.bf16 %v13692_v47  ;;  %v13693_v40 = vunpack.i.l.bf16 %v13692_v47 }
 0xed3   : > { %v4771_v34 = vsel %vm2435_vm3, %v4769_v7, %v13694_v54  ;;  %v4770_v19 = vsel %vm2435_vm3, %v4768_v43, %v13693_v40 }
 0xed4   : > { %v13712_v59 = vpop.permute.xlu1 %13711 }
 0xed5   : > { %v13714_v60 = vunpack.i.h.bf16 %v13712_v59  ;;  %v13713_v62 = vunpack.i.l.bf16 %v13712_v59 }
 0xed7   : > { %v4772_v1 = vsel %vm2438_vm4, %v4770_v19, %v13713_v62  ;;  %v4773_v26 = vsel %vm2438_vm4, %v4771_v34, %v13714_v60  ;;  %v13697_v15 = vpop.permute.xlu0 %13696 }
 0xed8   : > { %v4792_v9 = vpack.c.bf16 %v4773_v26, %v4772_v1  ;;  %v13699_v47 = vunpack.i.h.bf16 %v13697_v15  ;;  %v13698_v12 = vunpack.i.l.bf16 %v13697_v15 }
 0xeda   : > { %v4774_v27 = vsel %vm2432_vm2, %v17307_v2, %v13698_v12  ;;  %v4775_v7 = vsel %vm2432_vm2, %v17310_v17, %v13699_v47 }
 0xee0   : > { %v13702_v56 = vpop.permute.xlu0 %13701 }
 0xee1   : > { %v13704_v6 = vunpack.i.h.bf16 %v13702_v56  ;;  %v13703_v37 = vunpack.i.l.bf16 %v13702_v56 }
 0xee3   : > { %v4777_v16 = vsel %vm2435_vm3, %v4775_v7, %v13704_v6  ;;  %v4776_v60 = vsel %vm2435_vm3, %v4774_v27, %v13703_v37 }
 0xee4   : > { %v13707_v11 = vpop.permute.xlu0 %13706 }
 0xee5   : > { %v13709_v54 = vunpack.i.h.bf16 %v13707_v11  ;;  %v13708_v21 = vunpack.i.l.bf16 %v13707_v11 }
 0xee7   : > { %v4778_v40 = vsel %vm2438_vm4, %v4776_v60, %v13708_v21  ;;  %v4779_v59 = vsel %vm2438_vm4, %v4777_v16, %v13709_v54  ;;  %v13717_v56 = vpop.permute.xlu1 %13716 }
 0xee8   : > { %v4793_v43 = vpack.c.bf16 %v4779_v59, %v4778_v40  ;;  %v13719_v2 = vunpack.i.h.bf16 %v13717_v56  ;;  %v13718_v17 = vunpack.i.l.bf16 %v13717_v56 }
 0xeea   : > { %4828 = vmatprep.mubr.bf16.mxu0 %v4793_v43  ;;  %v4780_v34 = vsel %vm2432_vm2, %v17314_v33, %v13718_v17 }
 0xeeb   : > { %4829 = vmatmul.mubr.bf16.vlgmr.msra.gmra.mrb[240].mxu0 %v4792_v9 }
 0xeec   : > { %12176 = vmatpush3.bf16.msra.mxu0 %v16629_v48  ;;  %v4781_v48 = vsel %vm2432_vm2, %v17317_v0, %v13719_v2 }
 0xeed   : > { %12177 = vmatprep.subr.bf16.mxu0 %v16635_v10 }
 0xef0   : > { %12178 = vmatpush3.bf16.msra.mxu0 %v16644_v52  ;;  %v13722_v12 = vpop.permute.xlu1 %13721 }
 0xef1   : > { %12179 = vmatprep.subr.bf16.mxu0 %v16651_v61  ;;  %v13724_v37 = vunpack.i.h.bf16 %v13722_v12  ;;  %v13723_v6 = vunpack.i.l.bf16 %v13722_v12 }
 0xef3   : > { %v4783_v52 = vsel %vm2435_vm3, %v4781_v48, %v13724_v37  ;;  %v4782_v1 = vsel %vm2435_vm3, %v4780_v34, %v13723_v6 }
 0xef4   : > { %12180 = vmatpush3.bf16.msra.mxu0 %v16657_v58  ;;  %v13742_v62 = vpop.permute.xlu1 %13741 }
 0xef5   : > { %v13744_v19 = vunpack.i.h.bf16 %v13742_v62  ;;  %v13743_v10 = vunpack.i.l.bf16 %v13742_v62  ;;  %12181 = vmatprep.subr.bf16.mxu0 %v16669_v45 }
 0xef7   : > { %v4784_v61 = vsel %vm2438_vm4, %v4782_v1, %v13743_v10  ;;  %v4785_v26 = vsel %vm2438_vm4, %v4783_v52, %v13744_v19  ;;  %v13727_v33 = vpop.permute.xlu0 %13726 }
 0xef8   : > { %v4794_v58 = vpack.c.bf16 %v4785_v26, %v4784_v61  ;;  %12182 = vmatpush3.bf16.msra.mxu0 %v16680_v53  ;;  %v13729_v0 = vunpack.i.h.bf16 %v13727_v33  ;;  %v13728_v9 = vunpack.i.l.bf16 %v13727_v33 }
 0xef9   : > { %12183 = vmatprep.subr.bf16.mxu0 %v16686_v57 }
 0xefa   : > { %v4786_v53 = vsel %vm2432_vm2, %v17321_v38, %v13728_v9  ;;  %v4787_v57 = vsel %vm2432_vm2, %v17324_v44, %v13729_v0 }
 0xefc   : > { %12184 = vmatpush3.bf16.msra.mxu0 %v16693_v23 }
 0xefd   : > { %12185 = vmatprep.subr.bf16.mxu0 %v16699_v29 }
 0xf00   : > { %12186 = vmatpush3.bf16.msra.mxu0 %v16708_v46  ;;  %v13732_v45 = vpop.permute.xlu0 %13731 }
 0xf01   : > { %12187 = vmatprep.subr.bf16.mxu0 %v16715_v41  ;;  %v13734_v15 = vunpack.i.h.bf16 %v13732_v45  ;;  %v13733_v47 = vunpack.i.l.bf16 %v13732_v45 }
 0xf03   : > { %v4789_v46 = vsel %vm2435_vm3, %v4787_v57, %v13734_v15  ;;  %v4788_v27 = vsel %vm2435_vm3, %v4786_v53, %v13733_v47  ;;  %v20851_v47 = vld [vmem:[#allocation35_spill] sm:$0xff]  ;;  %v20853_v53 = vld [vmem:[#allocation37_spill] sm:$0xff] }
 0xf04   : > { %12188 = vmatpush3.bf16.msra.mxu0 %v16721_v30  ;;  %v13737_v11 = vpop.permute.xlu0 %13736 }
 0xf05   : > { %v13739_v23 = vunpack.i.h.bf16 %v13737_v11  ;;  %v13738_v29 = vunpack.i.l.bf16 %v13737_v11  ;;  %12189 = vmatprep.subr.bf16.mxu0 %v16733_v55  ;;  %v20852_v11 = vld [vmem:[#allocation36_spill] sm:$0xff] }
 0xf07   : > { %v4790_v41 = vsel %vm2438_vm4, %v4788_v27, %v13738_v29  ;;  %v4791_v7 = vsel %vm2438_vm4, %v4789_v46, %v13739_v23 }
 0xf08   : > { %12190 = vmatpush3.bf16.msra.mxu0 %v16744_v49  ;;  %v4795_v30 = vpack.c.bf16 %v4791_v7, %v4790_v41 }
 0xf09   : > { %13070 = vmatprep.subr.bf16.mxu0 %v20701_v20 }
 0xf0a   : > { %4869 = vmatprep.mubr.bf16.mxu0 %v4795_v30  ;;  %v20854_v30 = vld [vmem:[#allocation20_spill] sm:$0xff] }
 0xf0b   : > { %4870 = vmatmul.mubr.bf16.vlgmr.msra.gmra.mrb[244].mxu0 %v4794_v58 }
 0xf0c   : > { %13072 = vmatprep.mubr.msk.bf16.mxu0 %vm15075_vm5, %v20701_v20 }
 0xfbe   : > { %v12169_v38 = vpop.f32.mrb[240].mxu0 }
 0xfbf   : > { %v12170_v55 = vpop.f32.mrb[241].mxu0 }
 0xfc0   : > { %v12171_v44 = vadd.f32 %v12170_v55, %v12169_v38  ;;  %v12172_v54 = vpop.f32.mrb[242].mxu0  ;;  %v20855_v55 = vld [vmem:[#allocation3_spill] sm:$0xff] }
 0xfc1   : > { %v12173_v21 = vpop.f32.mrb[243].mxu0 }
 0xfc2   : > { %v12174_v16 = vadd.f32 %v12173_v21, %v12172_v54  ;;  %v4831_v59 = vadd.f32 %v16787_v32, %v12171_v44  ;;  %v20856_v44 = vld [vmem:[#allocation39_spill] sm:$0xff]  ;;  %v20857_v54 = vld [vmem:[#allocation4_spill] sm:$0xff] }
 0xfc3   : > { %v20858_v21 = vld [vmem:[#allocation40_spill] sm:$0xff] }
 0xfc4   : > { %v4834_v12 = vadd.f32 %v16787_v32, %v12174_v16  ;;  %v20848_v32 = vld [vmem:[#allocation33_spill] sm:$0xff] }
 0xfc5   : > { %v20859_v16 = vld [vmem:[#allocation41_spill] sm:$0xff] }
 0xfde   : > { %v12191_v60 = vpop.f32.mrb[244].mxu0 }
 0xfdf   : > { %v12192_v40 = vpop.f32.mrb[245].mxu0 }
 0xfe0   : > { %v12193_v43 = vadd.f32 %v12192_v40, %v12191_v60  ;;  %v12194_v49 = vpop.f32.mrb[246].mxu0  ;;  %v20860_v60 = vld [vmem:[#allocation5_spill] sm:$0xff]  ;;  %v20861_v40 = vld [vmem:[#allocation42_spill] sm:$0xff] }
 0xfe1   : > { %v12195_v56 = vpop.f32.mrb[247].mxu0 }
 0xfe2   : > { %v4872_v2 = vadd.f32 %v12193_v43, %v4831_v59  ;;  %v12196_v17 = vadd.f32 %v12195_v56, %v12194_v49  ;;  %v20862_v59 = vld [vmem:[#allocation43_spill] sm:$0xff]  ;;  %v20863_v43 = vld [vmem:[#allocation6_spill] sm:$0xff]  ;;  %v20864_v49 = vld [vmem:[#allocation44_spill] sm:$0xff] }
 0xfe3   : > { %v20865_v56 = vld [vmem:[#allocation45_spill] sm:$0xff] }
 0xfe4   : > { %v4875_v37 = vadd.f32 %v12196_v17, %v4834_v12  ;;  %v4878_v6 = vmax.f32 %v4872_v2, 0.0  ;;  %v20866_v12 = vld [vmem:[#allocation7_spill] sm:$0xff]  ;;  %v20867_v2 = vld [vmem:[#allocation46_spill] sm:$0xff] }
 0xfe5   : > { %v20868_v17 = vld [vmem:[#allocation47_spill] sm:$0xff] }
 0xfe6   : > { %v4879_v62 = vmax.f32 %v4875_v37, 0.0  ;;  %v20869_v37 = vld [vmem:[#allocation9_spill] sm:$0xff] }
 0xfe8   : > { %v4880_v34 = vpack.c.bf16 %v4879_v62, %v4878_v6  ;;  %v20870_v6 = vld [vmem:[#allocation48_spill] sm:$0xff]  ;;  %v20871_v62 = vld [vmem:[#allocation49_spill] sm:$0xff] }
 0xfea   : > { %13071 = vmatpush3.bf16.msra.mxu0 %v4880_v34  ;;  %v20872_v34 = vld [vmem:[#allocation8_spill] sm:$0xff] }
 0xfeb   : > { %12225 = vmatprep.subr.bf16.mxu0 %v16794_v8 }
 0xfed   : > { %13073 = vmatmul.mubr.msk.bf16.vlgmr.msra.gmra.mrb[248].mxu0 %vm2769_vm6, %v16800_v5  ;;  %v20849_v5 = vld [vmem:[#allocation19_spill] sm:$0xff] }
 0xfee   : > { %13076 = vmatprep.mubr.msk.bf16.mxu0 %vm15075_vm5, %v20701_v20  ;;  %12226 = vmatpush3.bf16.msra.mxu0 %v16809_v50  ;;  %v20850_v50 = vld [vmem:[#allocation34_spill] sm:$0xff] }
 0xfef   : > { %12227 = vmatprep.subr.bf16.mxu0 %v16815_v13 }
 0xff2   : > { %12228 = vmatpush3.bf16.msra.mxu0 %v16821_v18 }
 0xff3   : > { %12229 = vmatprep.subr.bf16.mxu0 %v16827_v31 }
 0xff5   : > { %13077 = vmatmul.mubr.msk.bf16.gmra.mrb[252].mxu0 %vm2769_vm6, %v16833_v14 }
 0xff6   : > { %13080 = vmatprep.mubr.msk.bf16.mxu0 %vm15075_vm5, %v20701_v20  ;;  %12230 = vmatpush3.bf16.msra.mxu0 %v16842_v22 }
 0xff7   : > { %12231 = vmatprep.subr.bf16.mxu0 %v16848_v36 }
 0xffa   : > { %12232 = vmatpush3.bf16.msra.mxu0 %v16854_v28 }
 0xffb   : > { %12233 = vmatprep.subr.bf16.mxu0 %v16860_v4 }
 0xffd   : > { %13081 = vmatmul.mubr.msk.bf16.gmra.mrb[0].mxu0 %vm2769_vm6, %v16866_v51 }
 0xffe   : > { %13084 = vmatprep.mubr.msk.bf16.mxu0 %vm15075_vm5, %v20701_v20  ;;  %12234 = vmatpush3.bf16.msra.mxu0 %v16875_v3 }
 0xfff   : > { %12235 = vmatprep.subr.bf16.mxu0 %v16881_v39 }
0x1002   : > { %12236 = vmatpush3.bf16.msra.mxu0 %v16887_v42 }
0x1003   : > { %12237 = vmatprep.subr.bf16.mxu0 %v16893_v35 }
0x1005   : > { %13085 = vmatmul.mubr.msk.bf16.gmra.mrb[4].mxu0 %vm2769_vm6, %v16899_v63 }
0x1006   : > { %13088 = vmatprep.mubr.msk.bf16.mxu0 %vm15075_vm5, %v20701_v20  ;;  %12238 = vmatpush3.bf16.msra.mxu0 %v16908_v24 }
0x1007   : > { %12239 = vmatprep.subr.bf16.mxu0 %v16914_v25 }
0x100a   : > { %12240 = vmatpush3.bf16.msra.mxu0 %v20848_v32  ;;  %v20873_v32 = vld [vmem:[#allocation50_spill] sm:$0xff] }
0x100b   : > { %12275 = vmatprep.subr.bf16.mxu0 %v20849_v5  ;;  %v20874_v5 = vld [vmem:[#allocation51_spill] sm:$0xff] }
0x100d   : > { %13089 = vmatmul.mubr.msk.bf16.gmra.mrb[8].mxu0 %vm2769_vm6, %v20850_v50  ;;  %v5116_v50 = vsel %vm2171_vm1, %v20872_v34, 0 }
0x10c0   : > { %v4915_v13 = vpop.f32.mrb[248].mxu0 }
0x10c1   : > { %v13074_v18 = vpop.f32.mrb[249].mxu0 }
0x10c2   : > { %v4918_v31 = vpop.f32.mrb[250].mxu0  ;;  %v20876_v18 = vld [vmem:[#allocation53_spill] sm:$0xff] }
0x10c3   : > { %v13075_v14 = vpop.f32.mrb[251].mxu0 }
0x10c4   : > { %v20878_v14 = vld [vmem:[#allocation55_spill] sm:$0xff] }
0x10c8   : > { %v4923_v22 = vpop.f32.mrb[252].mxu0 }
0x10c9   : > { %v13078_v63 = vpop.f32.mrb[253].mxu0 }
0x10ca   : > { %v4926_v36 = vpop.f32.mrb[254].mxu0  ;;  %v20880_v63 = vld [vmem:[#allocation57_spill] sm:$0xff] }
0x10cb   : > { %v13745_v28 = vpack.i.bf16 %v4918_v31, %v4926_v36  ;;  %v13079_v4 = vpop.f32.mrb[255].mxu0  ;;  %v20877_v31 = vld [vmem:[#allocation54_spill] sm:$0xff] }
0x10cc   : > { %v20881_v36 = vld [vmem:[#allocation58_spill] sm:$0xff]  ;;  %v20883_v4 = vld [vmem:[#allocation60_spill] sm:$0xff] }
0x10cd   : > { %13746 = vrot.lane.b32.xlu0 %v13745_v28, %s15072_s16  ;;  %v20882_v28 = vld [vmem:[#allocation59_spill] sm:$0xff] }
0x10d0   : > { %v4931_v24 = vpop.f32.mrb[0].mxu0 }
0x10d1   : > { %v13082_v25 = vpop.f32.mrb[1].mxu0 }
0x10d2   : > { %v4934_v51 = vpop.f32.mrb[2].mxu0  ;;  %v20885_v25 = vld [vmem:[#allocation62_spill] sm:$0xff] }
0x10d3   : > { %v13083_v3 = vpop.f32.mrb[3].mxu0 }
0x10d4   : > { %v20887_v3 = vld [vmem:[#allocation64_spill] sm:$0xff] }
0x10d8   : > { %v4939_v39 = vpop.f32.mrb[4].mxu0 }
0x10d9   : > { %v13086_v42 = vpop.f32.mrb[5].mxu0 }
0x10da   : > { %v4942_v35 = vpop.f32.mrb[6].mxu0  ;;  %v20889_v42 = vld [vmem:[#allocation66_spill] sm:$0xff] }
0x10db   : > { %v13750_v48 = vpack.i.bf16 %v4934_v51, %v4942_v35  ;;  %v13087_v19 = vpop.f32.mrb[7].mxu0  ;;  %v20886_v51 = vld [vmem:[#allocation63_spill] sm:$0xff] }
0x10dc   : > { %v20890_v35 = vld [vmem:[#allocation67_spill] sm:$0xff]  ;;  %v20892_v19 = vld [vmem:[#allocation69_spill] sm:$0xff] }
0x10dd   : > { %13751 = vrot.lane.b32.xlu1 %v13750_v48, %s15072_s16  ;;  %v20891_v48 = vld [vmem:[#allocation68_spill] sm:$0xff] }
0x10e0   : > { %v4947_v10 = vpop.f32.mrb[8].mxu0 }
0x10e1   : > { %v13090_v52 = vpop.f32.mrb[9].mxu0  ;;  %v4977_v27 = vpack.c.bf16 %v4947_v10, %v4947_v10  ;;  %v20893_v10 = vld [vmem:[#allocation70_spill] sm:$0xff] }
0x10e2   : > { %v4950_v1 = vpop.f32.mrb[10].mxu0  ;;  %v20894_v52 = vld [vmem:[#allocation71_spill] sm:$0xff] }
0x10e3   : > { %v13091_v61 = vpop.f32.mrb[11].mxu0  ;;  %v20895_v1 = vld [vmem:[#allocation72_spill] sm:$0xff] }
0x10e4   : > { %v20896_v61 = vld [vmem:[#allocation73_spill] sm:$0xff] }
0x113f   : > { %v13747_v26 = vpop.permute.xlu0 %13746 }
0x1140   : > { %v13749_v58 = vunpack.i.h.bf16 %v13747_v26  ;;  %v13748_v33 = vunpack.i.l.bf16 %v13747_v26  ;;  %v20897_v26 = vld [vmem:[#allocation74_spill] sm:$0xff] }
0x1142   : > { %v4969_v45 = vsel %vm2435_vm3, %v4915_v13, %v13749_v58  ;;  %v4970_v0 = vsel %vm2435_vm3, %v4923_v22, %v13748_v33  ;;  %v20875_v13 = vld [vmem:[#allocation52_spill] sm:$0xff]  ;;  %v20898_v58 = vld [vmem:[#allocation75_spill] sm:$0xff] }
0x1143   : > { %v4973_v9 = vpack.c.bf16 %v4969_v45, %v4969_v45  ;;  %v4974_v15 = vpack.c.bf16 %v4970_v0, %v4970_v0  ;;  %v20879_v22 = vld [vmem:[#allocation56_spill] sm:$0xff]  ;;  %v20900_v45 = vld [vmem:[#allocation77_spill] sm:$0xff]  ;;  %v20901_v0 = vld [vmem:[#allocation78_spill] sm:$0xff] }
0x1144   : > { %v20899_v33 = vld [vmem:[#allocation76_spill] sm:$0xff] }
0x1145   : > { %5013 = vmatprep.mubr.bf16.mxu1 %v4974_v15  ;;  %v20903_v15 = vld [vmem:[#allocation80_spill] sm:$0xff] }
0x1146   : > { %5014 = vmatmul.mubr.bf16.vlgmr.msra.gmra.mrb[216].mxu1 %v4973_v9  ;;  %v20902_v9 = vld [vmem:[#allocation79_spill] sm:$0xff] }
0x1147   : > { %13093 = vmatpush3.bf16.msra.mxu1 %v20851_v47  ;;  %13100 = vmatprep.mubr.msk.bf16.mxu1 %vm15075_vm5, %v20701_v20  ;;  %v20904_v47 = vld [vmem:[#allocation81_spill] sm:$0xff] }
0x1148   : > { %13094 = vmatprep.subr.bf16.mxu1 %v20701_v20 }
0x114b   : > { %13095 = vmatpush3.bf16.msra.mxu1 %v20852_v11  ;;  %v20905_v11 = vld [vmem:[#allocation82_spill] sm:$0xff] }
0x114c   : > { %13096 = vmatprep.subr.bf16.mxu1 %v20701_v20 }
0x114f   : > { %13097 = vmatpush3.bf16.msra.mxu1 %v20853_v53  ;;  %v13752_v57 = vpop.permute.xlu1 %13751  ;;  %v20906_v53 = vld [vmem:[#allocation83_spill] sm:$0xff] }
0x1150   : > { %v13754_v23 = vunpack.i.h.bf16 %v13752_v57  ;;  %v13753_v29 = vunpack.i.l.bf16 %v13752_v57  ;;  %13098 = vmatprep.subr.bf16.mxu1 %v20701_v20  ;;  %v20907_v57 = vld [vmem:[#allocation84_spill] sm:$0xff] }
0x1152   : > { %v4971_v46 = vsel %vm2435_vm3, %v4931_v24, %v13754_v23  ;;  %v4972_v41 = vsel %vm2435_vm3, %v4939_v39, %v13753_v29  ;;  %v20884_v24 = vld [vmem:[#allocation61_spill] sm:$0xff]  ;;  %v20909_v29 = vld [vmem:[#allocation86_spill] sm:$0xff] }
0x1153   : > { %v4975_v7 = vpack.c.bf16 %v4971_v46, %v4971_v46  ;;  %13099 = vmatpush3.bf16.msra.mxu1 %v20854_v30  ;;  %v4976_v38 = vpack.c.bf16 %v4972_v41, %v4972_v41  ;;  %v20888_v39 = vld [vmem:[#allocation65_spill] sm:$0xff] }
0x1154   : > { %13104 = vmatprep.subr.bf16.mxu1 %v20855_v55  ;;  %v20908_v23 = vld [vmem:[#allocation85_spill] sm:$0xff] }
0x1155   : > { %5053 = vmatprep.mubr.bf16.mxu0 %v4976_v38 }
0x1156   : > { %13101 = vmatmul.mubr.msk.bf16.vlgmr.msra.gmra.mrb[220].mxu1 %vm2435_vm3, %v4977_v27  ;;  %5054 = vmatmul.mubr.bf16.vlgmr.msra.gmra.mrb[12].mxu0 %v4975_v7 }
0x1157   : > { %13105 = vmatpush3.bf16.msra.mxu1 %v20855_v55  ;;  %13118 = vmatprep.mubr.msk.bf16.mxu1 %vm2122_vm0, %v20856_v44 }
0x1158   : > { %13106 = vmatprep.subr.bf16.mxu1 %v20857_v54  ;;  %12276 = vmatpush3.bf16.msra.mxu0 %v20858_v21 }
0x1159   : > { %12277 = vmatprep.subr.bf16.mxu0 %v20859_v16 }
0x115b   : > { %13107 = vmatpush3.bf16.msra.mxu1 %v20857_v54  ;;  %v20910_v54 = vld [vmem:[#allocation87_spill] sm:$0xff] }
0x115c   : > { %13108 = vmatprep.subr.bf16.mxu1 %v20860_v60  ;;  %12278 = vmatpush3.bf16.msra.mxu0 %v20861_v40 }
0x115d   : > { %12279 = vmatprep.subr.bf16.mxu0 %v20862_v59 }
0x115f   : > { %13109 = vmatpush3.bf16.msra.mxu1 %v20860_v60 }
0x1160   : > { %13110 = vmatprep.subr.bf16.mxu1 %v20863_v43  ;;  %12280 = vmatpush3.bf16.msra.mxu0 %v20864_v49 }
0x1161   : > { %12281 = vmatprep.subr.bf16.mxu0 %v20865_v56 }
0x1163   : > { %13111 = vmatpush3.bf16.msra.mxu1 %v20863_v43 }
0x1164   : > { %13112 = vmatprep.subr.bf16.mxu1 %v20866_v12  ;;  %12282 = vmatpush3.bf16.msra.mxu0 %v20867_v2 }
0x1165   : > { %12283 = vmatprep.subr.bf16.mxu0 %v20868_v17 }
0x1167   : > { %13113 = vmatpush3.bf16.msra.mxu1 %v20866_v12 }
0x1168   : > { %13114 = vmatprep.subr.bf16.mxu1 %v20869_v37  ;;  %12284 = vmatpush3.bf16.msra.mxu0 %v20870_v6 }
0x1169   : > { %12285 = vmatprep.subr.bf16.mxu0 %v20871_v62 }
0x116b   : > { %13115 = vmatpush3.bf16.msra.mxu1 %v20869_v37 }
0x116c   : > { %13456 = vmatprep.subr.msk.bf16.mxu1 %vm2171_vm1, %v20872_v34  ;;  %12286 = vmatpush3.bf16.msra.mxu0 %v20873_v32 }
0x116d   : > { %12287 = vmatprep.subr.bf16.mxu0 %v20874_v5 }
0x116f   : > { %13117 = vmatpush3.bf16.msra.mxu1 %v5116_v50 }
0x1170   : > { %12288 = vmatpush3.bf16.msra.mxu0 %v20875_v13  ;;  %12325 = vmatprep.subr.bf16.mxu1 %v20876_v18 }
0x1171   : > { %12289 = vmatprep.subr.bf16.mxu0 %v20877_v31 }
0x1172   : > { %13119 = vmatmul.mubr.msk.bf16.vlgmr.msra.gmra.mrb[224].mxu1 %vm2122_vm0, %v20878_v14 }
0x1173   : > { %13122 = vmatprep.mubr.msk.bf16.mxu1 %vm2122_vm0, %v20879_v22  ;;  %12326 = vmatpush3.bf16.msra.mxu1 %v20880_v63 }
0x1174   : > { %12290 = vmatpush3.bf16.msra.mxu0 %v20881_v36  ;;  %12327 = vmatprep.subr.bf16.mxu1 %v20882_v28 }
0x1175   : > { %12297 = vmatprep.subr.bf16.mxu0 %v20883_v4 }
0x1177   : > { %12328 = vmatpush3.bf16.msra.mxu1 %v20884_v24 }
0x1178   : > { %12329 = vmatprep.subr.bf16.mxu1 %v20885_v25 }
0x117a   : > { %13123 = vmatmul.mubr.msk.bf16.gmra.mrb[228].mxu1 %vm2122_vm0, %v20886_v51 }
0x117b   : > { %13126 = vmatprep.mubr.msk.bf16.mxu1 %vm2122_vm0, %v20887_v3  ;;  %12330 = vmatpush3.bf16.msra.mxu1 %v20888_v39 }
0x117c   : > { %12331 = vmatprep.subr.bf16.mxu1 %v20889_v42 }
0x117f   : > { %12332 = vmatpush3.bf16.msra.mxu1 %v20890_v35 }
0x1180   : > { %12333 = vmatprep.subr.bf16.mxu1 %v20891_v48 }
0x1182   : > { %13127 = vmatmul.mubr.msk.bf16.gmra.mrb[232].mxu1 %vm2122_vm0, %v20892_v19 }
0x1183   : > { %13130 = vmatprep.mubr.msk.bf16.mxu1 %vm2122_vm0, %v20893_v10  ;;  %12334 = vmatpush3.bf16.msra.mxu1 %v20894_v52 }
0x1184   : > { %12335 = vmatprep.subr.bf16.mxu1 %v20895_v1 }
0x1187   : > { %12336 = vmatpush3.bf16.msra.mxu1 %v20896_v61 }
0x1188   : > { %12337 = vmatprep.subr.bf16.mxu1 %v20897_v26 }
0x118a   : > { %13131 = vmatmul.mubr.msk.bf16.gmra.mrb[236].mxu1 %vm2122_vm0, %v20898_v58 }
0x118b   : > { %13134 = vmatprep.mubr.msk.bf16.mxu1 %vm2122_vm0, %v20899_v33  ;;  %12338 = vmatpush3.bf16.msra.mxu1 %v20900_v45 }
0x118c   : > { %12339 = vmatprep.subr.bf16.mxu1 %v20901_v0 }
0x118f   : > { %12340 = vmatpush3.bf16.msra.mxu1 %v20902_v9 }
0x1190   : > { %12347 = vmatprep.subr.bf16.mxu1 %v16794_v8 }
0x1192   : > { %13135 = vmatmul.mubr.msk.bf16.gmra.mrb[240].mxu1 %vm2122_vm0, %v20903_v15 }
0x1193   : > { %13138 = vmatprep.mubr.msk.bf16.mxu1 %vm2122_vm0, %v20904_v47 }
0x119a   : > { %13139 = vmatmul.mubr.msk.bf16.gmra.mrb[244].mxu1 %vm2122_vm0, %v20905_v11 }
0x119b   : > { %13142 = vmatprep.mubr.msk.bf16.mxu1 %vm2122_vm0, %v20906_v53 }
0x11a2   : > { %13143 = vmatmul.mubr.msk.bf16.gmra.mrb[248].mxu1 %vm2122_vm0, %v20907_v57 }
0x11a3   : > { %13146 = vmatprep.mubr.msk.bf16.mxu1 %vm2122_vm0, %v20908_v23 }
0x11aa   : > { %13147 = vmatmul.mubr.msk.bf16.gmra.mrb[252].mxu1 %vm2122_vm0, %v20909_v29 }
0x1219   : > { %v12219_v8 = vpop.f32.mrb[216].mxu1 }
0x121a   : > { %v12220_v46 = vpop.f32.mrb[217].mxu1 }
0x121b   : > { %v12221_v27 = vadd.f32 %v12220_v46, %v12219_v8  ;;  %v12222_v41 = vpop.f32.mrb[218].mxu1 }
0x121c   : > { %v12223_v7 = vpop.f32.mrb[219].mxu1 }
0x121d   : > { %v5016_v21 = vadd.f32 %v20910_v54, %v12221_v27 }
0x1229   : > { %v5095_v30 = vpop.f32.mrb[220].mxu1  ;;  %v12241_v38 = vpop.f32.mrb[12].mxu0 }
0x122a   : > { %v13102_v55 = vpop.f32.mrb[221].mxu1  ;;  %v12242_v44 = vpop.f32.mrb[13].mxu0 }
0x122b   : > { %v12243_v16 = vadd.f32 %v12242_v44, %v12241_v38  ;;  %v5098_v60 = vpop.f32.mrb[222].mxu1  ;;  %v12244_v40 = vpop.f32.mrb[14].mxu0 }
0x122c   : > { %v13103_v59 = vpop.f32.mrb[223].mxu1  ;;  %v12245_v43 = vpop.f32.mrb[15].mxu0 }
0x122d   : > { %v5056_v49 = vadd.f32 %v12243_v16, %v5016_v21 }
0x122f   : > { %v17513_v56 = vadd.f32 %v5095_v30, %v5056_v49 }
0x1231   : > { %20911 = vst [vmem:[#allocation33_spill] sm:$0xff] %v17513_v56  ;;  %v20934_v56 = vld [vmem:[#allocation10_spill] sm:$0xff] }
0x1245   : > { %v13120_v12 = vpop.f32.mrb[224].mxu1 }
0x1246   : > { %v17515_v2 = vpop.f32.mrb[225].mxu1 }
0x1247   : > { %v13121_v17 = vpop.f32.mrb[226].mxu1 }
0x1248   : > { %v13755_v37 = vpack.i.bf16 %v13121_v17, %v13120_v12  ;;  %v5155_v6 = vpop.f32.mrb[227].mxu1 }
0x124a   : > { %13756 = vrot.lane.b32.xlu1 %v13755_v37, %s15071_s26 }
0x124d   : > { %v13124_v62 = vpop.f32.mrb[228].mxu1 }
0x124e   : > { %v5168_v32 = vpop.f32.mrb[229].mxu1 }
0x124f   : > { %v13125_v5 = vpop.f32.mrb[230].mxu1 }
0x1250   : > { %v13780_v50 = vpack.i.bf16 %v13125_v5, %v13124_v62  ;;  %v5171_v13 = vpop.f32.mrb[231].mxu1 }
0x1251   : > { %v13760_v18 = vpack.i.bf16 %v5171_v13, %v5168_v32 }
0x1253   : > { %13761 = vrot.lane.b32.xlu1 %v13760_v18, %s15072_s16 }
0x1255   : > { %v13128_v31 = vpop.f32.mrb[232].mxu1 }
0x1256   : > { %v17519_v14 = vpop.f32.mrb[233].mxu1 }
0x1257   : > { %13781 = vrot.lane.b32.xlu1 %v13780_v50, %s15073_s17  ;;  %v13129_v22 = vpop.f32.mrb[234].mxu1 }
0x1258   : > { %v13765_v63 = vpack.i.bf16 %v13129_v22, %v13128_v31  ;;  %v17522_v36 = vpop.f32.mrb[235].mxu1 }
0x125a   : > { %13766 = vrot.lane.b32.xlu0 %v13765_v63, %s15071_s26 }
0x125d   : > { %v13132_v28 = vpop.f32.mrb[236].mxu1 }
0x125e   : > { %v5200_v4 = vpop.f32.mrb[237].mxu1 }
0x125f   : > { %v13133_v24 = vpop.f32.mrb[238].mxu1 }
0x1260   : > { %v13775_v25 = vpack.i.bf16 %v13133_v24, %v13132_v28  ;;  %v5203_v51 = vpop.f32.mrb[239].mxu1  ;;  %v17571_v24 = vld [vmem:[%s20484_s4 + $0x88] sm:$0xff]  }
0x1261   : > { %v13770_v3 = vpack.i.bf16 %v5203_v51, %v5200_v4 }
0x1263   : > { %13771 = vrot.lane.b32.xlu0 %v13770_v3, %s15072_s16 }
0x1265   : > { %v13136_v39 = vpop.f32.mrb[240].mxu1 }
0x1266   : > { %v17526_v42 = vpop.f32.mrb[241].mxu1 }
0x1267   : > { %13776 = vrot.lane.b32.xlu0 %v13775_v25, %s15073_s17  ;;  %v13137_v35 = vpop.f32.mrb[242].mxu1 }
0x1268   : > { %v13785_v48 = vpack.i.bf16 %v13137_v35, %v13136_v39  ;;  %v17529_v19 = vpop.f32.mrb[243].mxu1  ;;  %v17577_v39 = vld [vmem:[%s20484_s4 + $0xd0] sm:$0xff]  }
0x126a   : > { %13786 = vrot.lane.b32.xlu1 %v13785_v48, %s15071_s26 }
0x126d   : > { %v13140_v10 = vpop.f32.mrb[244].mxu1 }
0x126e   : > { %v5232_v52 = vpop.f32.mrb[245].mxu1 }
0x126f   : > { %v13141_v1 = vpop.f32.mrb[246].mxu1 }
0x1270   : > { %v13810_v61 = vpack.i.bf16 %v13141_v1, %v13140_v10  ;;  %v5235_v26 = vpop.f32.mrb[247].mxu1  ;;  %v17583_v10 = vld [vmem:[%s20484_s4 + $0x90] sm:$0xff]  }
0x1271   : > { %v13790_v58 = vpack.i.bf16 %v5235_v26, %v5232_v52 }
0x1273   : > { %13791 = vrot.lane.b32.xlu1 %v13790_v58, %s15072_s16 }
0x1275   : > { %v13144_v33 = vpop.f32.mrb[248].mxu1 }
0x1276   : > { %v17533_v45 = vpop.f32.mrb[249].mxu1 }
0x1277   : > { %13811 = vrot.lane.b32.xlu1 %v13810_v61, %s15073_s17  ;;  %v13145_v0 = vpop.f32.mrb[250].mxu1 }
0x1278   : > { %v13795_v9 = vpack.i.bf16 %v13145_v0, %v13144_v33  ;;  %v17536_v15 = vpop.f32.mrb[251].mxu1  ;;  %v17593_v33 = vld [vmem:[%s20484_s4 + $0xd8] sm:$0xff]  }
0x127a   : > { %13796 = vrot.lane.b32.xlu0 %v13795_v9, %s15071_s26 }
0x127d   : > { %v13148_v47 = vpop.f32.mrb[252].mxu1 }
0x127e   : > { %v5264_v11 = vpop.f32.mrb[253].mxu1 }
0x127f   : > { %v13149_v53 = vpop.f32.mrb[254].mxu1 }
0x1280   : > { %v13805_v57 = vpack.i.bf16 %v13149_v53, %v13148_v47  ;;  %v5267_v23 = vpop.f32.mrb[255].mxu1  ;;  %v17609_v53 = vld [vmem:[%s20484_s4 + $0xe0] sm:$0xff]  }
0x1281   : > { %v13800_v29 = vpack.i.bf16 %v5267_v23, %v5264_v11  ;;  %v17615_v23 = vld [vmem:[%s20484_s4 + $0xa0] sm:$0xff]  }
0x1283   : > { %13801 = vrot.lane.b32.xlu0 %v13800_v29, %s15072_s16  ;;  %v17621_v29 = vld [vmem:[%s20484_s4 + $0xe8] sm:$0xff]  }
0x1287   : > { %13806 = vrot.lane.b32.xlu0 %v13805_v57, %s15073_s17 }
0x12bc   : > { %v13757_v8 = vpop.permute.xlu1 %13756 }
0x12bd   : > { %v13759_v27 = vunpack.i.h.bf16 %v13757_v8  ;;  %v13758_v41 = vunpack.i.l.bf16 %v13757_v8  ;;  %v17627_v8 = vld [vmem:[%s20484_s4 + $0xa8] sm:$0xff]  }
0x12bf   : > { %v5375_v55 = vsel %vm2432_vm2, %v17515_v2, %v13758_v41  ;;  %v5376_v44 = vsel %vm2432_vm2, %v5155_v6, %v13759_v27 }
0x12c5   : > { %v13762_v46 = vpop.permute.xlu1 %13761 }
0x12c6   : > { %v13764_v7 = vunpack.i.h.bf16 %v13762_v46  ;;  %v13763_v30 = vunpack.i.l.bf16 %v13762_v46 }
0x12c8   : > { %v5378_v16 = vsel %vm2435_vm3, %v5376_v44, %v13764_v7  ;;  %v5377_v60 = vsel %vm2435_vm3, %v5375_v55, %v13763_v30  ;;  %v17633_v7 = vld [vmem:[%s20484_s4 + $0xf0] sm:$0xff]  }
0x12c9   : > { %v13782_v38 = vpop.permute.xlu1 %13781  ;;  %v17639_v55 = vld [vmem:[%s20484_s4 + $0xb0] sm:$0xff]  }
0x12ca   : > { %v13784_v54 = vunpack.i.h.bf16 %v13782_v38  ;;  %v13783_v21 = vunpack.i.l.bf16 %v13782_v38 }
0x12cc   : > { %v5379_v40 = vsel %vm2438_vm4, %v5377_v60, %v13783_v21  ;;  %v5380_v59 = vsel %vm2438_vm4, %v5378_v16, %v13784_v54  ;;  %v13767_v49 = vpop.permute.xlu0 %13766 }
0x12cd   : > { %v5399_v43 = vpack.c.bf16 %v5380_v59, %v5379_v40  ;;  %v13769_v17 = vunpack.i.h.bf16 %v13767_v49  ;;  %v13768_v37 = vunpack.i.l.bf16 %v13767_v49  ;;  %v17649_v40 = vld [vmem:[%s20484_s4 + $0xf8] sm:$0xff]  }
0x12cf   : > { %v5381_v6 = vsel %vm2432_vm2, %v17519_v14, %v13768_v37  ;;  %v5382_v5 = vsel %vm2432_vm2, %v17522_v36, %v13769_v17  ;;  %v17559_v14 = vld [vmem:[%s20484_s4 + $0x80] sm:$0xff]   ;;  %v17565_v36 = vld [vmem:[%s20484_s4 + $0xc8] sm:$0xff]  }
0x12d5   : > { %v13772_v12 = vpop.permute.xlu0 %13771 }
0x12d6   : > { %v13774_v62 = vunpack.i.h.bf16 %v13772_v12  ;;  %v13773_v32 = vunpack.i.l.bf16 %v13772_v12 }
0x12d8   : > { %v5384_v18 = vsel %vm2435_vm3, %v5382_v5, %v13774_v62  ;;  %v5383_v31 = vsel %vm2435_vm3, %v5381_v6, %v13773_v32 }
0x12d9   : > { %v13777_v2 = vpop.permute.xlu0 %13776 }
0x12da   : > { %v13779_v50 = vunpack.i.h.bf16 %v13777_v2  ;;  %v13778_v13 = vunpack.i.l.bf16 %v13777_v2 }
0x12dc   : > { %v5385_v22 = vsel %vm2438_vm4, %v5383_v31, %v13778_v13  ;;  %v5386_v63 = vsel %vm2438_vm4, %v5384_v18, %v13779_v50  ;;  %v13787_v4 = vpop.permute.xlu1 %13786  ;;  %v17668_v13 = vld [vmem:[%s20485_s5] ss:$0 sm:$0xff] }
0x12dd   : > { %v5400_v28 = vpack.c.bf16 %v5386_v63, %v5385_v22  ;;  %v13789_v51 = vunpack.i.h.bf16 %v13787_v4  ;;  %v13788_v3 = vunpack.i.l.bf16 %v13787_v4 }
0x12df   : > { %5435 = vmatprep.mubr.bf16.mxu0 %v5400_v28  ;;  %v5387_v1 = vsel %vm2432_vm2, %v17526_v42, %v13788_v3  ;;  %v5388_v61 = vsel %vm2432_vm2, %v17529_v19, %v13789_v51  ;;  %v17603_v19 = vld [vmem:[%s20484_s4 + $0x98] sm:$0xff]  }
0x12e0   : > { %5436 = vmatmul.mubr.bf16.vlgmr.msra.gmra.mrb[16].mxu0 %v5399_v43 }
0x12e1   : > { %12298 = vmatpush3.bf16.msra.mxu0 %v17559_v14 }
0x12e2   : > { %12299 = vmatprep.subr.bf16.mxu0 %v17565_v36 }
0x12e5   : > { %12300 = vmatpush3.bf16.msra.mxu0 %v17571_v24  ;;  %v13792_v25 = vpop.permute.xlu1 %13791 }
0x12e6   : > { %12301 = vmatprep.subr.bf16.mxu0 %v17577_v39  ;;  %v13794_v35 = vunpack.i.h.bf16 %v13792_v25  ;;  %v13793_v48 = vunpack.i.l.bf16 %v13792_v25 }
0x12e8   : > { %v5390_v0 = vsel %vm2435_vm3, %v5388_v61, %v13794_v35  ;;  %v5389_v9 = vsel %vm2435_vm3, %v5387_v1, %v13793_v48  ;;  %v17685_v1 = vld [vmem:[%s20487_s7 + $0x100] sm:$0xff]   ;;  %v17692_v61 = vld [vmem:[%s20487_s7 + $0x108] sm:$0xff]  }
0x12e9   : > { %12302 = vmatpush3.bf16.msra.mxu0 %v17583_v10  ;;  %v13812_v52 = vpop.permute.xlu1 %13811  ;;  %20912 = vst [vmem:[#allocation19_spill] sm:$0xff] %v17685_v1  ;;  %20913 = vst [vmem:[#allocation34_spill] sm:$0xff] %v17692_v61 }
0x12ea   : > { %v13814_v26 = vunpack.i.h.bf16 %v13812_v52  ;;  %v13813_v58 = vunpack.i.l.bf16 %v13812_v52  ;;  %12303 = vmatprep.subr.bf16.mxu0 %v17593_v33  ;;  %v17676_v52 = vld [vmem:[%s20486_s6] sm:$0xff]  }
0x12ec   : > { %v5391_v47 = vsel %vm2438_vm4, %v5389_v9, %v13813_v58  ;;  %v5392_v42 = vsel %vm2438_vm4, %v5390_v0, %v13814_v26  ;;  %v13797_v57 = vpop.permute.xlu0 %13796  ;;  %v17699_v26 = vld [vmem:[%s20486_s6 + $0x8] sm:$0xff]   ;;  %v17708_v58 = vld [vmem:[%s20487_s7 + $0x110] sm:$0xff]   ;;  %v17715_v0 = vld [vmem:[%s20487_s7 + $0x118] sm:$0xff]  }
0x12ed   : > { %v5401_v11 = vpack.c.bf16 %v5392_v42, %v5391_v47  ;;  %12304 = vmatpush3.bf16.msra.mxu0 %v17603_v19  ;;  %v13799_v27 = vunpack.i.h.bf16 %v13797_v57  ;;  %v13798_v41 = vunpack.i.l.bf16 %v13797_v57  ;;  %20914 = vst [vmem:[#allocation35_spill] sm:$0xff] %v17708_v58  ;;  %20915 = vst [vmem:[#allocation36_spill] sm:$0xff] %v17715_v0  ;;  %v17721_v9 = vld [vmem:[%s20484_s4 + $0x40] sm:$0xff]   ;;  %v17727_v47 = vld [vmem:[%s20486_s6 + $0x10] sm:$0xff]  }
0x12ee   : > { %12305 = vmatprep.subr.bf16.mxu0 %v17609_v53  ;;  %20916 = vst [vmem:[#allocation37_spill] sm:$0xff] %v17721_v9  ;;  %v17736_v42 = vld [vmem:[%s20486_s6 + $0x18] sm:$0xff]  }
0x12ef   : > { %v5393_v54 = vsel %vm2432_vm2, %v17533_v45, %v13798_v41  ;;  %v5394_v21 = vsel %vm2432_vm2, %v17536_v15, %v13799_v27  ;;  %v17659_v15 = vld [vmem:[%s20484_s4 + $0xb8] sm:$0xff]  }
0x12f1   : > { %12306 = vmatpush3.bf16.msra.mxu0 %v17615_v23 }
0x12f2   : > { %12307 = vmatprep.subr.bf16.mxu0 %v17621_v29 }
0x12f5   : > { %12308 = vmatpush3.bf16.msra.mxu0 %v17627_v8  ;;  %v13802_v46 = vpop.permute.xlu0 %13801 }
0x12f6   : > { %12309 = vmatprep.subr.bf16.mxu0 %v17633_v7  ;;  %v13804_v30 = vunpack.i.h.bf16 %v13802_v46  ;;  %v13803_v38 = vunpack.i.l.bf16 %v13802_v46 }
0x12f8   : > { %v5396_v59 = vsel %vm2435_vm3, %v5394_v21, %v13804_v30  ;;  %v5395_v43 = vsel %vm2435_vm3, %v5393_v54, %v13803_v38 }
0x12f9   : > { %12310 = vmatpush3.bf16.msra.mxu0 %v17639_v55  ;;  %v13807_v44 = vpop.permute.xlu0 %13806 }
0x12fa   : > { %v13809_v16 = vunpack.i.h.bf16 %v13807_v44  ;;  %v13808_v60 = vunpack.i.l.bf16 %v13807_v44  ;;  %12311 = vmatprep.subr.bf16.mxu0 %v17649_v40 }
0x12fc   : > { %v5397_v49 = vsel %vm2438_vm4, %v5395_v43, %v13808_v60  ;;  %v5398_v45 = vsel %vm2438_vm4, %v5396_v59, %v13809_v16 }
0x12fd   : > { %12312 = vmatpush3.bf16.msra.mxu0 %v17659_v15  ;;  %v5402_v12 = vpack.c.bf16 %v5398_v45, %v5397_v49 }
0x12fe   : > { %13150 = vmatprep.subr.bf16.mxu0 %v20701_v20 }
0x12ff   : > { %5476 = vmatprep.mubr.bf16.mxu0 %v5402_v12 }
0x1300   : > { %5477 = vmatmul.mubr.bf16.vlgmr.msra.gmra.mrb[20].mxu0 %v5401_v11  ;;  %v17745_v11 = vld [vmem:[%s20486_s6 + $0x20] ss:$0 sps:$4 sm:$0xff]  }
0x1301   : > { %13152 = vmatprep.mubr.msk.bf16.mxu0 %vm15075_vm5, %v20701_v20  ;;  %20917 = vst [vmem:[#allocation20_spill] sm:$0xff] %v17745_v11 }
0x13b3   : > { %v12291_v17 = vpop.f32.mrb[16].mxu0 }
0x13b4   : > { %v12292_v37 = vpop.f32.mrb[17].mxu0 }
0x13b5   : > { %v12293_v62 = vadd.f32 %v12292_v37, %v12291_v17  ;;  %v12294_v32 = vpop.f32.mrb[18].mxu0 }
0x13b6   : > { %v12295_v2 = vpop.f32.mrb[19].mxu0 }
0x13b7   : > { %v12296_v6 = vadd.f32 %v12295_v2, %v12294_v32  ;;  %v5438_v18 = vadd.f32 %v17668_v13, %v12293_v62 }
0x13b9   : > { %v5441_v28 = vadd.f32 %v17668_v13, %v12296_v6 }
0x13d3   : > { %v12313_v5 = vpop.f32.mrb[20].mxu0 }
0x13d4   : > { %v12314_v50 = vpop.f32.mrb[21].mxu0 }
0x13d5   : > { %v12315_v31 = vadd.f32 %v12314_v50, %v12313_v5  ;;  %v12316_v22 = vpop.f32.mrb[22].mxu0  ;;  %v17761_v50 = vld [vmem:[%s20484_s4] sm:$0xff]  }
0x13d6   : > { %v12317_v63 = vpop.f32.mrb[23].mxu0  ;;  %20918 = vst [vmem:[#allocation3_spill] sm:$0xff] %v17761_v50 }
0x13d7   : > { %v5479_v4 = vadd.f32 %v12315_v31, %v5438_v18  ;;  %v12318_v25 = vadd.f32 %v12317_v63, %v12316_v22  ;;  %v17767_v18 = vld [vmem:[%s20484_s4 + $0x48] sm:$0xff]   ;;  %v17779_v22 = vld [vmem:[%s20484_s4 + $0x50] sm:$0xff]  }
0x13d8   : > { %20919 = vst [vmem:[#allocation39_spill] sm:$0xff] %v17767_v18  ;;  %v17773_v31 = vld [vmem:[%s20484_s4 + $0x8] sm:$0xff]   ;;  %20921 = vst [vmem:[#allocation40_spill] sm:$0xff] %v17779_v22  ;;  %v17785_v63 = vld [vmem:[%s20484_s4 + $0x10] sm:$0xff]  }
0x13d9   : > { %v5482_v51 = vadd.f32 %v12318_v25, %v5441_v28  ;;  %v5485_v3 = vmax.f32 %v5479_v4, 0.0  ;;  %20920 = vst [vmem:[#allocation4_spill] sm:$0xff] %v17773_v31  ;;  %20922 = vst [vmem:[#allocation41_spill] sm:$0xff] %v17785_v63  ;;  %v17791_v28 = vld [vmem:[%s20484_s4 + $0x58] sm:$0xff]   ;;  %v17803_v25 = vld [vmem:[%s20484_s4 + $0x60] sm:$0xff]  }
0x13da   : > { %20923 = vst [vmem:[#allocation5_spill] sm:$0xff] %v17791_v28  ;;  %v17797_v4 = vld [vmem:[%s20484_s4 + $0x18] sm:$0xff]   ;;  %20925 = vst [vmem:[#allocation43_spill] sm:$0xff] %v17803_v25 }
0x13db   : > { %v5486_v35 = vmax.f32 %v5482_v51, 0.0  ;;  %20924 = vst [vmem:[#allocation42_spill] sm:$0xff] %v17797_v4  ;;  %v17809_v51 = vld [vmem:[%s20484_s4 + $0x20] sm:$0xff]  }
0x13dc   : > { %20926 = vst [vmem:[#allocation6_spill] sm:$0xff] %v17809_v51 }
0x13dd   : > { %v5487_v48 = vpack.c.bf16 %v5486_v35, %v5485_v3  ;;  %v17815_v3 = vld [vmem:[%s20484_s4 + $0x68] sm:$0xff]  }
0x13de   : > { %20927 = vst [vmem:[#allocation44_spill] sm:$0xff] %v17815_v3  ;;  %v17821_v35 = vld [vmem:[%s20484_s4 + $0x28] sm:$0xff]  }
0x13df   : > { %13151 = vmatpush3.bf16.msra.mxu0 %v5487_v48  ;;  %20928 = vst [vmem:[#allocation45_spill] sm:$0xff] %v17821_v35  ;;  %v17827_v48 = vld [vmem:[%s20484_s4 + $0x70] sm:$0xff]  }
0x13e0   : > { %13172 = vmatprep.subr.bf16.mxu0 %v20701_v20  ;;  %20929 = vst [vmem:[#allocation7_spill] sm:$0xff] %v17827_v48 }
0x13e2   : > { %13153 = vmatmul.mubr.msk.bf16.vlgmr.msra.gmra.mrb[24].mxu0 %vm2769_vm6, %v17676_v52 }
0x13e3   : > { %13156 = vmatprep.mubr.msk.bf16.mxu0 %vm15075_vm5, %v20701_v20  ;;  %13173 = vmatpush3.bf16.msra.mxu0 %v17685_v1 }
0x13e4   : > { %13174 = vmatprep.subr.bf16.mxu0 %v20701_v20 }
0x13e7   : > { %13175 = vmatpush3.bf16.msra.mxu0 %v17692_v61 }
0x13e8   : > { %13176 = vmatprep.subr.bf16.mxu0 %v20701_v20 }
0x13ea   : > { %13157 = vmatmul.mubr.msk.bf16.gmra.mrb[28].mxu0 %vm2769_vm6, %v17699_v26 }
0x13eb   : > { %13160 = vmatprep.mubr.msk.bf16.mxu0 %vm15075_vm5, %v20701_v20  ;;  %13177 = vmatpush3.bf16.msra.mxu0 %v17708_v58 }
0x13ec   : > { %13178 = vmatprep.subr.bf16.mxu0 %v20701_v20 }
0x13ef   : > { %13179 = vmatpush3.bf16.msra.mxu0 %v17715_v0 }
0x13f0   : > { %12397 = vmatprep.subr.bf16.mxu0 %v17721_v9 }
0x13f2   : > { %13161 = vmatmul.mubr.msk.bf16.gmra.mrb[32].mxu0 %vm2769_vm6, %v17727_v47 }
0x13f3   : > { %13164 = vmatprep.mubr.msk.bf16.mxu0 %vm15075_vm5, %v20701_v20 }
0x13fa   : > { %13165 = vmatmul.mubr.msk.bf16.gmra.mrb[36].mxu0 %vm2769_vm6, %v17736_v42 }
0x13fb   : > { %13168 = vmatprep.mubr.msk.bf16.mxu0 %vm15075_vm5, %v20701_v20 }
0x1402   : > { %13169 = vmatmul.mubr.msk.bf16.gmra.mrb[40].mxu0 %vm2769_vm6, %v17745_v11 }
0x1403   : > { %13180 = vmatprep.mubr.msk.bf16.mxu0 %vm15075_vm5, %v20701_v20 }
0x14b5   : > { %v5522_v57 = vpop.f32.mrb[24].mxu0 }
0x14b6   : > { %v13154_v46 = vpop.f32.mrb[25].mxu0 }
0x14b7   : > { %v5525_v27 = vpop.f32.mrb[26].mxu0  ;;  %v17833_v46 = vld [vmem:[%s20484_s4 + $0x30] sm:$0xff]  }
0x14b8   : > { %v13155_v41 = vpop.f32.mrb[27].mxu0  ;;  %20930 = vst [vmem:[#allocation46_spill] sm:$0xff] %v17833_v46 }
0x14b9   : > { %v17845_v41 = vld [vmem:[%s20484_s4 + $0x38] sm:$0xff]  }
0x14ba   : > { %20932 = vst [vmem:[#allocation9_spill] sm:$0xff] %v17845_v41 }
0x14bd   : > { %v5530_v30 = vpop.f32.mrb[28].mxu0 }
0x14be   : > { %v13158_v38 = vpop.f32.mrb[29].mxu0 }
0x14bf   : > { %v5533_v44 = vpop.f32.mrb[30].mxu0  ;;  %v17851_v38 = vld [vmem:[%s20484_s4 + $0xc0] sm:$0xff]  }
0x14c0   : > { %v13815_v54 = vpack.i.bf16 %v5525_v27, %v5533_v44  ;;  %v13159_v21 = vpop.f32.mrb[31].mxu0  ;;  %v17839_v27 = vld [vmem:[%s20484_s4 + $0x78] sm:$0xff]   ;;  %20933 = vst [vmem:[#allocation48_spill] sm:$0xff] %v17851_v38 }
0x14c1   : > { %20931 = vst [vmem:[#allocation47_spill] sm:$0xff] %v17839_v27 }
0x14c2   : > { %13816 = vrot.lane.b32.xlu0 %v13815_v54, %s15072_s16 }
0x14c5   : > { %v17752_v16 = vpop.f32.mrb[32].mxu0 }
0x14c6   : > { %v13162_v60 = vpop.f32.mrb[33].mxu0 }
0x14c7   : > { %v5541_v59 = vpop.f32.mrb[34].mxu0 }
0x14c8   : > { %v13163_v43 = vpop.f32.mrb[35].mxu0 }
0x14cd   : > { %v17754_v49 = vpop.f32.mrb[36].mxu0 }
0x14ce   : > { %v13166_v45 = vpop.f32.mrb[37].mxu0 }
0x14cf   : > { %v5549_v12 = vpop.f32.mrb[38].mxu0 }
0x14d0   : > { %v13820_v17 = vpack.i.bf16 %v5541_v59, %v5549_v12  ;;  %v13167_v37 = vpop.f32.mrb[39].mxu0  ;;  %v17859_v12 = vld [vmem:[%s20487_s7 + $0x80] sm:$0xff]  }
0x14d1   : > { %v17883_v37 = vld [vmem:[%s20487_s7 + $0x90] sm:$0xff]  }
0x14d2   : > { %13821 = vrot.lane.b32.xlu1 %v13820_v17, %s15072_s16  ;;  %v17865_v17 = vld [vmem:[%s20487_s7 + $0xc8] sm:$0xff]  }
0x14d5   : > { %v5554_v62 = vpop.f32.mrb[40].mxu0 }
0x14d6   : > { %v5584_v32 = vpack.c.bf16 %v5554_v62, %v5554_v62  ;;  %v13170_v2 = vpop.f32.mrb[41].mxu0 }
0x14d7   : > { %v5557_v6 = vpop.f32.mrb[42].mxu0  ;;  %v17889_v2 = vld [vmem:[%s20487_s7 + $0xd8] sm:$0xff]  }
0x14d8   : > { %13181 = vmatmul.mubr.msk.bf16.vlgmr.msra.gmra.mrb[44].mxu0 %vm2435_vm3, %v5584_v32  ;;  %v13171_v5 = vpop.f32.mrb[43].mxu0 }
0x14d9   : > { %12398 = vmatpush3.bf16.msra.mxu0 %v17761_v50  ;;  %v17897_v5 = vld [vmem:[%s20487_s7 + $0x98] sm:$0xff]  }
0x14da   : > { %12399 = vmatprep.subr.bf16.mxu0 %v17767_v18 }
0x14dd   : > { %12400 = vmatpush3.bf16.msra.mxu0 %v17773_v31 }
0x14de   : > { %12401 = vmatprep.subr.bf16.mxu0 %v17779_v22 }
0x14e1   : > { %12402 = vmatpush3.bf16.msra.mxu0 %v17785_v63 }
0x14e2   : > { %12403 = vmatprep.subr.bf16.mxu0 %v17791_v28 }
0x14e5   : > { %12404 = vmatpush3.bf16.msra.mxu0 %v17797_v4 }
0x14e6   : > { %12405 = vmatprep.subr.bf16.mxu0 %v17803_v25 }
0x14e9   : > { %12406 = vmatpush3.bf16.msra.mxu0 %v17809_v51 }
0x14ea   : > { %12407 = vmatprep.subr.bf16.mxu0 %v17815_v3 }
0x14ed   : > { %12408 = vmatpush3.bf16.msra.mxu0 %v17821_v35 }
0x14ee   : > { %12409 = vmatprep.subr.bf16.mxu0 %v17827_v48 }
0x14f1   : > { %12410 = vmatpush3.bf16.msra.mxu0 %v17833_v46 }
0x14f2   : > { %12411 = vmatprep.subr.bf16.mxu0 %v17839_v27  ;;  %v17957_v27 = vld [vmem:[%s20483_s3] sm:$0xff]  }
0x14f3   : > { %20936 = vst [vmem:[#allocation49_spill] sm:$0xff] %v17957_v27 }
0x14f5   : > { %12412 = vmatpush3.bf16.msra.mxu0 %v17845_v41 }
0x14f6   : > { %12419 = vmatprep.subr.bf16.mxu0 %v17851_v38  ;;  %v20935_v38 = vrot.slane %v20934_v56, 4  ;;  %v20939_v56 = vld [vmem:[#allocation13_spill] sm:$0xff] }
0x1534   : > { %v13817_v44 = vpop.permute.xlu0 %13816 }
0x1535   : > { %v13819_v54 = vunpack.i.h.bf16 %v13817_v44  ;;  %v13818_v21 = vunpack.i.l.bf16 %v13817_v44 }
0x1537   : > { %v5576_v60 = vsel %vm2435_vm3, %v5522_v57, %v13819_v54  ;;  %v5577_v59 = vsel %vm2435_vm3, %v5530_v30, %v13818_v21  ;;  %v17871_v57 = vld [vmem:[%s20487_s7 + $0x88] sm:$0xff]   ;;  %v17877_v30 = vld [vmem:[%s20487_s7 + $0xd0] sm:$0xff]   ;;  %v17903_v54 = vld [vmem:[%s20487_s7 + $0xe0] sm:$0xff]  }
0x1538   : > { %v5580_v43 = vpack.c.bf16 %v5576_v60, %v5576_v60  ;;  %v5581_v45 = vpack.c.bf16 %v5577_v59, %v5577_v59  ;;  %v17915_v21 = vld [vmem:[%s20487_s7 + $0xe8] sm:$0xff]   ;;  %v17927_v59 = vld [vmem:[%s20487_s7 + $0xf0] sm:$0xff]  }
0x1539   : > { %v17921_v60 = vld [vmem:[%s20487_s7 + $0xa8] sm:$0xff]  }
0x153a   : > { %5620 = vmatprep.mubr.bf16.mxu1 %v5581_v45  ;;  %v17933_v45 = vld [vmem:[%s20487_s7 + $0xb0] sm:$0xff]  }
0x153b   : > { %5621 = vmatmul.mubr.bf16.vlgmr.msra.gmra.mrb[0].mxu1 %v5580_v43 }
0x153c   : > { %12348 = vmatpush3.bf16.msra.mxu1 %v17859_v12 }
0x153d   : > { %12349 = vmatprep.subr.bf16.mxu1 %v17865_v17 }
0x1540   : > { %12350 = vmatpush3.bf16.msra.mxu1 %v17871_v57 }
0x1541   : > { %12351 = vmatprep.subr.bf16.mxu1 %v17877_v30 }
0x1544   : > { %12352 = vmatpush3.bf16.msra.mxu1 %v17883_v37  ;;  %v13822_v62 = vpop.permute.xlu1 %13821 }
0x1545   : > { %v13823_v32 = vunpack.i.l.bf16 %v13822_v62  ;;  %12353 = vmatprep.subr.bf16.mxu1 %v17889_v2  ;;  %v13824_v43 = vunpack.i.h.bf16 %v13822_v62  ;;  %v17948_v62 = vld [vmem:[%s20487_s7 + $0xb8] sm:$0xff]  }
0x1547   : > { %v5579_v6 = vsel %vm2435_vm3, %v17754_v49, %v13823_v32  ;;  %v17909_v49 = vld [vmem:[%s20487_s7 + $0xa0] sm:$0xff]   ;;  %v5729_v32 = vrot.slane %v20872_v34, 4 }
0x1548   : > { %12354 = vmatpush3.bf16.msra.mxu1 %v17897_v5  ;;  %v5583_v44 = vpack.c.bf16 %v5579_v6, %v5579_v6  ;;  %v17940_v6 = vld [vmem:[%s20487_s7 + $0xf8] sm:$0xff]  }
0x1549   : > { %12355 = vmatprep.subr.bf16.mxu1 %v17903_v54  ;;  %v5731_v34 = vsel %vm2171_vm1, %v5729_v32, %v20935_v38  ;;  %v20941_v38 = vld [vmem:[#allocation21_spill] sm:$0xff]  ;;  %v20942_v32 = vld [vmem:[#allocation15_spill] sm:$0xff] }
0x154a   : > { %5660 = vmatprep.mubr.bf16.mxu1 %v5583_v44  ;;  %v5578_v44 = vsel %vm2435_vm3, %v17752_v16, %v13824_v43  ;;  %v20937_v16 = vld [vmem:[#allocation11_spill] sm:$0xff]  ;;  %v20938_v43 = vld [vmem:[#allocation12_spill] sm:$0xff] }
0x154b   : > { %v5582_v41 = vpack.c.bf16 %v5578_v44, %v5578_v44  ;;  %v5749_v44 = vsel %vm2171_vm1, %v20942_v32, 0 }
0x154c   : > { %12356 = vmatpush3.bf16.msra.mxu1 %v17909_v49 }
0x154d   : > { %12357 = vmatprep.subr.bf16.mxu1 %v17915_v21 }
0x1550   : > { %12358 = vmatpush3.bf16.msra.mxu1 %v17921_v60 }
0x1551   : > { %12359 = vmatprep.subr.bf16.mxu1 %v17927_v59 }
0x1554   : > { %12360 = vmatpush3.bf16.msra.mxu1 %v17933_v45 }
0x1555   : > { %12361 = vmatprep.subr.bf16.mxu1 %v17940_v6 }
0x1558   : > { %12362 = vmatpush3.bf16.msra.mxu1 %v17948_v62 }
0x1559   : > { %13184 = vmatprep.subr.bf16.mxu1 %v5731_v34 }
0x155b   : > { %5661 = vmatmul.mubr.bf16.vlgmr.msra.gmra.mrb[4].mxu1 %v5582_v41  ;;  %v20940_v41 = vld [vmem:[#allocation14_spill] sm:$0xff] }
0x155c   : > { %13185 = vmatpush3.bf16.msra.mxu1 %v5731_v34  ;;  %13198 = vmatprep.mubr.msk.bf16.mxu1 %vm2122_vm0, %v17957_v27  ;;  %v17978_v34 = vld [vmem:[%s20487_s7 + $0x40] sm:$0xff]  }
0x155d   : > { %13186 = vmatprep.subr.bf16.mxu1 %v20937_v16  ;;  %20943 = vst [vmem:[#allocation8_spill] sm:$0xff] %v17978_v34 }
0x1560   : > { %13187 = vmatpush3.bf16.msra.mxu1 %v20937_v16  ;;  %v17984_v16 = vld [vmem:[%s20483_s3 + $0x8] sm:$0xff]  }
0x1561   : > { %13188 = vmatprep.subr.bf16.mxu1 %v20938_v43  ;;  %20944 = vst [vmem:[#allocation50_spill] sm:$0xff] %v17984_v16 }
0x1564   : > { %13189 = vmatpush3.bf16.msra.mxu1 %v20938_v43  ;;  %v17991_v43 = vld [vmem:[%s20483_s3 + $0x10] sm:$0xff]  }
0x1565   : > { %13190 = vmatprep.subr.bf16.mxu1 %v20939_v56  ;;  %20945 = vst [vmem:[#allocation51_spill] sm:$0xff] %v17991_v43 }
0x1568   : > { %13191 = vmatpush3.bf16.msra.mxu1 %v20939_v56  ;;  %v17998_v56 = vld [vmem:[%s20487_s7] sm:$0xff]  }
0x1569   : > { %13192 = vmatprep.subr.bf16.mxu1 %v20940_v41  ;;  %20946 = vst [vmem:[#allocation52_spill] sm:$0xff] %v17998_v56 }
0x156c   : > { %13193 = vmatpush3.bf16.msra.mxu1 %v20940_v41  ;;  %v18004_v41 = vld [vmem:[%s20487_s7 + $0x48] sm:$0xff]  }
0x156d   : > { %13194 = vmatprep.subr.bf16.mxu1 %v20941_v38  ;;  %20947 = vst [vmem:[#allocation53_spill] sm:$0xff] %v18004_v41 }
0x1570   : > { %13195 = vmatpush3.bf16.msra.mxu1 %v20941_v38  ;;  %v18010_v38 = vld [vmem:[%s20487_s7 + $0x8] sm:$0xff]  }
0x1571   : > { %13457 = vmatprep.subr.msk.bf16.mxu1 %vm2171_vm1, %v20942_v32  ;;  %20948 = vst [vmem:[#allocation54_spill] sm:$0xff] %v18010_v38  ;;  %v18016_v32 = vld [vmem:[%s20487_s7 + $0x50] sm:$0xff]  }
0x1572   : > { %20949 = vst [vmem:[#allocation55_spill] sm:$0xff] %v18016_v32 }
0x1574   : > { %13197 = vmatpush3.bf16.msra.mxu1 %v5749_v44  ;;  %v18022_v44 = vld [vmem:[%s20483_s3 + $0x18] sm:$0xff]  }
0x1575   : > { %12447 = vmatprep.subr.bf16.mxu1 %v17978_v34  ;;  %20950 = vst [vmem:[#allocation56_spill] sm:$0xff] %v18022_v44 }
0x1577   : > { %13199 = vmatmul.mubr.msk.bf16.vlgmr.msra.gmra.mrb[8].mxu1 %vm2122_vm0, %v17984_v16 }
0x1578   : > { %13202 = vmatprep.mubr.msk.bf16.mxu1 %vm2122_vm0, %v17991_v43  ;;  %12448 = vmatpush3.bf16.msra.mxu1 %v17998_v56 }
0x1579   : > { %12449 = vmatprep.subr.bf16.mxu1 %v18004_v41  ;;  %v18029_v41 = vld [vmem:[%s20483_s3 + $0x20] sm:$0xff]  }
0x157a   : > { %20951 = vst [vmem:[#allocation57_spill] sm:$0xff] %v18029_v41 }
0x157c   : > { %12450 = vmatpush3.bf16.msra.mxu1 %v18010_v38  ;;  %v18042_v38 = vld [vmem:[%s20487_s7 + $0x58] sm:$0xff]  }
0x157d   : > { %12451 = vmatprep.subr.bf16.mxu1 %v18016_v32  ;;  %v18036_v32 = vld [vmem:[%s20487_s7 + $0x10] sm:$0xff]   ;;  %20953 = vst [vmem:[#allocation59_spill] sm:$0xff] %v18042_v38 }
0x157e   : > { %20952 = vst [vmem:[#allocation58_spill] sm:$0xff] %v18036_v32 }
0x157f   : > { %13203 = vmatmul.mubr.msk.bf16.gmra.mrb[12].mxu1 %vm2122_vm0, %v18022_v44  ;;  %v18048_v44 = vld [vmem:[%s20487_s7 + $0x18] sm:$0xff]  }
0x1580   : > { %13206 = vmatprep.mubr.msk.bf16.mxu1 %vm2122_vm0, %v18029_v41  ;;  %12452 = vmatpush3.bf16.msra.mxu1 %v18036_v32  ;;  %20954 = vst [vmem:[#allocation60_spill] sm:$0xff] %v18048_v44  ;;  %v18054_v41 = vld [vmem:[%s20487_s7 + $0x60] sm:$0xff]   ;;  %v18060_v32 = vld [vmem:[%s20483_s3 + $0x28] sm:$0xff]  }
0x1581   : > { %12453 = vmatprep.subr.bf16.mxu1 %v18042_v38  ;;  %20955 = vst [vmem:[#allocation61_spill] sm:$0xff] %v18054_v41  ;;  %20956 = vst [vmem:[#allocation62_spill] sm:$0xff] %v18060_v32  ;;  %v18067_v38 = vld [vmem:[%s20483_s3 + $0x30] sm:$0xff]  }
0x1582   : > { %20957 = vst [vmem:[#allocation63_spill] sm:$0xff] %v18067_v38 }
0x1584   : > { %12454 = vmatpush3.bf16.msra.mxu1 %v18048_v44  ;;  %v18080_v44 = vld [vmem:[%s20487_s7 + $0x68] sm:$0xff]  }
0x1585   : > { %12455 = vmatprep.subr.bf16.mxu1 %v18054_v41  ;;  %v18074_v41 = vld [vmem:[%s20487_s7 + $0x20] sm:$0xff]   ;;  %20959 = vst [vmem:[#allocation65_spill] sm:$0xff] %v18080_v44 }
0x1586   : > { %20958 = vst [vmem:[#allocation64_spill] sm:$0xff] %v18074_v41 }
0x1587   : > { %13207 = vmatmul.mubr.msk.bf16.gmra.mrb[16].mxu1 %vm2122_vm0, %v18060_v32  ;;  %v18086_v32 = vld [vmem:[%s20487_s7 + $0x28] sm:$0xff]  }
0x1588   : > { %13210 = vmatprep.mubr.msk.bf16.mxu1 %vm2122_vm0, %v18067_v38  ;;  %12456 = vmatpush3.bf16.msra.mxu1 %v18074_v41  ;;  %20960 = vst [vmem:[#allocation66_spill] sm:$0xff] %v18086_v32  ;;  %v18092_v38 = vld [vmem:[%s20487_s7 + $0x70] sm:$0xff]   ;;  %v18098_v41 = vld [vmem:[%s20483_s3 + $0x38] sm:$0xff]  }
0x1589   : > { %12457 = vmatprep.subr.bf16.mxu1 %v18080_v44  ;;  %20961 = vst [vmem:[#allocation67_spill] sm:$0xff] %v18092_v38  ;;  %20962 = vst [vmem:[#allocation68_spill] sm:$0xff] %v18098_v41  ;;  %v18105_v44 = vld [vmem:[%s20483_s3 + $0x40] sm:$0xff]  }
0x158a   : > { %20963 = vst [vmem:[#allocation69_spill] sm:$0xff] %v18105_v44 }
0x158c   : > { %12458 = vmatpush3.bf16.msra.mxu1 %v18086_v32  ;;  %v18118_v32 = vld [vmem:[%s20487_s7 + $0x78] sm:$0xff]  }
0x158d   : > { %12459 = vmatprep.subr.bf16.mxu1 %v18092_v38  ;;  %v18112_v38 = vld [vmem:[%s20487_s7 + $0x30] sm:$0xff]   ;;  %20965 = vst [vmem:[#allocation71_spill] sm:$0xff] %v18118_v32 }
0x158e   : > { %20964 = vst [vmem:[#allocation70_spill] sm:$0xff] %v18112_v38 }
0x158f   : > { %13211 = vmatmul.mubr.msk.bf16.gmra.mrb[20].mxu1 %vm2122_vm0, %v18098_v41  ;;  %v18124_v41 = vld [vmem:[%s20487_s7 + $0x38] sm:$0xff]  }
0x1590   : > { %13214 = vmatprep.mubr.msk.bf16.mxu1 %vm2122_vm0, %v18105_v44  ;;  %12460 = vmatpush3.bf16.msra.mxu1 %v18112_v38  ;;  %20966 = vst [vmem:[#allocation72_spill] sm:$0xff] %v18124_v41  ;;  %v18131_v38 = vld [vmem:[%s20483_s3 + $0x48] sm:$0xff]  }
0x1591   : > { %12461 = vmatprep.subr.bf16.mxu1 %v18118_v32  ;;  %20967 = vst [vmem:[#allocation73_spill] sm:$0xff] %v18131_v38  ;;  %v18138_v32 = vld [vmem:[%s20483_s3 + $0x50] sm:$0xff]  }
0x1592   : > { %20968 = vst [vmem:[#allocation74_spill] sm:$0xff] %v18138_v32 }
0x1594   : > { %12462 = vmatpush3.bf16.msra.mxu1 %v18124_v41  ;;  %v18145_v41 = vld [vmem:[%s20483_s3 + $0x58] sm:$0xff]  }
0x1595   : > { %13252 = vmatprep.subr.bf16.mxu1 %v20701_v20  ;;  %20969 = vst [vmem:[#allocation75_spill] sm:$0xff] %v18145_v41 }
0x1597   : > { %13215 = vmatmul.mubr.msk.bf16.gmra.mrb[24].mxu1 %vm2122_vm0, %v18131_v38  ;;  %v18152_v38 = vld [vmem:[%s20483_s3 + $0x60] sm:$0xff]  }
0x1598   : > { %13218 = vmatprep.mubr.msk.bf16.mxu1 %vm2122_vm0, %v18138_v32  ;;  %20970 = vst [vmem:[#allocation76_spill] sm:$0xff] %v18152_v38  ;;  %v18159_v32 = vld [vmem:[%s20483_s3 + $0x68] sm:$0xff]  }
0x1599   : > { %20971 = vst [vmem:[#allocation77_spill] sm:$0xff] %v18159_v32 }
0x159f   : > { %13219 = vmatmul.mubr.msk.bf16.gmra.mrb[28].mxu1 %vm2122_vm0, %v18145_v41  ;;  %v18166_v41 = vld [vmem:[%s20483_s3 + $0x70] sm:$0xff]  }
0x15a0   : > { %13222 = vmatprep.mubr.msk.bf16.mxu1 %vm2122_vm0, %v18152_v38  ;;  %20972 = vst [vmem:[#allocation78_spill] sm:$0xff] %v18166_v41  ;;  %v18173_v38 = vld [vmem:[%s20483_s3 + $0x78] sm:$0xff]  }
0x15a1   : > { %20973 = vst [vmem:[#allocation79_spill] sm:$0xff] %v18173_v38 }
0x15a7   : > { %13223 = vmatmul.mubr.msk.bf16.gmra.mrb[32].mxu1 %vm2122_vm0, %v18159_v32 }
0x15a8   : > { %13226 = vmatprep.mubr.msk.bf16.mxu1 %vm2122_vm0, %v18166_v41  ;;  %v18180_v41 = vld [vmem:[%s20488_s8] ss:$0 sm:$0xff] }
0x15a9   : > { %20974 = vst [vmem:[#allocation80_spill] sm:$0xff] %v18180_v41 }
0x15ab   : > { %v5702_v44 = vpop.f32.mrb[44].mxu0 }
0x15ac   : > { %v13182_v56 = vpop.f32.mrb[45].mxu0 }
0x15ad   : > { %v5705_v43 = vpop.f32.mrb[46].mxu0 }
0x15ae   : > { %v13183_v32 = vpop.f32.mrb[47].mxu0 }
0x15af   : > { %13227 = vmatmul.mubr.msk.bf16.gmra.mrb[36].mxu1 %vm2122_vm0, %v18173_v38 }
0x160e   : > { %v12341_v16 = vpop.f32.mrb[0].mxu1 }
0x160f   : > { %v12342_v34 = vpop.f32.mrb[1].mxu1 }
0x1610   : > { %v12343_v46 = vadd.f32 %v12342_v34, %v12341_v16  ;;  %v12344_v48 = vpop.f32.mrb[2].mxu1 }
0x1611   : > { %v12345_v35 = vpop.f32.mrb[3].mxu1 }
0x1612   : > { %v5623_v25 = vadd.f32 %v18180_v41, %v12343_v46 }
0x162e   : > { %v12363_v3 = vpop.f32.mrb[4].mxu1 }
0x162f   : > { %v12364_v51 = vpop.f32.mrb[5].mxu1 }
0x1630   : > { %v12365_v4 = vadd.f32 %v12364_v51, %v12363_v3  ;;  %v12366_v38 = vpop.f32.mrb[6].mxu1 }
0x1631   : > { %v12367_v28 = vpop.f32.mrb[7].mxu1 }
0x1632   : > { %v5663_v56 = vadd.f32 %v12365_v4, %v5623_v25 }
0x1634   : > { %v18183_v43 = vadd.f32 %v5702_v44, %v5663_v56 }
0x1636   : > { %20975 = vst [vmem:[#allocation81_spill] sm:$0xff] %v18183_v43 }
0x164a   : > { %v13200_v32 = vpop.f32.mrb[8].mxu1 }
0x164b   : > { %v18185_v63 = vpop.f32.mrb[9].mxu1 }
0x164c   : > { %v13201_v48 = vpop.f32.mrb[10].mxu1 }
0x164d   : > { %v13825_v35 = vpack.i.bf16 %v13201_v48, %v13200_v32  ;;  %v5788_v34 = vpop.f32.mrb[11].mxu1 }
0x164f   : > { %13826 = vrot.lane.b32.xlu1 %v13825_v35, %s15071_s26 }
0x1652   : > { %v13204_v16 = vpop.f32.mrb[12].mxu1 }
0x1653   : > { %v5801_v22 = vpop.f32.mrb[13].mxu1 }
0x1654   : > { %v13205_v31 = vpop.f32.mrb[14].mxu1 }
0x1655   : > { %v13850_v18 = vpack.i.bf16 %v13205_v31, %v13204_v16  ;;  %v5804_v50 = vpop.f32.mrb[15].mxu1 }
0x1656   : > { %v13830_v46 = vpack.i.bf16 %v5804_v50, %v5801_v22 }
0x1658   : > { %13831 = vrot.lane.b32.xlu1 %v13830_v46, %s15072_s16 }
0x165a   : > { %v13208_v28 = vpop.f32.mrb[16].mxu1 }
0x165b   : > { %v18189_v4 = vpop.f32.mrb[17].mxu1 }
0x165c   : > { %13851 = vrot.lane.b32.xlu1 %v13850_v18, %s15073_s17  ;;  %v13209_v25 = vpop.f32.mrb[18].mxu1 }
0x165d   : > { %v13835_v51 = vpack.i.bf16 %v13209_v25, %v13208_v28  ;;  %v18192_v3 = vpop.f32.mrb[19].mxu1 }
0x165f   : > { %13836 = vrot.lane.b32.xlu0 %v13835_v51, %s15071_s26 }
0x1662   : > { %v13212_v38 = vpop.f32.mrb[20].mxu1 }
0x1663   : > { %v5833_v44 = vpop.f32.mrb[21].mxu1 }
0x1664   : > { %v13213_v56 = vpop.f32.mrb[22].mxu1 }
0x1665   : > { %v13845_v32 = vpack.i.bf16 %v13213_v56, %v13212_v38  ;;  %v5836_v31 = vpop.f32.mrb[23].mxu1 }
0x1666   : > { %v13840_v48 = vpack.i.bf16 %v5836_v31, %v5833_v44 }
0x1668   : > { %13841 = vrot.lane.b32.xlu0 %v13840_v48, %s15072_s16 }
0x166a   : > { %v13216_v50 = vpop.f32.mrb[24].mxu1 }
0x166b   : > { %v18196_v22 = vpop.f32.mrb[25].mxu1 }
0x166c   : > { %13846 = vrot.lane.b32.xlu0 %v13845_v32, %s15073_s17  ;;  %v13217_v18 = vpop.f32.mrb[26].mxu1 }
0x166d   : > { %v13855_v35 = vpack.i.bf16 %v13217_v18, %v13216_v50  ;;  %v18199_v16 = vpop.f32.mrb[27].mxu1 }
0x166f   : > { %13856 = vrot.lane.b32.xlu1 %v13855_v35, %s15071_s26 }
0x1672   : > { %v13220_v46 = vpop.f32.mrb[28].mxu1 }
0x1673   : > { %v5865_v28 = vpop.f32.mrb[29].mxu1 }
0x1674   : > { %v13221_v25 = vpop.f32.mrb[30].mxu1 }
0x1675   : > { %v13880_v51 = vpack.i.bf16 %v13221_v25, %v13220_v46  ;;  %v5868_v38 = vpop.f32.mrb[31].mxu1 }
0x1676   : > { %v13860_v56 = vpack.i.bf16 %v5868_v38, %v5865_v28 }
0x1678   : > { %13861 = vrot.lane.b32.xlu1 %v13860_v56, %s15072_s16 }
0x167a   : > { %v13224_v44 = vpop.f32.mrb[32].mxu1 }
0x167b   : > { %v18203_v31 = vpop.f32.mrb[33].mxu1 }
0x167c   : > { %13881 = vrot.lane.b32.xlu1 %v13880_v51, %s15073_s17  ;;  %v13225_v32 = vpop.f32.mrb[34].mxu1 }
0x167d   : > { %v13865_v48 = vpack.i.bf16 %v13225_v32, %v13224_v44  ;;  %v18206_v50 = vpop.f32.mrb[35].mxu1 }
0x167f   : > { %13866 = vrot.lane.b32.xlu0 %v13865_v48, %s15071_s26 }
0x1682   : > { %v13228_v18 = vpop.f32.mrb[36].mxu1 }
0x1683   : > { %v5897_v35 = vpop.f32.mrb[37].mxu1 }
0x1684   : > { %v13229_v43 = vpop.f32.mrb[38].mxu1 }
0x1685   : > { %v13875_v41 = vpack.i.bf16 %v13229_v43, %v13228_v18  ;;  %v5900_v46 = vpop.f32.mrb[39].mxu1 }
0x1686   : > { %v13870_v25 = vpack.i.bf16 %v5900_v46, %v5897_v35 }
0x1688   : > { %13871 = vrot.lane.b32.xlu0 %v13870_v25, %s15072_s16 }
0x168c   : > { %13876 = vrot.lane.b32.xlu0 %v13875_v41, %s15073_s17 }
0x16c1   : > { %v13827_v28 = vpop.permute.xlu1 %13826 }
0x16c2   : > { %v13829_v56 = vunpack.i.h.bf16 %v13827_v28  ;;  %v13828_v51 = vunpack.i.l.bf16 %v13827_v28 }
0x16c4   : > { %v6008_v48 = vsel %vm2432_vm2, %v18185_v63, %v13828_v51  ;;  %v6009_v0 = vsel %vm2432_vm2, %v5788_v34, %v13829_v56 }
0x16ca   : > { %v13832_v38 = vpop.permute.xlu1 %13831 }
0x16cb   : > { %v13834_v27 = vunpack.i.h.bf16 %v13832_v38  ;;  %v13833_v44 = vunpack.i.l.bf16 %v13832_v38 }
0x16cd   : > { %v6011_v18 = vsel %vm2435_vm3, %v6009_v0, %v13834_v27  ;;  %v6010_v35 = vsel %vm2435_vm3, %v6008_v48, %v13833_v44 }
0x16ce   : > { %v13852_v32 = vpop.permute.xlu1 %13851 }
0x16cf   : > { %v13854_v58 = vunpack.i.h.bf16 %v13852_v32  ;;  %v13853_v43 = vunpack.i.l.bf16 %v13852_v32 }
0x16d1   : > { %v6012_v41 = vsel %vm2438_vm4, %v6010_v35, %v13853_v43  ;;  %v6013_v46 = vsel %vm2438_vm4, %v6011_v18, %v13854_v58  ;;  %v13837_v28 = vpop.permute.xlu0 %13836 }
0x16d2   : > { %v6032_v25 = vpack.c.bf16 %v6013_v46, %v6012_v41  ;;  %v13839_v38 = vunpack.i.h.bf16 %v13837_v28  ;;  %v13838_v1 = vunpack.i.l.bf16 %v13837_v28 }
0x16d4   : > { %v6014_v34 = vsel %vm2432_vm2, %v18189_v4, %v13838_v1  ;;  %v6015_v0 = vsel %vm2432_vm2, %v18192_v3, %v13839_v38 }
0x16da   : > { %v13842_v61 = vpop.permute.xlu0 %13841 }
0x16db   : > { %v13844_v11 = vunpack.i.h.bf16 %v13842_v61  ;;  %v13843_v9 = vunpack.i.l.bf16 %v13842_v61 }
0x16dd   : > { %v6017_v51 = vsel %vm2435_vm3, %v6015_v0, %v13844_v11  ;;  %v6016_v58 = vsel %vm2435_vm3, %v6014_v34, %v13843_v9 }
0x16de   : > { %v13847_v63 = vpop.permute.xlu0 %13846 }
0x16df   : > { %v13849_v27 = vunpack.i.h.bf16 %v13847_v63  ;;  %v13848_v56 = vunpack.i.l.bf16 %v13847_v63 }
0x16e1   : > { %v6018_v44 = vsel %vm2438_vm4, %v6016_v58, %v13848_v56  ;;  %v6019_v32 = vsel %vm2438_vm4, %v6017_v51, %v13849_v27  ;;  %v13857_v61 = vpop.permute.xlu1 %13856 }
0x16e2   : > { %v6033_v48 = vpack.c.bf16 %v6019_v32, %v6018_v44  ;;  %v13859_v4 = vunpack.i.h.bf16 %v13857_v61  ;;  %v13858_v3 = vunpack.i.l.bf16 %v13857_v61 }
0x16e4   : > { %6068 = vmatprep.mubr.bf16.mxu0 %v6033_v48  ;;  %v6020_v18 = vsel %vm2432_vm2, %v18196_v22, %v13858_v3 }
0x16e5   : > { %6069 = vmatmul.mubr.bf16.vlgmr.msra.gmra.mrb[48].mxu0 %v6032_v25 }
0x16e6   : > { %12420 = vmatpush3.bf16.msra.mxu0 %v17559_v14  ;;  %v6021_v14 = vsel %vm2432_vm2, %v18199_v16, %v13859_v4 }
0x16e7   : > { %12421 = vmatprep.subr.bf16.mxu0 %v17565_v36 }
0x16ea   : > { %v13862_v1 = vpop.permute.xlu1 %13861  ;;  %12422 = vmatpush3.bf16.msra.mxu0 %v17571_v24 }
0x16eb   : > { %12423 = vmatprep.subr.bf16.mxu0 %v17577_v39  ;;  %v13864_v9 = vunpack.i.h.bf16 %v13862_v1  ;;  %v13863_v11 = vunpack.i.l.bf16 %v13862_v1 }
0x16ed   : > { %v6023_v24 = vsel %vm2435_vm3, %v6021_v14, %v13864_v9  ;;  %v6022_v41 = vsel %vm2435_vm3, %v6020_v18, %v13863_v11  ;;  %v18265_v14 = vld [vmem:[%s20487_s7 + $0xc0] sm:$0xff]  }
0x16ee   : > { %v13882_v43 = vpop.permute.xlu1 %13881  ;;  %12424 = vmatpush3.bf16.msra.mxu0 %v17583_v10 }
0x16ef   : > { %v13884_v35 = vunpack.i.h.bf16 %v13882_v43  ;;  %v13883_v36 = vunpack.i.l.bf16 %v13882_v43  ;;  %12425 = vmatprep.subr.bf16.mxu0 %v17593_v33 }
0x16f1   : > { %v6024_v39 = vsel %vm2438_vm4, %v6022_v41, %v13883_v36  ;;  %v6025_v46 = vsel %vm2438_vm4, %v6023_v24, %v13884_v35  ;;  %v13867_v10 = vpop.permute.xlu0 %13866 }
0x16f2   : > { %v6034_v25 = vpack.c.bf16 %v6025_v46, %v6024_v39  ;;  %12426 = vmatpush3.bf16.msra.mxu0 %v17603_v19  ;;  %v13869_v33 = vunpack.i.h.bf16 %v13867_v10  ;;  %v13868_v16 = vunpack.i.l.bf16 %v13867_v10 }
0x16f3   : > { %12427 = vmatprep.subr.bf16.mxu0 %v17609_v53 }
0x16f4   : > { %v6026_v19 = vsel %vm2432_vm2, %v18203_v31, %v13868_v16  ;;  %v6027_v53 = vsel %vm2432_vm2, %v18206_v50, %v13869_v33 }
0x16f6   : > { %12428 = vmatpush3.bf16.msra.mxu0 %v17615_v23 }
0x16f7   : > { %12429 = vmatprep.subr.bf16.mxu0 %v17621_v29 }
0x16fa   : > { %v13872_v22 = vpop.permute.xlu0 %13871  ;;  %12430 = vmatpush3.bf16.msra.mxu0 %v17627_v8 }
0x16fb   : > { %12431 = vmatprep.subr.bf16.mxu0 %v17633_v7  ;;  %v13874_v28 = vunpack.i.h.bf16 %v13872_v22  ;;  %v13873_v38 = vunpack.i.l.bf16 %v13872_v22 }
0x16fd   : > { %v6029_v8 = vsel %vm2435_vm3, %v6027_v53, %v13874_v28  ;;  %v6028_v34 = vsel %vm2435_vm3, %v6026_v19, %v13873_v38  ;;  %v20978_v28 = vld [vmem:[#allocation19_spill] sm:$0xff]  ;;  %v20979_v38 = vld [vmem:[#allocation34_spill] sm:$0xff] }
0x16fe   : > { %v13877_v63 = vpop.permute.xlu0 %13876  ;;  %12432 = vmatpush3.bf16.msra.mxu0 %v17639_v55 }
0x16ff   : > { %v13879_v23 = vunpack.i.h.bf16 %v13877_v63  ;;  %v13878_v29 = vunpack.i.l.bf16 %v13877_v63  ;;  %12433 = vmatprep.subr.bf16.mxu0 %v17649_v40  ;;  %v20980_v63 = vld [vmem:[#allocation35_spill] sm:$0xff] }
0x1701   : > { %v6030_v7 = vsel %vm2438_vm4, %v6028_v34, %v13878_v29  ;;  %v6031_v0 = vsel %vm2438_vm4, %v6029_v8, %v13879_v23 }
0x1702   : > { %12434 = vmatpush3.bf16.msra.mxu0 %v17659_v15  ;;  %v6035_v55 = vpack.c.bf16 %v6031_v0, %v6030_v7  ;;  %v20981_v0 = vld [vmem:[#allocation36_spill] sm:$0xff] }
0x1703   : > { %13230 = vmatprep.subr.bf16.mxu0 %v20701_v20 }
0x1704   : > { %6109 = vmatprep.mubr.bf16.mxu0 %v6035_v55 }
0x1705   : > { %6110 = vmatmul.mubr.bf16.vlgmr.msra.gmra.mrb[52].mxu0 %v6034_v25 }
0x1706   : > { %13232 = vmatprep.mubr.msk.bf16.mxu0 %vm15075_vm5, %v20701_v20 }
0x17b8   : > { %v12413_v31 = vpop.f32.mrb[48].mxu0 }
0x17b9   : > { %v12414_v40 = vpop.f32.mrb[49].mxu0 }
0x17ba   : > { %v12415_v50 = vadd.f32 %v12414_v40, %v12413_v31  ;;  %v12416_v27 = vpop.f32.mrb[50].mxu0  ;;  %v20982_v31 = vld [vmem:[#allocation22_spill] sm:$0xff]  ;;  %v20983_v40 = vld [vmem:[#allocation49_spill] sm:$0xff] }
0x17bb   : > { %v12417_v56 = vpop.f32.mrb[51].mxu0 }
0x17bc   : > { %v12418_v51 = vadd.f32 %v12417_v56, %v12416_v27  ;;  %v6071_v32 = vadd.f32 %v17668_v13, %v12415_v50  ;;  %v20984_v50 = vld [vmem:[#allocation16_spill] sm:$0xff]  ;;  %v20985_v27 = vld [vmem:[#allocation3_spill] sm:$0xff] }
0x17bd   : > { %v20986_v56 = vld [vmem:[#allocation39_spill] sm:$0xff] }
0x17be   : > { %v6074_v1 = vadd.f32 %v17668_v13, %v12418_v51  ;;  %v20976_v13 = vld [vmem:[#allocation37_spill] sm:$0xff]  ;;  %v20987_v51 = vld [vmem:[#allocation23_spill] sm:$0xff] }
0x17d8   : > { %v12435_v58 = vpop.f32.mrb[52].mxu0 }
0x17d9   : > { %v12436_v44 = vpop.f32.mrb[53].mxu0 }
0x17da   : > { %v12437_v48 = vadd.f32 %v12436_v44, %v12435_v58  ;;  %v12438_v15 = vpop.f32.mrb[54].mxu0  ;;  %v20988_v58 = vld [vmem:[#allocation4_spill] sm:$0xff] }
0x17db   : > { %v12439_v61 = vpop.f32.mrb[55].mxu0  ;;  %v20989_v44 = vld [vmem:[#allocation40_spill] sm:$0xff] }
0x17dc   : > { %v6112_v4 = vadd.f32 %v12437_v48, %v6071_v32  ;;  %v12440_v3 = vadd.f32 %v12439_v61, %v12438_v15  ;;  %v20990_v32 = vld [vmem:[#allocation24_spill] sm:$0xff]  ;;  %v20991_v48 = vld [vmem:[#allocation41_spill] sm:$0xff] }
0x17dd   : > { %v20992_v15 = vld [vmem:[#allocation5_spill] sm:$0xff] }
0x17de   : > { %v6115_v9 = vadd.f32 %v12440_v3, %v6074_v1  ;;  %v6118_v11 = vmax.f32 %v6112_v4, 0.0  ;;  %v20993_v61 = vld [vmem:[#allocation25_spill] sm:$0xff]  ;;  %v20994_v1 = vld [vmem:[#allocation42_spill] sm:$0xff]  ;;  %v20995_v4 = vld [vmem:[#allocation43_spill] sm:$0xff] }
0x17df   : > { %v20996_v3 = vld [vmem:[#allocation17_spill] sm:$0xff] }
0x17e0   : > { %v6119_v43 = vmax.f32 %v6115_v9, 0.0  ;;  %v20997_v9 = vld [vmem:[#allocation6_spill] sm:$0xff] }
0x17e2   : > { %v6120_v18 = vpack.c.bf16 %v6119_v43, %v6118_v11  ;;  %v20998_v11 = vld [vmem:[#allocation44_spill] sm:$0xff]  ;;  %v20999_v43 = vld [vmem:[#allocation26_spill] sm:$0xff] }
0x17e4   : > { %13231 = vmatpush3.bf16.msra.mxu0 %v6120_v18  ;;  %v21000_v18 = vld [vmem:[#allocation45_spill] sm:$0xff] }
0x17e5   : > { %12469 = vmatprep.subr.bf16.mxu0 %v18265_v14 }
0x17e7   : > { %13233 = vmatmul.mubr.msk.bf16.vlgmr.msra.gmra.mrb[56].mxu0 %vm2769_vm6, %v17676_v52  ;;  %v20977_v52 = vld [vmem:[#allocation20_spill] sm:$0xff] }
0x17e8   : > { %13236 = vmatprep.mubr.msk.bf16.mxu0 %vm15075_vm5, %v20701_v20  ;;  %12470 = vmatpush3.bf16.msra.mxu0 %v17859_v12 }
0x17e9   : > { %12471 = vmatprep.subr.bf16.mxu0 %v17865_v17 }
0x17ec   : > { %12472 = vmatpush3.bf16.msra.mxu0 %v17871_v57 }
0x17ed   : > { %12473 = vmatprep.subr.bf16.mxu0 %v17877_v30 }
0x17ef   : > { %13237 = vmatmul.mubr.msk.bf16.gmra.mrb[60].mxu0 %vm2769_vm6, %v17699_v26 }
0x17f0   : > { %13240 = vmatprep.mubr.msk.bf16.mxu0 %vm15075_vm5, %v20701_v20  ;;  %12474 = vmatpush3.bf16.msra.mxu0 %v17883_v37 }
0x17f1   : > { %12475 = vmatprep.subr.bf16.mxu0 %v17889_v2 }
0x17f4   : > { %12476 = vmatpush3.bf16.msra.mxu0 %v17897_v5 }
0x17f5   : > { %12477 = vmatprep.subr.bf16.mxu0 %v17903_v54 }
0x17f7   : > { %13241 = vmatmul.mubr.msk.bf16.gmra.mrb[64].mxu0 %vm2769_vm6, %v17727_v47 }
0x17f8   : > { %13244 = vmatprep.mubr.msk.bf16.mxu0 %vm15075_vm5, %v20701_v20  ;;  %12478 = vmatpush3.bf16.msra.mxu0 %v17909_v49 }
0x17f9   : > { %12479 = vmatprep.subr.bf16.mxu0 %v17915_v21 }
0x17fc   : > { %12480 = vmatpush3.bf16.msra.mxu0 %v17921_v60 }
0x17fd   : > { %12481 = vmatprep.subr.bf16.mxu0 %v17927_v59 }
0x17ff   : > { %13245 = vmatmul.mubr.msk.bf16.gmra.mrb[68].mxu0 %vm2769_vm6, %v17736_v42 }
0x1800   : > { %13248 = vmatprep.mubr.msk.bf16.mxu0 %vm15075_vm5, %v20701_v20  ;;  %12482 = vmatpush3.bf16.msra.mxu0 %v17933_v45 }
0x1801   : > { %12483 = vmatprep.subr.bf16.mxu0 %v17940_v6 }
0x1804   : > { %12484 = vmatpush3.bf16.msra.mxu0 %v17948_v62 }
0x1805   : > { %12519 = vmatprep.subr.bf16.mxu0 %v20976_v13  ;;  %v21001_v13 = vld [vmem:[#allocation7_spill] sm:$0xff] }
0x1807   : > { %13249 = vmatmul.mubr.msk.bf16.gmra.mrb[72].mxu0 %vm2769_vm6, %v20977_v52  ;;  %v6356_v52 = vsel %vm2171_vm1, %v20999_v43, 0 }
0x18ba   : > { %v6155_v26 = vpop.f32.mrb[56].mxu0 }
0x18bb   : > { %v13234_v47 = vpop.f32.mrb[57].mxu0 }
0x18bc   : > { %v6158_v12 = vpop.f32.mrb[58].mxu0  ;;  %v21003_v47 = vld [vmem:[#allocation8_spill] sm:$0xff] }
0x18bd   : > { %v13235_v17 = vpop.f32.mrb[59].mxu0 }
0x18be   : > { %v21005_v17 = vld [vmem:[#allocation50_spill] sm:$0xff] }
0x18c2   : > { %v6163_v57 = vpop.f32.mrb[60].mxu0 }
0x18c3   : > { %v13238_v42 = vpop.f32.mrb[61].mxu0 }
0x18c4   : > { %v6166_v30 = vpop.f32.mrb[62].mxu0  ;;  %v21007_v42 = vld [vmem:[#allocation52_spill] sm:$0xff] }
0x18c5   : > { %v13885_v37 = vpack.i.bf16 %v6158_v12, %v6166_v30  ;;  %v13239_v2 = vpop.f32.mrb[63].mxu0  ;;  %v21004_v12 = vld [vmem:[#allocation47_spill] sm:$0xff]  ;;  %v21008_v30 = vld [vmem:[#allocation9_spill] sm:$0xff] }
0x18c6   : > { %v21010_v2 = vld [vmem:[#allocation48_spill] sm:$0xff] }
0x18c7   : > { %13886 = vrot.lane.b32.xlu0 %v13885_v37, %s15072_s16  ;;  %v21009_v37 = vld [vmem:[#allocation53_spill] sm:$0xff] }
0x18ca   : > { %v6171_v5 = vpop.f32.mrb[64].mxu0 }
0x18cb   : > { %v13242_v54 = vpop.f32.mrb[65].mxu0 }
0x18cc   : > { %v6174_v49 = vpop.f32.mrb[66].mxu0  ;;  %v21012_v54 = vld [vmem:[#allocation55_spill] sm:$0xff] }
0x18cd   : > { %v13243_v21 = vpop.f32.mrb[67].mxu0 }
0x18ce   : > { %v21014_v21 = vld [vmem:[#allocation57_spill] sm:$0xff] }
0x18d2   : > { %v6179_v60 = vpop.f32.mrb[68].mxu0 }
0x18d3   : > { %v13246_v59 = vpop.f32.mrb[69].mxu0 }
0x18d4   : > { %v6182_v45 = vpop.f32.mrb[70].mxu0  ;;  %v21016_v59 = vld [vmem:[#allocation59_spill] sm:$0xff] }
0x18d5   : > { %v13890_v6 = vpack.i.bf16 %v6174_v49, %v6182_v45  ;;  %v13247_v62 = vpop.f32.mrb[71].mxu0  ;;  %v21013_v49 = vld [vmem:[#allocation56_spill] sm:$0xff] }
0x18d6   : > { %v21017_v45 = vld [vmem:[#allocation60_spill] sm:$0xff]  ;;  %v21019_v62 = vld [vmem:[#allocation62_spill] sm:$0xff] }
0x18d7   : > { %13891 = vrot.lane.b32.xlu1 %v13890_v6, %s15072_s16  ;;  %v21018_v6 = vld [vmem:[#allocation61_spill] sm:$0xff] }
0x18da   : > { %v6187_v35 = vpop.f32.mrb[72].mxu0 }
0x18db   : > { %v13250_v36 = vpop.f32.mrb[73].mxu0  ;;  %v6217_v8 = vpack.c.bf16 %v6187_v35, %v6187_v35  ;;  %v21020_v35 = vld [vmem:[#allocation63_spill] sm:$0xff] }
0x18dc   : > { %v6190_v24 = vpop.f32.mrb[74].mxu0  ;;  %v21021_v36 = vld [vmem:[#allocation64_spill] sm:$0xff] }
0x18dd   : > { %v13251_v41 = vpop.f32.mrb[75].mxu0  ;;  %v21022_v24 = vld [vmem:[#allocation65_spill] sm:$0xff] }
0x18de   : > { %v21023_v41 = vld [vmem:[#allocation66_spill] sm:$0xff] }
0x1939   : > { %v13887_v39 = vpop.permute.xlu0 %13886 }
0x193a   : > { %v13889_v46 = vunpack.i.h.bf16 %v13887_v39  ;;  %v13888_v25 = vunpack.i.l.bf16 %v13887_v39  ;;  %v21024_v39 = vld [vmem:[#allocation67_spill] sm:$0xff] }
0x193c   : > { %v6209_v10 = vsel %vm2435_vm3, %v6155_v26, %v13889_v46  ;;  %v6210_v22 = vsel %vm2435_vm3, %v6163_v57, %v13888_v25  ;;  %v21002_v26 = vld [vmem:[#allocation46_spill] sm:$0xff]  ;;  %v21006_v57 = vld [vmem:[#allocation51_spill] sm:$0xff]  ;;  %v21025_v46 = vld [vmem:[#allocation68_spill] sm:$0xff] }
0x193d   : > { %v6213_v33 = vpack.c.bf16 %v6209_v10, %v6209_v10  ;;  %v6214_v16 = vpack.c.bf16 %v6210_v22, %v6210_v22  ;;  %v21026_v25 = vld [vmem:[#allocation69_spill] sm:$0xff]  ;;  %v21027_v10 = vld [vmem:[#allocation70_spill] sm:$0xff]  ;;  %v21028_v22 = vld [vmem:[#allocation71_spill] sm:$0xff] }
0x193f   : > { %6253 = vmatprep.mubr.bf16.mxu1 %v6214_v16  ;;  %v21030_v16 = vld [vmem:[#allocation73_spill] sm:$0xff] }
0x1940   : > { %6254 = vmatmul.mubr.bf16.vlgmr.msra.gmra.mrb[40].mxu1 %v6213_v33  ;;  %v21029_v33 = vld [vmem:[#allocation72_spill] sm:$0xff] }
0x1941   : > { %13253 = vmatpush3.bf16.msra.mxu1 %v20978_v28  ;;  %13260 = vmatprep.mubr.msk.bf16.mxu1 %vm15075_vm5, %v20701_v20  ;;  %v21031_v28 = vld [vmem:[#allocation74_spill] sm:$0xff] }
0x1942   : > { %13254 = vmatprep.subr.bf16.mxu1 %v20701_v20 }
0x1945   : > { %13255 = vmatpush3.bf16.msra.mxu1 %v20979_v38  ;;  %v21032_v38 = vld [vmem:[#allocation75_spill] sm:$0xff] }
0x1946   : > { %13256 = vmatprep.subr.bf16.mxu1 %v20701_v20 }
0x1949   : > { %13257 = vmatpush3.bf16.msra.mxu1 %v20980_v63  ;;  %v13892_v19 = vpop.permute.xlu1 %13891  ;;  %v21033_v63 = vld [vmem:[#allocation76_spill] sm:$0xff] }
0x194a   : > { %v13894_v53 = vunpack.i.h.bf16 %v13892_v19  ;;  %v13893_v23 = vunpack.i.l.bf16 %v13892_v19  ;;  %13258 = vmatprep.subr.bf16.mxu1 %v20701_v20  ;;  %v21034_v19 = vld [vmem:[#allocation77_spill] sm:$0xff] }
0x194c   : > { %v6211_v29 = vsel %vm2435_vm3, %v6171_v5, %v13894_v53  ;;  %v6212_v34 = vsel %vm2435_vm3, %v6179_v60, %v13893_v23  ;;  %v21011_v5 = vld [vmem:[#allocation54_spill] sm:$0xff]  ;;  %v21036_v23 = vld [vmem:[#allocation79_spill] sm:$0xff] }
0x194d   : > { %v6215_v7 = vpack.c.bf16 %v6211_v29, %v6211_v29  ;;  %13259 = vmatpush3.bf16.msra.mxu1 %v20981_v0  ;;  %v6216_v55 = vpack.c.bf16 %v6212_v34, %v6212_v34  ;;  %v21015_v60 = vld [vmem:[#allocation58_spill] sm:$0xff] }
0x194e   : > { %13264 = vmatprep.subr.bf16.mxu1 %v20982_v31  ;;  %v21035_v53 = vld [vmem:[#allocation78_spill] sm:$0xff] }
0x194f   : > { %6293 = vmatprep.mubr.bf16.mxu0 %v6216_v55 }
0x1950   : > { %13261 = vmatmul.mubr.msk.bf16.vlgmr.msra.gmra.mrb[44].mxu1 %vm2435_vm3, %v6217_v8  ;;  %6294 = vmatmul.mubr.bf16.vlgmr.msra.gmra.mrb[76].mxu0 %v6215_v7 }
0x1951   : > { %13265 = vmatpush3.bf16.msra.mxu1 %v20982_v31  ;;  %13278 = vmatprep.mubr.msk.bf16.mxu1 %vm2122_vm0, %v20983_v40 }
0x1952   : > { %13266 = vmatprep.subr.bf16.mxu1 %v20984_v50  ;;  %12520 = vmatpush3.bf16.msra.mxu0 %v20985_v27  ;;  %v21037_v27 = vld [vmem:[#allocation80_spill] sm:$0xff] }
0x1953   : > { %12521 = vmatprep.subr.bf16.mxu0 %v20986_v56 }
0x1955   : > { %13267 = vmatpush3.bf16.msra.mxu1 %v20984_v50 }
0x1956   : > { %13268 = vmatprep.subr.bf16.mxu1 %v20987_v51  ;;  %12522 = vmatpush3.bf16.msra.mxu0 %v20988_v58 }
0x1957   : > { %12523 = vmatprep.subr.bf16.mxu0 %v20989_v44 }
0x1959   : > { %13269 = vmatpush3.bf16.msra.mxu1 %v20987_v51 }
0x195a   : > { %13270 = vmatprep.subr.bf16.mxu1 %v20990_v32  ;;  %12524 = vmatpush3.bf16.msra.mxu0 %v20991_v48 }
0x195b   : > { %12525 = vmatprep.subr.bf16.mxu0 %v20992_v15 }
0x195d   : > { %13271 = vmatpush3.bf16.msra.mxu1 %v20990_v32 }
0x195e   : > { %13272 = vmatprep.subr.bf16.mxu1 %v20993_v61  ;;  %12526 = vmatpush3.bf16.msra.mxu0 %v20994_v1 }
0x195f   : > { %12527 = vmatprep.subr.bf16.mxu0 %v20995_v4 }
0x1961   : > { %13273 = vmatpush3.bf16.msra.mxu1 %v20993_v61 }
0x1962   : > { %13274 = vmatprep.subr.bf16.mxu1 %v20996_v3  ;;  %12528 = vmatpush3.bf16.msra.mxu0 %v20997_v9 }
0x1963   : > { %12529 = vmatprep.subr.bf16.mxu0 %v20998_v11 }
0x1965   : > { %13275 = vmatpush3.bf16.msra.mxu1 %v20996_v3 }
0x1966   : > { %13458 = vmatprep.subr.msk.bf16.mxu1 %vm2171_vm1, %v20999_v43  ;;  %12530 = vmatpush3.bf16.msra.mxu0 %v21000_v18 }
0x1967   : > { %12531 = vmatprep.subr.bf16.mxu0 %v21001_v13 }
0x1969   : > { %13277 = vmatpush3.bf16.msra.mxu1 %v6356_v52 }
0x196a   : > { %12532 = vmatpush3.bf16.msra.mxu0 %v21002_v26  ;;  %12569 = vmatprep.subr.bf16.mxu1 %v21003_v47 }
0x196b   : > { %12533 = vmatprep.subr.bf16.mxu0 %v21004_v12 }
0x196c   : > { %13279 = vmatmul.mubr.msk.bf16.vlgmr.msra.gmra.mrb[48].mxu1 %vm2122_vm0, %v21005_v17 }
0x196d   : > { %13282 = vmatprep.mubr.msk.bf16.mxu1 %vm2122_vm0, %v21006_v57  ;;  %12570 = vmatpush3.bf16.msra.mxu1 %v21007_v42 }
0x196e   : > { %12534 = vmatpush3.bf16.msra.mxu0 %v21008_v30  ;;  %12571 = vmatprep.subr.bf16.mxu1 %v21009_v37 }
0x196f   : > { %12541 = vmatprep.subr.bf16.mxu0 %v21010_v2 }
0x1971   : > { %12572 = vmatpush3.bf16.msra.mxu1 %v21011_v5 }
0x1972   : > { %12573 = vmatprep.subr.bf16.mxu1 %v21012_v54 }
0x1974   : > { %13283 = vmatmul.mubr.msk.bf16.gmra.mrb[52].mxu1 %vm2122_vm0, %v21013_v49 }
0x1975   : > { %13286 = vmatprep.mubr.msk.bf16.mxu1 %vm2122_vm0, %v21014_v21  ;;  %12574 = vmatpush3.bf16.msra.mxu1 %v21015_v60 }
0x1976   : > { %12575 = vmatprep.subr.bf16.mxu1 %v21016_v59 }
0x1979   : > { %12576 = vmatpush3.bf16.msra.mxu1 %v21017_v45 }
0x197a   : > { %12577 = vmatprep.subr.bf16.mxu1 %v21018_v6 }
0x197c   : > { %13287 = vmatmul.mubr.msk.bf16.gmra.mrb[56].mxu1 %vm2122_vm0, %v21019_v62 }
0x197d   : > { %13290 = vmatprep.mubr.msk.bf16.mxu1 %vm2122_vm0, %v21020_v35  ;;  %12578 = vmatpush3.bf16.msra.mxu1 %v21021_v36 }
0x197e   : > { %12579 = vmatprep.subr.bf16.mxu1 %v21022_v24 }
0x1981   : > { %12580 = vmatpush3.bf16.msra.mxu1 %v21023_v41 }
0x1982   : > { %12581 = vmatprep.subr.bf16.mxu1 %v21024_v39 }
0x1984   : > { %13291 = vmatmul.mubr.msk.bf16.gmra.mrb[60].mxu1 %vm2122_vm0, %v21025_v46 }
0x1985   : > { %13294 = vmatprep.mubr.msk.bf16.mxu1 %vm2122_vm0, %v21026_v25  ;;  %12582 = vmatpush3.bf16.msra.mxu1 %v21027_v10 }
0x1986   : > { %12583 = vmatprep.subr.bf16.mxu1 %v21028_v22 }
0x1989   : > { %12584 = vmatpush3.bf16.msra.mxu1 %v21029_v33 }
0x198a   : > { %13332 = vmatprep.subr.bf16.mxu1 %v20701_v20 }
0x198c   : > { %13295 = vmatmul.mubr.msk.bf16.gmra.mrb[64].mxu1 %vm2122_vm0, %v21030_v16 }
0x198d   : > { %13298 = vmatprep.mubr.msk.bf16.mxu1 %vm2122_vm0, %v21031_v28 }
0x1994   : > { %13299 = vmatmul.mubr.msk.bf16.gmra.mrb[68].mxu1 %vm2122_vm0, %v21032_v38 }
0x1995   : > { %13302 = vmatprep.mubr.msk.bf16.mxu1 %vm2122_vm0, %v21033_v63 }
0x199c   : > { %13303 = vmatmul.mubr.msk.bf16.gmra.mrb[72].mxu1 %vm2122_vm0, %v21034_v19 }
0x199d   : > { %13306 = vmatprep.mubr.msk.bf16.mxu1 %vm2122_vm0, %v21035_v53 }
0x19a4   : > { %13307 = vmatmul.mubr.msk.bf16.gmra.mrb[76].mxu1 %vm2122_vm0, %v21036_v23 }
0x1a13   : > { %v12463_v29 = vpop.f32.mrb[40].mxu1 }
0x1a14   : > { %v12464_v8 = vpop.f32.mrb[41].mxu1 }
0x1a15   : > { %v12465_v34 = vadd.f32 %v12464_v8, %v12463_v29  ;;  %v12466_v7 = vpop.f32.mrb[42].mxu1 }
0x1a16   : > { %v12467_v0 = vpop.f32.mrb[43].mxu1 }
0x1a17   : > { %v6256_v56 = vadd.f32 %v21037_v27, %v12465_v34 }
0x1a23   : > { %v6335_v55 = vpop.f32.mrb[44].mxu1  ;;  %v12485_v31 = vpop.f32.mrb[76].mxu0 }
0x1a24   : > { %v13262_v40 = vpop.f32.mrb[45].mxu1  ;;  %v12486_v50 = vpop.f32.mrb[77].mxu0 }
0x1a25   : > { %v12487_v51 = vadd.f32 %v12486_v50, %v12485_v31  ;;  %v6338_v58 = vpop.f32.mrb[46].mxu1  ;;  %v12488_v44 = vpop.f32.mrb[78].mxu0 }
0x1a26   : > { %v13263_v32 = vpop.f32.mrb[47].mxu1  ;;  %v12489_v48 = vpop.f32.mrb[79].mxu0 }
0x1a27   : > { %v6296_v15 = vadd.f32 %v12487_v51, %v6256_v56 }
0x1a29   : > { %v18400_v61 = vadd.f32 %v6335_v55, %v6296_v15 }
0x1a2b   : > { %21038 = vst [vmem:[#allocation82_spill] sm:$0xff] %v18400_v61 }
0x1a3f   : > { %v13280_v1 = vpop.f32.mrb[48].mxu1 }
0x1a40   : > { %v18402_v4 = vpop.f32.mrb[49].mxu1 }
0x1a41   : > { %v13281_v3 = vpop.f32.mrb[50].mxu1 }
0x1a42   : > { %v13895_v9 = vpack.i.bf16 %v13281_v3, %v13280_v1  ;;  %v6395_v11 = vpop.f32.mrb[51].mxu1 }
0x1a44   : > { %13896 = vrot.lane.b32.xlu1 %v13895_v9, %s15071_s26 }
0x1a47   : > { %v13284_v18 = vpop.f32.mrb[52].mxu1 }
0x1a48   : > { %v6408_v13 = vpop.f32.mrb[53].mxu1 }
0x1a49   : > { %v13285_v52 = vpop.f32.mrb[54].mxu1 }
0x1a4a   : > { %v13920_v26 = vpack.i.bf16 %v13285_v52, %v13284_v18  ;;  %v6411_v47 = vpop.f32.mrb[55].mxu1 }
0x1a4b   : > { %v13900_v12 = vpack.i.bf16 %v6411_v47, %v6408_v13 }
0x1a4d   : > { %13901 = vrot.lane.b32.xlu1 %v13900_v12, %s15072_s16 }
0x1a4f   : > { %v13288_v17 = vpop.f32.mrb[56].mxu1 }
0x1a50   : > { %v18406_v57 = vpop.f32.mrb[57].mxu1 }
0x1a51   : > { %13921 = vrot.lane.b32.xlu1 %v13920_v26, %s15073_s17  ;;  %v13289_v42 = vpop.f32.mrb[58].mxu1 }
0x1a52   : > { %v13905_v30 = vpack.i.bf16 %v13289_v42, %v13288_v17  ;;  %v18409_v37 = vpop.f32.mrb[59].mxu1 }
0x1a54   : > { %13906 = vrot.lane.b32.xlu0 %v13905_v30, %s15071_s26 }
0x1a57   : > { %v13292_v2 = vpop.f32.mrb[60].mxu1 }
0x1a58   : > { %v6440_v5 = vpop.f32.mrb[61].mxu1 }
0x1a59   : > { %v13293_v54 = vpop.f32.mrb[62].mxu1 }
0x1a5a   : > { %v13915_v49 = vpack.i.bf16 %v13293_v54, %v13292_v2  ;;  %v6443_v21 = vpop.f32.mrb[63].mxu1 }
0x1a5b   : > { %v13910_v60 = vpack.i.bf16 %v6443_v21, %v6440_v5 }
0x1a5d   : > { %13911 = vrot.lane.b32.xlu0 %v13910_v60, %s15072_s16 }
0x1a5f   : > { %v13296_v59 = vpop.f32.mrb[64].mxu1 }
0x1a60   : > { %v18413_v45 = vpop.f32.mrb[65].mxu1 }
0x1a61   : > { %13916 = vrot.lane.b32.xlu0 %v13915_v49, %s15073_s17  ;;  %v13297_v6 = vpop.f32.mrb[66].mxu1  ;;  %v18458_v49 = vld [vmem:[%s20484_s4 + $0x88] sm:$0xff]  }
0x1a62   : > { %v13925_v62 = vpack.i.bf16 %v13297_v6, %v13296_v59  ;;  %v18416_v35 = vpop.f32.mrb[67].mxu1  ;;  %v18464_v6 = vld [vmem:[%s20484_s4 + $0xd0] sm:$0xff]  }
0x1a64   : > { %13926 = vrot.lane.b32.xlu1 %v13925_v62, %s15071_s26 }
0x1a67   : > { %v13300_v36 = vpop.f32.mrb[68].mxu1 }
0x1a68   : > { %v6472_v24 = vpop.f32.mrb[69].mxu1 }
0x1a69   : > { %v13301_v41 = vpop.f32.mrb[70].mxu1 }
0x1a6a   : > { %v13950_v39 = vpack.i.bf16 %v13301_v41, %v13300_v36  ;;  %v6475_v46 = vpop.f32.mrb[71].mxu1 }
0x1a6b   : > { %v13930_v25 = vpack.i.bf16 %v6475_v46, %v6472_v24  ;;  %v18470_v24 = vld [vmem:[%s20484_s4 + $0x90] sm:$0xff]  }
0x1a6d   : > { %13931 = vrot.lane.b32.xlu1 %v13930_v25, %s15072_s16 }
0x1a6f   : > { %v13304_v10 = vpop.f32.mrb[72].mxu1 }
0x1a70   : > { %v18420_v22 = vpop.f32.mrb[73].mxu1 }
0x1a71   : > { %13951 = vrot.lane.b32.xlu1 %v13950_v39, %s15073_s17  ;;  %v13305_v33 = vpop.f32.mrb[74].mxu1 }
0x1a72   : > { %v13935_v16 = vpack.i.bf16 %v13305_v33, %v13304_v10  ;;  %v18423_v28 = vpop.f32.mrb[75].mxu1  ;;  %v18480_v33 = vld [vmem:[%s20484_s4 + $0xd8] sm:$0xff]  }
0x1a74   : > { %13936 = vrot.lane.b32.xlu0 %v13935_v16, %s15071_s26 }
0x1a77   : > { %v13308_v38 = vpop.f32.mrb[76].mxu1 }
0x1a78   : > { %v6504_v63 = vpop.f32.mrb[77].mxu1 }
0x1a79   : > { %v13309_v19 = vpop.f32.mrb[78].mxu1 }
0x1a7a   : > { %v13945_v53 = vpack.i.bf16 %v13309_v19, %v13308_v38  ;;  %v6507_v23 = vpop.f32.mrb[79].mxu1 }
0x1a7b   : > { %v13940_v29 = vpack.i.bf16 %v6507_v23, %v6504_v63 }
0x1a7d   : > { %13941 = vrot.lane.b32.xlu0 %v13940_v29, %s15072_s16  ;;  %v18502_v29 = vld [vmem:[%s20484_s4 + $0xa0] sm:$0xff]  }
0x1a81   : > { %13946 = vrot.lane.b32.xlu0 %v13945_v53, %s15073_s17  ;;  %v18496_v53 = vld [vmem:[%s20484_s4 + $0xe0] sm:$0xff]  }
0x1ab6   : > { %v13897_v8 = vpop.permute.xlu1 %13896 }
0x1ab7   : > { %v13899_v7 = vunpack.i.h.bf16 %v13897_v8  ;;  %v13898_v0 = vunpack.i.l.bf16 %v13897_v8  ;;  %v18508_v8 = vld [vmem:[%s20484_s4 + $0xe8] sm:$0xff]  }
0x1ab9   : > { %v6615_v50 = vsel %vm2432_vm2, %v18402_v4, %v13898_v0  ;;  %v6616_v27 = vsel %vm2432_vm2, %v6395_v11, %v13899_v7 }
0x1abf   : > { %v13902_v34 = vpop.permute.xlu1 %13901 }
0x1ac0   : > { %v13904_v55 = vunpack.i.h.bf16 %v13902_v34  ;;  %v13903_v31 = vunpack.i.l.bf16 %v13902_v34  ;;  %v18514_v34 = vld [vmem:[%s20484_s4 + $0xa8] sm:$0xff]  }
0x1ac2   : > { %v6618_v58 = vsel %vm2435_vm3, %v6616_v27, %v13904_v55  ;;  %v6617_v44 = vsel %vm2435_vm3, %v6615_v50, %v13903_v31  ;;  %v18520_v31 = vld [vmem:[%s20484_s4 + $0xf0] sm:$0xff]  }
0x1ac3   : > { %v13922_v40 = vpop.permute.xlu1 %13921  ;;  %v18526_v27 = vld [vmem:[%s20484_s4 + $0xb0] sm:$0xff]  }
0x1ac4   : > { %v13924_v56 = vunpack.i.h.bf16 %v13922_v40  ;;  %v13923_v51 = vunpack.i.l.bf16 %v13922_v40 }
0x1ac6   : > { %v6619_v32 = vsel %vm2438_vm4, %v6617_v44, %v13923_v51  ;;  %v6620_v48 = vsel %vm2438_vm4, %v6618_v58, %v13924_v56  ;;  %v13907_v1 = vpop.permute.xlu0 %13906 }
0x1ac7   : > { %v6639_v15 = vpack.c.bf16 %v6620_v48, %v6619_v32  ;;  %v13909_v9 = vunpack.i.h.bf16 %v13907_v1  ;;  %v13908_v18 = vunpack.i.l.bf16 %v13907_v1  ;;  %v18536_v48 = vld [vmem:[%s20484_s4 + $0xf8] sm:$0xff]  }
0x1ac9   : > { %v6621_v11 = vsel %vm2432_vm2, %v18406_v57, %v13908_v18  ;;  %v6622_v26 = vsel %vm2432_vm2, %v18409_v37, %v13909_v9  ;;  %v18446_v57 = vld [vmem:[%s20484_s4 + $0x80] sm:$0xff]   ;;  %v18452_v37 = vld [vmem:[%s20484_s4 + $0xc8] sm:$0xff]  }
0x1acf   : > { %v13912_v3 = vpop.permute.xlu0 %13911 }
0x1ad0   : > { %v13914_v13 = vunpack.i.h.bf16 %v13912_v3  ;;  %v13913_v52 = vunpack.i.l.bf16 %v13912_v3 }
0x1ad2   : > { %v6624_v17 = vsel %vm2435_vm3, %v6622_v26, %v13914_v13  ;;  %v6623_v42 = vsel %vm2435_vm3, %v6621_v11, %v13913_v52 }
0x1ad3   : > { %v13917_v4 = vpop.permute.xlu0 %13916 }
0x1ad4   : > { %v13919_v47 = vunpack.i.h.bf16 %v13917_v4  ;;  %v13918_v12 = vunpack.i.l.bf16 %v13917_v4 }
0x1ad6   : > { %v6625_v30 = vsel %vm2438_vm4, %v6623_v42, %v13918_v12  ;;  %v6626_v2 = vsel %vm2438_vm4, %v6624_v17, %v13919_v47  ;;  %v13927_v54 = vpop.permute.xlu1 %13926  ;;  %v18555_v17 = vld [vmem:[%s20485_s5] ss:$0 sm:$0xff] }
0x1ad7   : > { %v6640_v5 = vpack.c.bf16 %v6626_v2, %v6625_v30  ;;  %v13929_v60 = vunpack.i.h.bf16 %v13927_v54  ;;  %v13928_v59 = vunpack.i.l.bf16 %v13927_v54 }
0x1ad9   : > { %6675 = vmatprep.mubr.bf16.mxu0 %v6640_v5  ;;  %v6627_v39 = vsel %vm2432_vm2, %v18413_v45, %v13928_v59  ;;  %v6628_v46 = vsel %vm2432_vm2, %v18416_v35, %v13929_v60  ;;  %v18490_v35 = vld [vmem:[%s20484_s4 + $0x98] sm:$0xff]  }
0x1ada   : > { %6676 = vmatmul.mubr.bf16.vlgmr.msra.gmra.mrb[80].mxu0 %v6639_v15 }
0x1adb   : > { %12542 = vmatpush3.bf16.msra.mxu0 %v18446_v57 }
0x1adc   : > { %12543 = vmatprep.subr.bf16.mxu0 %v18452_v37 }
0x1adf   : > { %12544 = vmatpush3.bf16.msra.mxu0 %v18458_v49  ;;  %v13932_v21 = vpop.permute.xlu1 %13931 }
0x1ae0   : > { %12545 = vmatprep.subr.bf16.mxu0 %v18464_v6  ;;  %v13934_v62 = vunpack.i.h.bf16 %v13932_v21  ;;  %v13933_v36 = vunpack.i.l.bf16 %v13932_v21 }
0x1ae2   : > { %v6630_v16 = vsel %vm2435_vm3, %v6628_v46, %v13934_v62  ;;  %v6629_v38 = vsel %vm2435_vm3, %v6627_v39, %v13933_v36  ;;  %v18563_v39 = vld [vmem:[%s20486_s6] sm:$0xff]  }
0x1ae3   : > { %12546 = vmatpush3.bf16.msra.mxu0 %v18470_v24  ;;  %v13952_v41 = vpop.permute.xlu1 %13951  ;;  %v18572_v46 = vld [vmem:[%s20487_s7 + $0x80] sm:$0xff]  }
0x1ae4   : > { %v13954_v25 = vunpack.i.h.bf16 %v13952_v41  ;;  %v13953_v10 = vunpack.i.l.bf16 %v13952_v41  ;;  %12547 = vmatprep.subr.bf16.mxu0 %v18480_v33 }
0x1ae6   : > { %v6631_v63 = vsel %vm2438_vm4, %v6629_v38, %v13953_v10  ;;  %v6632_v45 = vsel %vm2438_vm4, %v6630_v16, %v13954_v25  ;;  %v13937_v23 = vpop.permute.xlu0 %13936  ;;  %v18584_v25 = vld [vmem:[%s20487_s7 + $0x88] sm:$0xff]   ;;  %v18590_v10 = vld [vmem:[%s20487_s7 + $0xd0] sm:$0xff]  }
0x1ae7   : > { %v6641_v19 = vpack.c.bf16 %v6632_v45, %v6631_v63  ;;  %12548 = vmatpush3.bf16.msra.mxu0 %v18490_v35  ;;  %v13939_v0 = vunpack.i.h.bf16 %v13937_v23  ;;  %v13938_v55 = vunpack.i.l.bf16 %v13937_v23  ;;  %v18596_v16 = vld [vmem:[%s20486_s6 + $0x8] sm:$0xff]   ;;  %v18605_v38 = vld [vmem:[%s20487_s7 + $0x90] sm:$0xff]   ;;  %v18611_v63 = vld [vmem:[%s20487_s7 + $0xd8] sm:$0xff]  }
0x1ae8   : > { %12549 = vmatprep.subr.bf16.mxu0 %v18496_v53  ;;  %v18617_v45 = vld [vmem:[%s20487_s7 + $0x98] sm:$0xff]   ;;  %v18629_v23 = vld [vmem:[%s20486_s6 + $0x10] sm:$0xff]  }
0x1ae9   : > { %v6633_v51 = vsel %vm2432_vm2, %v18420_v22, %v13938_v55  ;;  %v6634_v58 = vsel %vm2432_vm2, %v18423_v28, %v13939_v0  ;;  %v18546_v28 = vld [vmem:[%s20484_s4 + $0xb8] sm:$0xff]   ;;  %v18644_v0 = vld [vmem:[%s20487_s7 + $0xe8] sm:$0xff]  }
0x1aea   : > { %v18650_v55 = vld [vmem:[%s20487_s7 + $0xa8] sm:$0xff]  }
0x1aeb   : > { %12550 = vmatpush3.bf16.msra.mxu0 %v18502_v29 }
0x1aec   : > { %12551 = vmatprep.subr.bf16.mxu0 %v18508_v8 }
0x1aef   : > { %12552 = vmatpush3.bf16.msra.mxu0 %v18514_v34  ;;  %v13942_v7 = vpop.permute.xlu0 %13941 }
0x1af0   : > { %12553 = vmatprep.subr.bf16.mxu0 %v18520_v31  ;;  %v13944_v40 = vunpack.i.h.bf16 %v13942_v7  ;;  %v13943_v50 = vunpack.i.l.bf16 %v13942_v7  ;;  %v18638_v7 = vld [vmem:[%s20487_s7 + $0xa0] sm:$0xff]  }
0x1af2   : > { %v6636_v15 = vsel %vm2435_vm3, %v6634_v58, %v13944_v40  ;;  %v6635_v1 = vsel %vm2435_vm3, %v6633_v51, %v13943_v50  ;;  %v18656_v40 = vld [vmem:[%s20487_s7 + $0xf0] sm:$0xff]   ;;  %v18662_v50 = vld [vmem:[%s20486_s6 + $0x18] sm:$0xff]  }
0x1af3   : > { %12554 = vmatpush3.bf16.msra.mxu0 %v18526_v27  ;;  %v13947_v56 = vpop.permute.xlu0 %13946  ;;  %v18677_v51 = vld [vmem:[%s20487_s7 + $0xf8] sm:$0xff]  }
0x1af4   : > { %v13949_v44 = vunpack.i.h.bf16 %v13947_v56  ;;  %v13948_v32 = vunpack.i.l.bf16 %v13947_v56  ;;  %12555 = vmatprep.subr.bf16.mxu0 %v18536_v48  ;;  %v18671_v56 = vld [vmem:[%s20487_s7 + $0xb0] sm:$0xff]   ;;  %v18683_v58 = vld [vmem:[%s20487_s7 + $0xb8] sm:$0xff]  }
0x1af6   : > { %v6637_v3 = vsel %vm2438_vm4, %v6635_v1, %v13948_v32  ;;  %v6638_v22 = vsel %vm2438_vm4, %v6636_v15, %v13949_v44  ;;  %v15006_v44 = vld [vmem:[%s20484_s4 + $0x40] sm:$0xff]  }
0x1af7   : > { %12556 = vmatpush3.bf16.msra.mxu0 %v18546_v28  ;;  %v6642_v9 = vpack.c.bf16 %v6638_v22, %v6637_v3  ;;  %v18692_v32 = vld [vmem:[%s20486_s6 + $0x20] ss:$0 sps:$4 sm:$0xff]  }
0x1af8   : > { %13310 = vmatprep.subr.bf16.mxu0 %v20701_v20  ;;  %21039 = vst [vmem:[#allocation83_spill] sm:$0xff] %v18692_v32 }
0x1af9   : > { %6716 = vmatprep.mubr.bf16.mxu0 %v6642_v9 }
0x1afa   : > { %6717 = vmatmul.mubr.bf16.vlgmr.msra.gmra.mrb[84].mxu0 %v6641_v19  ;;  %v18623_v19 = vld [vmem:[%s20487_s7 + $0xe0] sm:$0xff]  }
0x1afb   : > { %13312 = vmatprep.mubr.msk.bf16.mxu0 %vm15075_vm5, %v20701_v20 }
0x1bad   : > { %v12535_v18 = vpop.f32.mrb[80].mxu0 }
0x1bae   : > { %v12536_v13 = vpop.f32.mrb[81].mxu0 }
0x1baf   : > { %v12537_v52 = vadd.f32 %v12536_v13, %v12535_v18  ;;  %v12538_v4 = vpop.f32.mrb[82].mxu0 }
0x1bb0   : > { %v12539_v11 = vpop.f32.mrb[83].mxu0 }
0x1bb1   : > { %v12540_v26 = vadd.f32 %v12539_v11, %v12538_v4  ;;  %v6678_v42 = vadd.f32 %v18555_v17, %v12537_v52 }
0x1bb3   : > { %v6681_v54 = vadd.f32 %v18555_v17, %v12540_v26 }
0x1bcd   : > { %v12557_v47 = vpop.f32.mrb[84].mxu0 }
0x1bce   : > { %v12558_v12 = vpop.f32.mrb[85].mxu0 }
0x1bcf   : > { %v12559_v30 = vadd.f32 %v12558_v12, %v12557_v47  ;;  %v12560_v2 = vpop.f32.mrb[86].mxu0 }
0x1bd0   : > { %v12561_v5 = vpop.f32.mrb[87].mxu0 }
0x1bd1   : > { %v6719_v21 = vadd.f32 %v12559_v30, %v6678_v42  ;;  %v12562_v60 = vadd.f32 %v12561_v5, %v12560_v2 }
0x1bd3   : > { %v6722_v59 = vadd.f32 %v12562_v60, %v6681_v54  ;;  %v6725_v62 = vmax.f32 %v6719_v21, 0.0 }
0x1bd5   : > { %v6726_v36 = vmax.f32 %v6722_v59, 0.0 }
0x1bd7   : > { %v6727_v41 = vpack.c.bf16 %v6726_v36, %v6725_v62 }
0x1bd9   : > { %13311 = vmatpush3.bf16.msra.mxu0 %v6727_v41 }
0x1bda   : > { %12591 = vmatprep.subr.bf16.mxu0 %v18265_v14  ;;  %v18578_v14 = vld [vmem:[%s20487_s7 + $0xc8] sm:$0xff]  }
0x1bdc   : > { %13313 = vmatmul.mubr.msk.bf16.vlgmr.msra.gmra.mrb[88].mxu0 %vm2769_vm6, %v18563_v39 }
0x1bdd   : > { %13316 = vmatprep.mubr.msk.bf16.mxu0 %vm15075_vm5, %v20701_v20  ;;  %12592 = vmatpush3.bf16.msra.mxu0 %v18572_v46 }
0x1bde   : > { %12593 = vmatprep.subr.bf16.mxu0 %v18578_v14 }
0x1be1   : > { %12594 = vmatpush3.bf16.msra.mxu0 %v18584_v25 }
0x1be2   : > { %12595 = vmatprep.subr.bf16.mxu0 %v18590_v10 }
0x1be4   : > { %13317 = vmatmul.mubr.msk.bf16.gmra.mrb[92].mxu0 %vm2769_vm6, %v18596_v16 }
0x1be5   : > { %13320 = vmatprep.mubr.msk.bf16.mxu0 %vm15075_vm5, %v20701_v20  ;;  %12596 = vmatpush3.bf16.msra.mxu0 %v18605_v38 }
0x1be6   : > { %12597 = vmatprep.subr.bf16.mxu0 %v18611_v63 }
0x1be9   : > { %12598 = vmatpush3.bf16.msra.mxu0 %v18617_v45 }
0x1bea   : > { %12599 = vmatprep.subr.bf16.mxu0 %v18623_v19 }
0x1bec   : > { %13321 = vmatmul.mubr.msk.bf16.gmra.mrb[96].mxu0 %vm2769_vm6, %v18629_v23 }
0x1bed   : > { %13324 = vmatprep.mubr.msk.bf16.mxu0 %vm15075_vm5, %v20701_v20  ;;  %12600 = vmatpush3.bf16.msra.mxu0 %v18638_v7 }
0x1bee   : > { %12601 = vmatprep.subr.bf16.mxu0 %v18644_v0 }
0x1bf1   : > { %12602 = vmatpush3.bf16.msra.mxu0 %v18650_v55 }
0x1bf2   : > { %12603 = vmatprep.subr.bf16.mxu0 %v18656_v40 }
0x1bf4   : > { %13325 = vmatmul.mubr.msk.bf16.gmra.mrb[100].mxu0 %vm2769_vm6, %v18662_v50 }
0x1bf5   : > { %13328 = vmatprep.mubr.msk.bf16.mxu0 %vm15075_vm5, %v20701_v20  ;;  %12604 = vmatpush3.bf16.msra.mxu0 %v18671_v56 }
0x1bf6   : > { %12605 = vmatprep.subr.bf16.mxu0 %v18677_v51 }
0x1bf9   : > { %12606 = vmatpush3.bf16.msra.mxu0 %v18683_v58 }
0x1bfa   : > { %12641 = vmatprep.subr.bf16.mxu0 %v15006_v44 }
0x1bfc   : > { %13329 = vmatmul.mubr.msk.bf16.gmra.mrb[104].mxu0 %vm2769_vm6, %v18692_v32 }
0x1caf   : > { %v6762_v15 = vpop.f32.mrb[88].mxu0 }
0x1cb0   : > { %v13314_v1 = vpop.f32.mrb[89].mxu0 }
0x1cb1   : > { %v6765_v3 = vpop.f32.mrb[90].mxu0 }
0x1cb2   : > { %v13315_v22 = vpop.f32.mrb[91].mxu0 }
0x1cb7   : > { %v6770_v9 = vpop.f32.mrb[92].mxu0 }
0x1cb8   : > { %v13318_v18 = vpop.f32.mrb[93].mxu0 }
0x1cb9   : > { %v6773_v13 = vpop.f32.mrb[94].mxu0 }
0x1cba   : > { %v13955_v52 = vpack.i.bf16 %v6765_v3, %v6773_v13  ;;  %v13319_v4 = vpop.f32.mrb[95].mxu0  ;;  %v18703_v13 = vld [vmem:[%s20487_s7 + $0x100] sm:$0xff]  }
0x1cbb   : > { %21040 = vst [vmem:[#allocation84_spill] sm:$0xff] %v18703_v13  ;;  %v6969_v4 = vrot.slane %v20999_v43, 4 }
0x1cbc   : > { %13956 = vrot.lane.b32.xlu0 %v13955_v52, %s15072_s16 }
0x1cbf   : > { %v6778_v11 = vpop.f32.mrb[96].mxu0 }
0x1cc0   : > { %v13322_v26 = vpop.f32.mrb[97].mxu0 }
0x1cc1   : > { %v6781_v47 = vpop.f32.mrb[98].mxu0 }
0x1cc2   : > { %v13323_v12 = vpop.f32.mrb[99].mxu0 }
0x1cc7   : > { %v6786_v42 = vpop.f32.mrb[100].mxu0 }
0x1cc8   : > { %v13326_v30 = vpop.f32.mrb[101].mxu0 }
0x1cc9   : > { %v6789_v2 = vpop.f32.mrb[102].mxu0 }
0x1cca   : > { %v13960_v5 = vpack.i.bf16 %v6781_v47, %v6789_v2  ;;  %v13327_v54 = vpop.f32.mrb[103].mxu0 }
0x1ccb   : > { %v18729_v54 = vld [vmem:[%s20487_s7 + $0x118] sm:$0xff]  }
0x1ccc   : > { %13961 = vrot.lane.b32.xlu1 %v13960_v5, %s15072_s16  ;;  %21043 = vst [vmem:[#allocation87_spill] sm:$0xff] %v18729_v54 }
0x1ccf   : > { %v6794_v21 = vpop.f32.mrb[104].mxu0 }
0x1cd0   : > { %v13330_v60 = vpop.f32.mrb[105].mxu0  ;;  %v6824_v30 = vpack.c.bf16 %v6794_v21, %v6794_v21  ;;  %v15013_v21 = vld [vmem:[%s20484_s4] sm:$0xff]  }
0x1cd1   : > { %v6797_v59 = vpop.f32.mrb[106].mxu0  ;;  %v21044_v60 = vld [vmem:[#allocation27_spill] sm:$0xff] }
0x1cd2   : > { %v13331_v62 = vpop.f32.mrb[107].mxu0  ;;  %v21045_v59 = vrot.slane %v21044_v60, 4  ;;  %v15024_v60 = vld [vmem:[%s20484_s4 + $0x70] sm:$0xff]  }
0x1cd4   : > { %v6971_v43 = vsel %vm2171_vm1, %v6969_v4, %v21045_v59  ;;  %v15019_v4 = vld [vmem:[%s20484_s4 + $0x18] sm:$0xff]  }
0x1d2e   : > { %v13957_v36 = vpop.permute.xlu0 %13956 }
0x1d2f   : > { %v13959_v41 = vunpack.i.h.bf16 %v13957_v36  ;;  %v13958_v44 = vunpack.i.l.bf16 %v13957_v36  ;;  %v15014_v36 = vld [vmem:[%s20484_s4 + $0x48] sm:$0xff]  }
0x1d31   : > { %v6816_v1 = vsel %vm2435_vm3, %v6762_v15, %v13959_v41  ;;  %v6817_v3 = vsel %vm2435_vm3, %v6770_v9, %v13958_v44  ;;  %v18712_v15 = vld [vmem:[%s20487_s7 + $0x108] sm:$0xff]   ;;  %v18719_v9 = vld [vmem:[%s20487_s7 + $0x110] sm:$0xff]   ;;  %v21047_v41 = vld [vmem:[#allocation29_spill] sm:$0xff] }
0x1d32   : > { %v6820_v22 = vpack.c.bf16 %v6816_v1, %v6816_v1  ;;  %v6821_v18 = vpack.c.bf16 %v6817_v3, %v6817_v3  ;;  %21041 = vst [vmem:[#allocation85_spill] sm:$0xff] %v18712_v15  ;;  %21042 = vst [vmem:[#allocation86_spill] sm:$0xff] %v18719_v9  ;;  %v15015_v44 = vld [vmem:[%s20484_s4 + $0x8] sm:$0xff]   ;;  %v15016_v1 = vld [vmem:[%s20484_s4 + $0x50] sm:$0xff]  }
0x1d33   : > { %v21048_v3 = vld [vmem:[#allocation18_spill] sm:$0xff] }
0x1d34   : > { %6860 = vmatprep.mubr.bf16.mxu1 %v6821_v18  ;;  %v15018_v18 = vld [vmem:[%s20484_s4 + $0x58] sm:$0xff]  }
0x1d35   : > { %6861 = vmatmul.mubr.bf16.vlgmr.msra.gmra.mrb[80].mxu1 %v6820_v22  ;;  %v15017_v22 = vld [vmem:[%s20484_s4 + $0x10] sm:$0xff]  }
0x1d36   : > { %13333 = vmatpush3.bf16.msra.mxu1 %v18703_v13  ;;  %13340 = vmatprep.mubr.msk.bf16.mxu1 %vm15075_vm5, %v20701_v20 }
0x1d37   : > { %13334 = vmatprep.subr.bf16.mxu1 %v20701_v20 }
0x1d3a   : > { %13335 = vmatpush3.bf16.msra.mxu1 %v18712_v15 }
0x1d3b   : > { %13336 = vmatprep.subr.bf16.mxu1 %v20701_v20 }
0x1d3e   : > { %13337 = vmatpush3.bf16.msra.mxu1 %v18719_v9  ;;  %v13962_v52 = vpop.permute.xlu1 %13961 }
0x1d3f   : > { %v13964_v26 = vunpack.i.h.bf16 %v13962_v52  ;;  %v13963_v47 = vunpack.i.l.bf16 %v13962_v52  ;;  %13338 = vmatprep.subr.bf16.mxu1 %v20701_v20  ;;  %v21049_v52 = vld [vmem:[#allocation30_spill] sm:$0xff] }
0x1d41   : > { %v6818_v12 = vsel %vm2435_vm3, %v6778_v11, %v13964_v26  ;;  %v6819_v2 = vsel %vm2435_vm3, %v6786_v42, %v13963_v47  ;;  %v15012_v11 = vld [vmem:[%s20483_s3] sm:$0xff]   ;;  %v21046_v42 = vld [vmem:[#allocation28_spill] sm:$0xff] }
0x1d42   : > { %v6822_v5 = vpack.c.bf16 %v6818_v12, %v6818_v12  ;;  %13339 = vmatpush3.bf16.msra.mxu1 %v18729_v54  ;;  %v6823_v62 = vpack.c.bf16 %v6819_v2, %v6819_v2  ;;  %v15020_v26 = vld [vmem:[%s20484_s4 + $0x60] sm:$0xff]   ;;  %v21050_v47 = vld [vmem:[#allocation32_spill] sm:$0xff]  ;;  %v21051_v2 = vld [vmem:[#allocation31_spill] sm:$0xff] }
0x1d43   : > { %13344 = vmatprep.subr.bf16.mxu1 %v6971_v43  ;;  %v15021_v12 = vld [vmem:[%s20484_s4 + $0x20] sm:$0xff]   ;;  %v6989_v59 = vsel %vm2171_vm1, %v21051_v2, 0 }
0x1d44   : > { %6900 = vmatprep.mubr.bf16.mxu0 %v6823_v62  ;;  %v15026_v62 = vld [vmem:[%s20487_s7 + $0x40] sm:$0xff]  }
0x1d45   : > { %13341 = vmatmul.mubr.msk.bf16.vlgmr.msra.gmra.mrb[84].mxu1 %vm2435_vm3, %v6824_v30  ;;  %6901 = vmatmul.mubr.bf16.vlgmr.msra.gmra.mrb[108].mxu0 %v6822_v5  ;;  %v15022_v30 = vld [vmem:[%s20484_s4 + $0x68] sm:$0xff]  }
0x1d46   : > { %13345 = vmatpush3.bf16.msra.mxu1 %v6971_v43  ;;  %13358 = vmatprep.mubr.msk.bf16.mxu1 %vm2122_vm0, %v15012_v11  ;;  %v15023_v5 = vld [vmem:[%s20484_s4 + $0x28] sm:$0xff]   ;;  %v15025_v43 = vld [vmem:[%s20484_s4 + $0x30] sm:$0xff]   ;;  %v15027_v11 = vld [vmem:[%s20484_s4 + $0x78] sm:$0xff]  }
0x1d47   : > { %13346 = vmatprep.subr.bf16.mxu1 %v21046_v42  ;;  %12642 = vmatpush3.bf16.msra.mxu0 %v15013_v21  ;;  %v15029_v21 = vld [vmem:[%s20483_s3 + $0x10] sm:$0xff]  }
0x1d48   : > { %12643 = vmatprep.subr.bf16.mxu0 %v15014_v36  ;;  %v15030_v36 = vld [vmem:[%s20487_s7] sm:$0xff]  }
0x1d4a   : > { %13347 = vmatpush3.bf16.msra.mxu1 %v21046_v42  ;;  %v15028_v42 = vld [vmem:[%s20483_s3 + $0x8] sm:$0xff]  }
0x1d4b   : > { %13348 = vmatprep.subr.bf16.mxu1 %v21047_v41  ;;  %12644 = vmatpush3.bf16.msra.mxu0 %v15015_v44  ;;  %v15032_v44 = vld [vmem:[%s20487_s7 + $0x48] sm:$0xff]  }
0x1d4c   : > { %12645 = vmatprep.subr.bf16.mxu0 %v15016_v1  ;;  %v15033_v1 = vld [vmem:[%s20484_s4 + $0xc0] sm:$0xff]  }
0x1d4e   : > { %13349 = vmatpush3.bf16.msra.mxu1 %v21047_v41  ;;  %v15031_v41 = vld [vmem:[%s20484_s4 + $0x38] sm:$0xff]  }
0x1d4f   : > { %13350 = vmatprep.subr.bf16.mxu1 %v21048_v3  ;;  %12646 = vmatpush3.bf16.msra.mxu0 %v15017_v22  ;;  %v15035_v22 = vld [vmem:[%s20487_s7 + $0x50] sm:$0xff]  }
0x1d50   : > { %12647 = vmatprep.subr.bf16.mxu0 %v15018_v18  ;;  %v15036_v18 = vld [vmem:[%s20483_s3 + $0x18] sm:$0xff]  }
0x1d52   : > { %13351 = vmatpush3.bf16.msra.mxu1 %v21048_v3  ;;  %v15034_v3 = vld [vmem:[%s20487_s7 + $0x8] sm:$0xff]  }
0x1d53   : > { %13352 = vmatprep.subr.bf16.mxu1 %v21049_v52  ;;  %12648 = vmatpush3.bf16.msra.mxu0 %v15019_v4  ;;  %v15038_v4 = vld [vmem:[%s20487_s7 + $0x10] sm:$0xff]  }
0x1d54   : > { %12649 = vmatprep.subr.bf16.mxu0 %v15020_v26  ;;  %v15039_v26 = vld [vmem:[%s20487_s7 + $0x58] sm:$0xff]  }
0x1d56   : > { %13353 = vmatpush3.bf16.msra.mxu1 %v21049_v52  ;;  %v15037_v52 = vld [vmem:[%s20483_s3 + $0x20] sm:$0xff]  }
0x1d57   : > { %13354 = vmatprep.subr.bf16.mxu1 %v21050_v47  ;;  %12650 = vmatpush3.bf16.msra.mxu0 %v15021_v12  ;;  %v15041_v12 = vld [vmem:[%s20487_s7 + $0x60] sm:$0xff]  }
0x1d58   : > { %12651 = vmatprep.subr.bf16.mxu0 %v15022_v30  ;;  %v15042_v30 = vld [vmem:[%s20483_s3 + $0x28] sm:$0xff]  }
0x1d5a   : > { %13355 = vmatpush3.bf16.msra.mxu1 %v21050_v47  ;;  %v15040_v47 = vld [vmem:[%s20487_s7 + $0x18] sm:$0xff]  }
0x1d5b   : > { %13459 = vmatprep.subr.msk.bf16.mxu1 %vm2171_vm1, %v21051_v2  ;;  %12652 = vmatpush3.bf16.msra.mxu0 %v15023_v5  ;;  %v15043_v2 = vld [vmem:[%s20483_s3 + $0x30] sm:$0xff]   ;;  %v15044_v5 = vld [vmem:[%s20487_s7 + $0x20] sm:$0xff]  }
0x1d5c   : > { %12653 = vmatprep.subr.bf16.mxu0 %v15024_v60  ;;  %v15045_v60 = vld [vmem:[%s20487_s7 + $0x68] sm:$0xff]  }
0x1d5e   : > { %13357 = vmatpush3.bf16.msra.mxu1 %v6989_v59  ;;  %v15046_v59 = vld [vmem:[%s20487_s7 + $0x28] sm:$0xff]  }
0x1d5f   : > { %12654 = vmatpush3.bf16.msra.mxu0 %v15025_v43  ;;  %12691 = vmatprep.subr.bf16.mxu1 %v15026_v62  ;;  %v15047_v43 = vld [vmem:[%s20487_s7 + $0x70] sm:$0xff]   ;;  %v15048_v62 = vld [vmem:[%s20483_s3 + $0x38] sm:$0xff]  }
0x1d60   : > { %12655 = vmatprep.subr.bf16.mxu0 %v15027_v11  ;;  %v15049_v11 = vld [vmem:[%s20483_s3 + $0x40] sm:$0xff]  }
0x1d61   : > { %13359 = vmatmul.mubr.msk.bf16.vlgmr.msra.gmra.mrb[88].mxu1 %vm2122_vm0, %v15028_v42  ;;  %v15050_v42 = vld [vmem:[%s20487_s7 + $0x30] sm:$0xff]  }
0x1d62   : > { %13362 = vmatprep.mubr.msk.bf16.mxu1 %vm2122_vm0, %v15029_v21  ;;  %12692 = vmatpush3.bf16.msra.mxu1 %v15030_v36  ;;  %v15051_v21 = vld [vmem:[%s20487_s7 + $0x78] sm:$0xff]  }
0x1d63   : > { %12656 = vmatpush3.bf16.msra.mxu0 %v15031_v41  ;;  %12693 = vmatprep.subr.bf16.mxu1 %v15032_v44  ;;  %v15052_v36 = vld [vmem:[%s20487_s7 + $0x38] sm:$0xff]   ;;  %v15053_v41 = vld [vmem:[%s20483_s3 + $0x48] sm:$0xff]   ;;  %v15054_v44 = vld [vmem:[%s20483_s3 + $0x50] sm:$0xff]  }
0x1d64   : > { %12663 = vmatprep.subr.bf16.mxu0 %v15033_v1  ;;  %v15055_v1 = vld [vmem:[%s20483_s3 + $0x58] sm:$0xff]  }
0x1d66   : > { %12694 = vmatpush3.bf16.msra.mxu1 %v15034_v3  ;;  %v15056_v3 = vld [vmem:[%s20483_s3 + $0x60] sm:$0xff]  }
0x1d67   : > { %12695 = vmatprep.subr.bf16.mxu1 %v15035_v22  ;;  %v15057_v22 = vld [vmem:[%s20483_s3 + $0x68] sm:$0xff]  }
0x1d69   : > { %13363 = vmatmul.mubr.msk.bf16.gmra.mrb[92].mxu1 %vm2122_vm0, %v15036_v18  ;;  %v15058_v18 = vld [vmem:[%s20483_s3 + $0x70] sm:$0xff]  }
0x1d6a   : > { %13366 = vmatprep.mubr.msk.bf16.mxu1 %vm2122_vm0, %v15037_v52  ;;  %12696 = vmatpush3.bf16.msra.mxu1 %v15038_v4  ;;  %v15059_v52 = vld [vmem:[%s20483_s3 + $0x78] sm:$0xff]  }
0x1d6b   : > { %12697 = vmatprep.subr.bf16.mxu1 %v15039_v26 }
0x1d6e   : > { %12698 = vmatpush3.bf16.msra.mxu1 %v15040_v47 }
0x1d6f   : > { %12699 = vmatprep.subr.bf16.mxu1 %v15041_v12 }
0x1d71   : > { %13367 = vmatmul.mubr.msk.bf16.gmra.mrb[96].mxu1 %vm2122_vm0, %v15042_v30 }
0x1d72   : > { %13370 = vmatprep.mubr.msk.bf16.mxu1 %vm2122_vm0, %v15043_v2  ;;  %12700 = vmatpush3.bf16.msra.mxu1 %v15044_v5 }
0x1d73   : > { %12701 = vmatprep.subr.bf16.mxu1 %v15045_v60 }
0x1d76   : > { %12702 = vmatpush3.bf16.msra.mxu1 %v15046_v59 }
0x1d77   : > { %12703 = vmatprep.subr.bf16.mxu1 %v15047_v43  ;;  %v18914_v43 = vld [vmem:[%s20488_s8] ss:$0 sm:$0xff] }
0x1d78   : > { %21052 = vst [vmem:[#allocation10_spill] sm:$0xff] %v18914_v43 }
0x1d79   : > { %13371 = vmatmul.mubr.msk.bf16.gmra.mrb[100].mxu1 %vm2122_vm0, %v15048_v62 }
0x1d7a   : > { %13374 = vmatprep.mubr.msk.bf16.mxu1 %vm2122_vm0, %v15049_v11  ;;  %12704 = vmatpush3.bf16.msra.mxu1 %v15050_v42 }
0x1d7b   : > { %12705 = vmatprep.subr.bf16.mxu1 %v15051_v21 }
0x1d7e   : > { %12706 = vmatpush3.bf16.msra.mxu1 %v15052_v36 }
0x1d7f   : > { %13412 = vmatprep.subr.bf16.mxu1 %v20701_v20 }
0x1d81   : > { %13375 = vmatmul.mubr.msk.bf16.gmra.mrb[104].mxu1 %vm2122_vm0, %v15053_v41 }
0x1d82   : > { %13378 = vmatprep.mubr.msk.bf16.mxu1 %vm2122_vm0, %v15054_v44 }
0x1d89   : > { %13379 = vmatmul.mubr.msk.bf16.gmra.mrb[108].mxu1 %vm2122_vm0, %v15055_v1 }
0x1d8a   : > { %13382 = vmatprep.mubr.msk.bf16.mxu1 %vm2122_vm0, %v15056_v3 }
0x1d91   : > { %13383 = vmatmul.mubr.msk.bf16.gmra.mrb[112].mxu1 %vm2122_vm0, %v15057_v22 }
0x1d92   : > { %13386 = vmatprep.mubr.msk.bf16.mxu1 %vm2122_vm0, %v15058_v18 }
0x1d99   : > { %13387 = vmatmul.mubr.msk.bf16.gmra.mrb[116].mxu1 %vm2122_vm0, %v15059_v52 }
0x1e08   : > { %v12585_v4 = vpop.f32.mrb[80].mxu1 }
0x1e09   : > { %v12586_v26 = vpop.f32.mrb[81].mxu1 }
0x1e0a   : > { %v12587_v47 = vadd.f32 %v12586_v26, %v12585_v4  ;;  %v12588_v12 = vpop.f32.mrb[82].mxu1 }
0x1e0b   : > { %v12589_v30 = vpop.f32.mrb[83].mxu1 }
0x1e0c   : > { %v6863_v62 = vadd.f32 %v18914_v43, %v12587_v47 }
0x1e18   : > { %v6942_v2 = vpop.f32.mrb[84].mxu1  ;;  %v12607_v5 = vpop.f32.mrb[108].mxu0 }
0x1e19   : > { %v13342_v60 = vpop.f32.mrb[85].mxu1  ;;  %v12608_v59 = vpop.f32.mrb[109].mxu0 }
0x1e1a   : > { %v12609_v11 = vadd.f32 %v12608_v59, %v12607_v5  ;;  %v6945_v42 = vpop.f32.mrb[86].mxu1  ;;  %v12610_v21 = vpop.f32.mrb[110].mxu0 }
0x1e1b   : > { %v13343_v36 = vpop.f32.mrb[87].mxu1  ;;  %v12611_v41 = vpop.f32.mrb[111].mxu0 }
0x1e1c   : > { %v6903_v44 = vadd.f32 %v12609_v11, %v6863_v62 }
0x1e1e   : > { %v18917_v1 = vadd.f32 %v6942_v2, %v6903_v44 }
0x1e20   : > { %21053 = vst [vmem:[#allocation11_spill] sm:$0xff] %v18917_v1 }
0x1e34   : > { %v13360_v3 = vpop.f32.mrb[88].mxu1 }
0x1e35   : > { %v18919_v22 = vpop.f32.mrb[89].mxu1 }
0x1e36   : > { %v13361_v18 = vpop.f32.mrb[90].mxu1 }
0x1e37   : > { %v13965_v52 = vpack.i.bf16 %v13361_v18, %v13360_v3  ;;  %v7028_v4 = vpop.f32.mrb[91].mxu1 }
0x1e39   : > { %13966 = vrot.lane.b32.xlu1 %v13965_v52, %s15071_s26 }
0x1e3c   : > { %v13364_v26 = vpop.f32.mrb[92].mxu1 }
0x1e3d   : > { %v7041_v12 = vpop.f32.mrb[93].mxu1 }
0x1e3e   : > { %v13365_v30 = vpop.f32.mrb[94].mxu1 }
0x1e3f   : > { %v13990_v47 = vpack.i.bf16 %v13365_v30, %v13364_v26  ;;  %v7044_v5 = vpop.f32.mrb[95].mxu1 }
0x1e40   : > { %v13970_v60 = vpack.i.bf16 %v7044_v5, %v7041_v12 }
0x1e42   : > { %13971 = vrot.lane.b32.xlu1 %v13970_v60, %s15072_s16 }
0x1e44   : > { %v13368_v59 = vpop.f32.mrb[96].mxu1 }
0x1e45   : > { %v18923_v62 = vpop.f32.mrb[97].mxu1 }
0x1e46   : > { %13991 = vrot.lane.b32.xlu1 %v13990_v47, %s15073_s17  ;;  %v13369_v2 = vpop.f32.mrb[98].mxu1 }
0x1e47   : > { %v13975_v11 = vpack.i.bf16 %v13369_v2, %v13368_v59  ;;  %v18926_v42 = vpop.f32.mrb[99].mxu1 }
0x1e49   : > { %13976 = vrot.lane.b32.xlu0 %v13975_v11, %s15071_s26 }
0x1e4c   : > { %v13372_v21 = vpop.f32.mrb[100].mxu1 }
0x1e4d   : > { %v7073_v36 = vpop.f32.mrb[101].mxu1 }
0x1e4e   : > { %v13373_v41 = vpop.f32.mrb[102].mxu1 }
0x1e4f   : > { %v13985_v44 = vpack.i.bf16 %v13373_v41, %v13372_v21  ;;  %v7076_v3 = vpop.f32.mrb[103].mxu1 }
0x1e50   : > { %v13980_v18 = vpack.i.bf16 %v7076_v3, %v7073_v36 }
0x1e52   : > { %13981 = vrot.lane.b32.xlu0 %v13980_v18, %s15072_s16 }
0x1e54   : > { %v13376_v52 = vpop.f32.mrb[104].mxu1 }
0x1e55   : > { %v18930_v26 = vpop.f32.mrb[105].mxu1 }
0x1e56   : > { %13986 = vrot.lane.b32.xlu0 %v13985_v44, %s15073_s17  ;;  %v13377_v12 = vpop.f32.mrb[106].mxu1 }
0x1e57   : > { %v13995_v30 = vpack.i.bf16 %v13377_v12, %v13376_v52  ;;  %v18933_v47 = vpop.f32.mrb[107].mxu1 }
0x1e59   : > { %13996 = vrot.lane.b32.xlu1 %v13995_v30, %s15071_s26 }
0x1e5c   : > { %v13380_v5 = vpop.f32.mrb[108].mxu1 }
0x1e5d   : > { %v7105_v60 = vpop.f32.mrb[109].mxu1 }
0x1e5e   : > { %v13381_v59 = vpop.f32.mrb[110].mxu1 }
0x1e5f   : > { %v14020_v2 = vpack.i.bf16 %v13381_v59, %v13380_v5  ;;  %v7108_v11 = vpop.f32.mrb[111].mxu1 }
0x1e60   : > { %v14000_v21 = vpack.i.bf16 %v7108_v11, %v7105_v60 }
0x1e62   : > { %14001 = vrot.lane.b32.xlu1 %v14000_v21, %s15072_s16 }
0x1e64   : > { %v13384_v36 = vpop.f32.mrb[112].mxu1 }
0x1e65   : > { %v18937_v41 = vpop.f32.mrb[113].mxu1 }
0x1e66   : > { %14021 = vrot.lane.b32.xlu1 %v14020_v2, %s15073_s17  ;;  %v13385_v44 = vpop.f32.mrb[114].mxu1 }
0x1e67   : > { %v14005_v3 = vpack.i.bf16 %v13385_v44, %v13384_v36  ;;  %v18940_v18 = vpop.f32.mrb[115].mxu1 }
0x1e69   : > { %14006 = vrot.lane.b32.xlu0 %v14005_v3, %s15071_s26 }
0x1e6c   : > { %v13388_v52 = vpop.f32.mrb[116].mxu1 }
0x1e6d   : > { %v7137_v12 = vpop.f32.mrb[117].mxu1 }
0x1e6e   : > { %v13389_v30 = vpop.f32.mrb[118].mxu1 }
0x1e6f   : > { %v14015_v43 = vpack.i.bf16 %v13389_v30, %v13388_v52  ;;  %v7140_v5 = vpop.f32.mrb[119].mxu1 }
0x1e70   : > { %v14010_v59 = vpack.i.bf16 %v7140_v5, %v7137_v12 }
0x1e72   : > { %14011 = vrot.lane.b32.xlu0 %v14010_v59, %s15072_s16 }
0x1e76   : > { %14016 = vrot.lane.b32.xlu0 %v14015_v43, %s15073_s17 }
0x1eab   : > { %v13967_v60 = vpop.permute.xlu1 %13966 }
0x1eac   : > { %v13969_v21 = vunpack.i.h.bf16 %v13967_v60  ;;  %v13968_v2 = vunpack.i.l.bf16 %v13967_v60 }
0x1eae   : > { %v7248_v3 = vsel %vm2432_vm2, %v18919_v22, %v13968_v2  ;;  %v7249_v9 = vsel %vm2432_vm2, %v7028_v4, %v13969_v21 }
0x1eb4   : > { %v13972_v11 = vpop.permute.xlu1 %13971 }
0x1eb5   : > { %v13974_v54 = vunpack.i.h.bf16 %v13972_v11  ;;  %v13973_v36 = vunpack.i.l.bf16 %v13972_v11 }
0x1eb7   : > { %v7251_v12 = vsel %vm2435_vm3, %v7249_v9, %v13974_v54  ;;  %v7250_v30 = vsel %vm2435_vm3, %v7248_v3, %v13973_v36 }
0x1eb8   : > { %v13992_v44 = vpop.permute.xlu1 %13991 }
0x1eb9   : > { %v13994_v15 = vunpack.i.h.bf16 %v13992_v44  ;;  %v13993_v52 = vunpack.i.l.bf16 %v13992_v44 }
0x1ebb   : > { %v7252_v43 = vsel %vm2438_vm4, %v7250_v30, %v13993_v52  ;;  %v7253_v5 = vsel %vm2438_vm4, %v7251_v12, %v13994_v15  ;;  %v13977_v60 = vpop.permute.xlu0 %13976 }
0x1ebc   : > { %v7272_v59 = vpack.c.bf16 %v7253_v5, %v7252_v43  ;;  %v13979_v11 = vunpack.i.h.bf16 %v13977_v60  ;;  %v13978_v61 = vunpack.i.l.bf16 %v13977_v60 }
0x1ebe   : > { %v7254_v4 = vsel %vm2432_vm2, %v18923_v62, %v13978_v61  ;;  %v7255_v9 = vsel %vm2432_vm2, %v18926_v42, %v13979_v11 }
0x1ec4   : > { %v13982_v13 = vpop.permute.xlu0 %13981 }
0x1ec5   : > { %v13984_v1 = vunpack.i.h.bf16 %v13982_v13  ;;  %v13983_v32 = vunpack.i.l.bf16 %v13982_v13 }
0x1ec7   : > { %v7257_v2 = vsel %vm2435_vm3, %v7255_v9, %v13984_v1  ;;  %v7256_v15 = vsel %vm2435_vm3, %v7254_v4, %v13983_v32 }
0x1ec8   : > { %v13987_v22 = vpop.permute.xlu0 %13986 }
0x1ec9   : > { %v13989_v54 = vunpack.i.h.bf16 %v13987_v22  ;;  %v13988_v21 = vunpack.i.l.bf16 %v13987_v22 }
0x1ecb   : > { %v7258_v36 = vsel %vm2438_vm4, %v7256_v15, %v13988_v21  ;;  %v7259_v44 = vsel %vm2438_vm4, %v7257_v2, %v13989_v54  ;;  %v13997_v13 = vpop.permute.xlu1 %13996 }
0x1ecc   : > { %v7273_v3 = vpack.c.bf16 %v7259_v44, %v7258_v36  ;;  %v13999_v62 = vunpack.i.h.bf16 %v13997_v13  ;;  %v13998_v42 = vunpack.i.l.bf16 %v13997_v13 }
0x1ece   : > { %7308 = vmatprep.mubr.bf16.mxu0 %v7273_v3  ;;  %v7260_v12 = vsel %vm2432_vm2, %v18930_v26, %v13998_v42 }
0x1ecf   : > { %7309 = vmatmul.mubr.bf16.vlgmr.msra.gmra.mrb[112].mxu0 %v7272_v59 }
0x1ed0   : > { %12664 = vmatpush3.bf16.msra.mxu0 %v18446_v57  ;;  %v7261_v57 = vsel %vm2432_vm2, %v18933_v47, %v13999_v62 }
0x1ed1   : > { %12665 = vmatprep.subr.bf16.mxu0 %v18452_v37 }
0x1ed4   : > { %12666 = vmatpush3.bf16.msra.mxu0 %v18458_v49  ;;  %v14002_v61 = vpop.permute.xlu1 %14001 }
0x1ed5   : > { %12667 = vmatprep.subr.bf16.mxu0 %v18464_v6  ;;  %v14004_v32 = vunpack.i.h.bf16 %v14002_v61  ;;  %v14003_v1 = vunpack.i.l.bf16 %v14002_v61 }
0x1ed7   : > { %v7263_v49 = vsel %vm2435_vm3, %v7261_v57, %v14004_v32  ;;  %v7262_v43 = vsel %vm2435_vm3, %v7260_v12, %v14003_v1  ;;  %v15061_v57 = vld [vmem:[%s20487_s7 + $0xc0] sm:$0xff]  }
0x1ed8   : > { %12668 = vmatpush3.bf16.msra.mxu0 %v18470_v24  ;;  %v14022_v52 = vpop.permute.xlu1 %14021 }
0x1ed9   : > { %v14024_v30 = vunpack.i.h.bf16 %v14022_v52  ;;  %v14023_v37 = vunpack.i.l.bf16 %v14022_v52  ;;  %12669 = vmatprep.subr.bf16.mxu0 %v18480_v33 }
0x1edb   : > { %v7264_v6 = vsel %vm2438_vm4, %v7262_v43, %v14023_v37  ;;  %v7265_v5 = vsel %vm2438_vm4, %v7263_v49, %v14024_v30  ;;  %v14007_v26 = vpop.permute.xlu0 %14006 }
0x1edc   : > { %v7274_v24 = vpack.c.bf16 %v7265_v5, %v7264_v6  ;;  %12670 = vmatpush3.bf16.msra.mxu0 %v18490_v35  ;;  %v14009_v47 = vunpack.i.h.bf16 %v14007_v26  ;;  %v14008_v59 = vunpack.i.l.bf16 %v14007_v26 }
0x1edd   : > { %12671 = vmatprep.subr.bf16.mxu0 %v18496_v53 }
0x1ede   : > { %v7266_v35 = vsel %vm2432_vm2, %v18937_v41, %v14008_v59  ;;  %v7267_v53 = vsel %vm2432_vm2, %v18940_v18, %v14009_v47 }
0x1ee0   : > { %12672 = vmatpush3.bf16.msra.mxu0 %v18502_v29 }
0x1ee1   : > { %12673 = vmatprep.subr.bf16.mxu0 %v18508_v8 }
0x1ee4   : > { %12674 = vmatpush3.bf16.msra.mxu0 %v18514_v34  ;;  %v14012_v33 = vpop.permute.xlu0 %14011 }
0x1ee5   : > { %12675 = vmatprep.subr.bf16.mxu0 %v18520_v31  ;;  %v14014_v60 = vunpack.i.h.bf16 %v14012_v33  ;;  %v14013_v11 = vunpack.i.l.bf16 %v14012_v33  ;;  %v21059_v33 = vld [vmem:[#allocation11_spill] sm:$0xff] }
0x1ee6   : > { %v19055_v47 = vmax.f32 %v21059_v33, 0.0  ;;  %v7668_v33 = vld [vmem:[%s20489_s9 + $0x48] sm:$0xff] }
0x1ee7   : > { %v7269_v34 = vsel %vm2435_vm3, %v7267_v53, %v14014_v60  ;;  %v7268_v4 = vsel %vm2435_vm3, %v7266_v35, %v14013_v11 }
0x1ee8   : > { %12676 = vmatpush3.bf16.msra.mxu0 %v18526_v27  ;;  %v14017_v22 = vpop.permute.xlu0 %14016  ;;  %v6956_v35 = vrot.slane %v19055_v47, 3 }
0x1ee9   : > { %v14019_v29 = vunpack.i.h.bf16 %v14017_v22  ;;  %v14018_v8 = vunpack.i.l.bf16 %v14017_v22  ;;  %12677 = vmatprep.subr.bf16.mxu0 %v18536_v48  ;;  %v6950_v22 = vrot.slane %v19055_v47, 1 }
0x1eeb   : > { %v7270_v31 = vsel %vm2438_vm4, %v7268_v4, %v14018_v8  ;;  %v7271_v9 = vsel %vm2438_vm4, %v7269_v34, %v14019_v29  ;;  %v21060_v29 = vld [vmem:[#allocation38_spill] sm:$0xff] }
0x1eec   : > { %12678 = vmatpush3.bf16.msra.mxu0 %v18546_v28  ;;  %v7275_v27 = vpack.c.bf16 %v7271_v9, %v7270_v31  ;;  %v19061_v8 = vmax.f32 %v21060_v29, 0.0 }
0x1eed   : > { %13390 = vmatprep.subr.bf16.mxu0 %v20701_v20 }
0x1eee   : > { %7349 = vmatprep.mubr.bf16.mxu0 %v7275_v27  ;;  %v14065_v27 = vpack.i.bf16 %v6950_v22, %v6956_v35  ;;  %v7679_v22 = vld [vmem:[%s20489_s9 + $0xa0] sm:$0xff]  ;;  %v7676_v35 = vld [vmem:[%s20489_s9 + $0x88] sm:$0xff] }
0x1eef   : > { %7350 = vmatmul.mubr.bf16.vlgmr.msra.gmra.mrb[116].mxu0 %v7274_v24 }
0x1ef0   : > { %13392 = vmatprep.mubr.msk.bf16.mxu0 %vm15075_vm5, %v20701_v20 }
0x1fa2   : > { %v12657_v41 = vpop.f32.mrb[112].mxu0 }
0x1fa3   : > { %v12658_v48 = vpop.f32.mrb[113].mxu0 }
0x1fa4   : > { %v12659_v18 = vadd.f32 %v12658_v48, %v12657_v41  ;;  %v12660_v54 = vpop.f32.mrb[114].mxu0  ;;  %v3235_v48 = vrot.slane %v19061_v8, 3 }
0x1fa5   : > { %v12661_v21 = vpop.f32.mrb[115].mxu0 }
0x1fa6   : > { %v12662_v2 = vadd.f32 %v12661_v21, %v12660_v54  ;;  %v7311_v44 = vadd.f32 %v18555_v17, %v12659_v18  ;;  %v21061_v18 = vld [vmem:[#allocation82_spill] sm:$0xff] }
0x1fa7   : > { %v19069_v54 = vmax.f32 %v21061_v18, 0.0 }
0x1fa8   : > { %v7314_v61 = vadd.f32 %v18555_v17, %v12662_v2  ;;  %v21054_v17 = vld [vmem:[#allocation83_spill] sm:$0xff] }
0x1fc2   : > { %v12679_v15 = vpop.f32.mrb[116].mxu0 }
0x1fc3   : > { %v12680_v36 = vpop.f32.mrb[117].mxu0 }
0x1fc4   : > { %v12681_v3 = vadd.f32 %v12680_v36, %v12679_v15  ;;  %v12682_v28 = vpop.f32.mrb[118].mxu0  ;;  %v3229_v36 = vrot.slane %v19061_v8, 1 }
0x1fc5   : > { %v12683_v13 = vpop.f32.mrb[119].mxu0 }
0x1fc6   : > { %v7352_v62 = vadd.f32 %v12681_v3, %v7311_v44  ;;  %v12684_v42 = vadd.f32 %v12683_v13, %v12682_v28  ;;  %v6343_v13 = vrot.slane %v19069_v54, 1 }
0x1fc8   : > { %v7355_v32 = vadd.f32 %v12684_v42, %v7314_v61  ;;  %v7358_v1 = vmax.f32 %v7352_v62, 0.0  ;;  %v6349_v61 = vrot.slane %v19069_v54, 3 }
0x1fca   : > { %v7359_v52 = vmax.f32 %v7355_v32, 0.0  ;;  %v14060_v42 = vpack.i.bf16 %v6343_v13, %v6349_v61 }
0x1fcc   : > { %v7360_v12 = vpack.c.bf16 %v7359_v52, %v7358_v1 }
0x1fce   : > { %13391 = vmatpush3.bf16.msra.mxu0 %v7360_v12 }
0x1fcf   : > { %12713 = vmatprep.subr.bf16.mxu0 %v15061_v57 }
0x1fd1   : > { %13393 = vmatmul.mubr.msk.bf16.vlgmr.msra.gmra.mrb[120].mxu0 %vm2769_vm6, %v18563_v39 }
0x1fd2   : > { %13396 = vmatprep.mubr.msk.bf16.mxu0 %vm15075_vm5, %v20701_v20  ;;  %12714 = vmatpush3.bf16.msra.mxu0 %v18572_v46 }
0x1fd3   : > { %12715 = vmatprep.subr.bf16.mxu0 %v18578_v14 }
0x1fd6   : > { %12716 = vmatpush3.bf16.msra.mxu0 %v18584_v25 }
0x1fd7   : > { %12717 = vmatprep.subr.bf16.mxu0 %v18590_v10  ;;  %v21055_v10 = vld [vmem:[#allocation2_spill] sm:$0xff] }
0x1fd9   : > { %13397 = vmatmul.mubr.msk.bf16.gmra.mrb[124].mxu0 %vm2769_vm6, %v18596_v16  ;;  %v19035_v16 = vmax.f32 %v21055_v10, 0.0 }
0x1fda   : > { %13400 = vmatprep.mubr.msk.bf16.mxu0 %vm15075_vm5, %v20701_v20  ;;  %12718 = vmatpush3.bf16.msra.mxu0 %v18605_v38 }
0x1fdb   : > { %12719 = vmatprep.subr.bf16.mxu0 %v18611_v63 }
0x1fde   : > { %12720 = vmatpush3.bf16.msra.mxu0 %v18617_v45 }
0x1fdf   : > { %12721 = vmatprep.subr.bf16.mxu0 %v18623_v19  ;;  %v21056_v19 = vld [vmem:[#allocation33_spill] sm:$0xff] }
0x1fe1   : > { %13401 = vmatmul.mubr.msk.bf16.gmra.mrb[128].mxu0 %vm2769_vm6, %v18629_v23  ;;  %v19038_v23 = vmax.f32 %v21056_v19, 0.0 }
0x1fe2   : > { %13404 = vmatprep.mubr.msk.bf16.mxu0 %vm15075_vm5, %v20701_v20  ;;  %12722 = vmatpush3.bf16.msra.mxu0 %v18638_v7 }
0x1fe3   : > { %12723 = vmatprep.subr.bf16.mxu0 %v18644_v0  ;;  %v5109_v37 = vrot.slane %v19038_v23, 3  ;;  %v5103_v2 = vrot.slane %v19038_v23, 1 }
0x1fe5   : > { %v14050_v28 = vpack.i.bf16 %v5103_v2, %v3229_v36  ;;  %v7691_v36 = vld [vmem:[%s20489_s9 + $0x100] sm:$0xff] }
0x1fe6   : > { %12724 = vmatpush3.bf16.msra.mxu0 %v18650_v55  ;;  %v3863_v55 = vrot.slane %v19035_v16, 1 }
0x1fe7   : > { %12725 = vmatprep.subr.bf16.mxu0 %v18656_v40  ;;  %v3869_v40 = vrot.slane %v19035_v16, 3 }
0x1fe9   : > { %13405 = vmatmul.mubr.msk.bf16.gmra.mrb[132].mxu0 %vm2769_vm6, %v18662_v50  ;;  %v21057_v50 = vld [vmem:[#allocation88_spill] sm:$0xff]  ;;  %v14035_v30 = vpack.i.bf16 %v3863_v55, %v3869_v40  ;;  %v21065_v40 = vld [vmem:[#allocation87_spill] sm:$0xff] }
0x1fea   : > { %13408 = vmatprep.mubr.msk.bf16.mxu0 %vm15075_vm5, %v20701_v20  ;;  %12726 = vmatpush3.bf16.msra.mxu0 %v18671_v56  ;;  %v19043_v56 = vmax.f32 %v21057_v50, 0.0  ;;  %v7659_v50 = vld [vmem:[%s20489_s9] sm:$0xff] }
0x1feb   : > { %12727 = vmatprep.subr.bf16.mxu0 %v18677_v51  ;;  %v21058_v51 = vld [vmem:[#allocation81_spill] sm:$0xff] }
0x1fec   : > { %v4470_v6 = vrot.slane %v19043_v56, 1  ;;  %v4476_v41 = vrot.slane %v19043_v56, 3 }
0x1fee   : > { %12728 = vmatpush3.bf16.msra.mxu0 %v18683_v58  ;;  %v19047_v58 = vmax.f32 %v21058_v51, 0.0  ;;  %v14045_v60 = vpack.i.bf16 %v5109_v37, %v4470_v6  ;;  %v14040_v21 = vpack.i.bf16 %v3235_v48, %v4476_v41  ;;  %v7660_v51 = vld [vmem:[%s20489_s9 + $0x8] sm:$0xff]  ;;  %v7671_v6 = vld [vmem:[%s20489_s9 + $0x60] sm:$0xff] }
0x1fef   : > { %v7684_v41 = vld [vmem:[%s20489_s9 + $0xc8] sm:$0xff] }
0x1ff0   : > { %v5710_v24 = vrot.slane %v19047_v58, 1  ;;  %v5716_v26 = vrot.slane %v19047_v58, 3  ;;  %v7688_v48 = vld [vmem:[%s20489_s9 + $0xe8] sm:$0xff] }
0x1ff1   : > { %13409 = vmatmul.mubr.msk.bf16.gmra.mrb[136].mxu0 %vm2769_vm6, %v21054_v17  ;;  %v11370_v61 = vcombine.low %v7684_v41, %v7688_v48 }
0x1ff2   : > { %v14055_v11 = vpack.i.bf16 %v5710_v24, %v5716_v26 }
0x20a4   : > { %v19032_v39 = vpop.f32.mrb[120].mxu0 }
0x20a5   : > { %v13394_v46 = vpop.f32.mrb[121].mxu0 }
0x20a6   : > { %v7398_v14 = vpop.f32.mrb[122].mxu0 }
0x20a7   : > { %v13395_v25 = vpop.f32.mrb[123].mxu0 }
0x20a8   : > { %v21063_v25 = vld [vmem:[#allocation85_spill] sm:$0xff] }
0x20ac   : > { %v7403_v38 = vpop.f32.mrb[124].mxu0 }
0x20ad   : > { %v13398_v63 = vpop.f32.mrb[125].mxu0 }
0x20ae   : > { %v7406_v45 = vpop.f32.mrb[126].mxu0  ;;  %v21064_v63 = vld [vmem:[#allocation86_spill] sm:$0xff] }
0x20af   : > { %v14025_v7 = vpack.i.bf16 %v7398_v14, %v7406_v45  ;;  %v13399_v0 = vpop.f32.mrb[127].mxu0  ;;  %v21062_v14 = vld [vmem:[#allocation84_spill] sm:$0xff] }
0x20b1   : > { %14026 = vrot.lane.b32.xlu0 %v14025_v7, %s15072_s16 }
0x20b4   : > { %v7411_v49 = vpop.f32.mrb[128].mxu0 }
0x20b5   : > { %14036 = vrot.lane.b32.xlu0 %v14035_v30, %s15072_s16  ;;  %v13402_v43 = vpop.f32.mrb[129].mxu0 }
0x20b6   : > { %v7414_v5 = vpop.f32.mrb[130].mxu0  ;;  %v7667_v43 = vld [vmem:[%s20489_s9 + $0x40] sm:$0xff] }
0x20b7   : > { %v13403_v59 = vpop.f32.mrb[131].mxu0  ;;  %v11353_v26 = vcombine.high %v7667_v43, %v7671_v6  ;;  %v11352_v29 = vcombine.low %v7667_v43, %v7671_v6  ;;  %v7727_v43 = vld [vmem:[%s20489_s9 + $0x220] sm:$0xff]  ;;  %v7724_v6 = vld [vmem:[%s20489_s9 + $0x208] sm:$0xff] }
0x20b8   : > { %v7672_v59 = vld [vmem:[%s20489_s9 + $0x68] sm:$0xff] }
0x20b9   : > { %14046 = vrot.lane.b32.xlu0 %v14045_v60, %s15072_s16  ;;  %v7675_v60 = vld [vmem:[%s20489_s9 + $0x80] sm:$0xff] }
0x20ba   : > { %v11360_v18 = vcombine.low %v7675_v60, %v7679_v22 }
0x20bc   : > { %v7419_v53 = vpop.f32.mrb[132].mxu0 }
0x20bd   : > { %v13406_v34 = vpop.f32.mrb[133].mxu0  ;;  %14056 = vrot.lane.b32.xlu0 %v14055_v11, %s15072_s16  ;;  %v11355_v11 = vcombine.high %v7668_v33, %v7672_v59 }
0x20be   : > { %v7422_v4 = vpop.f32.mrb[134].mxu0  ;;  %v11354_v34 = vcombine.low %v7668_v33, %v7672_v59 }
0x20bf   : > { %v14030_v31 = vpack.i.bf16 %v7414_v5, %v7422_v4  ;;  %v13407_v9 = vpop.f32.mrb[135].mxu0  ;;  %v11361_v4 = vcombine.high %v7675_v60, %v7679_v22  ;;  %v7731_v60 = vld [vmem:[%s20489_s9 + $0x240] sm:$0xff]  ;;  %v7732_v22 = vld [vmem:[%s20489_s9 + $0x248] sm:$0xff] }
0x20c0   : > { %v7683_v9 = vld [vmem:[%s20489_s9 + $0xc0] sm:$0xff] }
0x20c1   : > { %14031 = vrot.lane.b32.xlu1 %v14030_v31, %s15072_s16  ;;  %14066 = vrot.lane.b32.xlu0 %v14065_v27, %s15072_s16  ;;  %v7687_v27 = vld [vmem:[%s20489_s9 + $0xe0] sm:$0xff] }
0x20c2   : > { %v11369_v2 = vcombine.high %v7683_v9, %v7687_v27  ;;  %v11368_v13 = vcombine.low %v7683_v9, %v7687_v27  ;;  %v7743_v9 = vld [vmem:[%s20489_s9 + $0x2a0] sm:$0xff]  ;;  %v7740_v27 = vld [vmem:[%s20489_s9 + $0x288] sm:$0xff] }
0x20c4   : > { %v7427_v15 = vpop.f32.mrb[136].mxu0 }
0x20c5   : > { %14041 = vrot.lane.b32.xlu1 %v14040_v21, %s15072_s16  ;;  %v13410_v44 = vpop.f32.mrb[137].mxu0  ;;  %v7457_v7 = vpack.c.bf16 %v7427_v15, %v7427_v15  ;;  %v11371_v15 = vcombine.high %v7684_v41, %v7688_v48  ;;  %v7744_v41 = vld [vmem:[%s20489_s9 + $0x2a8] sm:$0xff] }
0x20c6   : > { %v7430_v3 = vpop.f32.mrb[138].mxu0  ;;  %v7695_v44 = vld [vmem:[%s20489_s9 + $0x120] sm:$0xff] }
0x20c7   : > { %v13411_v62 = vpop.f32.mrb[139].mxu0  ;;  %v7692_v3 = vld [vmem:[%s20489_s9 + $0x108] sm:$0xff] }
0x20c8   : > { %v11377_v62 = vcombine.high %v7691_v36, %v7695_v44 }
0x20c9   : > { %14051 = vrot.lane.b32.xlu1 %v14050_v28, %s15072_s16  ;;  %v7696_v28 = vld [vmem:[%s20489_s9 + $0x128] sm:$0xff] }
0x20cd   : > { %14061 = vrot.lane.b32.xlu1 %v14060_v42, %s15072_s16  ;;  %v11379_v42 = vcombine.high %v7692_v3, %v7696_v28 }
0x2123   : > { %v14027_v32 = vpop.permute.xlu0 %14026 }
0x2124   : > { %v14029_v1 = vunpack.i.h.bf16 %v14027_v32  ;;  %v14028_v52 = vunpack.i.l.bf16 %v14027_v32  ;;  %v7699_v32 = vld [vmem:[%s20489_s9 + $0x140] sm:$0xff] }
0x2126   : > { %v7449_v12 = vsel %vm2435_vm3, %v19032_v39, %v14029_v1  ;;  %v7450_v57 = vsel %vm2435_vm3, %v7403_v38, %v14028_v52  ;;  %v7703_v1 = vld [vmem:[%s20489_s9 + $0x160] sm:$0xff]  ;;  %v7700_v52 = vld [vmem:[%s20489_s9 + $0x148] sm:$0xff] }
0x2127   : > { %v7453_v17 = vpack.c.bf16 %v7449_v12, %v7449_v12  ;;  %v7454_v46 = vpack.c.bf16 %v7450_v57, %v7450_v57  ;;  %v7704_v12 = vld [vmem:[%s20489_s9 + $0x168] sm:$0xff]  ;;  %v11376_v57 = vcombine.low %v7691_v36, %v7695_v44  ;;  %v7751_v36 = vld [vmem:[%s20489_s9 + $0x2e0] sm:$0xff] }
0x2128   : > { %v7748_v44 = vld [vmem:[%s20489_s9 + $0x2c8] sm:$0xff] }
0x2129   : > { %7493 = vmatprep.mubr.bf16.mxu1 %v7454_v46  ;;  %v11385_v46 = vcombine.high %v7699_v32, %v7703_v1 }
0x212a   : > { %7494 = vmatmul.mubr.bf16.vlgmr.msra.gmra.mrb[120].mxu1 %v7453_v17  ;;  %v11378_v17 = vcombine.low %v7692_v3, %v7696_v28  ;;  %v7752_v3 = vld [vmem:[%s20489_s9 + $0x2e8] sm:$0xff] }
0x212b   : > { %13413 = vmatpush3.bf16.msra.mxu1 %v21062_v14  ;;  %13420 = vmatprep.mubr.msk.bf16.mxu1 %vm15075_vm5, %v20701_v20  ;;  %v11387_v14 = vcombine.high %v7700_v52, %v7704_v12 }
0x212c   : > { %13414 = vmatprep.subr.bf16.mxu1 %v20701_v20 }
0x212f   : > { %13415 = vmatpush3.bf16.msra.mxu1 %v21063_v25  ;;  %v7707_v25 = vld [vmem:[%s20489_s9 + $0x180] sm:$0xff] }
0x2130   : > { %13416 = vmatprep.subr.bf16.mxu1 %v20701_v20 }
0x2133   : > { %v14032_v10 = vpop.permute.xlu1 %14031  ;;  %13417 = vmatpush3.bf16.msra.mxu1 %v21064_v63  ;;  %v7708_v63 = vld [vmem:[%s20489_s9 + $0x188] sm:$0xff] }
0x2134   : > { %v14034_v39 = vunpack.i.h.bf16 %v14032_v10  ;;  %v14033_v38 = vunpack.i.l.bf16 %v14032_v10  ;;  %13418 = vmatprep.subr.bf16.mxu1 %v20701_v20  ;;  %v7663_v20 = vld [vmem:[%s20489_s9 + $0x20] sm:$0xff] }
0x2135   : > { %v11344_v30 = vcombine.low %v7659_v50, %v7663_v20  ;;  %v11345_v37 = vcombine.high %v7659_v50, %v7663_v20  ;;  %v7711_v10 = vld [vmem:[%s20489_s9 + $0x1a0] sm:$0xff]  ;;  %v7720_v50 = vld [vmem:[%s20489_s9 + $0x1e8] sm:$0xff] }
0x2136   : > { %v7451_v45 = vsel %vm2435_vm3, %v7411_v49, %v14034_v39  ;;  %v7452_v19 = vsel %vm2435_vm3, %v7419_v53, %v14033_v38  ;;  %v7664_v49 = vld [vmem:[%s20489_s9 + $0x28] sm:$0xff]  ;;  %v11384_v38 = vcombine.low %v7699_v32, %v7703_v1  ;;  %v11392_v20 = vcombine.low %v7707_v25, %v7711_v10  ;;  %v7759_v32 = vld [vmem:[%s20489_s9 + $0x320] sm:$0xff] }
0x2137   : > { %v7455_v0 = vpack.c.bf16 %v7451_v45, %v7451_v45  ;;  %v7456_v55 = vpack.c.bf16 %v7452_v19, %v7452_v19  ;;  %13419 = vmatpush3.bf16.msra.mxu1 %v21065_v40  ;;  %v11346_v5 = vcombine.low %v7660_v51, %v7664_v49  ;;  %v11347_v24 = vcombine.high %v7660_v51, %v7664_v49  ;;  %v7680_v53 = vld [vmem:[%s20489_s9 + $0xa8] sm:$0xff]  ;;  %v7723_v49 = vld [vmem:[%s20489_s9 + $0x200] sm:$0xff] }
0x2138   : > { %8469 = vmatprep.subr.bf16.mxu1 %v11345_v37  ;;  %v11363_v31 = vcombine.high %v7676_v35, %v7680_v53  ;;  %v11362_v21 = vcombine.low %v7676_v35, %v7680_v53  ;;  %v7712_v39 = vld [vmem:[%s20489_s9 + $0x1a8] sm:$0xff]  ;;  %v11386_v45 = vcombine.low %v7700_v52, %v7704_v12  ;;  %v11393_v19 = vcombine.high %v7707_v25, %v7711_v10  ;;  %v7767_v25 = vld [vmem:[%s20489_s9 + $0x360] sm:$0xff] }
0x2139   : > { %7533 = vmatprep.mubr.bf16.mxu0 %v7456_v55  ;;  %8510 = vmatprep.subr.bf16.mxu0 %v11347_v24  ;;  %v7719_v55 = vld [vmem:[%s20489_s9 + $0x1e0] sm:$0xff]  ;;  %v7716_v40 = vld [vmem:[%s20489_s9 + $0x1c8] sm:$0xff]  ;;  %v11394_v51 = vcombine.low %v7708_v63, %v7712_v39  ;;  %v11409_v33 = vcombine.high %v7723_v49, %v7727_v43  ;;  %v11408_v53 = vcombine.low %v7723_v49, %v7727_v43 }
0x213a   : > { %7534 = vmatmul.mubr.bf16.vlgmr.msra.gmra.mrb[140].mxu0 %v7455_v0  ;;  %13421 = vmatmul.mubr.msk.bf16.vlgmr.msra.gmra.mrb[124].mxu1 %vm2435_vm3, %v7457_v7  ;;  %v11395_v7 = vcombine.high %v7708_v63, %v7712_v39  ;;  %v7715_v0 = vld [vmem:[%s20489_s9 + $0x1c0] sm:$0xff]  ;;  %v11403_v37 = vcombine.high %v7716_v40, %v7720_v50  ;;  %v7736_v35 = vld [vmem:[%s20489_s9 + $0x268] sm:$0xff] }
0x213b   : > { %8470 = vmatpush1.bf16.msra.mxu1 %v11344_v30  ;;  %8511 = vmatpush1.bf16.msra.mxu0 %v11346_v5  ;;  %v11401_v30 = vcombine.high %v7715_v0, %v7719_v55  ;;  %v7728_v5 = vld [vmem:[%s20489_s9 + $0x228] sm:$0xff]  ;;  %v11400_v24 = vcombine.low %v7715_v0, %v7719_v55 }
0x213c   : > { %8471 = vmatprep.subr.bf16.mxu1 %v11353_v26  ;;  %8512 = vmatprep.subr.bf16.mxu0 %v11355_v11  ;;  %v11402_v26 = vcombine.low %v7716_v40, %v7720_v50  ;;  %v11411_v59 = vcombine.high %v7724_v6, %v7728_v5  ;;  %v7735_v11 = vld [vmem:[%s20489_s9 + $0x260] sm:$0xff]  ;;  %v7756_v1 = vld [vmem:[%s20489_s9 + $0x308] sm:$0xff] }
0x213d   : > { %v11416_v48 = vcombine.low %v7731_v60, %v7735_v11  ;;  %v7760_v52 = vld [vmem:[%s20489_s9 + $0x328] sm:$0xff] }
0x213e   : > { %v7764_v10 = vld [vmem:[%s20489_s9 + $0x348] sm:$0xff] }
0x213f   : > { %8472 = vmatpush1.bf16.msra.mxu1 %v11352_v29  ;;  %8513 = vmatpush1.bf16.msra.mxu0 %v11354_v34  ;;  %v11410_v29 = vcombine.low %v7724_v6, %v7728_v5  ;;  %v11417_v34 = vcombine.high %v7731_v60, %v7735_v11  ;;  %v7768_v63 = vld [vmem:[%s20489_s9 + $0x368] sm:$0xff] }
0x2140   : > { %8473 = vmatprep.subr.bf16.mxu1 %v11361_v4  ;;  %8514 = vmatprep.subr.bf16.mxu0 %v11363_v31  ;;  %v11419_v4 = vcombine.high %v7732_v22, %v7736_v35  ;;  %v7739_v31 = vld [vmem:[%s20489_s9 + $0x280] sm:$0xff]  ;;  %v11450_v0 = vcombine.low %v7764_v10, %v7768_v63  ;;  %v7772_v49 = vld [vmem:[%s20489_s9 + $0x388] sm:$0xff] }
0x2141   : > { %v11424_v28 = vcombine.low %v7739_v31, %v7743_v9  ;;  %v7776_v6 = vld [vmem:[%s20489_s9 + $0x3a8] sm:$0xff] }
0x2143   : > { %8474 = vmatpush1.bf16.msra.mxu1 %v11360_v18  ;;  %8515 = vmatpush1.bf16.msra.mxu0 %v11362_v21  ;;  %v11418_v18 = vcombine.low %v7732_v22, %v7736_v35  ;;  %v11425_v21 = vcombine.high %v7739_v31, %v7743_v9  ;;  %v21066_v22 = vld [vmem:[#allocation10_spill] sm:$0xff]  ;;  %v7780_v9 = vld [vmem:[%s20489_s9 + $0x3c8] sm:$0xff] }
0x2144   : > { %8475 = vmatprep.subr.bf16.mxu1 %v11369_v2  ;;  %8516 = vmatprep.subr.bf16.mxu0 %v11371_v15  ;;  %v11427_v2 = vcombine.high %v7740_v27, %v7744_v41  ;;  %v7747_v15 = vld [vmem:[%s20489_s9 + $0x2c0] sm:$0xff] }
0x2145   : > { %v11432_v12 = vcombine.low %v7747_v15, %v7751_v36  ;;  %v7783_v31 = vld [vmem:[%s20489_s9 + $0x3e0] sm:$0xff] }
0x2147   : > { %8476 = vmatpush1.bf16.msra.mxu1 %v11368_v13  ;;  %8517 = vmatpush1.bf16.msra.mxu0 %v11370_v61  ;;  %v11426_v13 = vcombine.low %v7740_v27, %v7744_v41  ;;  %v11433_v61 = vcombine.high %v7747_v15, %v7751_v36 }
0x2148   : > { %8477 = vmatprep.subr.bf16.mxu1 %v11377_v62  ;;  %8518 = vmatprep.subr.bf16.mxu0 %v11379_v42  ;;  %v11435_v62 = vcombine.high %v7748_v44, %v7752_v3  ;;  %v7755_v42 = vld [vmem:[%s20489_s9 + $0x300] sm:$0xff] }
0x2149   : > { %v11440_v39 = vcombine.low %v7755_v42, %v7759_v32 }
0x214b   : > { %8478 = vmatpush1.bf16.msra.mxu1 %v11376_v57  ;;  %8519 = vmatpush1.bf16.msra.mxu0 %v11378_v17  ;;  %v11434_v57 = vcombine.low %v7748_v44, %v7752_v3  ;;  %v11441_v17 = vcombine.high %v7755_v42, %v7759_v32  ;;  %v19289_v3 = vld [vmem:[%s20489_s9 + $0x10] sm:$0xff] }
0x214c   : > { %8479 = vmatprep.subr.bf16.mxu1 %v11385_v46  ;;  %8520 = vmatprep.subr.bf16.mxu0 %v11387_v14  ;;  %v11443_v46 = vcombine.high %v7756_v1, %v7760_v52  ;;  %v7763_v14 = vld [vmem:[%s20489_s9 + $0x340] sm:$0xff] }
0x214f   : > { %8480 = vmatpush1.bf16.msra.mxu1 %v11384_v38  ;;  %8521 = vmatpush1.bf16.msra.mxu0 %v11386_v45  ;;  %v11442_v38 = vcombine.low %v7756_v1, %v7760_v52  ;;  %v11449_v45 = vcombine.high %v7763_v14, %v7767_v25 }
0x2150   : > { %8481 = vmatprep.subr.bf16.mxu1 %v11393_v19  ;;  %8522 = vmatprep.subr.bf16.mxu0 %v11395_v7  ;;  %v11451_v19 = vcombine.high %v7764_v10, %v7768_v63  ;;  %v11448_v7 = vcombine.low %v7763_v14, %v7767_v25  ;;  %v14042_v14 = vpop.permute.xlu1 %14041 }
0x2153   : > { %8482 = vmatpush1.bf16.msra.mxu1 %v11392_v20  ;;  %8523 = vmatpush1.bf16.msra.mxu0 %v11394_v51 }
0x2154   : > { %8483 = vmatprep.subr.bf16.mxu1 %v11401_v30  ;;  %8524 = vmatprep.subr.bf16.mxu0 %v11403_v37  ;;  %v7771_v30 = vld [vmem:[%s20489_s9 + $0x380] sm:$0xff] }
0x2155   : > { %v7775_v37 = vld [vmem:[%s20489_s9 + $0x3a0] sm:$0xff] }
0x2156   : > { %v11457_v43 = vcombine.high %v7771_v30, %v7775_v37 }
0x2157   : > { %8484 = vmatpush1.bf16.msra.mxu1 %v11400_v24  ;;  %8525 = vmatpush1.bf16.msra.mxu0 %v11402_v26  ;;  %v11456_v26 = vcombine.low %v7771_v30, %v7775_v37 }
0x2158   : > { %8485 = vmatprep.subr.bf16.mxu1 %v11409_v33  ;;  %8526 = vmatprep.subr.bf16.mxu0 %v11411_v59  ;;  %v11458_v33 = vcombine.low %v7772_v49, %v7776_v6  ;;  %v11459_v59 = vcombine.high %v7772_v49, %v7776_v6 }
0x215b   : > { %8486 = vmatpush1.bf16.msra.mxu1 %v11408_v53  ;;  %8527 = vmatpush1.bf16.msra.mxu0 %v11410_v29 }
0x215c   : > { %8487 = vmatprep.subr.bf16.mxu1 %v11417_v34  ;;  %8528 = vmatprep.subr.bf16.mxu0 %v11419_v4  ;;  %v7779_v4 = vld [vmem:[%s20489_s9 + $0x3c0] sm:$0xff] }
0x215f   : > { %8488 = vmatpush1.bf16.msra.mxu1 %v11416_v48  ;;  %8529 = vmatpush1.bf16.msra.mxu0 %v11418_v18  ;;  %v11465_v48 = vcombine.high %v7779_v4, %v7783_v31  ;;  %v7784_v18 = vld [vmem:[%s20489_s9 + $0x3e8] sm:$0xff] }
0x2160   : > { %8489 = vmatprep.subr.bf16.mxu1 %v11425_v21  ;;  %8530 = vmatprep.subr.bf16.mxu0 %v11427_v2  ;;  %v11464_v2 = vcombine.low %v7779_v4, %v7783_v31  ;;  %v11466_v15 = vcombine.low %v7780_v9, %v7784_v18  ;;  %v11467_v36 = vcombine.high %v7780_v9, %v7784_v18 }
0x2163   : > { %8490 = vmatpush1.bf16.msra.mxu1 %v11424_v28  ;;  %8531 = vmatpush1.bf16.msra.mxu0 %v11426_v13  ;;  %v19294_v28 = vld [vmem:[%s20489_s9 + $0x30] sm:$0xff]  ;;  %v19299_v13 = vld [vmem:[%s20489_s9 + $0x18] sm:$0xff] }
0x2164   : > { %8491 = vmatprep.subr.bf16.mxu1 %v11433_v61  ;;  %8532 = vmatprep.subr.bf16.mxu0 %v11435_v62  ;;  %v11349_v61 = vcombine.high %v19289_v3, %v19294_v28  ;;  %v19306_v62 = vld [vmem:[%s20489_s9 + $0x38] sm:$0xff]  ;;  %v11348_v32 = vcombine.low %v19289_v3, %v19294_v28  ;;  %v7689_v3 = vld [vmem:[%s20489_s9 + $0xf0] sm:$0xff] }
0x2165   : > { %v11350_v1 = vcombine.low %v19299_v13, %v19306_v62  ;;  %v11351_v52 = vcombine.high %v19299_v13, %v19306_v62  ;;  %v7686_v28 = vld [vmem:[%s20489_s9 + $0xd8] sm:$0xff] }
0x2166   : > { %v7690_v13 = vld [vmem:[%s20489_s9 + $0xf8] sm:$0xff] }
0x2167   : > { %8492 = vmatpush1.bf16.msra.mxu1 %v11432_v12  ;;  %8533 = vmatpush1.bf16.msra.mxu0 %v11434_v57 }
0x2168   : > { %8493 = vmatprep.subr.bf16.mxu1 %v11441_v17  ;;  %8534 = vmatprep.subr.bf16.mxu0 %v11443_v46  ;;  %v14037_v46 = vpop.permute.xlu0 %14036 }
0x2169   : > { %v14039_v10 = vunpack.i.h.bf16 %v14037_v46  ;;  %v14038_v63 = vunpack.i.l.bf16 %v14037_v46 }
0x216b   : > { %8494 = vmatpush1.bf16.msra.mxu1 %v11440_v39  ;;  %8535 = vmatpush1.bf16.msra.mxu0 %v11442_v38  ;;  %v14052_v39 = vpop.permute.xlu1 %14051  ;;  %v14043_v38 = vunpack.i.l.bf16 %v14042_v14 }
0x216c   : > { %8495 = vmatprep.subr.bf16.mxu1 %v11449_v45  ;;  %8536 = vmatprep.subr.bf16.mxu0 %v11451_v19  ;;  %v14047_v25 = vpop.permute.xlu0 %14046  ;;  %v3867_v45 = vrot.slane %v19035_v16, 2  ;;  %v14044_v19 = vunpack.i.h.bf16 %v14042_v14  ;;  %v14054_v49 = vunpack.i.h.bf16 %v14052_v39 }
0x216f   : > { %8496 = vmatpush1.bf16.msra.mxu1 %v11448_v7  ;;  %8537 = vmatpush1.bf16.msra.mxu0 %v11450_v0  ;;  %v4474_v7 = vrot.slane %v19043_v56, 2  ;;  %v3233_v0 = vrot.slane %v19061_v8, 2 }
0x2170   : > { %8497 = vmatprep.subr.bf16.mxu1 %v11457_v43  ;;  %8538 = vmatprep.subr.bf16.mxu0 %v11459_v59  ;;  %v14057_v30 = vpop.permute.xlu0 %14056  ;;  %v5107_v43 = vrot.slane %v19038_v23, 2 }
0x2171   : > { %v4481_v37 = vsel %vm2435_vm3, %v4474_v7, %v14043_v38  ;;  %v3240_v6 = vsel %vm2435_vm3, %v3233_v0, %v14044_v19  ;;  %v14059_v4 = vunpack.i.h.bf16 %v14057_v30 }
0x2173   : > { %8498 = vmatpush1.bf16.msra.mxu1 %v11456_v26  ;;  %8539 = vmatpush1.bf16.msra.mxu0 %v11458_v33 }
0x2174   : > { %8499 = vmatprep.subr.bf16.mxu1 %v11465_v48  ;;  %8540 = vmatprep.subr.bf16.mxu0 %v11467_v36  ;;  %v14067_v31 = vpop.permute.xlu0 %14066  ;;  %v5720_v36 = vsel %vm2435_vm3, %v19047_v58, %v14059_v4  ;;  %v7685_v4 = vld [vmem:[%s20489_s9 + $0xd0] sm:$0xff] }
0x2175   : > { %v7615_v14 = vrot.slane %v5720_v36, 4  ;;  %v7706_v36 = vld [vmem:[%s20489_s9 + $0x178] sm:$0xff] }
0x2177   : > { %8500 = vmatpush1.bf16.msra.mxu1 %v11464_v2  ;;  %8541 = vmatpush1.bf16.msra.mxu0 %v11466_v15 }
0x2178   : > { %8551 = vmatprep.subr.bf16.mxu1 %v11349_v61  ;;  %8592 = vmatprep.subr.bf16.mxu0 %v11351_v52  ;;  %v6954_v61 = vrot.slane %v19055_v47, 2 }
0x21fd   : > { %v12707_v55 = vpop.f32.mrb[120].mxu1 }
0x21fe   : > { %v12708_v40 = vpop.f32.mrb[121].mxu1 }
0x21ff   : > { %v12709_v50 = vadd.f32 %v12708_v40, %v12707_v55  ;;  %v12710_v20 = vpop.f32.mrb[122].mxu1  ;;  %v14053_v55 = vunpack.i.l.bf16 %v14052_v39  ;;  %v3873_v40 = vsel %vm2435_vm3, %v19035_v16, %v14039_v10 }
0x2200   : > { %v12711_v51 = vpop.f32.mrb[123].mxu1  ;;  %v14049_v20 = vunpack.i.h.bf16 %v14047_v25 }
0x2201   : > { %v7496_v35 = vadd.f32 %v21066_v22, %v12709_v50  ;;  %v3874_v50 = vsel %vm2435_vm3, %v3867_v45, %v14038_v63  ;;  %v14048_v51 = vunpack.i.l.bf16 %v14047_v25  ;;  %v3239_v16 = vsel %vm2435_vm3, %v19061_v8, %v14053_v55 }
0x2202   : > { %v7598_v26 = vrot.slane %v3874_v50, 7  ;;  %v5114_v33 = vsel %vm2435_vm3, %v5107_v43, %v14049_v20 }
0x2203   : > { %v4480_v59 = vsel %vm2435_vm3, %v19043_v56, %v14048_v51  ;;  %v7610_v56 = vrot.slane %v5114_v33, 5 }
0x2204   : > { %v7639_v22 = vsel %vm7637_vm7, %v3240_v6, %v7598_v26  ;;  %v7603_v9 = vrot.slane %v4480_v59, 6  ;;  %v7673_v6 = vld [vmem:[%s20489_s9 + $0x70] sm:$0xff] }
0x220d   : > { %v12729_v5 = vpop.f32.mrb[140].mxu0  ;;  %v7575_v24 = vpop.f32.mrb[124].mxu1 }
0x220e   : > { %v12730_v60 = vpop.f32.mrb[141].mxu0  ;;  %v13422_v11 = vpop.f32.mrb[125].mxu1 }
0x220f   : > { %v12731_v53 = vadd.f32 %v12730_v60, %v12729_v5  ;;  %v12732_v29 = vpop.f32.mrb[142].mxu0  ;;  %v7578_v34 = vpop.f32.mrb[126].mxu1  ;;  %v14058_v60 = vunpack.i.l.bf16 %v14057_v30  ;;  %v7604_v11 = vrot.slane %v4481_v37, 6  ;;  %v7669_v37 = vld [vmem:[%s20489_s9 + $0x50] sm:$0xff] }
0x2210   : > { %v12733_v27 = vpop.f32.mrb[143].mxu0  ;;  %v13423_v41 = vpop.f32.mrb[127].mxu1  ;;  %v5714_v34 = vrot.slane %v19047_v58, 2  ;;  %v11357_v33 = vcombine.high %v7669_v37, %v7673_v6 }
0x2211   : > { %v7536_v21 = vadd.f32 %v12731_v53, %v7496_v35  ;;  %v14062_v5 = vpop.permute.xlu1 %14061  ;;  %v5113_v35 = vsel %vm2435_vm3, %v19038_v23, %v14054_v49  ;;  %v6347_v27 = vrot.slane %v19069_v54, 2  ;;  %v7642_v48 = vsel %vm7640_vm8, %v7639_v22, %v7604_v11  ;;  %v7678_v11 = vld [vmem:[%s20489_s9 + $0x98] sm:$0xff] }
0x2212   : > { %v14064_v53 = vunpack.i.h.bf16 %v14062_v5  ;;  %v14063_v29 = vunpack.i.l.bf16 %v14062_v5  ;;  %v5721_v41 = vsel %vm2435_vm3, %v5714_v34, %v14058_v60  ;;  %v7609_v18 = vrot.slane %v5113_v35, 5  ;;  %v7674_v5 = vld [vmem:[%s20489_s9 + $0x78] sm:$0xff]  ;;  %v7681_v60 = vld [vmem:[%s20489_s9 + $0xb0] sm:$0xff] }
0x2213   : > { %v7576_v44 = vadd.f32 %v7575_v24, %v7536_v21  ;;  %v7597_v24 = vrot.slane %v3873_v40, 7  ;;  %v14069_v21 = vunpack.i.h.bf16 %v14067_v31  ;;  %v7645_v52 = vsel %vm7643_vm9, %v7642_v48, %v7610_v56  ;;  %v7682_v22 = vld [vmem:[%s20489_s9 + $0xb8] sm:$0xff] }
0x2214   : > { %v6353_v2 = vsel %vm2435_vm3, %v19069_v54, %v14064_v53  ;;  %v6354_v15 = vsel %vm2435_vm3, %v6347_v27, %v14063_v29  ;;  %v11356_v35 = vcombine.low %v7669_v37, %v7673_v6  ;;  %v11367_v34 = vcombine.high %v7678_v11, %v7682_v22  ;;  %v7694_v27 = vld [vmem:[%s20489_s9 + $0x118] sm:$0xff]  ;;  %v7737_v6 = vld [vmem:[%s20489_s9 + $0x270] sm:$0xff] }
0x2215   : > { %v19308_v42 = vmax.f32 %v7576_v44, 0.0  ;;  %v7638_v8 = vsel %vm7637_vm7, %v3239_v16, %v7597_v24  ;;  %v14068_v44 = vunpack.i.l.bf16 %v14067_v31  ;;  %v7622_v46 = vrot.slane %v6354_v15, 3  ;;  %v7677_v16 = vld [vmem:[%s20489_s9 + $0x90] sm:$0xff]  ;;  %v7698_v56 = vld [vmem:[%s20489_s9 + $0x138] sm:$0xff] }
0x2216   : > { %v7641_v23 = vsel %vm7640_vm8, %v7638_v8, %v7603_v9  ;;  %v6960_v25 = vsel %vm2435_vm3, %v19055_v47, %v14069_v21  ;;  %v11365_v29 = vcombine.high %v7677_v16, %v7681_v60  ;;  %v11364_v62 = vcombine.low %v7677_v16, %v7681_v60  ;;  %v7693_v8 = vld [vmem:[%s20489_s9 + $0x110] sm:$0xff]  ;;  %v7702_v15 = vld [vmem:[%s20489_s9 + $0x158] sm:$0xff] }
0x2217   : > { %v7583_v12 = vrot.slane %v19308_v42, 1  ;;  %v7589_v57 = vrot.slane %v19308_v42, 3  ;;  %v6961_v54 = vsel %vm2435_vm3, %v6954_v61, %v14068_v44  ;;  %v7587_v39 = vrot.slane %v19308_v42, 2  ;;  %v7697_v9 = vld [vmem:[%s20489_s9 + $0x130] sm:$0xff] }
0x2218   : > { %v7627_v19 = vrot.slane %v6960_v25, 2  ;;  %v7628_v55 = vrot.slane %v6961_v54, 2  ;;  %v11375_v31 = vcombine.high %v7686_v28, %v7690_v13  ;;  %v11374_v48 = vcombine.low %v7686_v28, %v7690_v13  ;;  %v7741_v60 = vld [vmem:[%s20489_s9 + $0x290] sm:$0xff]  ;;  %v7750_v13 = vld [vmem:[%s20489_s9 + $0x2d8] sm:$0xff] }
0x2219   : > { %v14070_v17 = vpack.i.bf16 %v7583_v12, %v7589_v57  ;;  %v7616_v12 = vrot.slane %v5721_v41, 4  ;;  %v7644_v57 = vsel %vm7643_vm9, %v7641_v23, %v7609_v18  ;;  %v11372_v41 = vcombine.low %v7685_v4, %v7689_v3  ;;  %v7701_v23 = vld [vmem:[%s20489_s9 + $0x150] sm:$0xff] }
0x221a   : > { %v7646_v58 = vsel %vm2171_vm1, %v7644_v57, %v7615_v14  ;;  %v11381_v18 = vcombine.high %v7693_v8, %v7697_v9  ;;  %v11383_v21 = vcombine.high %v7694_v27, %v7698_v56  ;;  %v11380_v44 = vcombine.low %v7693_v8, %v7697_v9  ;;  %v7709_v57 = vld [vmem:[%s20489_s9 + $0x190] sm:$0xff]  ;;  %v7714_v14 = vld [vmem:[%s20489_s9 + $0x1b8] sm:$0xff] }
0x221b   : > { %14071 = vrot.lane.b32.xlu1 %v14070_v17, %s15072_s16  ;;  %v7621_v17 = vrot.slane %v6353_v2, 3  ;;  %v7647_v10 = vsel %vm2171_vm1, %v7645_v52, %v7616_v12  ;;  %v7705_v2 = vld [vmem:[%s20489_s9 + $0x170] sm:$0xff]  ;;  %v11382_v61 = vcombine.low %v7694_v27, %v7698_v56  ;;  %v11391_v12 = vcombine.high %v7702_v15, %v7706_v36  ;;  %v7758_v56 = vld [vmem:[%s20489_s9 + $0x318] sm:$0xff]  ;;  %s10955_s16 = sshll.u32 %s21070_s19, 3 }
0x221c   : > { %v7650_v0 = vsel %vm7648_vm10, %v7647_v10, %v7622_v46  ;;  %v11389_v52 = vcombine.high %v7701_v23, %v7705_v2  ;;  %v7710_v46 = vld [vmem:[%s20489_s9 + $0x198] sm:$0xff]  ;;  %v11388_v25 = vcombine.low %v7701_v23, %v7705_v2  ;;  %v11390_v54 = vcombine.low %v7702_v15, %v7706_v36  ;;  %v7753_v28 = vld [vmem:[%s20489_s9 + $0x2f0] sm:$0xff]  ;;  %s497_s27 = scalar_lea.vmem %s20495_s15, %s10955_s16 }
0x221d   : > { %v7649_v7 = vsel %vm7648_vm10, %v7646_v58, %v7621_v17  ;;  %v7653_v30 = vsel %vm7651_vm11, %v7650_v0, %v7628_v55  ;;  %v7713_v17 = vld [vmem:[%s20489_s9 + $0x1b0] sm:$0xff]  ;;  %v7766_v36 = vld [vmem:[%s20489_s9 + $0x358] sm:$0xff] }
0x221e   : > { %v7652_v51 = vsel %vm7651_vm11, %v7649_v7, %v7627_v19  ;;  %v11397_v10 = vcombine.high %v7709_v57, %v7713_v17  ;;  %v7717_v58 = vld [vmem:[%s20489_s9 + $0x1d0] sm:$0xff]  ;;  %v11396_v19 = vcombine.low %v7709_v57, %v7713_v17  ;;  %v11398_v7 = vcombine.low %v7710_v46, %v7714_v14 }
0x221f   : > { %v7757_v9 = vld [vmem:[%s20489_s9 + $0x310] sm:$0xff] }
0x2220   : > { %v7761_v27 = vld [vmem:[%s20489_s9 + $0x330] sm:$0xff] }
0x2221   : > { %v7765_v2 = vld [vmem:[%s20489_s9 + $0x350] sm:$0xff] }
0x2222   : > { %v7769_v15 = vld [vmem:[%s20489_s9 + $0x370] sm:$0xff] }
0x2223   : > { %v7773_v17 = vld [vmem:[%s20489_s9 + $0x390] sm:$0xff] }
0x228d   : > { %v14072_v63 = vpop.permute.xlu1 %14071 }
0x228e   : > { %v14074_v38 = vunpack.i.h.bf16 %v14072_v63  ;;  %v14073_v45 = vunpack.i.l.bf16 %v14072_v63  ;;  %v11399_v63 = vcombine.high %v7710_v46, %v7714_v14  ;;  %v7777_v46 = vld [vmem:[%s20489_s9 + $0x3b0] sm:$0xff]  ;;  %v7774_v14 = vld [vmem:[%s20489_s9 + $0x398] sm:$0xff] }
0x2290   : > { %v7593_v47 = vsel %vm2435_vm3, %v19308_v42, %v14074_v38  ;;  %v7594_v40 = vsel %vm2435_vm3, %v7587_v39, %v14073_v45  ;;  %v7670_v42 = vld [vmem:[%s20489_s9 + $0x58] sm:$0xff]  ;;  %v7721_v39 = vld [vmem:[%s20489_s9 + $0x1f0] sm:$0xff] }
0x2291   : > { %v7633_v50 = vrot.slane %v7593_v47, 1  ;;  %v7634_v20 = vrot.slane %v7594_v40, 1  ;;  %v11359_v59 = vcombine.high %v7670_v42, %v7674_v5  ;;  %v11358_v53 = vcombine.low %v7670_v42, %v7674_v5  ;;  %v7718_v38 = vld [vmem:[%s20489_s9 + $0x1d8] sm:$0xff]  ;;  %v7725_v47 = vld [vmem:[%s20489_s9 + $0x210] sm:$0xff] }
0x2292   : > { %v7722_v45 = vld [vmem:[%s20489_s9 + $0x1f8] sm:$0xff]  ;;  %v11405_v0 = vcombine.high %v7717_v58, %v7721_v39  ;;  %v7729_v40 = vld [vmem:[%s20489_s9 + $0x230] sm:$0xff] }
0x2293   : > { %v7655_v49 = vsel %vm7654_vm12, %v7652_v51, %v7633_v50  ;;  %v7656_v43 = vsel %vm7654_vm12, %v7653_v30, %v7634_v20  ;;  %v11407_v55 = vcombine.high %v7718_v38, %v7722_v45  ;;  %v7726_v50 = vld [vmem:[%s20489_s9 + $0x218] sm:$0xff]  ;;  %v11404_v51 = vcombine.low %v7717_v58, %v7721_v39  ;;  %v7781_v39 = vld [vmem:[%s20489_s9 + $0x3d0] sm:$0xff] }
0x2294   : > { %v19369_v24 = vpack.c.bf16 %v7655_v49, %v7655_v49  ;;  %v7658_v26 = vpack.c.bf16 %v7656_v43, %v7656_v43  ;;  %v7730_v20 = vld [vmem:[%s20489_s9 + $0x238] sm:$0xff]  ;;  %v11406_v30 = vcombine.low %v7718_v38, %v7722_v45  ;;  %v11413_v37 = vcombine.high %v7725_v47, %v7729_v40  ;;  %v7733_v43 = vld [vmem:[%s20489_s9 + $0x250] sm:$0xff] }
0x2295   : > { %v11415_v49 = vcombine.high %v7726_v50, %v7730_v20  ;;  %v7734_v42 = vld [vmem:[%s20489_s9 + $0x258] sm:$0xff]  ;;  %v11414_v16 = vcombine.low %v7726_v50, %v7730_v20  ;;  %v7785_v38 = vld [vmem:[%s20489_s9 + $0x3f0] sm:$0xff] }
0x2296   : > { %8501 = vmatprep.mubr.bf16.mxu1 %v7658_v26  ;;  %8542 = vmatprep.mubr.bf16.mxu0 %v7658_v26  ;;  %v7738_v5 = vld [vmem:[%s20489_s9 + $0x278] sm:$0xff]  ;;  %v14340_v20 = vld [vmem:[%s20491_s11 + $0x4] ss:$16 sps:$4 sm:$0xff]  }
0x2297   : > { %8502 = vmatmul.mubr.bf16.vlgmr.msra.gmra.mrb[128].mxu1 %v19369_v24  ;;  %8543 = vmatmul.mubr.bf16.vlgmr.msra.gmra.mrb[144].mxu0 %v19369_v24  ;;  %v7782_v45 = vld [vmem:[%s20489_s9 + $0x3d8] sm:$0xff] }
0x2298   : > { %8552 = vmatpush1.bf16.msra.mxu1 %v11348_v32  ;;  %8593 = vmatpush1.bf16.msra.mxu0 %v11350_v1  ;;  %v11366_v32 = vcombine.low %v7678_v11, %v7682_v22  ;;  %v11373_v1 = vcombine.high %v7685_v4, %v7689_v3  ;;  %v7745_v11 = vld [vmem:[%s20489_s9 + $0x2b0] sm:$0xff]  ;;  %v7742_v22 = vld [vmem:[%s20489_s9 + $0x298] sm:$0xff] }
0x2299   : > { %8583 = vmatprep.mubr.bf16.mxu1 %v7658_v26  ;;  %8624 = vmatprep.mubr.bf16.mxu0 %v7658_v26  ;;  %v11412_v26 = vcombine.low %v7725_v47, %v7729_v40  ;;  %v7749_v3 = vld [vmem:[%s20489_s9 + $0x2d0] sm:$0xff]  ;;  %v11468_v40 = vcombine.low %v7781_v39, %v7785_v38 }
0x229a   : > { %8553 = vmatprep.subr.bf16.mxu1 %v11357_v33  ;;  %8594 = vmatprep.subr.bf16.mxu0 %v11359_v59  ;;  %v11421_v33 = vcombine.high %v7733_v43, %v7737_v6  ;;  %v11423_v59 = vcombine.high %v7734_v42, %v7738_v5 }
0x229c   : > { %8554 = vmatpush1.bf16.msra.mxu1 %v11356_v35  ;;  %8595 = vmatpush1.bf16.msra.mxu0 %v11358_v53  ;;  %v7746_v35 = vld [vmem:[%s20489_s9 + $0x2b8] sm:$0xff]  ;;  %v11420_v53 = vcombine.low %v7733_v43, %v7737_v6  ;;  %v14344_v6 = vld [vmem:[%s20491_s11 + $0x20] ss:$16 sps:$4 sm:$0xff]  }
0x229d   : > { %8555 = vmatprep.subr.bf16.mxu1 %v11365_v29  ;;  %8596 = vmatprep.subr.bf16.mxu0 %v11367_v34  ;;  %v11422_v29 = vcombine.low %v7734_v42, %v7738_v5  ;;  %v11429_v34 = vcombine.high %v7741_v60, %v7745_v11  ;;  %v11431_v4 = vcombine.high %v7742_v22, %v7746_v35  ;;  %v14349_v43 = vld [vmem:[%s20491_s11 + $0x2c] ss:$16 sps:$4 sm:$0xff]   ;;  %v14347_v42 = vld [vmem:[%s20491_s11 + $0x28] ss:$16 sps:$4 sm:$0xff]   ;;  %v14352_v5 = vld [vmem:[%s20491_s11 + $0x44] ss:$16 sps:$4 sm:$0xff]  }
0x22a0   : > { %8556 = vmatpush1.bf16.msra.mxu1 %v11364_v62  ;;  %8597 = vmatpush1.bf16.msra.mxu0 %v11366_v32  ;;  %v7754_v62 = vld [vmem:[%s20489_s9 + $0x2f8] sm:$0xff]  ;;  %v11428_v32 = vcombine.low %v7741_v60, %v7745_v11  ;;  %v14356_v60 = vld [vmem:[%s20491_s11 + $0x60] ss:$16 sps:$4 sm:$0xff]  }
0x22a1   : > { %8557 = vmatprep.subr.bf16.mxu1 %v11373_v1  ;;  %8598 = vmatprep.subr.bf16.mxu0 %v11375_v31  ;;  %v11430_v1 = vcombine.low %v7742_v22, %v7746_v35  ;;  %v11437_v31 = vcombine.high %v7749_v3, %v7753_v28  ;;  %v11439_v8 = vcombine.high %v7750_v13, %v7754_v62  ;;  %v14359_v11 = vld [vmem:[%s20491_s11 + $0x68] ss:$16 sps:$4 sm:$0xff]   ;;  %v14364_v22 = vld [vmem:[%s20491_s11 + $0x84] ss:$16 sps:$4 sm:$0xff]   ;;  %v14367_v35 = vld [vmem:[%s20491_s11 + $0x8c] ss:$16 sps:$4 sm:$0xff]  }
0x22a4   : > { %8558 = vmatpush1.bf16.msra.mxu1 %v11372_v41  ;;  %8599 = vmatpush1.bf16.msra.mxu0 %v11374_v48  ;;  %v7762_v41 = vld [vmem:[%s20489_s9 + $0x338] sm:$0xff]  ;;  %v11436_v48 = vcombine.low %v7749_v3, %v7753_v28  ;;  %v14368_v3 = vld [vmem:[%s20491_s11 + $0xa0] ss:$16 sps:$4 sm:$0xff]  }
0x22a5   : > { %8559 = vmatprep.subr.bf16.mxu1 %v11381_v18  ;;  %8600 = vmatprep.subr.bf16.mxu0 %v11383_v21  ;;  %v11438_v18 = vcombine.low %v7750_v13, %v7754_v62  ;;  %v11445_v21 = vcombine.high %v7757_v9, %v7761_v27  ;;  %v11447_v23 = vcombine.high %v7758_v56, %v7762_v41  ;;  %v14371_v28 = vld [vmem:[%s20491_s11 + $0xa8] ss:$16 sps:$4 sm:$0xff]   ;;  %v14376_v13 = vld [vmem:[%s20491_s11 + $0xc4] ss:$16 sps:$4 sm:$0xff]   ;;  %v14379_v62 = vld [vmem:[%s20491_s11 + $0xcc] ss:$16 sps:$4 sm:$0xff]  }
0x22a8   : > { %8560 = vmatpush1.bf16.msra.mxu1 %v11380_v44  ;;  %8601 = vmatpush1.bf16.msra.mxu0 %v11382_v61  ;;  %v7770_v44 = vld [vmem:[%s20489_s9 + $0x378] sm:$0xff]  ;;  %v11444_v61 = vcombine.low %v7757_v9, %v7761_v27  ;;  %v14380_v9 = vld [vmem:[%s20491_s11 + $0xe0] ss:$16 sps:$4 sm:$0xff]  }
0x22a9   : > { %8561 = vmatprep.subr.bf16.mxu1 %v11389_v52  ;;  %8602 = vmatprep.subr.bf16.mxu0 %v11391_v12  ;;  %v11446_v52 = vcombine.low %v7758_v56, %v7762_v41  ;;  %v11453_v12 = vcombine.high %v7765_v2, %v7769_v15  ;;  %v11455_v57 = vcombine.high %v7766_v36, %v7770_v44  ;;  %v14383_v27 = vld [vmem:[%s20491_s11 + $0xe8] ss:$16 sps:$4 sm:$0xff]   ;;  %v14388_v56 = vld [vmem:[%s20491_s11 + $0x104] ss:$16 sps:$4 sm:$0xff]   ;;  %v14391_v41 = vld [vmem:[%s20491_s11 + $0x10c] ss:$16 sps:$4 sm:$0xff]  }
0x22ac   : > { %8562 = vmatpush1.bf16.msra.mxu1 %v11388_v25  ;;  %8603 = vmatpush1.bf16.msra.mxu0 %v11390_v54  ;;  %v7778_v25 = vld [vmem:[%s20489_s9 + $0x3b8] sm:$0xff]  ;;  %v11452_v54 = vcombine.low %v7765_v2, %v7769_v15  ;;  %v14392_v2 = vld [vmem:[%s20491_s11 + $0x120] ss:$16 sps:$4 sm:$0xff]  }
0x22ad   : > { %8563 = vmatprep.subr.bf16.mxu1 %v11397_v10  ;;  %8604 = vmatprep.subr.bf16.mxu0 %v11399_v63  ;;  %v11454_v10 = vcombine.low %v7766_v36, %v7770_v44  ;;  %v11461_v63 = vcombine.high %v7773_v17, %v7777_v46  ;;  %v11463_v58 = vcombine.high %v7774_v14, %v7778_v25  ;;  %v14395_v15 = vld [vmem:[%s20491_s11 + $0x128] ss:$16 sps:$4 sm:$0xff]   ;;  %v14400_v36 = vld [vmem:[%s20491_s11 + $0x144] ss:$16 sps:$4 sm:$0xff]   ;;  %v14403_v44 = vld [vmem:[%s20491_s11 + $0x14c] ss:$16 sps:$4 sm:$0xff]  }
0x22b0   : > { %8564 = vmatpush1.bf16.msra.mxu1 %v11396_v19  ;;  %8605 = vmatpush1.bf16.msra.mxu0 %v11398_v7  ;;  %v7786_v19 = vld [vmem:[%s20489_s9 + $0x3f8] sm:$0xff]  ;;  %v11460_v7 = vcombine.low %v7773_v17, %v7777_v46  ;;  %v14404_v17 = vld [vmem:[%s20491_s11 + $0x160] ss:$16 sps:$4 sm:$0xff]  }
0x22b1   : > { %8565 = vmatprep.subr.bf16.mxu1 %v11405_v0  ;;  %8606 = vmatprep.subr.bf16.mxu0 %v11407_v55  ;;  %v11462_v0 = vcombine.low %v7774_v14, %v7778_v25  ;;  %v11469_v55 = vcombine.high %v7781_v39, %v7785_v38  ;;  %v11471_v47 = vcombine.high %v7782_v45, %v7786_v19  ;;  %v14407_v46 = vld [vmem:[%s20491_s11 + $0x168] ss:$16 sps:$4 sm:$0xff]   ;;  %v14412_v14 = vld [vmem:[%s20491_s11 + $0x184] ss:$16 sps:$4 sm:$0xff]   ;;  %v14415_v25 = vld [vmem:[%s20491_s11 + $0x18c] ss:$16 sps:$4 sm:$0xff]  }
0x22b2   : > { %v11470_v50 = vcombine.low %v7782_v45, %v7786_v19  ;;  %v14416_v39 = vld [vmem:[%s20491_s11 + $0x1a0] ss:$16 sps:$4 sm:$0xff]   ;;  %v14419_v38 = vld [vmem:[%s20491_s11 + $0x1a8] ss:$16 sps:$4 sm:$0xff]   ;;  %v14424_v45 = vld [vmem:[%s20491_s11 + $0x1c4] ss:$16 sps:$4 sm:$0xff]  }
0x22b3   : > { %v14427_v19 = vld [vmem:[%s20491_s11 + $0x1cc] ss:$16 sps:$4 sm:$0xff]  }
0x22b4   : > { %8566 = vmatpush1.bf16.msra.mxu1 %v11404_v51  ;;  %8607 = vmatpush1.bf16.msra.mxu0 %v11406_v30  ;;  %v14343_v51 = vld [vmem:[%s20491_s11 + $0xc] ss:$16 sps:$4 sm:$0xff]   ;;  %v14338_v30 = vld [vmem:[%s20491_s11] ss:$16 sps:$4 sm:$0xff]  }
0x22b5   : > { %8567 = vmatprep.subr.bf16.mxu1 %v11413_v37  ;;  %8608 = vmatprep.subr.bf16.mxu0 %v11415_v49  ;;  %v14341_v37 = vld [vmem:[%s20491_s11 + $0x8] ss:$16 sps:$4 sm:$0xff]   ;;  %v14346_v49 = vld [vmem:[%s20491_s11 + $0x24] ss:$16 sps:$4 sm:$0xff]  }
0x22b8   : > { %8568 = vmatpush1.bf16.msra.mxu1 %v11412_v26  ;;  %8609 = vmatpush1.bf16.msra.mxu0 %v11414_v16  ;;  %v14350_v26 = vld [vmem:[%s20491_s11 + $0x40] ss:$16 sps:$4 sm:$0xff]   ;;  %v14353_v16 = vld [vmem:[%s20491_s11 + $0x48] ss:$16 sps:$4 sm:$0xff]  }
0x22b9   : > { %8569 = vmatprep.subr.bf16.mxu1 %v11421_v33  ;;  %8610 = vmatprep.subr.bf16.mxu0 %v11423_v59  ;;  %v14358_v33 = vld [vmem:[%s20491_s11 + $0x64] ss:$16 sps:$4 sm:$0xff]   ;;  %v14361_v59 = vld [vmem:[%s20491_s11 + $0x6c] ss:$16 sps:$4 sm:$0xff]  }
0x22bc   : > { %8570 = vmatpush1.bf16.msra.mxu1 %v11420_v53  ;;  %8611 = vmatpush1.bf16.msra.mxu0 %v11422_v29  ;;  %v14362_v53 = vld [vmem:[%s20491_s11 + $0x80] ss:$16 sps:$4 sm:$0xff]   ;;  %v14365_v29 = vld [vmem:[%s20491_s11 + $0x88] ss:$16 sps:$4 sm:$0xff]  }
0x22bd   : > { %8571 = vmatprep.subr.bf16.mxu1 %v11429_v34  ;;  %8612 = vmatprep.subr.bf16.mxu0 %v11431_v4  ;;  %v14370_v34 = vld [vmem:[%s20491_s11 + $0xa4] ss:$16 sps:$4 sm:$0xff]   ;;  %v14373_v4 = vld [vmem:[%s20491_s11 + $0xac] ss:$16 sps:$4 sm:$0xff]  }
0x22c0   : > { %8572 = vmatpush1.bf16.msra.mxu1 %v11428_v32  ;;  %8613 = vmatpush1.bf16.msra.mxu0 %v11430_v1  ;;  %v14374_v32 = vld [vmem:[%s20491_s11 + $0xc0] ss:$16 sps:$4 sm:$0xff]   ;;  %v14377_v1 = vld [vmem:[%s20491_s11 + $0xc8] ss:$16 sps:$4 sm:$0xff]  }
0x22c1   : > { %8573 = vmatprep.subr.bf16.mxu1 %v11437_v31  ;;  %8614 = vmatprep.subr.bf16.mxu0 %v11439_v8  ;;  %v14382_v31 = vld [vmem:[%s20491_s11 + $0xe4] ss:$16 sps:$4 sm:$0xff]   ;;  %v14385_v8 = vld [vmem:[%s20491_s11 + $0xec] ss:$16 sps:$4 sm:$0xff]  }
0x22c4   : > { %8574 = vmatpush1.bf16.msra.mxu1 %v11436_v48  ;;  %8615 = vmatpush1.bf16.msra.mxu0 %v11438_v18  ;;  %v14386_v48 = vld [vmem:[%s20491_s11 + $0x100] ss:$16 sps:$4 sm:$0xff]   ;;  %v14389_v18 = vld [vmem:[%s20491_s11 + $0x108] ss:$16 sps:$4 sm:$0xff]  }
0x22c5   : > { %8575 = vmatprep.subr.bf16.mxu1 %v11445_v21  ;;  %8616 = vmatprep.subr.bf16.mxu0 %v11447_v23  ;;  %v14394_v21 = vld [vmem:[%s20491_s11 + $0x124] ss:$16 sps:$4 sm:$0xff]   ;;  %v14397_v23 = vld [vmem:[%s20491_s11 + $0x12c] ss:$16 sps:$4 sm:$0xff]  }
0x22c8   : > { %8576 = vmatpush1.bf16.msra.mxu1 %v11444_v61  ;;  %8617 = vmatpush1.bf16.msra.mxu0 %v11446_v52  ;;  %v14398_v61 = vld [vmem:[%s20491_s11 + $0x140] ss:$16 sps:$4 sm:$0xff]   ;;  %v14401_v52 = vld [vmem:[%s20491_s11 + $0x148] ss:$16 sps:$4 sm:$0xff]  }
0x22c9   : > { %8577 = vmatprep.subr.bf16.mxu1 %v11453_v12  ;;  %8618 = vmatprep.subr.bf16.mxu0 %v11455_v57  ;;  %v14406_v12 = vld [vmem:[%s20491_s11 + $0x164] ss:$16 sps:$4 sm:$0xff]   ;;  %v14409_v57 = vld [vmem:[%s20491_s11 + $0x16c] ss:$16 sps:$4 sm:$0xff]  }
0x22cc   : > { %8578 = vmatpush1.bf16.msra.mxu1 %v11452_v54  ;;  %8619 = vmatpush1.bf16.msra.mxu0 %v11454_v10  ;;  %v14410_v54 = vld [vmem:[%s20491_s11 + $0x180] ss:$16 sps:$4 sm:$0xff]   ;;  %v14413_v10 = vld [vmem:[%s20491_s11 + $0x188] ss:$16 sps:$4 sm:$0xff]  }
0x22cd   : > { %8579 = vmatprep.subr.bf16.mxu1 %v11461_v63  ;;  %8620 = vmatprep.subr.bf16.mxu0 %v11463_v58  ;;  %v14418_v63 = vld [vmem:[%s20491_s11 + $0x1a4] ss:$16 sps:$4 sm:$0xff]   ;;  %v14421_v58 = vld [vmem:[%s20491_s11 + $0x1ac] ss:$16 sps:$4 sm:$0xff]  }
0x22d0   : > { %8580 = vmatpush1.bf16.msra.mxu1 %v11460_v7  ;;  %8621 = vmatpush1.bf16.msra.mxu0 %v11462_v0  ;;  %v14422_v7 = vld [vmem:[%s20491_s11 + $0x1c0] ss:$16 sps:$4 sm:$0xff]   ;;  %v14425_v0 = vld [vmem:[%s20491_s11 + $0x1c8] ss:$16 sps:$4 sm:$0xff]  }
0x22d1   : > { %8581 = vmatprep.subr.bf16.mxu1 %v11469_v55  ;;  %8622 = vmatprep.subr.bf16.mxu0 %v11471_v47  ;;  %v14430_v55 = vld [vmem:[%s20491_s11 + $0x1e4] ss:$16 sps:$4 sm:$0xff]   ;;  %v14433_v47 = vld [vmem:[%s20491_s11 + $0x1ec] ss:$16 sps:$4 sm:$0xff]  }
0x22d4   : > { %8582 = vmatpush1.bf16.msra.mxu1 %v11468_v40  ;;  %8623 = vmatpush1.bf16.msra.mxu0 %v11470_v50  ;;  %v14428_v40 = vld [vmem:[%s20491_s11 + $0x1e0] ss:$16 sps:$4 sm:$0xff]   ;;  %v14431_v50 = vld [vmem:[%s20491_s11 + $0x1e8] ss:$16 sps:$4 sm:$0xff]  }
0x22d5   : > { %10207 = vmatprep.subr.bf16.mxu1 %v14340_v20  ;;  %10371 = vmatprep.subr.bf16.mxu0 %v14343_v51  ;;  %v14436_v20 = vld [vmem:[%s20491_s11 + $0x204] ss:$16 sps:$4 sm:$0xff]   ;;  %v14439_v51 = vld [vmem:[%s20491_s11 + $0x20c] ss:$16 sps:$4 sm:$0xff]  }
0x22d7   : > { %8584 = vmatmul.mubr.bf16.vlgmr.msra.gmra.mrb[132].mxu1 %v19369_v24  ;;  %8625 = vmatmul.mubr.bf16.vlgmr.msra.gmra.mrb[148].mxu0 %v19369_v24  ;;  %v14355_v24 = vld [vmem:[%s20491_s11 + $0x4c] ss:$16 sps:$4 sm:$0xff]  }
0x22d8   : > { %10208 = vmatpush1.bf16.msra.mxu1 %v14338_v30  ;;  %10372 = vmatpush1.bf16.msra.mxu0 %v14341_v37  ;;  %v7789_v30 = vlaneseq }
0x22d9   : > { %10209 = vmatprep.subr.bf16.mxu1 %v14346_v49  ;;  %10373 = vmatprep.subr.bf16.mxu0 %v14349_v43  ;;  %v19753_v43 = vld [vmem:[%s20490_s10] sm:$0xff] }
0x22da   : > { %v19747_v37 = vshrl.u32 %v7789_v30, 7  ;;  %v14496_v30 = vld [vmem:[%s20491_s11 + $0x344] ss:$16 sps:$4 sm:$0xff]  }
0x22dc   : > { %10210 = vmatpush1.bf16.msra.mxu1 %v14344_v6  ;;  %10374 = vmatpush1.bf16.msra.mxu0 %v14347_v42  ;;  %v7791_v49 = vsub.s32 0, %v19747_v37  ;;  %v7795_v6 = vsub.s32 1, %v19747_v37  ;;  %v7803_v42 = vsub.s32 3, %v19747_v37 }
0x22dd   : > { %10211 = vmatprep.subr.bf16.mxu1 %v14352_v5  ;;  %10375 = vmatprep.subr.bf16.mxu0 %v14355_v24 }
0x22de   : > { %v7792_v5 = vrot.slane %v19753_v43, %v7791_v49  ;;  %v7796_v24 = vrot.slane %v19753_v43, %v7795_v6 }
0x22e0   : > { %10212 = vmatpush1.bf16.msra.mxu1 %v14350_v26  ;;  %10376 = vmatpush1.bf16.msra.mxu0 %v14353_v16  ;;  %v7804_v26 = vrot.slane %v19753_v43, %v7803_v42 }
0x22e1   : > { %10213 = vmatprep.subr.bf16.mxu1 %v14358_v33  ;;  %10377 = vmatprep.subr.bf16.mxu0 %v14361_v59 }
0x22e4   : > { %10214 = vmatpush1.bf16.msra.mxu1 %v14356_v60  ;;  %10378 = vmatpush1.bf16.msra.mxu0 %v14359_v11 }
0x22e5   : > { %10215 = vmatprep.subr.bf16.mxu1 %v14364_v22  ;;  %10379 = vmatprep.subr.bf16.mxu0 %v14367_v35 }
0x22e8   : > { %10216 = vmatpush1.bf16.msra.mxu1 %v14362_v53  ;;  %10380 = vmatpush1.bf16.msra.mxu0 %v14365_v29 }
0x22e9   : > { %10217 = vmatprep.subr.bf16.mxu1 %v14370_v34  ;;  %10381 = vmatprep.subr.bf16.mxu0 %v14373_v4 }
0x22ec   : > { %10218 = vmatpush1.bf16.msra.mxu1 %v14368_v3  ;;  %10382 = vmatpush1.bf16.msra.mxu0 %v14371_v28 }
0x22ed   : > { %10219 = vmatprep.subr.bf16.mxu1 %v14376_v13  ;;  %10383 = vmatprep.subr.bf16.mxu0 %v14379_v62 }
0x22f0   : > { %10220 = vmatpush1.bf16.msra.mxu1 %v14374_v32  ;;  %10384 = vmatpush1.bf16.msra.mxu0 %v14377_v1  ;;  %v14434_v32 = vld [vmem:[%s20491_s11 + $0x200] ss:$16 sps:$4 sm:$0xff]   ;;  %v14437_v1 = vld [vmem:[%s20491_s11 + $0x208] ss:$16 sps:$4 sm:$0xff]  }
0x22f1   : > { %10221 = vmatprep.subr.bf16.mxu1 %v14382_v31  ;;  %10385 = vmatprep.subr.bf16.mxu0 %v14385_v8  ;;  %v14442_v8 = vld [vmem:[%s20491_s11 + $0x224] ss:$16 sps:$4 sm:$0xff]  }
0x22f4   : > { %10222 = vmatpush1.bf16.msra.mxu1 %v14380_v9  ;;  %10386 = vmatpush1.bf16.msra.mxu0 %v14383_v27  ;;  %v14445_v9 = vld [vmem:[%s20491_s11 + $0x22c] ss:$16 sps:$4 sm:$0xff]  }
0x22f5   : > { %10223 = vmatprep.subr.bf16.mxu1 %v14388_v56  ;;  %10387 = vmatprep.subr.bf16.mxu0 %v14391_v41  ;;  %v14440_v56 = vld [vmem:[%s20491_s11 + $0x220] ss:$16 sps:$4 sm:$0xff]   ;;  %v14443_v41 = vld [vmem:[%s20491_s11 + $0x228] ss:$16 sps:$4 sm:$0xff]  }
0x22f8   : > { %10224 = vmatpush1.bf16.msra.mxu1 %v14386_v48  ;;  %10388 = vmatpush1.bf16.msra.mxu0 %v14389_v18  ;;  %v14448_v48 = vld [vmem:[%s20491_s11 + $0x244] ss:$16 sps:$4 sm:$0xff]   ;;  %v14451_v18 = vld [vmem:[%s20491_s11 + $0x24c] ss:$16 sps:$4 sm:$0xff]  }
0x22f9   : > { %10225 = vmatprep.subr.bf16.mxu1 %v14394_v21  ;;  %10389 = vmatprep.subr.bf16.mxu0 %v14397_v23  ;;  %v14446_v21 = vld [vmem:[%s20491_s11 + $0x240] ss:$16 sps:$4 sm:$0xff]   ;;  %v14449_v23 = vld [vmem:[%s20491_s11 + $0x248] ss:$16 sps:$4 sm:$0xff]  }
0x22fc   : > { %10226 = vmatpush1.bf16.msra.mxu1 %v14392_v2  ;;  %10390 = vmatpush1.bf16.msra.mxu0 %v14395_v15  ;;  %v14454_v2 = vld [vmem:[%s20491_s11 + $0x264] ss:$16 sps:$4 sm:$0xff]   ;;  %v14457_v15 = vld [vmem:[%s20491_s11 + $0x26c] ss:$16 sps:$4 sm:$0xff]  }
0x22fd   : > { %10227 = vmatprep.subr.bf16.mxu1 %v14400_v36  ;;  %10391 = vmatprep.subr.bf16.mxu0 %v14403_v44  ;;  %v14452_v36 = vld [vmem:[%s20491_s11 + $0x260] ss:$16 sps:$4 sm:$0xff]   ;;  %v14455_v44 = vld [vmem:[%s20491_s11 + $0x268] ss:$16 sps:$4 sm:$0xff]  }
0x2300   : > { %10228 = vmatpush1.bf16.msra.mxu1 %v14398_v61  ;;  %10392 = vmatpush1.bf16.msra.mxu0 %v14401_v52  ;;  %v14460_v61 = vld [vmem:[%s20491_s11 + $0x284] ss:$16 sps:$4 sm:$0xff]   ;;  %v14463_v52 = vld [vmem:[%s20491_s11 + $0x28c] ss:$16 sps:$4 sm:$0xff]  }
0x2301   : > { %10229 = vmatprep.subr.bf16.mxu1 %v14406_v12  ;;  %10393 = vmatprep.subr.bf16.mxu0 %v14409_v57  ;;  %v14458_v12 = vld [vmem:[%s20491_s11 + $0x280] ss:$16 sps:$4 sm:$0xff]   ;;  %v14461_v57 = vld [vmem:[%s20491_s11 + $0x288] ss:$16 sps:$4 sm:$0xff]  }
0x2304   : > { %10230 = vmatpush1.bf16.msra.mxu1 %v14404_v17  ;;  %10394 = vmatpush1.bf16.msra.mxu0 %v14407_v46  ;;  %v14466_v17 = vld [vmem:[%s20491_s11 + $0x2a4] ss:$16 sps:$4 sm:$0xff]   ;;  %v14469_v46 = vld [vmem:[%s20491_s11 + $0x2ac] ss:$16 sps:$4 sm:$0xff]  }
0x2305   : > { %10231 = vmatprep.subr.bf16.mxu1 %v14412_v14  ;;  %10395 = vmatprep.subr.bf16.mxu0 %v14415_v25  ;;  %v14464_v14 = vld [vmem:[%s20491_s11 + $0x2a0] ss:$16 sps:$4 sm:$0xff]   ;;  %v14467_v25 = vld [vmem:[%s20491_s11 + $0x2a8] ss:$16 sps:$4 sm:$0xff]  }
0x2308   : > { %10232 = vmatpush1.bf16.msra.mxu1 %v14410_v54  ;;  %10396 = vmatpush1.bf16.msra.mxu0 %v14413_v10  ;;  %v14472_v54 = vld [vmem:[%s20491_s11 + $0x2c4] ss:$16 sps:$4 sm:$0xff]   ;;  %v14475_v10 = vld [vmem:[%s20491_s11 + $0x2cc] ss:$16 sps:$4 sm:$0xff]  }
0x2309   : > { %10233 = vmatprep.subr.bf16.mxu1 %v14418_v63  ;;  %10397 = vmatprep.subr.bf16.mxu0 %v14421_v58  ;;  %v14470_v63 = vld [vmem:[%s20491_s11 + $0x2c0] ss:$16 sps:$4 sm:$0xff]   ;;  %v14473_v58 = vld [vmem:[%s20491_s11 + $0x2c8] ss:$16 sps:$4 sm:$0xff]  }
0x230c   : > { %10234 = vmatpush1.bf16.msra.mxu1 %v14416_v39  ;;  %10398 = vmatpush1.bf16.msra.mxu0 %v14419_v38  ;;  %v14478_v39 = vld [vmem:[%s20491_s11 + $0x2e4] ss:$16 sps:$4 sm:$0xff]   ;;  %v14481_v38 = vld [vmem:[%s20491_s11 + $0x2ec] ss:$16 sps:$4 sm:$0xff]  }
0x230d   : > { %10235 = vmatprep.subr.bf16.mxu1 %v14424_v45  ;;  %10399 = vmatprep.subr.bf16.mxu0 %v14427_v19  ;;  %v14476_v45 = vld [vmem:[%s20491_s11 + $0x2e0] ss:$16 sps:$4 sm:$0xff]   ;;  %v14479_v19 = vld [vmem:[%s20491_s11 + $0x2e8] ss:$16 sps:$4 sm:$0xff]  }
0x2310   : > { %10236 = vmatpush1.bf16.msra.mxu1 %v14422_v7  ;;  %10400 = vmatpush1.bf16.msra.mxu0 %v14425_v0  ;;  %v14484_v7 = vld [vmem:[%s20491_s11 + $0x304] ss:$16 sps:$4 sm:$0xff]   ;;  %v14487_v0 = vld [vmem:[%s20491_s11 + $0x30c] ss:$16 sps:$4 sm:$0xff]  }
0x2311   : > { %10237 = vmatprep.subr.bf16.mxu1 %v14430_v55  ;;  %10401 = vmatprep.subr.bf16.mxu0 %v14433_v47  ;;  %v14482_v55 = vld [vmem:[%s20491_s11 + $0x300] ss:$16 sps:$4 sm:$0xff]   ;;  %v14485_v47 = vld [vmem:[%s20491_s11 + $0x308] ss:$16 sps:$4 sm:$0xff]  }
0x2314   : > { %10238 = vmatpush1.bf16.msra.mxu1 %v14428_v40  ;;  %10402 = vmatpush1.bf16.msra.mxu0 %v14431_v50  ;;  %v14490_v40 = vld [vmem:[%s20491_s11 + $0x324] ss:$16 sps:$4 sm:$0xff]   ;;  %v14493_v50 = vld [vmem:[%s20491_s11 + $0x32c] ss:$16 sps:$4 sm:$0xff]  }
0x2315   : > { %10248 = vmatprep.subr.bf16.mxu1 %v14436_v20  ;;  %10412 = vmatprep.subr.bf16.mxu0 %v14439_v51  ;;  %v14488_v20 = vld [vmem:[%s20491_s11 + $0x320] ss:$16 sps:$4 sm:$0xff]   ;;  %v14491_v51 = vld [vmem:[%s20491_s11 + $0x328] ss:$16 sps:$4 sm:$0xff]  }
0x236a   : > { %v8503_v16 = vpop.f32.mrb[128].mxu1  ;;  %v19766_v33 = vpop.f32.mrb[144].mxu0 }
0x236b   : > { %v8504_v59 = vadd.f32 %v8503_v16, %v7792_v5  ;;  %v8505_v60 = vpop.f32.mrb[129].mxu1  ;;  %v8546_v11 = vpop.f32.mrb[145].mxu0  ;;  %v14499_v5 = vld [vmem:[%s20491_s11 + $0x34c] ss:$16 sps:$4 sm:$0xff]   ;;  %v14502_v16 = vld [vmem:[%s20491_s11 + $0x364] ss:$16 sps:$4 sm:$0xff]  }
0x236c   : > { %v8506_v22 = vadd.f32 %v8505_v60, %v7796_v24  ;;  %v8547_v35 = vadd.f32 %v8546_v11, %v7804_v26  ;;  %v8507_v53 = vpop.f32.mrb[130].mxu1  ;;  %v8548_v29 = vpop.f32.mrb[146].mxu0  ;;  %v14494_v24 = vld [vmem:[%s20491_s11 + $0x340] ss:$16 sps:$4 sm:$0xff]   ;;  %v14497_v26 = vld [vmem:[%s20491_s11 + $0x348] ss:$16 sps:$4 sm:$0xff]  }
0x236d   : > { %v8633_v34 = vmax.f32 %v8504_v59, 0.0  ;;  %v8508_v4 = vpop.f32.mrb[131].mxu1  ;;  %v8549_v3 = vpop.f32.mrb[147].mxu0  ;;  %v14505_v59 = vld [vmem:[%s20491_s11 + $0x36c] ss:$16 sps:$4 sm:$0xff]  }
0x236e   : > { %v8634_v28 = vmax.f32 %v8506_v22, 0.0  ;;  %v8636_v13 = vmax.f32 %v8547_v35, 0.0  ;;  %v14500_v60 = vld [vmem:[%s20491_s11 + $0x360] ss:$16 sps:$4 sm:$0xff]   ;;  %v14503_v11 = vld [vmem:[%s20491_s11 + $0x368] ss:$16 sps:$4 sm:$0xff]  }
0x236f   : > { %v8641_v31 = vpack.c.bf16 %v8633_v34, %v8633_v34  ;;  %v14508_v22 = vld [vmem:[%s20491_s11 + $0x384] ss:$16 sps:$4 sm:$0xff]   ;;  %v14511_v35 = vld [vmem:[%s20491_s11 + $0x38c] ss:$16 sps:$4 sm:$0xff]   ;;  %v14506_v53 = vld [vmem:[%s20491_s11 + $0x380] ss:$16 sps:$4 sm:$0xff]  }
0x2370   : > { %v8642_v62 = vpack.c.bf16 %v8634_v28, %v8634_v28  ;;  %v8644_v27 = vpack.c.bf16 %v8636_v13, %v8636_v13  ;;  %v14509_v29 = vld [vmem:[%s20491_s11 + $0x388] ss:$16 sps:$4 sm:$0xff]   ;;  %v7799_v34 = vsub.s32 2, %v19747_v37  ;;  %v14514_v4 = vld [vmem:[%s20491_s11 + $0x3a4] ss:$16 sps:$4 sm:$0xff]  }
0x2371   : > { %v14517_v3 = vld [vmem:[%s20491_s11 + $0x3ac] ss:$16 sps:$4 sm:$0xff]   ;;  %v14512_v28 = vld [vmem:[%s20491_s11 + $0x3a0] ss:$16 sps:$4 sm:$0xff]   ;;  %v14515_v13 = vld [vmem:[%s20491_s11 + $0x3a8] ss:$16 sps:$4 sm:$0xff]  }
0x2372   : > { %10239 = vmatprep.mubr.bf16.mxu1 %v8642_v62  ;;  %10403 = vmatprep.mubr.bf16.mxu0 %v8642_v62  ;;  %v7811_v62 = vsub.s32 5, %v19747_v37 }
0x2373   : > { %10240 = vmatmul.mubr.bf16.vlgmr.msra.gmra.mrb[136].mxu1 %v8641_v31  ;;  %10404 = vmatmul.mubr.bf16.vlgmr.msra.gmra.mrb[152].mxu0 %v8641_v31  ;;  %v14523_v31 = vld [vmem:[%s20491_s11 + $0x3cc] ss:$16 sps:$4 sm:$0xff]  }
0x2374   : > { %10249 = vmatpush1.bf16.msra.mxu1 %v14434_v32  ;;  %10413 = vmatpush1.bf16.msra.mxu0 %v14437_v1  ;;  %v7800_v32 = vrot.slane %v19753_v43, %v7799_v34  ;;  %v14520_v1 = vld [vmem:[%s20491_s11 + $0x3c4] ss:$16 sps:$4 sm:$0xff]  }
0x2375   : > { %10280 = vmatprep.mubr.bf16.mxu1 %v8644_v27  ;;  %10444 = vmatprep.mubr.bf16.mxu0 %v8644_v27  ;;  %v14521_v27 = vld [vmem:[%s20491_s11 + $0x3c8] ss:$16 sps:$4 sm:$0xff]  }
0x2376   : > { %10250 = vmatprep.subr.bf16.mxu1 %v14442_v8  ;;  %10414 = vmatprep.subr.bf16.mxu0 %v14445_v9  ;;  %v7812_v8 = vrot.slane %v19753_v43, %v7811_v62  ;;  %v14518_v9 = vld [vmem:[%s20491_s11 + $0x3c0] ss:$16 sps:$4 sm:$0xff]   ;;  %v14583_v62 = vld [vmem:[%s20491_s11 + $0x50c] ss:$16 sps:$4 sm:$0xff]  }
0x2378   : > { %10251 = vmatpush1.bf16.msra.mxu1 %v14440_v56  ;;  %10415 = vmatpush1.bf16.msra.mxu0 %v14443_v41  ;;  %v8545_v56 = vadd.f32 %v19766_v33, %v7800_v32  ;;  %v14526_v41 = vld [vmem:[%s20491_s11 + $0x3e4] ss:$16 sps:$4 sm:$0xff]   ;;  %v14524_v33 = vld [vmem:[%s20491_s11 + $0x3e0] ss:$16 sps:$4 sm:$0xff]  }
0x2379   : > { %10252 = vmatprep.subr.bf16.mxu1 %v14448_v48  ;;  %10416 = vmatprep.subr.bf16.mxu0 %v14451_v18  ;;  %v14529_v48 = vld [vmem:[%s20491_s11 + $0x3ec] ss:$16 sps:$4 sm:$0xff]   ;;  %v14578_v32 = vld [vmem:[%s20491_s11 + $0x500] ss:$16 sps:$4 sm:$0xff]  }
0x237c   : > { %10253 = vmatpush1.bf16.msra.mxu1 %v14446_v21  ;;  %10417 = vmatpush1.bf16.msra.mxu0 %v14449_v23 }
0x237d   : > { %10254 = vmatprep.subr.bf16.mxu1 %v14454_v2  ;;  %10418 = vmatprep.subr.bf16.mxu0 %v14457_v15 }
0x2380   : > { %10255 = vmatpush1.bf16.msra.mxu1 %v14452_v36  ;;  %10419 = vmatpush1.bf16.msra.mxu0 %v14455_v44 }
0x2381   : > { %10256 = vmatprep.subr.bf16.mxu1 %v14460_v61  ;;  %10420 = vmatprep.subr.bf16.mxu0 %v14463_v52  ;;  %v14527_v61 = vld [vmem:[%s20491_s11 + $0x3e8] ss:$16 sps:$4 sm:$0xff]   ;;  %v14532_v52 = vld [vmem:[%s20491_s11 + $0x404] ss:$16 sps:$4 sm:$0xff]  }
0x2384   : > { %10257 = vmatpush1.bf16.msra.mxu1 %v14458_v12  ;;  %10421 = vmatpush1.bf16.msra.mxu0 %v14461_v57  ;;  %v8635_v12 = vmax.f32 %v8545_v56, 0.0  ;;  %v14592_v56 = vld [vmem:[%s20491_s11 + $0x544] ss:$16 sps:$4 sm:$0xff]  }
0x2385   : > { %10258 = vmatprep.subr.bf16.mxu1 %v14466_v17  ;;  %10422 = vmatprep.subr.bf16.mxu0 %v14469_v46  ;;  %v14535_v46 = vld [vmem:[%s20491_s11 + $0x40c] ss:$16 sps:$4 sm:$0xff]  }
0x2388   : > { %10259 = vmatpush1.bf16.msra.mxu1 %v14464_v14  ;;  %10423 = vmatpush1.bf16.msra.mxu0 %v14467_v25  ;;  %v14530_v25 = vld [vmem:[%s20491_s11 + $0x400] ss:$16 sps:$4 sm:$0xff]  }
0x2389   : > { %10260 = vmatprep.subr.bf16.mxu1 %v14472_v54  ;;  %10424 = vmatprep.subr.bf16.mxu0 %v14475_v10  ;;  %v8643_v54 = vpack.c.bf16 %v8635_v12, %v8635_v12  ;;  %v14533_v10 = vld [vmem:[%s20491_s11 + $0x408] ss:$16 sps:$4 sm:$0xff]   ;;  %v14602_v12 = vld [vmem:[%s20491_s11 + $0x580] ss:$16 sps:$4 sm:$0xff]  }
0x238c   : > { %10261 = vmatpush1.bf16.msra.mxu1 %v14470_v63  ;;  %10425 = vmatpush1.bf16.msra.mxu0 %v14473_v58  ;;  %v14538_v58 = vld [vmem:[%s20491_s11 + $0x424] ss:$16 sps:$4 sm:$0xff]  }
0x238d   : > { %10262 = vmatprep.subr.bf16.mxu1 %v14478_v39  ;;  %10426 = vmatprep.subr.bf16.mxu0 %v14481_v38  ;;  %v14541_v39 = vld [vmem:[%s20491_s11 + $0x42c] ss:$16 sps:$4 sm:$0xff]   ;;  %v14536_v38 = vld [vmem:[%s20491_s11 + $0x420] ss:$16 sps:$4 sm:$0xff]  }
0x2390   : > { %10263 = vmatpush1.bf16.msra.mxu1 %v14476_v45  ;;  %10427 = vmatpush1.bf16.msra.mxu0 %v14479_v19  ;;  %v14539_v45 = vld [vmem:[%s20491_s11 + $0x428] ss:$16 sps:$4 sm:$0xff]   ;;  %v14544_v19 = vld [vmem:[%s20491_s11 + $0x444] ss:$16 sps:$4 sm:$0xff]  }
0x2391   : > { %10264 = vmatprep.subr.bf16.mxu1 %v14484_v7  ;;  %10428 = vmatprep.subr.bf16.mxu0 %v14487_v0  ;;  %v14547_v7 = vld [vmem:[%s20491_s11 + $0x44c] ss:$16 sps:$4 sm:$0xff]   ;;  %v14542_v0 = vld [vmem:[%s20491_s11 + $0x440] ss:$16 sps:$4 sm:$0xff]  }
0x2394   : > { %10265 = vmatpush1.bf16.msra.mxu1 %v14482_v55  ;;  %10429 = vmatpush1.bf16.msra.mxu0 %v14485_v47  ;;  %v14545_v55 = vld [vmem:[%s20491_s11 + $0x448] ss:$16 sps:$4 sm:$0xff]   ;;  %v14550_v47 = vld [vmem:[%s20491_s11 + $0x464] ss:$16 sps:$4 sm:$0xff]  }
0x2395   : > { %10266 = vmatprep.subr.bf16.mxu1 %v14490_v40  ;;  %10430 = vmatprep.subr.bf16.mxu0 %v14493_v50  ;;  %v14553_v40 = vld [vmem:[%s20491_s11 + $0x46c] ss:$16 sps:$4 sm:$0xff]   ;;  %v14548_v50 = vld [vmem:[%s20491_s11 + $0x460] ss:$16 sps:$4 sm:$0xff]  }
0x2398   : > { %10267 = vmatpush1.bf16.msra.mxu1 %v14488_v20  ;;  %10431 = vmatpush1.bf16.msra.mxu0 %v14491_v51  ;;  %v14551_v20 = vld [vmem:[%s20491_s11 + $0x468] ss:$16 sps:$4 sm:$0xff]   ;;  %v14556_v51 = vld [vmem:[%s20491_s11 + $0x484] ss:$16 sps:$4 sm:$0xff]  }
0x2399   : > { %10268 = vmatprep.subr.bf16.mxu1 %v14496_v30  ;;  %10432 = vmatprep.subr.bf16.mxu0 %v14499_v5  ;;  %v14559_v30 = vld [vmem:[%s20491_s11 + $0x48c] ss:$16 sps:$4 sm:$0xff]   ;;  %v14554_v5 = vld [vmem:[%s20491_s11 + $0x480] ss:$16 sps:$4 sm:$0xff]  }
0x239c   : > { %10269 = vmatpush1.bf16.msra.mxu1 %v14494_v24  ;;  %10433 = vmatpush1.bf16.msra.mxu0 %v14497_v26  ;;  %v14557_v24 = vld [vmem:[%s20491_s11 + $0x488] ss:$16 sps:$4 sm:$0xff]   ;;  %v14562_v26 = vld [vmem:[%s20491_s11 + $0x4a4] ss:$16 sps:$4 sm:$0xff]  }
0x239d   : > { %10270 = vmatprep.subr.bf16.mxu1 %v14502_v16  ;;  %10434 = vmatprep.subr.bf16.mxu0 %v14505_v59  ;;  %v14565_v16 = vld [vmem:[%s20491_s11 + $0x4ac] ss:$16 sps:$4 sm:$0xff]   ;;  %v14560_v59 = vld [vmem:[%s20491_s11 + $0x4a0] ss:$16 sps:$4 sm:$0xff]  }
0x23a0   : > { %10271 = vmatpush1.bf16.msra.mxu1 %v14500_v60  ;;  %10435 = vmatpush1.bf16.msra.mxu0 %v14503_v11  ;;  %v14563_v60 = vld [vmem:[%s20491_s11 + $0x4a8] ss:$16 sps:$4 sm:$0xff]   ;;  %v14568_v11 = vld [vmem:[%s20491_s11 + $0x4c4] ss:$16 sps:$4 sm:$0xff]  }
0x23a1   : > { %10272 = vmatprep.subr.bf16.mxu1 %v14508_v22  ;;  %10436 = vmatprep.subr.bf16.mxu0 %v14511_v35  ;;  %v14571_v22 = vld [vmem:[%s20491_s11 + $0x4cc] ss:$16 sps:$4 sm:$0xff]   ;;  %v14566_v35 = vld [vmem:[%s20491_s11 + $0x4c0] ss:$16 sps:$4 sm:$0xff]  }
0x23a4   : > { %10273 = vmatpush1.bf16.msra.mxu1 %v14506_v53  ;;  %10437 = vmatpush1.bf16.msra.mxu0 %v14509_v29  ;;  %v14569_v53 = vld [vmem:[%s20491_s11 + $0x4c8] ss:$16 sps:$4 sm:$0xff]   ;;  %v14574_v29 = vld [vmem:[%s20491_s11 + $0x4e4] ss:$16 sps:$4 sm:$0xff]  }
0x23a5   : > { %10274 = vmatprep.subr.bf16.mxu1 %v14514_v4  ;;  %10438 = vmatprep.subr.bf16.mxu0 %v14517_v3  ;;  %v14577_v4 = vld [vmem:[%s20491_s11 + $0x4ec] ss:$16 sps:$4 sm:$0xff]   ;;  %v14572_v3 = vld [vmem:[%s20491_s11 + $0x4e0] ss:$16 sps:$4 sm:$0xff]  }
0x23a8   : > { %10275 = vmatpush1.bf16.msra.mxu1 %v14512_v28  ;;  %10439 = vmatpush1.bf16.msra.mxu0 %v14515_v13  ;;  %v14575_v28 = vld [vmem:[%s20491_s11 + $0x4e8] ss:$16 sps:$4 sm:$0xff]   ;;  %v14580_v13 = vld [vmem:[%s20491_s11 + $0x504] ss:$16 sps:$4 sm:$0xff]  }
0x23a9   : > { %10276 = vmatprep.subr.bf16.mxu1 %v14520_v1  ;;  %10440 = vmatprep.subr.bf16.mxu0 %v14523_v31  ;;  %v14581_v1 = vld [vmem:[%s20491_s11 + $0x508] ss:$16 sps:$4 sm:$0xff]   ;;  %v14586_v31 = vld [vmem:[%s20491_s11 + $0x524] ss:$16 sps:$4 sm:$0xff]  }
0x23aa   : > { %v19955_v18 = vpop.f32.mrb[132].mxu1  ;;  %v19957_v21 = vpop.f32.mrb[148].mxu0 }
0x23ab   : > { %v8587_v23 = vpop.f32.mrb[133].mxu1  ;;  %v19959_v2 = vpop.f32.mrb[149].mxu0 }
0x23ac   : > { %v8588_v15 = vadd.f32 %v8587_v23, %v7812_v8  ;;  %v8589_v36 = vpop.f32.mrb[134].mxu1  ;;  %v8630_v44 = vpop.f32.mrb[150].mxu0  ;;  %10277 = vmatpush1.bf16.msra.mxu1 %v14518_v9  ;;  %10441 = vmatpush1.bf16.msra.mxu0 %v14521_v27  ;;  %v14589_v8 = vld [vmem:[%s20491_s11 + $0x52c] ss:$16 sps:$4 sm:$0xff]   ;;  %v14584_v9 = vld [vmem:[%s20491_s11 + $0x520] ss:$16 sps:$4 sm:$0xff]  }
0x23ad   : > { %v8590_v57 = vpop.f32.mrb[135].mxu1  ;;  %v8631_v17 = vpop.f32.mrb[151].mxu0  ;;  %10278 = vmatprep.subr.bf16.mxu1 %v14526_v41  ;;  %10442 = vmatprep.subr.bf16.mxu0 %v14529_v48  ;;  %v14587_v27 = vld [vmem:[%s20491_s11 + $0x528] ss:$16 sps:$4 sm:$0xff]   ;;  %v14595_v41 = vld [vmem:[%s20491_s11 + $0x54c] ss:$16 sps:$4 sm:$0xff]  }
0x23ae   : > { %v8638_v14 = vmax.f32 %v8588_v15, 0.0  ;;  %v14590_v48 = vld [vmem:[%s20491_s11 + $0x540] ss:$16 sps:$4 sm:$0xff]   ;;  %v14593_v23 = vld [vmem:[%s20491_s11 + $0x548] ss:$16 sps:$4 sm:$0xff]   ;;  %v7807_v57 = vsub.s32 4, %v19747_v37 }
0x23af   : > { %v14601_v15 = vld [vmem:[%s20491_s11 + $0x56c] ss:$16 sps:$4 sm:$0xff]   ;;  %v14596_v36 = vld [vmem:[%s20491_s11 + $0x560] ss:$16 sps:$4 sm:$0xff]   ;;  %v14599_v44 = vld [vmem:[%s20491_s11 + $0x568] ss:$16 sps:$4 sm:$0xff]  }
0x23b0   : > { %10279 = vmatpush1.bf16.msra.mxu1 %v14524_v33  ;;  %10443 = vmatpush1.bf16.msra.mxu0 %v14527_v61  ;;  %v8646_v63 = vpack.c.bf16 %v8638_v14, %v8638_v14  ;;  %v14598_v33 = vld [vmem:[%s20491_s11 + $0x564] ss:$16 sps:$4 sm:$0xff]   ;;  %v14605_v17 = vld [vmem:[%s20491_s11 + $0x588] ss:$16 sps:$4 sm:$0xff]   ;;  %v14613_v14 = vld [vmem:[%s20491_s11 + $0x5ac] ss:$16 sps:$4 sm:$0xff]  }
0x23b1   : > { %10289 = vmatprep.subr.bf16.mxu1 %v14532_v52  ;;  %10453 = vmatprep.subr.bf16.mxu0 %v14535_v46  ;;  %v14604_v61 = vld [vmem:[%s20491_s11 + $0x584] ss:$16 sps:$4 sm:$0xff]   ;;  %v14607_v52 = vld [vmem:[%s20491_s11 + $0x58c] ss:$16 sps:$4 sm:$0xff]  }
0x23b2   : > { %v14610_v46 = vld [vmem:[%s20491_s11 + $0x5a4] ss:$16 sps:$4 sm:$0xff]  }
0x23b3   : > { %10281 = vmatmul.mubr.bf16.vlgmr.msra.gmra.mrb[136].mxu1 %v8643_v54  ;;  %10445 = vmatmul.mubr.bf16.vlgmr.msra.gmra.mrb[152].mxu0 %v8643_v54  ;;  %v14608_v54 = vld [vmem:[%s20491_s11 + $0x5a0] ss:$16 sps:$4 sm:$0xff]  }
0x23b4   : > { %10290 = vmatpush1.bf16.msra.mxu1 %v14530_v25  ;;  %10321 = vmatprep.mubr.bf16.mxu1 %v8646_v63  ;;  %v7819_v25 = vsub.s32 7, %v19747_v37 }
0x23b5   : > { %10454 = vmatpush1.bf16.msra.mxu0 %v14533_v10  ;;  %10485 = vmatprep.mubr.bf16.mxu0 %v8646_v63  ;;  %v7808_v10 = vrot.slane %v19753_v43, %v7807_v57  ;;  %v14611_v63 = vld [vmem:[%s20491_s11 + $0x5a8] ss:$16 sps:$4 sm:$0xff]   ;;  %v14674_v57 = vld [vmem:[%s20491_s11 + $0x700] ss:$16 sps:$4 sm:$0xff]  }
0x23b6   : > { %10291 = vmatprep.subr.bf16.mxu1 %v14538_v58  ;;  %10455 = vmatprep.subr.bf16.mxu0 %v14541_v39  ;;  %v14616_v58 = vld [vmem:[%s20491_s11 + $0x5c4] ss:$16 sps:$4 sm:$0xff]   ;;  %v14619_v39 = vld [vmem:[%s20491_s11 + $0x5cc] ss:$16 sps:$4 sm:$0xff]  }
0x23b8   : > { %10292 = vmatpush1.bf16.msra.mxu1 %v14536_v38  ;;  %v7820_v38 = vrot.slane %v19753_v43, %v7819_v25  ;;  %v14680_v25 = vld [vmem:[%s20491_s11 + $0x720] ss:$16 sps:$4 sm:$0xff]  }
0x23b9   : > { %10456 = vmatpush1.bf16.msra.mxu0 %v14539_v45  ;;  %10293 = vmatprep.subr.bf16.mxu1 %v14544_v19  ;;  %v14614_v45 = vld [vmem:[%s20491_s11 + $0x5c0] ss:$16 sps:$4 sm:$0xff]   ;;  %v8586_v19 = vadd.f32 %v19955_v18, %v7808_v10  ;;  %v14688_v10 = vld [vmem:[%s20491_s11 + $0x744] ss:$16 sps:$4 sm:$0xff]  }
0x23ba   : > { %10457 = vmatprep.subr.bf16.mxu0 %v14547_v7  ;;  %v14617_v7 = vld [vmem:[%s20491_s11 + $0x5c8] ss:$16 sps:$4 sm:$0xff]   ;;  %v14620_v18 = vld [vmem:[%s20491_s11 + $0x5e0] ss:$16 sps:$4 sm:$0xff]  }
0x23bc   : > { %10294 = vmatpush1.bf16.msra.mxu1 %v14542_v0  ;;  %v14622_v0 = vld [vmem:[%s20491_s11 + $0x5e4] ss:$16 sps:$4 sm:$0xff]  }
0x23bd   : > { %10458 = vmatpush1.bf16.msra.mxu0 %v14545_v55  ;;  %10295 = vmatprep.subr.bf16.mxu1 %v14550_v47  ;;  %v14625_v55 = vld [vmem:[%s20491_s11 + $0x5ec] ss:$16 sps:$4 sm:$0xff]   ;;  %v8629_v47 = vadd.f32 %v19959_v2, %v7820_v38  ;;  %v14694_v38 = vld [vmem:[%s20491_s11 + $0x764] ss:$16 sps:$4 sm:$0xff]  }
0x23be   : > { %10459 = vmatprep.subr.bf16.mxu0 %v14553_v40  ;;  %v8637_v40 = vmax.f32 %v8586_v19, 0.0  ;;  %v14631_v2 = vld [vmem:[%s20491_s11 + $0x60c] ss:$16 sps:$4 sm:$0xff]   ;;  %v14692_v19 = vld [vmem:[%s20491_s11 + $0x760] ss:$16 sps:$4 sm:$0xff]  }
0x23c0   : > { %10296 = vmatpush1.bf16.msra.mxu1 %v14548_v50  ;;  %v14623_v50 = vld [vmem:[%s20491_s11 + $0x5e8] ss:$16 sps:$4 sm:$0xff]  }
0x23c1   : > { %10460 = vmatpush1.bf16.msra.mxu0 %v14551_v20  ;;  %10297 = vmatprep.subr.bf16.mxu1 %v14556_v51  ;;  %v14628_v20 = vld [vmem:[%s20491_s11 + $0x604] ss:$16 sps:$4 sm:$0xff]   ;;  %v8640_v51 = vmax.f32 %v8629_v47, 0.0  ;;  %v14698_v47 = vld [vmem:[%s20491_s11 + $0x780] ss:$16 sps:$4 sm:$0xff]  }
0x23c2   : > { %10461 = vmatprep.subr.bf16.mxu0 %v14559_v30  ;;  %v14626_v30 = vld [vmem:[%s20491_s11 + $0x600] ss:$16 sps:$4 sm:$0xff]  }
0x23c4   : > { %10298 = vmatpush1.bf16.msra.mxu1 %v14554_v5  ;;  %v8645_v5 = vpack.c.bf16 %v8637_v40, %v8637_v40  ;;  %v14701_v40 = vld [vmem:[%s20491_s11 + $0x788] ss:$16 sps:$4 sm:$0xff]  }
0x23c5   : > { %10462 = vmatpush1.bf16.msra.mxu0 %v14557_v24  ;;  %10299 = vmatprep.subr.bf16.mxu1 %v14562_v26  ;;  %v14629_v24 = vld [vmem:[%s20491_s11 + $0x608] ss:$16 sps:$4 sm:$0xff]   ;;  %v14634_v26 = vld [vmem:[%s20491_s11 + $0x624] ss:$16 sps:$4 sm:$0xff]  }
0x23c6   : > { %10463 = vmatprep.subr.bf16.mxu0 %v14565_v16  ;;  %v8648_v16 = vpack.c.bf16 %v8640_v51, %v8640_v51 }
0x23c8   : > { %10300 = vmatpush1.bf16.msra.mxu1 %v14560_v59  ;;  %v14637_v59 = vld [vmem:[%s20491_s11 + $0x62c] ss:$16 sps:$4 sm:$0xff]  }
0x23c9   : > { %10464 = vmatpush1.bf16.msra.mxu0 %v14563_v60  ;;  %10301 = vmatprep.subr.bf16.mxu1 %v14568_v11  ;;  %v14632_v60 = vld [vmem:[%s20491_s11 + $0x620] ss:$16 sps:$4 sm:$0xff]   ;;  %v14635_v11 = vld [vmem:[%s20491_s11 + $0x628] ss:$16 sps:$4 sm:$0xff]  }
0x23ca   : > { %10465 = vmatprep.subr.bf16.mxu0 %v14571_v22  ;;  %v14640_v22 = vld [vmem:[%s20491_s11 + $0x644] ss:$16 sps:$4 sm:$0xff]  }
0x23cc   : > { %10302 = vmatpush1.bf16.msra.mxu1 %v14566_v35  ;;  %v14643_v35 = vld [vmem:[%s20491_s11 + $0x64c] ss:$16 sps:$4 sm:$0xff]  }
0x23cd   : > { %10466 = vmatpush1.bf16.msra.mxu0 %v14569_v53  ;;  %10303 = vmatprep.subr.bf16.mxu1 %v14574_v29  ;;  %v14638_v53 = vld [vmem:[%s20491_s11 + $0x640] ss:$16 sps:$4 sm:$0xff]   ;;  %v14641_v29 = vld [vmem:[%s20491_s11 + $0x648] ss:$16 sps:$4 sm:$0xff]  }
0x23ce   : > { %10467 = vmatprep.subr.bf16.mxu0 %v14577_v4  ;;  %v14646_v4 = vld [vmem:[%s20491_s11 + $0x664] ss:$16 sps:$4 sm:$0xff]  }
0x23d0   : > { %10304 = vmatpush1.bf16.msra.mxu1 %v14572_v3  ;;  %v14649_v3 = vld [vmem:[%s20491_s11 + $0x66c] ss:$16 sps:$4 sm:$0xff]  }
0x23d1   : > { %10468 = vmatpush1.bf16.msra.mxu0 %v14575_v28  ;;  %10305 = vmatprep.subr.bf16.mxu1 %v14580_v13  ;;  %v14644_v28 = vld [vmem:[%s20491_s11 + $0x660] ss:$16 sps:$4 sm:$0xff]   ;;  %v14647_v13 = vld [vmem:[%s20491_s11 + $0x668] ss:$16 sps:$4 sm:$0xff]  }
0x23d2   : > { %10469 = vmatprep.subr.bf16.mxu0 %v14583_v62  ;;  %v14652_v62 = vld [vmem:[%s20491_s11 + $0x684] ss:$16 sps:$4 sm:$0xff]  }
0x23d4   : > { %10306 = vmatpush1.bf16.msra.mxu1 %v14578_v32  ;;  %v14655_v32 = vld [vmem:[%s20491_s11 + $0x68c] ss:$16 sps:$4 sm:$0xff]  }
0x23d5   : > { %10470 = vmatpush1.bf16.msra.mxu0 %v14581_v1  ;;  %10307 = vmatprep.subr.bf16.mxu1 %v14586_v31  ;;  %v14650_v1 = vld [vmem:[%s20491_s11 + $0x680] ss:$16 sps:$4 sm:$0xff]   ;;  %v14653_v31 = vld [vmem:[%s20491_s11 + $0x688] ss:$16 sps:$4 sm:$0xff]  }
0x23d6   : > { %10471 = vmatprep.subr.bf16.mxu0 %v14589_v8  ;;  %v14658_v8 = vld [vmem:[%s20491_s11 + $0x6a4] ss:$16 sps:$4 sm:$0xff]  }
0x23d8   : > { %10308 = vmatpush1.bf16.msra.mxu1 %v14584_v9  ;;  %v14661_v9 = vld [vmem:[%s20491_s11 + $0x6ac] ss:$16 sps:$4 sm:$0xff]  }
0x23d9   : > { %10472 = vmatpush1.bf16.msra.mxu0 %v14587_v27  ;;  %10309 = vmatprep.subr.bf16.mxu1 %v14592_v56  ;;  %v14656_v27 = vld [vmem:[%s20491_s11 + $0x6a0] ss:$16 sps:$4 sm:$0xff]   ;;  %v14659_v56 = vld [vmem:[%s20491_s11 + $0x6a8] ss:$16 sps:$4 sm:$0xff]  }
0x23da   : > { %10473 = vmatprep.subr.bf16.mxu0 %v14595_v41  ;;  %v14664_v41 = vld [vmem:[%s20491_s11 + $0x6c4] ss:$16 sps:$4 sm:$0xff]  }
0x23dc   : > { %10310 = vmatpush1.bf16.msra.mxu1 %v14590_v48  ;;  %v14667_v48 = vld [vmem:[%s20491_s11 + $0x6cc] ss:$16 sps:$4 sm:$0xff]  }
0x23dd   : > { %10474 = vmatpush1.bf16.msra.mxu0 %v14593_v23  ;;  %10311 = vmatprep.subr.bf16.mxu1 %v14598_v33  ;;  %v14662_v23 = vld [vmem:[%s20491_s11 + $0x6c0] ss:$16 sps:$4 sm:$0xff]   ;;  %v14665_v33 = vld [vmem:[%s20491_s11 + $0x6c8] ss:$16 sps:$4 sm:$0xff]  }
0x23de   : > { %10475 = vmatprep.subr.bf16.mxu0 %v14601_v15  ;;  %v14670_v15 = vld [vmem:[%s20491_s11 + $0x6e4] ss:$16 sps:$4 sm:$0xff]  }
0x23e0   : > { %10312 = vmatpush1.bf16.msra.mxu1 %v14596_v36  ;;  %v14673_v36 = vld [vmem:[%s20491_s11 + $0x6ec] ss:$16 sps:$4 sm:$0xff]  }
0x23e1   : > { %10476 = vmatpush1.bf16.msra.mxu0 %v14599_v44  ;;  %10313 = vmatprep.subr.bf16.mxu1 %v14604_v61  ;;  %v14668_v44 = vld [vmem:[%s20491_s11 + $0x6e0] ss:$16 sps:$4 sm:$0xff]   ;;  %v14671_v61 = vld [vmem:[%s20491_s11 + $0x6e8] ss:$16 sps:$4 sm:$0xff]  }
0x23e2   : > { %10477 = vmatprep.subr.bf16.mxu0 %v14607_v52  ;;  %v14676_v52 = vld [vmem:[%s20491_s11 + $0x704] ss:$16 sps:$4 sm:$0xff]  }
0x23e4   : > { %10314 = vmatpush1.bf16.msra.mxu1 %v14602_v12  ;;  %v14679_v12 = vld [vmem:[%s20491_s11 + $0x70c] ss:$16 sps:$4 sm:$0xff]  }
0x23e5   : > { %10478 = vmatpush1.bf16.msra.mxu0 %v14605_v17  ;;  %10315 = vmatprep.subr.bf16.mxu1 %v14610_v46  ;;  %v14677_v17 = vld [vmem:[%s20491_s11 + $0x708] ss:$16 sps:$4 sm:$0xff]   ;;  %v14682_v46 = vld [vmem:[%s20491_s11 + $0x724] ss:$16 sps:$4 sm:$0xff]  }
0x23e6   : > { %10479 = vmatprep.subr.bf16.mxu0 %v14613_v14  ;;  %v14685_v14 = vld [vmem:[%s20491_s11 + $0x72c] ss:$16 sps:$4 sm:$0xff]  }
0x23e8   : > { %10316 = vmatpush1.bf16.msra.mxu1 %v14608_v54  ;;  %v14683_v54 = vld [vmem:[%s20491_s11 + $0x728] ss:$16 sps:$4 sm:$0xff]  }
0x23e9   : > { %10480 = vmatpush1.bf16.msra.mxu0 %v14611_v63  ;;  %10317 = vmatprep.subr.bf16.mxu1 %v14616_v58  ;;  %v14691_v63 = vld [vmem:[%s20491_s11 + $0x74c] ss:$16 sps:$4 sm:$0xff]   ;;  %v14686_v58 = vld [vmem:[%s20491_s11 + $0x740] ss:$16 sps:$4 sm:$0xff]  }
0x23ea   : > { %10481 = vmatprep.subr.bf16.mxu0 %v14619_v39  ;;  %v14689_v39 = vld [vmem:[%s20491_s11 + $0x748] ss:$16 sps:$4 sm:$0xff]  }
0x23ec   : > { %10318 = vmatpush1.bf16.msra.mxu1 %v14614_v45  ;;  %v14697_v45 = vld [vmem:[%s20491_s11 + $0x76c] ss:$16 sps:$4 sm:$0xff]  }
0x23ed   : > { %10482 = vmatpush1.bf16.msra.mxu0 %v14617_v7  ;;  %10319 = vmatprep.subr.bf16.mxu1 %v14622_v0  ;;  %v14695_v7 = vld [vmem:[%s20491_s11 + $0x768] ss:$16 sps:$4 sm:$0xff]   ;;  %v14700_v0 = vld [vmem:[%s20491_s11 + $0x784] ss:$16 sps:$4 sm:$0xff]  }
0x23ee   : > { %10483 = vmatprep.subr.bf16.mxu0 %v14625_v55  ;;  %v14703_v55 = vld [vmem:[%s20491_s11 + $0x78c] ss:$16 sps:$4 sm:$0xff]  }
0x23f0   : > { %10320 = vmatpush1.bf16.msra.mxu1 %v14620_v18  ;;  %v7815_v18 = vsub.s32 6, %v19747_v37 }
0x23f1   : > { %10484 = vmatpush1.bf16.msra.mxu0 %v14623_v50  ;;  %10330 = vmatprep.subr.bf16.mxu1 %v14628_v20  ;;  %v14706_v50 = vld [vmem:[%s20491_s11 + $0x7a4] ss:$16 sps:$4 sm:$0xff]   ;;  %v14709_v20 = vld [vmem:[%s20491_s11 + $0x7ac] ss:$16 sps:$4 sm:$0xff]  }
0x23f2   : > { %10494 = vmatprep.subr.bf16.mxu0 %v14631_v2  ;;  %v14704_v2 = vld [vmem:[%s20491_s11 + $0x7a0] ss:$16 sps:$4 sm:$0xff]   ;;  %v7816_v51 = vrot.slane %v19753_v43, %v7815_v18 }
0x23f3   : > { %10322 = vmatmul.mubr.bf16.vlgmr.msra.gmra.mrb[136].mxu1 %v8645_v5  ;;  %v14710_v43 = vld [vmem:[%s20491_s11 + $0x7c0] ss:$16 sps:$4 sm:$0xff]  }
0x23f4   : > { %10486 = vmatmul.mubr.bf16.vlgmr.msra.gmra.mrb[152].mxu0 %v8645_v5  ;;  %10331 = vmatpush1.bf16.msra.mxu1 %v14626_v30  ;;  %v14707_v30 = vld [vmem:[%s20491_s11 + $0x7a8] ss:$16 sps:$4 sm:$0xff]   ;;  %v14712_v5 = vld [vmem:[%s20491_s11 + $0x7c4] ss:$16 sps:$4 sm:$0xff]  }
0x23f5   : > { %10362 = vmatprep.mubr.bf16.mxu1 %v8648_v16  ;;  %10495 = vmatpush1.bf16.msra.mxu0 %v14629_v24  ;;  %v14715_v24 = vld [vmem:[%s20491_s11 + $0x7cc] ss:$16 sps:$4 sm:$0xff]  }
0x23f6   : > { %10526 = vmatprep.mubr.bf16.mxu0 %v8648_v16  ;;  %10332 = vmatprep.subr.bf16.mxu1 %v14634_v26  ;;  %v8627_v26 = vadd.f32 %v19957_v21, %v7816_v51  ;;  %v14713_v16 = vld [vmem:[%s20491_s11 + $0x7c8] ss:$16 sps:$4 sm:$0xff]   ;;  %v14716_v21 = vld [vmem:[%s20491_s11 + $0x7e0] ss:$16 sps:$4 sm:$0xff]  }
0x23f7   : > { %10496 = vmatprep.subr.bf16.mxu0 %v14637_v59  ;;  %v14718_v59 = vld [vmem:[%s20491_s11 + $0x7e4] ss:$16 sps:$4 sm:$0xff]  }
0x23f8   : > { %10333 = vmatpush1.bf16.msra.mxu1 %v14632_v60  ;;  %v14721_v60 = vld [vmem:[%s20491_s11 + $0x7ec] ss:$16 sps:$4 sm:$0xff]  }
0x23f9   : > { %10497 = vmatpush1.bf16.msra.mxu0 %v14635_v11  ;;  %10334 = vmatprep.subr.bf16.mxu1 %v14640_v22  ;;  %v8639_v11 = vmax.f32 %v8627_v26, 0.0  ;;  %v14719_v22 = vld [vmem:[%s20491_s11 + $0x7e8] ss:$16 sps:$4 sm:$0xff]  }
0x23fa   : > { %10498 = vmatprep.subr.bf16.mxu0 %v14643_v35  ;;  %v14722_v35 = vld [vmem:[%s20493_s13 + $0x40] sm:$0xff]  }
0x23fc   : > { %10335 = vmatpush1.bf16.msra.mxu1 %v14638_v53  ;;  %v14723_v53 = vld [vmem:[%s20493_s13 + $0xc0] sm:$0xff]  }
0x23fd   : > { %10499 = vmatpush1.bf16.msra.mxu0 %v14641_v29  ;;  %10336 = vmatprep.subr.bf16.mxu1 %v14646_v4  ;;  %v14724_v29 = vld [vmem:[%s20493_s13] sm:$0xff]   ;;  %v8647_v4 = vpack.c.bf16 %v8639_v11, %v8639_v11 }
0x23fe   : > { %10500 = vmatprep.subr.bf16.mxu0 %v14649_v3  ;;  %v14725_v3 = vld [vmem:[%s20493_s13 + $0x80] sm:$0xff]  }
0x2400   : > { %10337 = vmatpush1.bf16.msra.mxu1 %v14644_v28  ;;  %v14726_v28 = vld [vmem:[%s20493_s13 + $0x48] sm:$0xff]  }
0x2401   : > { %10501 = vmatpush1.bf16.msra.mxu0 %v14647_v13  ;;  %10338 = vmatprep.subr.bf16.mxu1 %v14652_v62  ;;  %v14727_v13 = vld [vmem:[%s20493_s13 + $0xc8] sm:$0xff]  }
0x2402   : > { %10502 = vmatprep.subr.bf16.mxu0 %v14655_v32  ;;  %v14728_v62 = vld [vmem:[%s20493_s13 + $0x8] sm:$0xff]  }
0x2403   : > { %v14729_v32 = vld [vmem:[%s20493_s13 + $0x88] sm:$0xff]  }
0x2404   : > { %10339 = vmatpush1.bf16.msra.mxu1 %v14650_v1  ;;  %v14730_v1 = vld [vmem:[%s20493_s13 + $0x50] sm:$0xff]  }
0x2405   : > { %10503 = vmatpush1.bf16.msra.mxu0 %v14653_v31  ;;  %10340 = vmatprep.subr.bf16.mxu1 %v14658_v8  ;;  %v14731_v31 = vld [vmem:[%s20493_s13 + $0xd0] sm:$0xff]  }
0x2406   : > { %10504 = vmatprep.subr.bf16.mxu0 %v14661_v9  ;;  %v14732_v8 = vld [vmem:[%s20493_s13 + $0x10] sm:$0xff]  }
0x2407   : > { %v14733_v9 = vld [vmem:[%s20493_s13 + $0x90] sm:$0xff]  }
0x2408   : > { %10341 = vmatpush1.bf16.msra.mxu1 %v14656_v27  ;;  %v14734_v27 = vld [vmem:[%s20493_s13 + $0x58] sm:$0xff]  }
0x2409   : > { %10505 = vmatpush1.bf16.msra.mxu0 %v14659_v56  ;;  %10342 = vmatprep.subr.bf16.mxu1 %v14664_v41  ;;  %v14735_v56 = vld [vmem:[%s20493_s13 + $0xd8] sm:$0xff]  }
0x240a   : > { %10506 = vmatprep.subr.bf16.mxu0 %v14667_v48  ;;  %v14736_v41 = vld [vmem:[%s20493_s13 + $0x18] sm:$0xff]  }
0x240b   : > { %v14737_v48 = vld [vmem:[%s20493_s13 + $0x98] sm:$0xff]  }
0x240c   : > { %10343 = vmatpush1.bf16.msra.mxu1 %v14662_v23  ;;  %v14738_v23 = vld [vmem:[%s20493_s13 + $0x60] sm:$0xff]  }
0x240d   : > { %10507 = vmatpush1.bf16.msra.mxu0 %v14665_v33  ;;  %10344 = vmatprep.subr.bf16.mxu1 %v14670_v15  ;;  %v14739_v33 = vld [vmem:[%s20493_s13 + $0xe0] sm:$0xff]  }
0x240e   : > { %10508 = vmatprep.subr.bf16.mxu0 %v14673_v36  ;;  %v14740_v15 = vld [vmem:[%s20493_s13 + $0x20] sm:$0xff]  }
0x240f   : > { %v14741_v36 = vld [vmem:[%s20493_s13 + $0xa0] sm:$0xff]  }
0x2410   : > { %10345 = vmatpush1.bf16.msra.mxu1 %v14668_v44  ;;  %v14742_v44 = vld [vmem:[%s20493_s13 + $0x68] sm:$0xff]  }
0x2411   : > { %10509 = vmatpush1.bf16.msra.mxu0 %v14671_v61  ;;  %10346 = vmatprep.subr.bf16.mxu1 %v14676_v52  ;;  %v14743_v61 = vld [vmem:[%s20493_s13 + $0xe8] sm:$0xff]  }
0x2412   : > { %10510 = vmatprep.subr.bf16.mxu0 %v14679_v12  ;;  %v14744_v52 = vld [vmem:[%s20493_s13 + $0x28] sm:$0xff]  }
0x2413   : > { %v14745_v12 = vld [vmem:[%s20493_s13 + $0xa8] sm:$0xff]  }
0x2414   : > { %10347 = vmatpush1.bf16.msra.mxu1 %v14674_v57  ;;  %v14746_v57 = vld [vmem:[%s20493_s13 + $0x70] sm:$0xff]  }
0x2415   : > { %10511 = vmatpush1.bf16.msra.mxu0 %v14677_v17  ;;  %10348 = vmatprep.subr.bf16.mxu1 %v14682_v46  ;;  %v14747_v17 = vld [vmem:[%s20493_s13 + $0xf0] sm:$0xff]  }
0x2416   : > { %10512 = vmatprep.subr.bf16.mxu0 %v14685_v14  ;;  %v14748_v46 = vld [vmem:[%s20493_s13 + $0x30] sm:$0xff]  }
0x2417   : > { %v14749_v14 = vld [vmem:[%s20493_s13 + $0xb0] sm:$0xff]  }
0x2418   : > { %10349 = vmatpush1.bf16.msra.mxu1 %v14680_v25  ;;  %v14750_v25 = vld [vmem:[%s20493_s13 + $0x78] sm:$0xff]  }
0x2419   : > { %10513 = vmatpush1.bf16.msra.mxu0 %v14683_v54  ;;  %10350 = vmatprep.subr.bf16.mxu1 %v14688_v10  ;;  %v14751_v54 = vld [vmem:[%s20493_s13 + $0xf8] sm:$0xff]  }
0x241a   : > { %10514 = vmatprep.subr.bf16.mxu0 %v14691_v63  ;;  %v14752_v10 = vld [vmem:[%s20493_s13 + $0x38] sm:$0xff]  }
0x241b   : > { %v14753_v63 = vld [vmem:[%s20493_s13 + $0xb8] sm:$0xff]  }
0x241c   : > { %10351 = vmatpush1.bf16.msra.mxu1 %v14686_v58  ;;  %v8905_v58 = vld [vmem:[%s20492_s12] sm:$0xf] }
0x241d   : > { %10515 = vmatpush1.bf16.msra.mxu0 %v14689_v39  ;;  %10352 = vmatprep.subr.bf16.mxu1 %v14694_v38  ;;  %v8910_v39 = vrot.slane %v8905_v58, %v7791_v49  ;;  %v8918_v38 = vrot.slane %v8905_v58, %v7799_v34 }
0x241e   : > { %10516 = vmatprep.subr.bf16.mxu0 %v14697_v45  ;;  %v8914_v45 = vrot.slane %v8905_v58, %v7795_v6 }
0x2420   : > { %10353 = vmatpush1.bf16.msra.mxu1 %v14692_v19  ;;  %v8922_v19 = vrot.slane %v8905_v58, %v7803_v42  ;;  %v11728_v42 = vld [vmem:[%s20494_s14] ss:$0 sm:$0xff] }
0x2421   : > { %10517 = vmatpush1.bf16.msra.mxu0 %v14695_v7  ;;  %10354 = vmatprep.subr.bf16.mxu1 %v14700_v0 }
0x2422   : > { %10518 = vmatprep.subr.bf16.mxu0 %v14703_v55 }
0x2424   : > { %10355 = vmatpush1.bf16.msra.mxu1 %v14698_v47 }
0x2425   : > { %10519 = vmatpush1.bf16.msra.mxu0 %v14701_v40  ;;  %10356 = vmatprep.subr.bf16.mxu1 %v14706_v50 }
0x2426   : > { %10520 = vmatprep.subr.bf16.mxu0 %v14709_v20 }
0x2428   : > { %10357 = vmatpush1.bf16.msra.mxu1 %v14704_v2 }
0x2429   : > { %10521 = vmatpush1.bf16.msra.mxu0 %v14707_v30  ;;  %10358 = vmatprep.subr.bf16.mxu1 %v14712_v5 }
0x242a   : > { %10522 = vmatprep.subr.bf16.mxu0 %v14715_v24 }
0x242c   : > { %10359 = vmatpush1.bf16.msra.mxu1 %v14710_v43 }
0x242d   : > { %10523 = vmatpush1.bf16.msra.mxu0 %v14713_v16  ;;  %10360 = vmatprep.subr.bf16.mxu1 %v14718_v59 }
0x242e   : > { %10524 = vmatprep.subr.bf16.mxu0 %v14721_v60 }
0x2430   : > { %10361 = vmatpush1.bf16.msra.mxu1 %v14716_v21 }
0x2431   : > { %10525 = vmatpush1.bf16.msra.mxu0 %v14719_v22  ;;  %12740 = vmatprep.subr.bf16.mxu1 %v14722_v35 }
0x2432   : > { %12762 = vmatprep.subr.bf16.mxu0 %v14723_v53 }
0x2433   : > { %10363 = vmatmul.mubr.bf16.vlgmr.msra.gmra.mrb[136].mxu1 %v8647_v4 }
0x2434   : > { %10527 = vmatmul.mubr.bf16.vlgmr.msra.gmra.mrb[152].mxu0 %v8647_v4  ;;  %12741 = vmatpush3.bf16.msra.mxu1 %v14724_v29 }
0x2435   : > { %12763 = vmatpush3.bf16.msra.mxu0 %v14725_v3  ;;  %12742 = vmatprep.subr.bf16.mxu1 %v14726_v28  ;;  %v15076_v3 = vmov 4  }
0x2436   : > { %12764 = vmatprep.subr.bf16.mxu0 %v14727_v13  ;;  %14075 = vset.pattern.permute.xlu1 %v15076_v3 }
0x2437   : > { %14076 = vset.pattern.permute.xlu0 %v15076_v3 }
0x2438   : > { %12743 = vmatpush3.bf16.msra.mxu1 %v14728_v62 }
0x2439   : > { %12765 = vmatpush3.bf16.msra.mxu0 %v14729_v32  ;;  %12744 = vmatprep.subr.bf16.mxu1 %v14730_v1 }
0x243a   : > { %12766 = vmatprep.subr.bf16.mxu0 %v14731_v31 }
0x243c   : > { %12745 = vmatpush3.bf16.msra.mxu1 %v14732_v8 }
0x243d   : > { %12767 = vmatpush3.bf16.msra.mxu0 %v14733_v9  ;;  %12746 = vmatprep.subr.bf16.mxu1 %v14734_v27 }
0x243e   : > { %12768 = vmatprep.subr.bf16.mxu0 %v14735_v56 }
0x2440   : > { %12747 = vmatpush3.bf16.msra.mxu1 %v14736_v41 }
0x2441   : > { %12769 = vmatpush3.bf16.msra.mxu0 %v14737_v48  ;;  %12748 = vmatprep.subr.bf16.mxu1 %v14738_v23 }
0x2442   : > { %12770 = vmatprep.subr.bf16.mxu0 %v14739_v33 }
0x2444   : > { %12749 = vmatpush3.bf16.msra.mxu1 %v14740_v15 }
0x2445   : > { %12771 = vmatpush3.bf16.msra.mxu0 %v14741_v36  ;;  %12750 = vmatprep.subr.bf16.mxu1 %v14742_v44 }
0x2446   : > { %12772 = vmatprep.subr.bf16.mxu0 %v14743_v61 }
0x2448   : > { %12751 = vmatpush3.bf16.msra.mxu1 %v14744_v52 }
0x2449   : > { %12773 = vmatpush3.bf16.msra.mxu0 %v14745_v12  ;;  %12752 = vmatprep.subr.bf16.mxu1 %v14746_v57 }
0x244a   : > { %12774 = vmatprep.subr.bf16.mxu0 %v14747_v17 }
0x244c   : > { %12753 = vmatpush3.bf16.msra.mxu1 %v14748_v46 }
0x244d   : > { %12775 = vmatpush3.bf16.msra.mxu0 %v14749_v14  ;;  %12754 = vmatprep.subr.bf16.mxu1 %v14750_v25 }
0x244e   : > { %12776 = vmatprep.subr.bf16.mxu0 %v14751_v54 }
0x2450   : > { %12755 = vmatpush3.bf16.msra.mxu1 %v14752_v10 }
0x2451   : > { %12777 = vmatpush3.bf16.msra.mxu0 %v14753_v63 }
0x2506   : > { %v10364_v7 = vpop.f32.mrb[136].mxu1 }
0x2507   : > { %v13424_v0 = vadd.f32 %v10364_v7, %v8910_v39  ;;  %v10528_v55 = vpop.f32.mrb[152].mxu0  ;;  %v10366_v47 = vpop.f32.mrb[137].mxu1 }
0x2508   : > { %v13426_v18 = vadd.f32 %v10528_v55, %v8918_v38  ;;  %v13425_v40 = vadd.f32 %v10366_v47, %v8914_v45  ;;  %v10530_v50 = vpop.f32.mrb[153].mxu0  ;;  %v10368_v20 = vpop.f32.mrb[138].mxu1 }
0x2509   : > { %v13427_v2 = vadd.f32 %v10530_v50, %v8922_v19  ;;  %v10532_v51 = vpop.f32.mrb[154].mxu0  ;;  %v10369_v49 = vpop.f32.mrb[139].mxu1  ;;  %v10535_v34 = vpack.c.bf16 %v13424_v0, %v13424_v0 }
0x250a   : > { %v10536_v30 = vpack.c.bf16 %v13425_v40, %v13425_v40  ;;  %v10533_v5 = vpop.f32.mrb[155].mxu0  ;;  %v10537_v43 = vpack.c.bf16 %v13426_v18, %v13426_v18 }
0x250b   : > { %v10538_v24 = vpack.c.bf16 %v13427_v2, %v13427_v2 }
0x250c   : > { %10834 = vmatprep.mubr.bf16.mxu1 %v10536_v30 }
0x250d   : > { %10874 = vmatprep.mubr.bf16.mxu0 %v10538_v24  ;;  %10835 = vmatmul.mubr.bf16.vlgmr.msra.gmra.mrb[140].mxu1 %v10535_v34 }
0x250e   : > { %10875 = vmatmul.mubr.bf16.vlgmr.msra.gmra.mrb[156].mxu0 %v10537_v43 }
0x25e0   : > { %v12756_v37 = vpop.f32.mrb[140].mxu1 }
0x25e1   : > { %v12778_v6 = vpop.f32.mrb[156].mxu0  ;;  %v12757_v26 = vpop.f32.mrb[141].mxu1 }
0x25e2   : > { %v12758_v16 = vadd.f32 %v12757_v26, %v12756_v37  ;;  %v12779_v59 = vpop.f32.mrb[157].mxu0  ;;  %v12759_v60 = vpop.f32.mrb[142].mxu1 }
0x25e3   : > { %v12780_v21 = vadd.f32 %v12779_v59, %v12778_v6  ;;  %v12781_v11 = vpop.f32.mrb[158].mxu0  ;;  %v12760_v22 = vpop.f32.mrb[143].mxu1 }
0x25e4   : > { %v10837_v35 = vadd.f32 %v12758_v16, %v11728_v42  ;;  %v12782_v53 = vpop.f32.mrb[159].mxu0 }
0x25e6   : > { %v10877_v29 = vadd.f32 %v12780_v21, %v10837_v35 }
0x25e8   : > { %v10883_v4 = vsel %vm10882_vm13, %v10877_v29, 0.0 }
0x25e9   : > { %10884 = vadd.xlane.f32.xlu0 %v10883_v4 }
0x2676   : > { %v10885_v28 = vpop.xlane.xlu0 %10884 }
0x2677   : > { %v10886_v13 = vmul.f32 0.25, %v10885_v28 }
0x2679   : > { %v10887_v62 = vsub.f32 %v10877_v29, %v10886_v13 }
0x267b   : > { %10890 = vperm.xlu1 %14075, %v10887_v62  }
0x26fa   : > { %v10891_v32 = vpop.permute.xlu1 %10890 }
0x26fb   : > { %v10893_v1 = vadd.f32 %v10891_v32, %v10877_v29 }
0x26fd   : > { %10894 = vst.msk [vmem:[%s497_s27] sm:$0xff] %vm10882_vm13, %v10893_v1 }
0x26fe PF: > { %s25_s18 = sadd.s32 1, %s15068_s18  }
0x26ff   : > { %p22_p5 = scmp.ge.s32.totalorder %s25_s18, 4  }
0x2701   :  { %24 = sbr.rel (!%p22_p5) target bundleno = 1 (0x1), region = 110 }

</bundles_post_ra>
